<compile_context>
chip_gen: v6e
topology: v6e:2x2x1
jax: 0.10.0
libtpu: 0.0.40
codegen_flags: <defaults>
</compile_context>

<pallas_src>
import functools

import jax
import jax.numpy as jnp
from jax import lax
from jax.experimental import pallas as pl
from jax.experimental.pallas import tpu as pltpu


# -----------------------------------------------------------------------------
# tiling helpers
# -----------------------------------------------------------------------------

def _round_up(x, m):
    return (x + m - 1) // m * m


def _tile_m(M):
    # second-to-last dim of the A / output blocks: multiple of 8 is enough.
    return min(128, _round_up(M, 8))


def _tile_k(K):
    # bigger K tiles for the deep 1x1 convs (K = 512/1024/2048/4608, ...)
    for t in (512, 256):
        if K % t == 0:
            return t
    return 128


def _tile_n(N):
    # 256-wide output tiles feed the 256x256 MXU on v6e/v7x; harmless on v5e.
    return 256 if (N >= 256 and N % 256 == 0) else 128


# -----------------------------------------------------------------------------
# Pallas kernels
# -----------------------------------------------------------------------------

def _fused_matmul_kernel(a_ref, b_ref, bias_ref, *rest, relu, has_residual):
    """Tiled MXU matmul with fused bias / residual-add / ReLU epilogue.

    a: (tm, tk) bf16, b: (tk, tn) bf16, bias: (1, tn) f32,
    [res: (tm, tn) f32], out: (tm, tn) f32, acc scratch: (tm, tn) f32.
    Grid = (M/tm, N/tn, K/tk); k is the last ("arbitrary") axis and the output
    block is resident across it (accumulator pattern).
    """
    if has_residual:
        res_ref, o_ref, acc_ref = rest
    else:
        o_ref, acc_ref = rest

    @pl.when(pl.program_id(2) == 0)
    def _():
        acc_ref[...] = jnp.zeros_like(acc_ref)

    acc_ref[...] += jnp.dot(a_ref[...], b_ref[...],
                            preferred_element_type=jnp.float32)

    @pl.when(pl.program_id(2) == pl.num_programs(2) - 1)
    def _():
        y = acc_ref[...] + bias_ref[...]
        if has_residual:
            y = y + res_ref[...]
        if relu:
            y = jnp.maximum(y, 0.0)
        o_ref[...] = y.astype(o_ref.dtype)


def fused_matmul(a, w_pad, b_pad, n_out, relu, residual=None):
    """y = relu?(a @ W + bias [+ residual]).

    a:        (M, K) f32 activations (cast to bf16 here).
    w_pad:    (Kp, Np) bf16 weight, pre-padded once at prep time.
    b_pad:    (1, Np) f32 bias (BN shift folded in), pre-padded.
    residual: optional (M, n_out) f32, added in the epilogue.
    Returns (M, n_out) f32.
    """
    M, K = a.shape
    Kp, Np = w_pad.shape
    tm = _tile_m(M)
    tk = _tile_k(K)
    tn = _tile_n(n_out)
    Mp = _round_up(M, tm)
    assert Kp == _round_up(K, tk) and Np == _round_up(n_out, tn), (
        "weight padding does not match the tiling rules")

    a_p = a.astype(jnp.bfloat16)
    if (Mp, Kp) != (M, K):
        a_p = jnp.pad(a_p, ((0, Mp - M), (0, Kp - K)))

    in_specs = [pl.BlockSpec((tm, tk), lambda i, j, k: (i, k)),
                pl.BlockSpec((tk, tn), lambda i, j, k: (k, j)),
                pl.BlockSpec((1, tn), lambda i, j, k: (0, j))]
    inputs = [a_p, w_pad, b_pad]

    has_residual = residual is not None
    if has_residual:
        r = residual.astype(jnp.float32)
        if r.shape != (Mp, Np):
            r = jnp.pad(r, ((0, Mp - r.shape[0]), (0, Np - r.shape[1])))
        in_specs.append(pl.BlockSpec((tm, tn), lambda i, j, k: (i, j)))
        inputs.append(r)

    out = pl.pallas_call(
        functools.partial(_fused_matmul_kernel, relu=relu,
                          has_residual=has_residual),
        out_shape=jax.ShapeDtypeStruct((Mp, Np), jnp.float32),
        grid_spec=pltpu.PrefetchScalarGridSpec(
            num_scalar_prefetch=0,
            grid=(Mp // tm, Np // tn, Kp // tk),
            in_specs=in_specs,
            out_specs=pl.BlockSpec((tm, tn), lambda i, j, k: (i, j)),
            scratch_shapes=[pltpu.VMEM((tm, tn), jnp.float32)]),
        compiler_params=pltpu.CompilerParams(
            dimension_semantics=("parallel", "parallel", "arbitrary")),
    )(*inputs)
    return out[:M, :n_out]


def _avgpool_kernel(x_ref, o_ref, *, inv_hw):
    # x: (B, H*W, C) -> o: (B, C). Single reduction op instead of an add chain.
    o_ref[...] = jnp.sum(x_ref[...], axis=1) * inv_hw


# -----------------------------------------------------------------------------
# conv / pool glue
# -----------------------------------------------------------------------------

def _im2col(x, kh, kw, stride, pad):
    """x: (B, H, W, C) NHWC -> ((B*Ho*Wo, kh*kw*C), (B, Ho, Wo))."""
    B, H, W, C = x.shape
    if pad:
        x = jnp.pad(x, ((0, 0), (pad, pad), (pad, pad), (0, 0)))
    Ho = (H + 2 * pad - kh) // stride + 1
    Wo = (W + 2 * pad - kw) // stride + 1
    if kh == 1 and kw == 1:
        v = x if stride == 1 else x[:, :stride * Ho:stride, :stride * Wo:stride, :]
        return v.reshape(B * Ho * Wo, C), (B, Ho, Wo)
    cols = []
    for dy in range(kh):
        for dx in range(kw):
            cols.append(x[:, dy:dy + stride * Ho:stride,
                          dx:dx + stride * Wo:stride, :])
    patches = jnp.stack(cols, axis=3)                    # (B, Ho, Wo, kh*kw, C)
    return patches.reshape(B * Ho * Wo, kh * kw * C), (B, Ho, Wo)


def conv_bn(x, cp, kh, kw, cin, cout, stride, pad, relu, residual=None):
    """Conv with BN folded into the (pre-padded, bf16) weights; bias/ReLU/
    residual handled in the matmul epilogue."""
    # TODO(synk): at real mammography resolutions, replace the materialized
    # im2col for 3x3 convs with an in-grid tap accumulation (extra grid axis
    # over the 9 taps); at 32x32 the im2col traffic is negligible.
    cols, (B, Ho, Wo) = _im2col(x, kh, kw, stride, pad)
    out = fused_matmul(cols, cp["w"], cp["b"], cout, relu=relu,
                       residual=residual)
    return out.reshape(B, Ho, Wo, cout)


def maxpool_3x3_s2(x):
    # Stem 3x3/2 maxpool (pad=1). Per review: not hot -> lax.reduce_window,
    # which avoids materializing 9 shifted copies of the activation in HBM.
    return lax.reduce_window(
        x, -jnp.inf, lax.max,
        window_dimensions=(1, 3, 3, 1),
        window_strides=(1, 2, 2, 1),
        padding=((0, 0), (1, 1), (1, 1), (0, 0)))


# -----------------------------------------------------------------------------
# ResNet-50 parameters
# -----------------------------------------------------------------------------

LAYER_CFG = ((64, 3, 1), (128, 4, 2), (256, 6, 2), (512, 3, 2))
EXPANSION = 4


class _KeyGen:
    def __init__(self, seed):
        self._key = jax.random.PRNGKey(seed)
        self._n = 0

    def __call__(self):
        self._n += 1
        return jax.random.fold_in(self._key, self._n)


def _make_conv(kh, kw, cin, cout, kg):
    fan_in = kh * kw * cin
    return (jax.random.normal(kg(), (kh, kw, cin, cout), jnp.float32)
            * (2.0 / fan_in) ** 0.5)


def _make_bn(c, kg):
    return {
        "gamma": 1.0 + 0.1 * jax.random.normal(kg(), (c,), jnp.float32),
        "beta": 0.1 * jax.random.normal(kg(), (c,), jnp.float32),
        "mean": jnp.zeros((c,), jnp.float32),
        "var": jnp.ones((c,), jnp.float32),
    }


def init_resnet50_params(num_classes=4, seed=0):
    kg = _KeyGen(seed)
    params = {"conv1": _make_conv(7, 7, 3, 64, kg), "bn1": _make_bn(64, kg),
              "layers": []}
    inplanes = 64
    for planes, blocks, stride in LAYER_CFG:
        layer = []
        for b in range(blocks):
            s = stride if b == 0 else 1
            blk = {
                "conv1": _make_conv(1, 1, inplanes, planes, kg),
                "bn1": _make_bn(planes, kg),
                "conv2": _make_conv(3, 3, planes, planes, kg),
                "bn2": _make_bn(planes, kg),
                "conv3": _make_conv(1, 1, planes, planes * EXPANSION, kg),
                "bn3": _make_bn(planes * EXPANSION, kg),
            }
            if s != 1 or inplanes != planes * EXPANSION:
                blk["down_conv"] = _make_conv(1, 1, inplanes,
                                              planes * EXPANSION, kg)
                blk["down_bn"] = _make_bn(planes * EXPANSION, kg)
            layer.append(blk)
            inplanes = planes * EXPANSION
        params["layers"].append(layer)
    params["fc_w"] = (jax.random.normal(kg(), (512 * EXPANSION, num_classes),
                                        jnp.float32)
                      / jnp.sqrt(512.0 * EXPANSION))
    params["fc_b"] = jnp.zeros((num_classes,), jnp.float32)
    return params


def _pack_weight(w2d, bias):
    """Pad a (K, N) weight + (N,) bias ONCE to the kernel's tile multiples;
    weight goes to bf16 (MXU operand), bias stays f32 (epilogue)."""
    K, N = w2d.shape
    Kp, Np = _round_up(K, _tile_k(K)), _round_up(N, _tile_n(N))
    w_pad = jnp.pad(w2d, ((0, Kp - K), (0, Np - N))).astype(jnp.bfloat16)
    b_pad = jnp.pad(bias.reshape(1, N),
                    ((0, 0), (0, Np - N))).astype(jnp.float32)
    return {"w": w_pad, "b": b_pad}


def _fuse_conv_bn(w, bn, eps=1e-5):
    """Fold inference BN (running stats) into the conv: w' = w*scale, b = shift."""
    scale = bn["gamma"] * lax.rsqrt(bn["var"] + eps)
    shift = bn["beta"] - bn["mean"] * scale
    kh, kw, cin, cout = w.shape
    w2d = (w * scale).reshape(kh * kw * cin, cout)
    return _pack_weight(w2d, shift)


def prepare_params(raw):
    """One-time host-side prep: BN folding, bf16 cast, tile padding."""
    fused = {"conv1": _fuse_conv_bn(raw["conv1"], raw["bn1"]), "layers": []}
    for layer in raw["layers"]:
        fl = []
        for blk in layer:
            fb = {"conv1": _fuse_conv_bn(blk["conv1"], blk["bn1"]),
                  "conv2": _fuse_conv_bn(blk["conv2"], blk["bn2"]),
                  "conv3": _fuse_conv_bn(blk["conv3"], blk["bn3"])}
            if "down_conv" in blk:
                fb["down"] = _fuse_conv_bn(blk["down_conv"], blk["down_bn"])
            fl.append(fb)
        fused["layers"].append(fl)
    fused["fc"] = _pack_weight(raw["fc_w"], raw["fc_b"])
    return fused


# -----------------------------------------------------------------------------
# forward pass
# -----------------------------------------------------------------------------

def mammography_forward(fused, x_nchw, num_classes=4):
    # layout: input NCHW (PyTorch); converted to NHWC for TPU-friendly compute.
    x = jnp.transpose(x_nchw, (0, 2, 3, 1)).astype(jnp.float32)

    # stem: 7x7/2 conv + BN + ReLU (BN folded, ReLU in matmul epilogue)
    x = conv_bn(x, fused["conv1"], 7, 7, 3, 64, stride=2, pad=3, relu=True)
    x = maxpool_3x3_s2(x)

    inplanes = 64
    for (planes, blocks, stride), layer_params in zip(LAYER_CFG,
                                                      fused["layers"]):
        for b, blk in enumerate(layer_params):
            s = stride if b == 0 else 1
            cout = planes * EXPANSION
            # identity / downsample path first (conv3's epilogue consumes it)
            if "down" in blk:
                identity = conv_bn(x, blk["down"], 1, 1, inplanes, cout,
                                   stride=s, pad=0, relu=False)
            else:
                identity = x
            out = conv_bn(x, blk["conv1"], 1, 1, inplanes, planes,
                          stride=1, pad=0, relu=True)
            out = conv_bn(out, blk["conv2"], 3, 3, planes, planes,
                          stride=s, pad=1, relu=True)
            B, Ho, Wo, _ = out.shape
            res2d = identity.reshape(B * Ho * Wo, cout)
            # conv3 + BN + residual-add + ReLU, all in one fused matmul
            x = conv_bn(out, blk["conv3"], 1, 1, planes, cout,
                        stride=1, pad=0, relu=True, residual=res2d)
            inplanes = cout

    # adaptive average pool to (1,1)
    B, H, W, C = x.shape
    feat = pl.pallas_call(
        functools.partial(_avgpool_kernel, inv_hw=1.0 / float(H * W)),
        out_shape=jax.ShapeDtypeStruct((B, C), jnp.float32),
    )(x.reshape(B, H * W, C))

    # final fc: 2048 -> num_classes, bias fused into the matmul epilogue
    logits = fused_matmul(feat, fused["fc"]["w"], fused["fc"]["b"],
                          num_classes, relu=False)
    return logits


# -----------------------------------------------------------------------------
# Demo
# -----------------------------------------------------------------------------

if __name__ == "__main__":
    key = jax.random.PRNGKey(0)
    # Small input consistent with the module: batch=2, 3-channel 32x32 images.
    x = jax.random.normal(key, (2, 3, 32, 32), jnp.float32)

    raw_params = init_resnet50_params(num_classes=4, seed=0)
    fused_params = prepare_params(raw_params)   # one-time BN-fold / pad / bf16

    fwd = jax.jit(mammography_forward)
    logits = fwd(fused_params, x)
    logits = jax.block_until_ready(logits)

    assert logits.shape == (2, 4), logits.shape
    assert logits.dtype == jnp.float32
    assert bool(jnp.all(jnp.isfinite(logits)))
    print("KERNEL_OK")
</pallas_src>

<mosaic_0001>
module attributes {stable_mosaic.version = 11 : i64} {
  func.func @_fused_matmul_kernel(%arg0: i32, %arg1: i32, %arg2: i32, %arg3: memref<128x128xbf16, #tpu.memory_space<vmem>>, %arg4: memref<128x128xbf16, #tpu.memory_space<vmem>>, %arg5: memref<1x128xf32, #tpu.memory_space<vmem>>, %arg6: memref<128x128xf32, #tpu.memory_space<vmem>>, %arg7: memref<128x128xf32, #tpu.memory_space<vmem>>) attributes {dimension_semantics = [#tpu.dimension_semantics<parallel>, #tpu.dimension_semantics<parallel>, #tpu.dimension_semantics<arbitrary>], iteration_bounds = array<i64: 4, 1, 2>, scalar_prefetch = 0 : i64, scratch_operands = 1 : i64, tpu.core_type = #tpu.core_type<tc>, window_params = [{transform_indices = @transform_0, window_bounds = array<i64: 128, 128>}, {transform_indices = @transform_1, window_bounds = array<i64: 128, 128>}, {transform_indices = @transform_2, window_bounds = array<i64: 1, 128>}, {transform_indices = @transform_3, window_bounds = array<i64: 128, 128>}]} {
    %c0_i32 = arith.constant 0 : i32
    %0 = arith.cmpi eq, %arg2, %c0_i32 : i32
    %1 = arith.extui %0 : i1 to i32
    %c0_i32_0 = arith.constant 0 : i32
    %2 = arith.cmpi ne, %1, %c0_i32_0 : i32
    scf.if %2 {
      %cst_9 = arith.constant 0.000000e+00 : f32
      %12 = vector.broadcast %cst_9 : f32 to vector<128x128xf32>
      %c0_10 = arith.constant 0 : index
      %c0_11 = arith.constant 0 : index
      %13 = vector.load %arg7[%c0_10, %c0_11] : memref<128x128xf32, #tpu.memory_space<vmem>>, vector<128x128xf32>
      tpu.vector_store %arg7[%c0_10, %c0_11], %12 {strides = array<i32>} : memref<128x128xf32, #tpu.memory_space<vmem>>, vector<128x128xf32>,
    } else {
    }
    %c0 = arith.constant 0 : index
    %c0_1 = arith.constant 0 : index
    %3 = vector.load %arg7[%c0, %c0_1] : memref<128x128xf32, #tpu.memory_space<vmem>>, vector<128x128xf32>
    %c0_2 = arith.constant 0 : index
    %c0_3 = arith.constant 0 : index
    %4 = vector.load %arg3[%c0_2, %c0_3] : memref<128x128xbf16, #tpu.memory_space<vmem>>, vector<128x128xbf16>
    %c0_4 = arith.constant 0 : index
    %c0_5 = arith.constant 0 : index
    %5 = vector.load %arg4[%c0_4, %c0_5] : memref<128x128xbf16, #tpu.memory_space<vmem>>, vector<128x128xbf16>
    %cst = arith.constant dense<0.000000e+00> : vector<128x128xf32>
    %6 = tpu.matmul %4, %5, %cst {dimension_numbers = #tpu.dot_dimension_numbers<[1], [0], [0], [1], [0, 0, 1, 1], [], []>} : vector<128x128xbf16>, vector<128x128xbf16>, vector<128x128xf32> -> vector<128x128xf32>
    %7 = arith.addf %3, %6 : vector<128x128xf32>
    %c0_6 = arith.constant 0 : index
    %c0_7 = arith.constant 0 : index
    %8 = vector.load %arg7[%c0_6, %c0_7] : memref<128x128xf32, #tpu.memory_space<vmem>>, vector<128x128xf32>
    tpu.vector_store %arg7[%c0_6, %c0_7], %7 {strides = array<i32>} : memref<128x128xf32, #tpu.memory_space<vmem>>, vector<128x128xf32>,
    %c1_i32 = arith.constant 1 : i32
    %9 = arith.cmpi eq, %arg2, %c1_i32 : i32
    %10 = arith.extui %9 : i1 to i32
    %c0_i32_8 = arith.constant 0 : i32
    %11 = arith.cmpi ne, %10, %c0_i32_8 : i32
    scf.if %11 {
      %c0_9 = arith.constant 0 : index
      %c0_10 = arith.constant 0 : index
      %12 = vector.load %arg7[%c0_9, %c0_10] : memref<128x128xf32, #tpu.memory_space<vmem>>, vector<128x128xf32>
      %c0_11 = arith.constant 0 : index
      %c0_12 = arith.constant 0 : index
      %13 = vector.load %arg5[%c0_11, %c0_12] : memref<1x128xf32, #tpu.memory_space<vmem>>, vector<1x128xf32>
      %14 = vector.broadcast %13 : vector<1x128xf32> to vector<128x128xf32>
      %15 = arith.addf %12, %14 : vector<128x128xf32>
      %cst_13 = arith.constant 0.000000e+00 : f32
      %16 = vector.broadcast %cst_13 : f32 to vector<128x128xf32>
      %17 = arith.maximumf %15, %16 : vector<128x128xf32>
      %c0_14 = arith.constant 0 : index
      %c0_15 = arith.constant 0 : index
      %18 = vector.load %arg6[%c0_14, %c0_15] : memref<128x128xf32, #tpu.memory_space<vmem>>, vector<128x128xf32>
      tpu.vector_store %arg6[%c0_14, %c0_15], %17 {strides = array<i32>} : memref<128x128xf32, #tpu.memory_space<vmem>>, vector<128x128xf32>,
    } else {
    }
    return
  }
  func.func @transform_0(%arg0: i32, %arg1: i32, %arg2: i32) -> (i32, i32) {
    %c0_i32 = arith.constant 0 : i32
    return %arg0, %arg2 : i32, i32
  }
  func.func @transform_1(%arg0: i32, %arg1: i32, %arg2: i32) -> (i32, i32) {
    %c0_i32 = arith.constant 0 : i32
    return %arg2, %arg1 : i32, i32
  }
  func.func @transform_2(%arg0: i32, %arg1: i32, %arg2: i32) -> (i32, i32) {
    %c0_i32 = arith.constant 0 : i32
    %c0_i32_0 = arith.constant 0 : i32
    return %c0_i32, %arg1 : i32, i32
  }
  func.func @transform_3(%arg0: i32, %arg1: i32, %arg2: i32) -> (i32, i32) {
    %c0_i32 = arith.constant 0 : i32
    return %arg0, %arg1 : i32, i32
  }
}

module attributes {stable_mosaic.version = 11 : i64} {
  func.func @_fused_matmul_kernel(%arg0: i32, %arg1: i32, %arg2: i32, %arg3: memref<128x128xbf16, #tpu.memory_space<vmem>>, %arg4: memref<128x128xbf16, #tpu.memory_space<vmem>>, %arg5: memref<1x128xf32, #tpu.memory_space<vmem>>, %arg6: memref<128x128xf32, #tpu.memory_space<vmem>>, %arg7: memref<128x128xf32, #tpu.memory_space<vmem>>) attributes {dimension_semantics = [#tpu.dimension_semantics<parallel>, #tpu.dimension_semantics<parallel>, #tpu.dimension_semantics<arbitrary>], iteration_bounds = array<i64: 1, 1, 1>, scalar_prefetch = 0 : i64, scratch_operands = 1 : i64, tpu.core_type = #tpu.core_type<tc>, window_params = [{transform_indices = @transform_0, window_bounds = array<i64: 128, 128>}, {transform_indices = @transform_1, window_bounds = array<i64: 128, 128>}, {transform_indices = @transform_2, window_bounds = array<i64: 1, 128>}, {transform_indices = @transform_3, window_bounds = array<i64: 128, 128>}]} {
    %c0_i32 = arith.constant 0 : i32
    %0 = arith.cmpi eq, %arg2, %c0_i32 : i32
    %1 = arith.extui %0 : i1 to i32
    %c0_i32_0 = arith.constant 0 : i32
    %2 = arith.cmpi ne, %1, %c0_i32_0 : i32
    scf.if %2 {
      %cst_10 = arith.constant 0.000000e+00 : f32
      %12 = vector.broadcast %cst_10 : f32 to vector<128x128xf32>
      %c0_11 = arith.constant 0 : index
      %c0_12 = arith.constant 0 : index
      %13 = vector.load %arg7[%c0_11, %c0_12] : memref<128x128xf32, #tpu.memory_space<vmem>>, vector<128x128xf32>
      tpu.vector_store %arg7[%c0_11, %c0_12], %12 {strides = array<i32>} : memref<128x128xf32, #tpu.memory_space<vmem>>, vector<128x128xf32>,
    } else {
    }
    %c0 = arith.constant 0 : index
    %c0_1 = arith.constant 0 : index
    %3 = vector.load %arg7[%c0, %c0_1] : memref<128x128xf32, #tpu.memory_space<vmem>>, vector<128x128xf32>
    %c0_2 = arith.constant 0 : index
    %c0_3 = arith.constant 0 : index
    %4 = vector.load %arg3[%c0_2, %c0_3] : memref<128x128xbf16, #tpu.memory_space<vmem>>, vector<128x128xbf16>
    %c0_4 = arith.constant 0 : index
    %c0_5 = arith.constant 0 : index
    %5 = vector.load %arg4[%c0_4, %c0_5] : memref<128x128xbf16, #tpu.memory_space<vmem>>, vector<128x128xbf16>
    %cst = arith.constant dense<0.000000e+00> : vector<128x128xf32>
    %6 = tpu.matmul %4, %5, %cst {dimension_numbers = #tpu.dot_dimension_numbers<[1], [0], [0], [1], [0, 0, 1, 1], [], []>} : vector<128x128xbf16>, vector<128x128xbf16>, vector<128x128xf32> -> vector<128x128xf32>
    %7 = arith.addf %3, %6 : vector<128x128xf32>
    %c0_6 = arith.constant 0 : index
    %c0_7 = arith.constant 0 : index
    %8 = vector.load %arg7[%c0_6, %c0_7] : memref<128x128xf32, #tpu.memory_space<vmem>>, vector<128x128xf32>
    tpu.vector_store %arg7[%c0_6, %c0_7], %7 {strides = array<i32>} : memref<128x128xf32, #tpu.memory_space<vmem>>, vector<128x128xf32>,
    %c0_i32_8 = arith.constant 0 : i32
    %9 = arith.cmpi eq, %arg2, %c0_i32_8 : i32
    %10 = arith.extui %9 : i1 to i32
    %c0_i32_9 = arith.constant 0 : i32
    %11 = arith.cmpi ne, %10, %c0_i32_9 : i32
    scf.if %11 {
      %c0_10 = arith.constant 0 : index
      %c0_11 = arith.constant 0 : index
      %12 = vector.load %arg7[%c0_10, %c0_11] : memref<128x128xf32, #tpu.memory_space<vmem>>, vector<128x128xf32>
      %c0_12 = arith.constant 0 : index
      %c0_13 = arith.constant 0 : index
      %13 = vector.load %arg5[%c0_12, %c0_13] : memref<1x128xf32, #tpu.memory_space<vmem>>, vector<1x128xf32>
      %14 = vector.broadcast %13 : vector<1x128xf32> to vector<128x128xf32>
      %15 = arith.addf %12, %14 : vector<128x128xf32>
      %cst_14 = arith.constant 0.000000e+00 : f32
      %16 = vector.broadcast %cst_14 : f32 to vector<128x128xf32>
      %17 = arith.maximumf %15, %16 : vector<128x128xf32>
      %c0_15 = arith.constant 0 : index
      %c0_16 = arith.constant 0 : index
      %18 = vector.load %arg6[%c0_15, %c0_16] : memref<128x128xf32, #tpu.memory_space<vmem>>, vector<128x128xf32>
      tpu.vector_store %arg6[%c0_15, %c0_16], %17 {strides = array<i32>} : memref<128x128xf32, #tpu.memory_space<vmem>>, vector<128x128xf32>,
    } else {
    }
    return
  }
  func.func @transform_0(%arg0: i32, %arg1: i32, %arg2: i32) -> (i32, i32) {
    %c0_i32 = arith.constant 0 : i32
    return %arg0, %arg2 : i32, i32
  }
  func.func @transform_1(%arg0: i32, %arg1: i32, %arg2: i32) -> (i32, i32) {
    %c0_i32 = arith.constant 0 : i32
    return %arg2, %arg1 : i32, i32
  }
  func.func @transform_2(%arg0: i32, %arg1: i32, %arg2: i32) -> (i32, i32) {
    %c0_i32 = arith.constant 0 : i32
    %c0_i32_0 = arith.constant 0 : i32
    return %c0_i32, %arg1 : i32, i32
  }
  func.func @transform_3(%arg0: i32, %arg1: i32, %arg2: i32) -> (i32, i32) {
    %c0_i32 = arith.constant 0 : i32
    return %arg0, %arg1 : i32, i32
  }
}

module attributes {stable_mosaic.version = 11 : i64} {
  func.func @_fused_matmul_kernel(%arg0: i32, %arg1: i32, %arg2: i32, %arg3: memref<128x128xbf16, #tpu.memory_space<vmem>>, %arg4: memref<128x128xbf16, #tpu.memory_space<vmem>>, %arg5: memref<1x128xf32, #tpu.memory_space<vmem>>, %arg6: memref<128x128xf32, #tpu.memory_space<vmem>>, %arg7: memref<128x128xf32, #tpu.memory_space<vmem>>) attributes {dimension_semantics = [#tpu.dimension_semantics<parallel>, #tpu.dimension_semantics<parallel>, #tpu.dimension_semantics<arbitrary>], iteration_bounds = array<i64: 1, 1, 5>, scalar_prefetch = 0 : i64, scratch_operands = 1 : i64, tpu.core_type = #tpu.core_type<tc>, window_params = [{transform_indices = @transform_0, window_bounds = array<i64: 128, 128>}, {transform_indices = @transform_1, window_bounds = array<i64: 128, 128>}, {transform_indices = @transform_2, window_bounds = array<i64: 1, 128>}, {transform_indices = @transform_3, window_bounds = array<i64: 128, 128>}]} {
    %c0_i32 = arith.constant 0 : i32
    %0 = arith.cmpi eq, %arg2, %c0_i32 : i32
    %1 = arith.extui %0 : i1 to i32
    %c0_i32_0 = arith.constant 0 : i32
    %2 = arith.cmpi ne, %1, %c0_i32_0 : i32
    scf.if %2 {
      %cst_9 = arith.constant 0.000000e+00 : f32
      %12 = vector.broadcast %cst_9 : f32 to vector<128x128xf32>
      %c0_10 = arith.constant 0 : index
      %c0_11 = arith.constant 0 : index
      %13 = vector.load %arg7[%c0_10, %c0_11] : memref<128x128xf32, #tpu.memory_space<vmem>>, vector<128x128xf32>
      tpu.vector_store %arg7[%c0_10, %c0_11], %12 {strides = array<i32>} : memref<128x128xf32, #tpu.memory_space<vmem>>, vector<128x128xf32>,
    } else {
    }
    %c0 = arith.constant 0 : index
    %c0_1 = arith.constant 0 : index
    %3 = vector.load %arg7[%c0, %c0_1] : memref<128x128xf32, #tpu.memory_space<vmem>>, vector<128x128xf32>
    %c0_2 = arith.constant 0 : index
    %c0_3 = arith.constant 0 : index
    %4 = vector.load %arg3[%c0_2, %c0_3] : memref<128x128xbf16, #tpu.memory_space<vmem>>, vector<128x128xbf16>
    %c0_4 = arith.constant 0 : index
    %c0_5 = arith.constant 0 : index
    %5 = vector.load %arg4[%c0_4, %c0_5] : memref<128x128xbf16, #tpu.memory_space<vmem>>, vector<128x128xbf16>
    %cst = arith.constant dense<0.000000e+00> : vector<128x128xf32>
    %6 = tpu.matmul %4, %5, %cst {dimension_numbers = #tpu.dot_dimension_numbers<[1], [0], [0], [1], [0, 0, 1, 1], [], []>} : vector<128x128xbf16>, vector<128x128xbf16>, vector<128x128xf32> -> vector<128x128xf32>
    %7 = arith.addf %3, %6 : vector<128x128xf32>
    %c0_6 = arith.constant 0 : index
    %c0_7 = arith.constant 0 : index
    %8 = vector.load %arg7[%c0_6, %c0_7] : memref<128x128xf32, #tpu.memory_space<vmem>>, vector<128x128xf32>
    tpu.vector_store %arg7[%c0_6, %c0_7], %7 {strides = array<i32>} : memref<128x128xf32, #tpu.memory_space<vmem>>, vector<128x128xf32>,
    %c4_i32 = arith.constant 4 : i32
    %9 = arith.cmpi eq, %arg2, %c4_i32 : i32
    %10 = arith.extui %9 : i1 to i32
    %c0_i32_8 = arith.constant 0 : i32
    %11 = arith.cmpi ne, %10, %c0_i32_8 : i32
    scf.if %11 {
      %c0_9 = arith.constant 0 : index
      %c0_10 = arith.constant 0 : index
      %12 = vector.load %arg7[%c0_9, %c0_10] : memref<128x128xf32, #tpu.memory_space<vmem>>, vector<128x128xf32>
      %c0_11 = arith.constant 0 : index
      %c0_12 = arith.constant 0 : index
      %13 = vector.load %arg5[%c0_11, %c0_12] : memref<1x128xf32, #tpu.memory_space<vmem>>, vector<1x128xf32>
      %14 = vector.broadcast %13 : vector<1x128xf32> to vector<128x128xf32>
      %15 = arith.addf %12, %14 : vector<128x128xf32>
      %cst_13 = arith.constant 0.000000e+00 : f32
      %16 = vector.broadcast %cst_13 : f32 to vector<128x128xf32>
      %17 = arith.maximumf %15, %16 : vector<128x128xf32>
      %c0_14 = arith.constant 0 : index
      %c0_15 = arith.constant 0 : index
      %18 = vector.load %arg6[%c0_14, %c0_15] : memref<128x128xf32, #tpu.memory_space<vmem>>, vector<128x128xf32>
      tpu.vector_store %arg6[%c0_14, %c0_15], %17 {strides = array<i32>} : memref<128x128xf32, #tpu.memory_space<vmem>>, vector<128x128xf32>,
    } else {
    }
    return
  }
  func.func @transform_0(%arg0: i32, %arg1: i32, %arg2: i32) -> (i32, i32) {
    %c0_i32 = arith.constant 0 : i32
    return %arg0, %arg2 : i32, i32
  }
  func.func @transform_1(%arg0: i32, %arg1: i32, %arg2: i32) -> (i32, i32) {
    %c0_i32 = arith.constant 0 : i32
    return %arg2, %arg1 : i32, i32
  }
  func.func @transform_2(%arg0: i32, %arg1: i32, %arg2: i32) -> (i32, i32) {
    %c0_i32 = arith.constant 0 : i32
    %c0_i32_0 = arith.constant 0 : i32
    return %c0_i32, %arg1 : i32, i32
  }
  func.func @transform_3(%arg0: i32, %arg1: i32, %arg2: i32) -> (i32, i32) {
    %c0_i32 = arith.constant 0 : i32
    return %arg0, %arg1 : i32, i32
  }
}

module attributes {stable_mosaic.version = 11 : i64} {
  func.func @_fused_matmul_kernel(%arg0: i32, %arg1: i32, %arg2: i32, %arg3: memref<128x128xbf16, #tpu.memory_space<vmem>>, %arg4: memref<128x256xbf16, #tpu.memory_space<vmem>>, %arg5: memref<1x256xf32, #tpu.memory_space<vmem>>, %arg6: memref<128x256xf32, #tpu.memory_space<vmem>>, %arg7: memref<128x256xf32, #tpu.memory_space<vmem>>, %arg8: memref<128x256xf32, #tpu.memory_space<vmem>>) attributes {dimension_semantics = [#tpu.dimension_semantics<parallel>, #tpu.dimension_semantics<parallel>, #tpu.dimension_semantics<arbitrary>], iteration_bounds = array<i64: 1, 1, 1>, scalar_prefetch = 0 : i64, scratch_operands = 1 : i64, tpu.core_type = #tpu.core_type<tc>, window_params = [{transform_indices = @transform_0, window_bounds = array<i64: 128, 128>}, {transform_indices = @transform_1, window_bounds = array<i64: 128, 256>}, {transform_indices = @transform_2, window_bounds = array<i64: 1, 256>}, {transform_indices = @transform_3, window_bounds = array<i64: 128, 256>}, {transform_indices = @transform_4, window_bounds = array<i64: 128, 256>}]} {
    %c0_i32 = arith.constant 0 : i32
    %0 = arith.cmpi eq, %arg2, %c0_i32 : i32
    %1 = arith.extui %0 : i1 to i32
    %c0_i32_0 = arith.constant 0 : i32
    %2 = arith.cmpi ne, %1, %c0_i32_0 : i32
    scf.if %2 {
      %cst_10 = arith.constant 0.000000e+00 : f32
      %12 = vector.broadcast %cst_10 : f32 to vector<128x256xf32>
      %c0_11 = arith.constant 0 : index
      %c0_12 = arith.constant 0 : index
      %13 = vector.load %arg8[%c0_11, %c0_12] : memref<128x256xf32, #tpu.memory_space<vmem>>, vector<128x256xf32>
      tpu.vector_store %arg8[%c0_11, %c0_12], %12 {strides = array<i32>} : memref<128x256xf32, #tpu.memory_space<vmem>>, vector<128x256xf32>,
    } else {
    }
    %c0 = arith.constant 0 : index
    %c0_1 = arith.constant 0 : index
    %3 = vector.load %arg8[%c0, %c0_1] : memref<128x256xf32, #tpu.memory_space<vmem>>, vector<128x256xf32>
    %c0_2 = arith.constant 0 : index
    %c0_3 = arith.constant 0 : index
    %4 = vector.load %arg3[%c0_2, %c0_3] : memref<128x128xbf16, #tpu.memory_space<vmem>>, vector<128x128xbf16>
    %c0_4 = arith.constant 0 : index
    %c0_5 = arith.constant 0 : index
    %5 = vector.load %arg4[%c0_4, %c0_5] : memref<128x256xbf16, #tpu.memory_space<vmem>>, vector<128x256xbf16>
    %cst = arith.constant dense<0.000000e+00> : vector<128x256xf32>
    %6 = tpu.matmul %4, %5, %cst {dimension_numbers = #tpu.dot_dimension_numbers<[1], [0], [0], [1], [0, 0, 1, 1], [], []>} : vector<128x128xbf16>, vector<128x256xbf16>, vector<128x256xf32> -> vector<128x256xf32>
    %7 = arith.addf %3, %6 : vector<128x256xf32>
    %c0_6 = arith.constant 0 : index
    %c0_7 = arith.constant 0 : index
    %8 = vector.load %arg8[%c0_6, %c0_7] : memref<128x256xf32, #tpu.memory_space<vmem>>, vector<128x256xf32>
    tpu.vector_store %arg8[%c0_6, %c0_7], %7 {strides = array<i32>} : memref<128x256xf32, #tpu.memory_space<vmem>>, vector<128x256xf32>,
    %c0_i32_8 = arith.constant 0 : i32
    %9 = arith.cmpi eq, %arg2, %c0_i32_8 : i32
    %10 = arith.extui %9 : i1 to i32
    %c0_i32_9 = arith.constant 0 : i32
    %11 = arith.cmpi ne, %10, %c0_i32_9 : i32
    scf.if %11 {
      %c0_10 = arith.constant 0 : index
      %c0_11 = arith.constant 0 : index
      %12 = vector.load %arg8[%c0_10, %c0_11] : memref<128x256xf32, #tpu.memory_space<vmem>>, vector<128x256xf32>
      %c0_12 = arith.constant 0 : index
      %c0_13 = arith.constant 0 : index
      %13 = vector.load %arg5[%c0_12, %c0_13] : memref<1x256xf32, #tpu.memory_space<vmem>>, vector<1x256xf32>
      %14 = vector.broadcast %13 : vector<1x256xf32> to vector<128x256xf32>
      %15 = arith.addf %12, %14 : vector<128x256xf32>
      %c0_14 = arith.constant 0 : index
      %c0_15 = arith.constant 0 : index
      %16 = vector.load %arg6[%c0_14, %c0_15] : memref<128x256xf32, #tpu.memory_space<vmem>>, vector<128x256xf32>
      %17 = arith.addf %15, %16 : vector<128x256xf32>
      %cst_16 = arith.constant 0.000000e+00 : f32
      %18 = vector.broadcast %cst_16 : f32 to vector<128x256xf32>
      %19 = arith.maximumf %17, %18 : vector<128x256xf32>
      %c0_17 = arith.constant 0 : index
      %c0_18 = arith.constant 0 : index
      %20 = vector.load %arg7[%c0_17, %c0_18] : memref<128x256xf32, #tpu.memory_space<vmem>>, vector<128x256xf32>
      tpu.vector_store %arg7[%c0_17, %c0_18], %19 {strides = array<i32>} : memref<128x256xf32, #tpu.memory_space<vmem>>, vector<128x256xf32>,
    } else {
    }
    return
  }
  func.func @transform_0(%arg0: i32, %arg1: i32, %arg2: i32) -> (i32, i32) {
    %c0_i32 = arith.constant 0 : i32
    return %arg0, %arg2 : i32, i32
  }
  func.func @transform_1(%arg0: i32, %arg1: i32, %arg2: i32) -> (i32, i32) {
    %c0_i32 = arith.constant 0 : i32
    return %arg2, %arg1 : i32, i32
  }
  func.func @transform_2(%arg0: i32, %arg1: i32, %arg2: i32) -> (i32, i32) {
    %c0_i32 = arith.constant 0 : i32
    %c0_i32_0 = arith.constant 0 : i32
    return %c0_i32, %arg1 : i32, i32
  }
  func.func @transform_3(%arg0: i32, %arg1: i32, %arg2: i32) -> (i32, i32) {
    %c0_i32 = arith.constant 0 : i32
    return %arg0, %arg1 : i32, i32
  }
  func.func @transform_4(%arg0: i32, %arg1: i32, %arg2: i32) -> (i32, i32) {
    %c0_i32 = arith.constant 0 : i32
    return %arg0, %arg1 : i32, i32
  }
}

module attributes {stable_mosaic.version = 11 : i64} {
  func.func @_fused_matmul_kernel(%arg0: i32, %arg1: i32, %arg2: i32, %arg3: memref<128x128xbf16, #tpu.memory_space<vmem>>, %arg4: memref<128x256xbf16, #tpu.memory_space<vmem>>, %arg5: memref<1x256xf32, #tpu.memory_space<vmem>>, %arg6: memref<128x256xf32, #tpu.memory_space<vmem>>, %arg7: memref<128x256xf32, #tpu.memory_space<vmem>>) attributes {dimension_semantics = [#tpu.dimension_semantics<parallel>, #tpu.dimension_semantics<parallel>, #tpu.dimension_semantics<arbitrary>], iteration_bounds = array<i64: 1, 1, 1>, scalar_prefetch = 0 : i64, scratch_operands = 1 : i64, tpu.core_type = #tpu.core_type<tc>, window_params = [{transform_indices = @transform_0, window_bounds = array<i64: 128, 128>}, {transform_indices = @transform_1, window_bounds = array<i64: 128, 256>}, {transform_indices = @transform_2, window_bounds = array<i64: 1, 256>}, {transform_indices = @transform_3, window_bounds = array<i64: 128, 256>}]} {
    %c0_i32 = arith.constant 0 : i32
    %0 = arith.cmpi eq, %arg2, %c0_i32 : i32
    %1 = arith.extui %0 : i1 to i32
    %c0_i32_0 = arith.constant 0 : i32
    %2 = arith.cmpi ne, %1, %c0_i32_0 : i32
    scf.if %2 {
      %cst_10 = arith.constant 0.000000e+00 : f32
      %12 = vector.broadcast %cst_10 : f32 to vector<128x256xf32>
      %c0_11 = arith.constant 0 : index
      %c0_12 = arith.constant 0 : index
      %13 = vector.load %arg7[%c0_11, %c0_12] : memref<128x256xf32, #tpu.memory_space<vmem>>, vector<128x256xf32>
      tpu.vector_store %arg7[%c0_11, %c0_12], %12 {strides = array<i32>} : memref<128x256xf32, #tpu.memory_space<vmem>>, vector<128x256xf32>,
    } else {
    }
    %c0 = arith.constant 0 : index
    %c0_1 = arith.constant 0 : index
    %3 = vector.load %arg7[%c0, %c0_1] : memref<128x256xf32, #tpu.memory_space<vmem>>, vector<128x256xf32>
    %c0_2 = arith.constant 0 : index
    %c0_3 = arith.constant 0 : index
    %4 = vector.load %arg3[%c0_2, %c0_3] : memref<128x128xbf16, #tpu.memory_space<vmem>>, vector<128x128xbf16>
    %c0_4 = arith.constant 0 : index
    %c0_5 = arith.constant 0 : index
    %5 = vector.load %arg4[%c0_4, %c0_5] : memref<128x256xbf16, #tpu.memory_space<vmem>>, vector<128x256xbf16>
    %cst = arith.constant dense<0.000000e+00> : vector<128x256xf32>
    %6 = tpu.matmul %4, %5, %cst {dimension_numbers = #tpu.dot_dimension_numbers<[1], [0], [0], [1], [0, 0, 1, 1], [], []>} : vector<128x128xbf16>, vector<128x256xbf16>, vector<128x256xf32> -> vector<128x256xf32>
    %7 = arith.addf %3, %6 : vector<128x256xf32>
    %c0_6 = arith.constant 0 : index
    %c0_7 = arith.constant 0 : index
    %8 = vector.load %arg7[%c0_6, %c0_7] : memref<128x256xf32, #tpu.memory_space<vmem>>, vector<128x256xf32>
    tpu.vector_store %arg7[%c0_6, %c0_7], %7 {strides = array<i32>} : memref<128x256xf32, #tpu.memory_space<vmem>>, vector<128x256xf32>,
    %c0_i32_8 = arith.constant 0 : i32
    %9 = arith.cmpi eq, %arg2, %c0_i32_8 : i32
    %10 = arith.extui %9 : i1 to i32
    %c0_i32_9 = arith.constant 0 : i32
    %11 = arith.cmpi ne, %10, %c0_i32_9 : i32
    scf.if %11 {
      %c0_10 = arith.constant 0 : index
      %c0_11 = arith.constant 0 : index
      %12 = vector.load %arg7[%c0_10, %c0_11] : memref<128x256xf32, #tpu.memory_space<vmem>>, vector<128x256xf32>
      %c0_12 = arith.constant 0 : index
      %c0_13 = arith.constant 0 : index
      %13 = vector.load %arg5[%c0_12, %c0_13] : memref<1x256xf32, #tpu.memory_space<vmem>>, vector<1x256xf32>
      %14 = vector.broadcast %13 : vector<1x256xf32> to vector<128x256xf32>
      %15 = arith.addf %12, %14 : vector<128x256xf32>
      %c0_14 = arith.constant 0 : index
      %c0_15 = arith.constant 0 : index
      %16 = vector.load %arg6[%c0_14, %c0_15] : memref<128x256xf32, #tpu.memory_space<vmem>>, vector<128x256xf32>
      tpu.vector_store %arg6[%c0_14, %c0_15], %15 {strides = array<i32>} : memref<128x256xf32, #tpu.memory_space<vmem>>, vector<128x256xf32>,
    } else {
    }
    return
  }
  func.func @transform_0(%arg0: i32, %arg1: i32, %arg2: i32) -> (i32, i32) {
    %c0_i32 = arith.constant 0 : i32
    return %arg0, %arg2 : i32, i32
  }
  func.func @transform_1(%arg0: i32, %arg1: i32, %arg2: i32) -> (i32, i32) {
    %c0_i32 = arith.constant 0 : i32
    return %arg2, %arg1 : i32, i32
  }
  func.func @transform_2(%arg0: i32, %arg1: i32, %arg2: i32) -> (i32, i32) {
    %c0_i32 = arith.constant 0 : i32
    %c0_i32_0 = arith.constant 0 : i32
    return %c0_i32, %arg1 : i32, i32
  }
  func.func @transform_3(%arg0: i32, %arg1: i32, %arg2: i32) -> (i32, i32) {
    %c0_i32 = arith.constant 0 : i32
    return %arg0, %arg1 : i32, i32
  }
}

module attributes {stable_mosaic.version = 11 : i64} {
  func.func @_fused_matmul_kernel(%arg0: i32, %arg1: i32, %arg2: i32, %arg3: memref<128x256xbf16, #tpu.memory_space<vmem>>, %arg4: memref<256x128xbf16, #tpu.memory_space<vmem>>, %arg5: memref<1x128xf32, #tpu.memory_space<vmem>>, %arg6: memref<128x128xf32, #tpu.memory_space<vmem>>, %arg7: memref<128x128xf32, #tpu.memory_space<vmem>>) attributes {dimension_semantics = [#tpu.dimension_semantics<parallel>, #tpu.dimension_semantics<parallel>, #tpu.dimension_semantics<arbitrary>], iteration_bounds = array<i64: 1, 1, 1>, scalar_prefetch = 0 : i64, scratch_operands = 1 : i64, tpu.core_type = #tpu.core_type<tc>, window_params = [{transform_indices = @transform_0, window_bounds = array<i64: 128, 256>}, {transform_indices = @transform_1, window_bounds = array<i64: 256, 128>}, {transform_indices = @transform_2, window_bounds = array<i64: 1, 128>}, {transform_indices = @transform_3, window_bounds = array<i64: 128, 128>}]} {
    %c0_i32 = arith.constant 0 : i32
    %0 = arith.cmpi eq, %arg2, %c0_i32 : i32
    %1 = arith.extui %0 : i1 to i32
    %c0_i32_0 = arith.constant 0 : i32
    %2 = arith.cmpi ne, %1, %c0_i32_0 : i32
    scf.if %2 {
      %cst_10 = arith.constant 0.000000e+00 : f32
      %12 = vector.broadcast %cst_10 : f32 to vector<128x128xf32>
      %c0_11 = arith.constant 0 : index
      %c0_12 = arith.constant 0 : index
      %13 = vector.load %arg7[%c0_11, %c0_12] : memref<128x128xf32, #tpu.memory_space<vmem>>, vector<128x128xf32>
      tpu.vector_store %arg7[%c0_11, %c0_12], %12 {strides = array<i32>} : memref<128x128xf32, #tpu.memory_space<vmem>>, vector<128x128xf32>,
    } else {
    }
    %c0 = arith.constant 0 : index
    %c0_1 = arith.constant 0 : index
    %3 = vector.load %arg7[%c0, %c0_1] : memref<128x128xf32, #tpu.memory_space<vmem>>, vector<128x128xf32>
    %c0_2 = arith.constant 0 : index
    %c0_3 = arith.constant 0 : index
    %4 = vector.load %arg3[%c0_2, %c0_3] : memref<128x256xbf16, #tpu.memory_space<vmem>>, vector<128x256xbf16>
    %c0_4 = arith.constant 0 : index
    %c0_5 = arith.constant 0 : index
    %5 = vector.load %arg4[%c0_4, %c0_5] : memref<256x128xbf16, #tpu.memory_space<vmem>>, vector<256x128xbf16>
    %cst = arith.constant dense<0.000000e+00> : vector<128x128xf32>
    %6 = tpu.matmul %4, %5, %cst {dimension_numbers = #tpu.dot_dimension_numbers<[1], [0], [0], [1], [0, 0, 1, 1], [], []>} : vector<128x256xbf16>, vector<256x128xbf16>, vector<128x128xf32> -> vector<128x128xf32>
    %7 = arith.addf %3, %6 : vector<128x128xf32>
    %c0_6 = arith.constant 0 : index
    %c0_7 = arith.constant 0 : index
    %8 = vector.load %arg7[%c0_6, %c0_7] : memref<128x128xf32, #tpu.memory_space<vmem>>, vector<128x128xf32>
    tpu.vector_store %arg7[%c0_6, %c0_7], %7 {strides = array<i32>} : memref<128x128xf32, #tpu.memory_space<vmem>>, vector<128x128xf32>,
    %c0_i32_8 = arith.constant 0 : i32
    %9 = arith.cmpi eq, %arg2, %c0_i32_8 : i32
    %10 = arith.extui %9 : i1 to i32
    %c0_i32_9 = arith.constant 0 : i32
    %11 = arith.cmpi ne, %10, %c0_i32_9 : i32
    scf.if %11 {
      %c0_10 = arith.constant 0 : index
      %c0_11 = arith.constant 0 : index
      %12 = vector.load %arg7[%c0_10, %c0_11] : memref<128x128xf32, #tpu.memory_space<vmem>>, vector<128x128xf32>
      %c0_12 = arith.constant 0 : index
      %c0_13 = arith.constant 0 : index
      %13 = vector.load %arg5[%c0_12, %c0_13] : memref<1x128xf32, #tpu.memory_space<vmem>>, vector<1x128xf32>
      %14 = vector.broadcast %13 : vector<1x128xf32> to vector<128x128xf32>
      %15 = arith.addf %12, %14 : vector<128x128xf32>
      %cst_14 = arith.constant 0.000000e+00 : f32
      %16 = vector.broadcast %cst_14 : f32 to vector<128x128xf32>
      %17 = arith.maximumf %15, %16 : vector<128x128xf32>
      %c0_15 = arith.constant 0 : index
      %c0_16 = arith.constant 0 : index
      %18 = vector.load %arg6[%c0_15, %c0_16] : memref<128x128xf32, #tpu.memory_space<vmem>>, vector<128x128xf32>
      tpu.vector_store %arg6[%c0_15, %c0_16], %17 {strides = array<i32>} : memref<128x128xf32, #tpu.memory_space<vmem>>, vector<128x128xf32>,
    } else {
    }
    return
  }
  func.func @transform_0(%arg0: i32, %arg1: i32, %arg2: i32) -> (i32, i32) {
    %c0_i32 = arith.constant 0 : i32
    return %arg0, %arg2 : i32, i32
  }
  func.func @transform_1(%arg0: i32, %arg1: i32, %arg2: i32) -> (i32, i32) {
    %c0_i32 = arith.constant 0 : i32
    return %arg2, %arg1 : i32, i32
  }
  func.func @transform_2(%arg0: i32, %arg1: i32, %arg2: i32) -> (i32, i32) {
    %c0_i32 = arith.constant 0 : i32
    %c0_i32_0 = arith.constant 0 : i32
    return %c0_i32, %arg1 : i32, i32
  }
  func.func @transform_3(%arg0: i32, %arg1: i32, %arg2: i32) -> (i32, i32) {
    %c0_i32 = arith.constant 0 : i32
    return %arg0, %arg1 : i32, i32
  }
}

module attributes {stable_mosaic.version = 11 : i64} {
  func.func @_fused_matmul_kernel(%arg0: i32, %arg1: i32, %arg2: i32, %arg3: memref<32x128xbf16, #tpu.memory_space<vmem>>, %arg4: memref<128x128xbf16, #tpu.memory_space<vmem>>, %arg5: memref<1x128xf32, #tpu.memory_space<vmem>>, %arg6: memref<32x128xf32, #tpu.memory_space<vmem>>, %arg7: memref<32x128xf32, #tpu.memory_space<vmem>>) attributes {dimension_semantics = [#tpu.dimension_semantics<parallel>, #tpu.dimension_semantics<parallel>, #tpu.dimension_semantics<arbitrary>], iteration_bounds = array<i64: 1, 1, 9>, scalar_prefetch = 0 : i64, scratch_operands = 1 : i64, tpu.core_type = #tpu.core_type<tc>, window_params = [{transform_indices = @transform_0, window_bounds = array<i64: 32, 128>}, {transform_indices = @transform_1, window_bounds = array<i64: 128, 128>}, {transform_indices = @transform_2, window_bounds = array<i64: 1, 128>}, {transform_indices = @transform_3, window_bounds = array<i64: 32, 128>}]} {
    %c0_i32 = arith.constant 0 : i32
    %0 = arith.cmpi eq, %arg2, %c0_i32 : i32
    %1 = arith.extui %0 : i1 to i32
    %c0_i32_0 = arith.constant 0 : i32
    %2 = arith.cmpi ne, %1, %c0_i32_0 : i32
    scf.if %2 {
      %cst_9 = arith.constant 0.000000e+00 : f32
      %12 = vector.broadcast %cst_9 : f32 to vector<32x128xf32>
      %c0_10 = arith.constant 0 : index
      %c0_11 = arith.constant 0 : index
      %13 = vector.load %arg7[%c0_10, %c0_11] : memref<32x128xf32, #tpu.memory_space<vmem>>, vector<32x128xf32>
      tpu.vector_store %arg7[%c0_10, %c0_11], %12 {strides = array<i32>} : memref<32x128xf32, #tpu.memory_space<vmem>>, vector<32x128xf32>,
    } else {
    }
    %c0 = arith.constant 0 : index
    %c0_1 = arith.constant 0 : index
    %3 = vector.load %arg7[%c0, %c0_1] : memref<32x128xf32, #tpu.memory_space<vmem>>, vector<32x128xf32>
    %c0_2 = arith.constant 0 : index
    %c0_3 = arith.constant 0 : index
    %4 = vector.load %arg3[%c0_2, %c0_3] : memref<32x128xbf16, #tpu.memory_space<vmem>>, vector<32x128xbf16>
    %c0_4 = arith.constant 0 : index
    %c0_5 = arith.constant 0 : index
    %5 = vector.load %arg4[%c0_4, %c0_5] : memref<128x128xbf16, #tpu.memory_space<vmem>>, vector<128x128xbf16>
    %cst = arith.constant dense<0.000000e+00> : vector<32x128xf32>
    %6 = tpu.matmul %4, %5, %cst {dimension_numbers = #tpu.dot_dimension_numbers<[1], [0], [0], [1], [0, 0, 1, 1], [], []>} : vector<32x128xbf16>, vector<128x128xbf16>, vector<32x128xf32> -> vector<32x128xf32>
    %7 = arith.addf %3, %6 : vector<32x128xf32>
    %c0_6 = arith.constant 0 : index
    %c0_7 = arith.constant 0 : index
    %8 = vector.load %arg7[%c0_6, %c0_7] : memref<32x128xf32, #tpu.memory_space<vmem>>, vector<32x128xf32>
    tpu.vector_store %arg7[%c0_6, %c0_7], %7 {strides = array<i32>} : memref<32x128xf32, #tpu.memory_space<vmem>>, vector<32x128xf32>,
    %c8_i32 = arith.constant 8 : i32
    %9 = arith.cmpi eq, %arg2, %c8_i32 : i32
    %10 = arith.extui %9 : i1 to i32
    %c0_i32_8 = arith.constant 0 : i32
    %11 = arith.cmpi ne, %10, %c0_i32_8 : i32
    scf.if %11 {
      %c0_9 = arith.constant 0 : index
      %c0_10 = arith.constant 0 : index
      %12 = vector.load %arg7[%c0_9, %c0_10] : memref<32x128xf32, #tpu.memory_space<vmem>>, vector<32x128xf32>
      %c0_11 = arith.constant 0 : index
      %c0_12 = arith.constant 0 : index
      %13 = vector.load %arg5[%c0_11, %c0_12] : memref<1x128xf32, #tpu.memory_space<vmem>>, vector<1x128xf32>
      %14 = vector.broadcast %13 : vector<1x128xf32> to vector<32x128xf32>
      %15 = arith.addf %12, %14 : vector<32x128xf32>
      %cst_13 = arith.constant 0.000000e+00 : f32
      %16 = vector.broadcast %cst_13 : f32 to vector<32x128xf32>
      %17 = arith.maximumf %15, %16 : vector<32x128xf32>
      %c0_14 = arith.constant 0 : index
      %c0_15 = arith.constant 0 : index
      %18 = vector.load %arg6[%c0_14, %c0_15] : memref<32x128xf32, #tpu.memory_space<vmem>>, vector<32x128xf32>
      tpu.vector_store %arg6[%c0_14, %c0_15], %17 {strides = array<i32>} : memref<32x128xf32, #tpu.memory_space<vmem>>, vector<32x128xf32>,
    } else {
    }
    return
  }
  func.func @transform_0(%arg0: i32, %arg1: i32, %arg2: i32) -> (i32, i32) {
    %c0_i32 = arith.constant 0 : i32
    return %arg0, %arg2 : i32, i32
  }
  func.func @transform_1(%arg0: i32, %arg1: i32, %arg2: i32) -> (i32, i32) {
    %c0_i32 = arith.constant 0 : i32
    return %arg2, %arg1 : i32, i32
  }
  func.func @transform_2(%arg0: i32, %arg1: i32, %arg2: i32) -> (i32, i32) {
    %c0_i32 = arith.constant 0 : i32
    %c0_i32_0 = arith.constant 0 : i32
    return %c0_i32, %arg1 : i32, i32
  }
  func.func @transform_3(%arg0: i32, %arg1: i32, %arg2: i32) -> (i32, i32) {
    %c0_i32 = arith.constant 0 : i32
    return %arg0, %arg1 : i32, i32
  }
}

module attributes {stable_mosaic.version = 11 : i64} {
  func.func @_fused_matmul_kernel(%arg0: i32, %arg1: i32, %arg2: i32, %arg3: memref<32x256xbf16, #tpu.memory_space<vmem>>, %arg4: memref<256x256xbf16, #tpu.memory_space<vmem>>, %arg5: memref<1x256xf32, #tpu.memory_space<vmem>>, %arg6: memref<32x256xf32, #tpu.memory_space<vmem>>, %arg7: memref<32x256xf32, #tpu.memory_space<vmem>>) attributes {dimension_semantics = [#tpu.dimension_semantics<parallel>, #tpu.dimension_semantics<parallel>, #tpu.dimension_semantics<arbitrary>], iteration_bounds = array<i64: 1, 2, 1>, scalar_prefetch = 0 : i64, scratch_operands = 1 : i64, tpu.core_type = #tpu.core_type<tc>, window_params = [{transform_indices = @transform_0, window_bounds = array<i64: 32, 256>}, {transform_indices = @transform_1, window_bounds = array<i64: 256, 256>}, {transform_indices = @transform_2, window_bounds = array<i64: 1, 256>}, {transform_indices = @transform_3, window_bounds = array<i64: 32, 256>}]} {
    %c0_i32 = arith.constant 0 : i32
    %0 = arith.cmpi eq, %arg2, %c0_i32 : i32
    %1 = arith.extui %0 : i1 to i32
    %c0_i32_0 = arith.constant 0 : i32
    %2 = arith.cmpi ne, %1, %c0_i32_0 : i32
    scf.if %2 {
      %cst_10 = arith.constant 0.000000e+00 : f32
      %12 = vector.broadcast %cst_10 : f32 to vector<32x256xf32>
      %c0_11 = arith.constant 0 : index
      %c0_12 = arith.constant 0 : index
      %13 = vector.load %arg7[%c0_11, %c0_12] : memref<32x256xf32, #tpu.memory_space<vmem>>, vector<32x256xf32>
      tpu.vector_store %arg7[%c0_11, %c0_12], %12 {strides = array<i32>} : memref<32x256xf32, #tpu.memory_space<vmem>>, vector<32x256xf32>,
    } else {
    }
    %c0 = arith.constant 0 : index
    %c0_1 = arith.constant 0 : index
    %3 = vector.load %arg7[%c0, %c0_1] : memref<32x256xf32, #tpu.memory_space<vmem>>, vector<32x256xf32>
    %c0_2 = arith.constant 0 : index
    %c0_3 = arith.constant 0 : index
    %4 = vector.load %arg3[%c0_2, %c0_3] : memref<32x256xbf16, #tpu.memory_space<vmem>>, vector<32x256xbf16>
    %c0_4 = arith.constant 0 : index
    %c0_5 = arith.constant 0 : index
    %5 = vector.load %arg4[%c0_4, %c0_5] : memref<256x256xbf16, #tpu.memory_space<vmem>>, vector<256x256xbf16>
    %cst = arith.constant dense<0.000000e+00> : vector<32x256xf32>
    %6 = tpu.matmul %4, %5, %cst {dimension_numbers = #tpu.dot_dimension_numbers<[1], [0], [0], [1], [0, 0, 1, 1], [], []>} : vector<32x256xbf16>, vector<256x256xbf16>, vector<32x256xf32> -> vector<32x256xf32>
    %7 = arith.addf %3, %6 : vector<32x256xf32>
    %c0_6 = arith.constant 0 : index
    %c0_7 = arith.constant 0 : index
    %8 = vector.load %arg7[%c0_6, %c0_7] : memref<32x256xf32, #tpu.memory_space<vmem>>, vector<32x256xf32>
    tpu.vector_store %arg7[%c0_6, %c0_7], %7 {strides = array<i32>} : memref<32x256xf32, #tpu.memory_space<vmem>>, vector<32x256xf32>,
    %c0_i32_8 = arith.constant 0 : i32
    %9 = arith.cmpi eq, %arg2, %c0_i32_8 : i32
    %10 = arith.extui %9 : i1 to i32
    %c0_i32_9 = arith.constant 0 : i32
    %11 = arith.cmpi ne, %10, %c0_i32_9 : i32
    scf.if %11 {
      %c0_10 = arith.constant 0 : index
      %c0_11 = arith.constant 0 : index
      %12 = vector.load %arg7[%c0_10, %c0_11] : memref<32x256xf32, #tpu.memory_space<vmem>>, vector<32x256xf32>
      %c0_12 = arith.constant 0 : index
      %c0_13 = arith.constant 0 : index
      %13 = vector.load %arg5[%c0_12, %c0_13] : memref<1x256xf32, #tpu.memory_space<vmem>>, vector<1x256xf32>
      %14 = vector.broadcast %13 : vector<1x256xf32> to vector<32x256xf32>
      %15 = arith.addf %12, %14 : vector<32x256xf32>
      %c0_14 = arith.constant 0 : index
      %c0_15 = arith.constant 0 : index
      %16 = vector.load %arg6[%c0_14, %c0_15] : memref<32x256xf32, #tpu.memory_space<vmem>>, vector<32x256xf32>
      tpu.vector_store %arg6[%c0_14, %c0_15], %15 {strides = array<i32>} : memref<32x256xf32, #tpu.memory_space<vmem>>, vector<32x256xf32>,
    } else {
    }
    return
  }
  func.func @transform_0(%arg0: i32, %arg1: i32, %arg2: i32) -> (i32, i32) {
    %c0_i32 = arith.constant 0 : i32
    return %arg0, %arg2 : i32, i32
  }
  func.func @transform_1(%arg0: i32, %arg1: i32, %arg2: i32) -> (i32, i32) {
    %c0_i32 = arith.constant 0 : i32
    return %arg2, %arg1 : i32, i32
  }
  func.func @transform_2(%arg0: i32, %arg1: i32, %arg2: i32) -> (i32, i32) {
    %c0_i32 = arith.constant 0 : i32
    %c0_i32_0 = arith.constant 0 : i32
    return %c0_i32, %arg1 : i32, i32
  }
  func.func @transform_3(%arg0: i32, %arg1: i32, %arg2: i32) -> (i32, i32) {
    %c0_i32 = arith.constant 0 : i32
    return %arg0, %arg1 : i32, i32
  }
}

module attributes {stable_mosaic.version = 11 : i64} {
  func.func @_fused_matmul_kernel(%arg0: i32, %arg1: i32, %arg2: i32, %arg3: memref<32x128xbf16, #tpu.memory_space<vmem>>, %arg4: memref<128x256xbf16, #tpu.memory_space<vmem>>, %arg5: memref<1x256xf32, #tpu.memory_space<vmem>>, %arg6: memref<32x256xf32, #tpu.memory_space<vmem>>, %arg7: memref<32x256xf32, #tpu.memory_space<vmem>>, %arg8: memref<32x256xf32, #tpu.memory_space<vmem>>) attributes {dimension_semantics = [#tpu.dimension_semantics<parallel>, #tpu.dimension_semantics<parallel>, #tpu.dimension_semantics<arbitrary>], iteration_bounds = array<i64: 1, 2, 1>, scalar_prefetch = 0 : i64, scratch_operands = 1 : i64, tpu.core_type = #tpu.core_type<tc>, window_params = [{transform_indices = @transform_0, window_bounds = array<i64: 32, 128>}, {transform_indices = @transform_1, window_bounds = array<i64: 128, 256>}, {transform_indices = @transform_2, window_bounds = array<i64: 1, 256>}, {transform_indices = @transform_3, window_bounds = array<i64: 32, 256>}, {transform_indices = @transform_4, window_bounds = array<i64: 32, 256>}]} {
    %c0_i32 = arith.constant 0 : i32
    %0 = arith.cmpi eq, %arg2, %c0_i32 : i32
    %1 = arith.extui %0 : i1 to i32
    %c0_i32_0 = arith.constant 0 : i32
    %2 = arith.cmpi ne, %1, %c0_i32_0 : i32
    scf.if %2 {
      %cst_10 = arith.constant 0.000000e+00 : f32
      %12 = vector.broadcast %cst_10 : f32 to vector<32x256xf32>
      %c0_11 = arith.constant 0 : index
      %c0_12 = arith.constant 0 : index
      %13 = vector.load %arg8[%c0_11, %c0_12] : memref<32x256xf32, #tpu.memory_space<vmem>>, vector<32x256xf32>
      tpu.vector_store %arg8[%c0_11, %c0_12], %12 {strides = array<i32>} : memref<32x256xf32, #tpu.memory_space<vmem>>, vector<32x256xf32>,
    } else {
    }
    %c0 = arith.constant 0 : index
    %c0_1 = arith.constant 0 : index
    %3 = vector.load %arg8[%c0, %c0_1] : memref<32x256xf32, #tpu.memory_space<vmem>>, vector<32x256xf32>
    %c0_2 = arith.constant 0 : index
    %c0_3 = arith.constant 0 : index
    %4 = vector.load %arg3[%c0_2, %c0_3] : memref<32x128xbf16, #tpu.memory_space<vmem>>, vector<32x128xbf16>
    %c0_4 = arith.constant 0 : index
    %c0_5 = arith.constant 0 : index
    %5 = vector.load %arg4[%c0_4, %c0_5] : memref<128x256xbf16, #tpu.memory_space<vmem>>, vector<128x256xbf16>
    %cst = arith.constant dense<0.000000e+00> : vector<32x256xf32>
    %6 = tpu.matmul %4, %5, %cst {dimension_numbers = #tpu.dot_dimension_numbers<[1], [0], [0], [1], [0, 0, 1, 1], [], []>} : vector<32x128xbf16>, vector<128x256xbf16>, vector<32x256xf32> -> vector<32x256xf32>
    %7 = arith.addf %3, %6 : vector<32x256xf32>
    %c0_6 = arith.constant 0 : index
    %c0_7 = arith.constant 0 : index
    %8 = vector.load %arg8[%c0_6, %c0_7] : memref<32x256xf32, #tpu.memory_space<vmem>>, vector<32x256xf32>
    tpu.vector_store %arg8[%c0_6, %c0_7], %7 {strides = array<i32>} : memref<32x256xf32, #tpu.memory_space<vmem>>, vector<32x256xf32>,
    %c0_i32_8 = arith.constant 0 : i32
    %9 = arith.cmpi eq, %arg2, %c0_i32_8 : i32
    %10 = arith.extui %9 : i1 to i32
    %c0_i32_9 = arith.constant 0 : i32
    %11 = arith.cmpi ne, %10, %c0_i32_9 : i32
    scf.if %11 {
      %c0_10 = arith.constant 0 : index
      %c0_11 = arith.constant 0 : index
      %12 = vector.load %arg8[%c0_10, %c0_11] : memref<32x256xf32, #tpu.memory_space<vmem>>, vector<32x256xf32>
      %c0_12 = arith.constant 0 : index
      %c0_13 = arith.constant 0 : index
      %13 = vector.load %arg5[%c0_12, %c0_13] : memref<1x256xf32, #tpu.memory_space<vmem>>, vector<1x256xf32>
      %14 = vector.broadcast %13 : vector<1x256xf32> to vector<32x256xf32>
      %15 = arith.addf %12, %14 : vector<32x256xf32>
      %c0_14 = arith.constant 0 : index
      %c0_15 = arith.constant 0 : index
      %16 = vector.load %arg6[%c0_14, %c0_15] : memref<32x256xf32, #tpu.memory_space<vmem>>, vector<32x256xf32>
      %17 = arith.addf %15, %16 : vector<32x256xf32>
      %cst_16 = arith.constant 0.000000e+00 : f32
      %18 = vector.broadcast %cst_16 : f32 to vector<32x256xf32>
      %19 = arith.maximumf %17, %18 : vector<32x256xf32>
      %c0_17 = arith.constant 0 : index
      %c0_18 = arith.constant 0 : index
      %20 = vector.load %arg7[%c0_17, %c0_18] : memref<32x256xf32, #tpu.memory_space<vmem>>, vector<32x256xf32>
      tpu.vector_store %arg7[%c0_17, %c0_18], %19 {strides = array<i32>} : memref<32x256xf32, #tpu.memory_space<vmem>>, vector<32x256xf32>,
    } else {
    }
    return
  }
  func.func @transform_0(%arg0: i32, %arg1: i32, %arg2: i32) -> (i32, i32) {
    %c0_i32 = arith.constant 0 : i32
    return %arg0, %arg2 : i32, i32
  }
  func.func @transform_1(%arg0: i32, %arg1: i32, %arg2: i32) -> (i32, i32) {
    %c0_i32 = arith.constant 0 : i32
    return %arg2, %arg1 : i32, i32
  }
  func.func @transform_2(%arg0: i32, %arg1: i32, %arg2: i32) -> (i32, i32) {
    %c0_i32 = arith.constant 0 : i32
    %c0_i32_0 = arith.constant 0 : i32
    return %c0_i32, %arg1 : i32, i32
  }
  func.func @transform_3(%arg0: i32, %arg1: i32, %arg2: i32) -> (i32, i32) {
    %c0_i32 = arith.constant 0 : i32
    return %arg0, %arg1 : i32, i32
  }
  func.func @transform_4(%arg0: i32, %arg1: i32, %arg2: i32) -> (i32, i32) {
    %c0_i32 = arith.constant 0 : i32
    return %arg0, %arg1 : i32, i32
  }
}

module attributes {stable_mosaic.version = 11 : i64} {
  func.func @_fused_matmul_kernel(%arg0: i32, %arg1: i32, %arg2: i32, %arg3: memref<32x512xbf16, #tpu.memory_space<vmem>>, %arg4: memref<512x128xbf16, #tpu.memory_space<vmem>>, %arg5: memref<1x128xf32, #tpu.memory_space<vmem>>, %arg6: memref<32x128xf32, #tpu.memory_space<vmem>>, %arg7: memref<32x128xf32, #tpu.memory_space<vmem>>) attributes {dimension_semantics = [#tpu.dimension_semantics<parallel>, #tpu.dimension_semantics<parallel>, #tpu.dimension_semantics<arbitrary>], iteration_bounds = array<i64: 1, 1, 1>, scalar_prefetch = 0 : i64, scratch_operands = 1 : i64, tpu.core_type = #tpu.core_type<tc>, window_params = [{transform_indices = @transform_0, window_bounds = array<i64: 32, 512>}, {transform_indices = @transform_1, window_bounds = array<i64: 512, 128>}, {transform_indices = @transform_2, window_bounds = array<i64: 1, 128>}, {transform_indices = @transform_3, window_bounds = array<i64: 32, 128>}]} {
    %c0_i32 = arith.constant 0 : i32
    %0 = arith.cmpi eq, %arg2, %c0_i32 : i32
    %1 = arith.extui %0 : i1 to i32
    %c0_i32_0 = arith.constant 0 : i32
    %2 = arith.cmpi ne, %1, %c0_i32_0 : i32
    scf.if %2 {
      %cst_10 = arith.constant 0.000000e+00 : f32
      %12 = vector.broadcast %cst_10 : f32 to vector<32x128xf32>
      %c0_11 = arith.constant 0 : index
      %c0_12 = arith.constant 0 : index
      %13 = vector.load %arg7[%c0_11, %c0_12] : memref<32x128xf32, #tpu.memory_space<vmem>>, vector<32x128xf32>
      tpu.vector_store %arg7[%c0_11, %c0_12], %12 {strides = array<i32>} : memref<32x128xf32, #tpu.memory_space<vmem>>, vector<32x128xf32>,
    } else {
    }
    %c0 = arith.constant 0 : index
    %c0_1 = arith.constant 0 : index
    %3 = vector.load %arg7[%c0, %c0_1] : memref<32x128xf32, #tpu.memory_space<vmem>>, vector<32x128xf32>
    %c0_2 = arith.constant 0 : index
    %c0_3 = arith.constant 0 : index
    %4 = vector.load %arg3[%c0_2, %c0_3] : memref<32x512xbf16, #tpu.memory_space<vmem>>, vector<32x512xbf16>
    %c0_4 = arith.constant 0 : index
    %c0_5 = arith.constant 0 : index
    %5 = vector.load %arg4[%c0_4, %c0_5] : memref<512x128xbf16, #tpu.memory_space<vmem>>, vector<512x128xbf16>
    %cst = arith.constant dense<0.000000e+00> : vector<32x128xf32>
    %6 = tpu.matmul %4, %5, %cst {dimension_numbers = #tpu.dot_dimension_numbers<[1], [0], [0], [1], [0, 0, 1, 1], [], []>} : vector<32x512xbf16>, vector<512x128xbf16>, vector<32x128xf32> -> vector<32x128xf32>
    %7 = arith.addf %3, %6 : vector<32x128xf32>
    %c0_6 = arith.constant 0 : index
    %c0_7 = arith.constant 0 : index
    %8 = vector.load %arg7[%c0_6, %c0_7] : memref<32x128xf32, #tpu.memory_space<vmem>>, vector<32x128xf32>
    tpu.vector_store %arg7[%c0_6, %c0_7], %7 {strides = array<i32>} : memref<32x128xf32, #tpu.memory_space<vmem>>, vector<32x128xf32>,
    %c0_i32_8 = arith.constant 0 : i32
    %9 = arith.cmpi eq, %arg2, %c0_i32_8 : i32
    %10 = arith.extui %9 : i1 to i32
    %c0_i32_9 = arith.constant 0 : i32
    %11 = arith.cmpi ne, %10, %c0_i32_9 : i32
    scf.if %11 {
      %c0_10 = arith.constant 0 : index
      %c0_11 = arith.constant 0 : index
      %12 = vector.load %arg7[%c0_10, %c0_11] : memref<32x128xf32, #tpu.memory_space<vmem>>, vector<32x128xf32>
      %c0_12 = arith.constant 0 : index
      %c0_13 = arith.constant 0 : index
      %13 = vector.load %arg5[%c0_12, %c0_13] : memref<1x128xf32, #tpu.memory_space<vmem>>, vector<1x128xf32>
      %14 = vector.broadcast %13 : vector<1x128xf32> to vector<32x128xf32>
      %15 = arith.addf %12, %14 : vector<32x128xf32>
      %cst_14 = arith.constant 0.000000e+00 : f32
      %16 = vector.broadcast %cst_14 : f32 to vector<32x128xf32>
      %17 = arith.maximumf %15, %16 : vector<32x128xf32>
      %c0_15 = arith.constant 0 : index
      %c0_16 = arith.constant 0 : index
      %18 = vector.load %arg6[%c0_15, %c0_16] : memref<32x128xf32, #tpu.memory_space<vmem>>, vector<32x128xf32>
      tpu.vector_store %arg6[%c0_15, %c0_16], %17 {strides = array<i32>} : memref<32x128xf32, #tpu.memory_space<vmem>>, vector<32x128xf32>,
    } else {
    }
    return
  }
  func.func @transform_0(%arg0: i32, %arg1: i32, %arg2: i32) -> (i32, i32) {
    %c0_i32 = arith.constant 0 : i32
    return %arg0, %arg2 : i32, i32
  }
  func.func @transform_1(%arg0: i32, %arg1: i32, %arg2: i32) -> (i32, i32) {
    %c0_i32 = arith.constant 0 : i32
    return %arg2, %arg1 : i32, i32
  }
  func.func @transform_2(%arg0: i32, %arg1: i32, %arg2: i32) -> (i32, i32) {
    %c0_i32 = arith.constant 0 : i32
    %c0_i32_0 = arith.constant 0 : i32
    return %c0_i32, %arg1 : i32, i32
  }
  func.func @transform_3(%arg0: i32, %arg1: i32, %arg2: i32) -> (i32, i32) {
    %c0_i32 = arith.constant 0 : i32
    return %arg0, %arg1 : i32, i32
  }
}

module attributes {stable_mosaic.version = 11 : i64} {
  func.func @_fused_matmul_kernel(%arg0: i32, %arg1: i32, %arg2: i32, %arg3: memref<32x512xbf16, #tpu.memory_space<vmem>>, %arg4: memref<512x256xbf16, #tpu.memory_space<vmem>>, %arg5: memref<1x256xf32, #tpu.memory_space<vmem>>, %arg6: memref<32x256xf32, #tpu.memory_space<vmem>>, %arg7: memref<32x256xf32, #tpu.memory_space<vmem>>) attributes {dimension_semantics = [#tpu.dimension_semantics<parallel>, #tpu.dimension_semantics<parallel>, #tpu.dimension_semantics<arbitrary>], iteration_bounds = array<i64: 1, 1, 1>, scalar_prefetch = 0 : i64, scratch_operands = 1 : i64, tpu.core_type = #tpu.core_type<tc>, window_params = [{transform_indices = @transform_0, window_bounds = array<i64: 32, 512>}, {transform_indices = @transform_1, window_bounds = array<i64: 512, 256>}, {transform_indices = @transform_2, window_bounds = array<i64: 1, 256>}, {transform_indices = @transform_3, window_bounds = array<i64: 32, 256>}]} {
    %c0_i32 = arith.constant 0 : i32
    %0 = arith.cmpi eq, %arg2, %c0_i32 : i32
    %1 = arith.extui %0 : i1 to i32
    %c0_i32_0 = arith.constant 0 : i32
    %2 = arith.cmpi ne, %1, %c0_i32_0 : i32
    scf.if %2 {
      %cst_10 = arith.constant 0.000000e+00 : f32
      %12 = vector.broadcast %cst_10 : f32 to vector<32x256xf32>
      %c0_11 = arith.constant 0 : index
      %c0_12 = arith.constant 0 : index
      %13 = vector.load %arg7[%c0_11, %c0_12] : memref<32x256xf32, #tpu.memory_space<vmem>>, vector<32x256xf32>
      tpu.vector_store %arg7[%c0_11, %c0_12], %12 {strides = array<i32>} : memref<32x256xf32, #tpu.memory_space<vmem>>, vector<32x256xf32>,
    } else {
    }
    %c0 = arith.constant 0 : index
    %c0_1 = arith.constant 0 : index
    %3 = vector.load %arg7[%c0, %c0_1] : memref<32x256xf32, #tpu.memory_space<vmem>>, vector<32x256xf32>
    %c0_2 = arith.constant 0 : index
    %c0_3 = arith.constant 0 : index
    %4 = vector.load %arg3[%c0_2, %c0_3] : memref<32x512xbf16, #tpu.memory_space<vmem>>, vector<32x512xbf16>
    %c0_4 = arith.constant 0 : index
    %c0_5 = arith.constant 0 : index
    %5 = vector.load %arg4[%c0_4, %c0_5] : memref<512x256xbf16, #tpu.memory_space<vmem>>, vector<512x256xbf16>
    %cst = arith.constant dense<0.000000e+00> : vector<32x256xf32>
    %6 = tpu.matmul %4, %5, %cst {dimension_numbers = #tpu.dot_dimension_numbers<[1], [0], [0], [1], [0, 0, 1, 1], [], []>} : vector<32x512xbf16>, vector<512x256xbf16>, vector<32x256xf32> -> vector<32x256xf32>
    %7 = arith.addf %3, %6 : vector<32x256xf32>
    %c0_6 = arith.constant 0 : index
    %c0_7 = arith.constant 0 : index
    %8 = vector.load %arg7[%c0_6, %c0_7] : memref<32x256xf32, #tpu.memory_space<vmem>>, vector<32x256xf32>
    tpu.vector_store %arg7[%c0_6, %c0_7], %7 {strides = array<i32>} : memref<32x256xf32, #tpu.memory_space<vmem>>, vector<32x256xf32>,
    %c0_i32_8 = arith.constant 0 : i32
    %9 = arith.cmpi eq, %arg2, %c0_i32_8 : i32
    %10 = arith.extui %9 : i1 to i32
    %c0_i32_9 = arith.constant 0 : i32
    %11 = arith.cmpi ne, %10, %c0_i32_9 : i32
    scf.if %11 {
      %c0_10 = arith.constant 0 : index
      %c0_11 = arith.constant 0 : index
      %12 = vector.load %arg7[%c0_10, %c0_11] : memref<32x256xf32, #tpu.memory_space<vmem>>, vector<32x256xf32>
      %c0_12 = arith.constant 0 : index
      %c0_13 = arith.constant 0 : index
      %13 = vector.load %arg5[%c0_12, %c0_13] : memref<1x256xf32, #tpu.memory_space<vmem>>, vector<1x256xf32>
      %14 = vector.broadcast %13 : vector<1x256xf32> to vector<32x256xf32>
      %15 = arith.addf %12, %14 : vector<32x256xf32>
      %cst_14 = arith.constant 0.000000e+00 : f32
      %16 = vector.broadcast %cst_14 : f32 to vector<32x256xf32>
      %17 = arith.maximumf %15, %16 : vector<32x256xf32>
      %c0_15 = arith.constant 0 : index
      %c0_16 = arith.constant 0 : index
      %18 = vector.load %arg6[%c0_15, %c0_16] : memref<32x256xf32, #tpu.memory_space<vmem>>, vector<32x256xf32>
      tpu.vector_store %arg6[%c0_15, %c0_16], %17 {strides = array<i32>} : memref<32x256xf32, #tpu.memory_space<vmem>>, vector<32x256xf32>,
    } else {
    }
    return
  }
  func.func @transform_0(%arg0: i32, %arg1: i32, %arg2: i32) -> (i32, i32) {
    %c0_i32 = arith.constant 0 : i32
    return %arg0, %arg2 : i32, i32
  }
  func.func @transform_1(%arg0: i32, %arg1: i32, %arg2: i32) -> (i32, i32) {
    %c0_i32 = arith.constant 0 : i32
    return %arg2, %arg1 : i32, i32
  }
  func.func @transform_2(%arg0: i32, %arg1: i32, %arg2: i32) -> (i32, i32) {
    %c0_i32 = arith.constant 0 : i32
    %c0_i32_0 = arith.constant 0 : i32
    return %c0_i32, %arg1 : i32, i32
  }
  func.func @transform_3(%arg0: i32, %arg1: i32, %arg2: i32) -> (i32, i32) {
    %c0_i32 = arith.constant 0 : i32
    return %arg0, %arg1 : i32, i32
  }
}

module attributes {stable_mosaic.version = 11 : i64} {
  func.func @_fused_matmul_kernel(%arg0: i32, %arg1: i32, %arg2: i32, %arg3: memref<8x512xbf16, #tpu.memory_space<vmem>>, %arg4: memref<512x256xbf16, #tpu.memory_space<vmem>>, %arg5: memref<1x256xf32, #tpu.memory_space<vmem>>, %arg6: memref<8x256xf32, #tpu.memory_space<vmem>>, %arg7: memref<8x256xf32, #tpu.memory_space<vmem>>) attributes {dimension_semantics = [#tpu.dimension_semantics<parallel>, #tpu.dimension_semantics<parallel>, #tpu.dimension_semantics<arbitrary>], iteration_bounds = array<i64: 1, 4, 1>, scalar_prefetch = 0 : i64, scratch_operands = 1 : i64, tpu.core_type = #tpu.core_type<tc>, window_params = [{transform_indices = @transform_0, window_bounds = array<i64: 8, 512>}, {transform_indices = @transform_1, window_bounds = array<i64: 512, 256>}, {transform_indices = @transform_2, window_bounds = array<i64: 1, 256>}, {transform_indices = @transform_3, window_bounds = array<i64: 8, 256>}]} {
    %c0_i32 = arith.constant 0 : i32
    %0 = arith.cmpi eq, %arg2, %c0_i32 : i32
    %1 = arith.extui %0 : i1 to i32
    %c0_i32_0 = arith.constant 0 : i32
    %2 = arith.cmpi ne, %1, %c0_i32_0 : i32
    scf.if %2 {
      %cst_10 = arith.constant 0.000000e+00 : f32
      %12 = vector.broadcast %cst_10 : f32 to vector<8x256xf32>
      %c0_11 = arith.constant 0 : index
      %c0_12 = arith.constant 0 : index
      %13 = vector.load %arg7[%c0_11, %c0_12] : memref<8x256xf32, #tpu.memory_space<vmem>>, vector<8x256xf32>
      tpu.vector_store %arg7[%c0_11, %c0_12], %12 {strides = array<i32>} : memref<8x256xf32, #tpu.memory_space<vmem>>, vector<8x256xf32>,
    } else {
    }
    %c0 = arith.constant 0 : index
    %c0_1 = arith.constant 0 : index
    %3 = vector.load %arg7[%c0, %c0_1] : memref<8x256xf32, #tpu.memory_space<vmem>>, vector<8x256xf32>
    %c0_2 = arith.constant 0 : index
    %c0_3 = arith.constant 0 : index
    %4 = vector.load %arg3[%c0_2, %c0_3] : memref<8x512xbf16, #tpu.memory_space<vmem>>, vector<8x512xbf16>
    %c0_4 = arith.constant 0 : index
    %c0_5 = arith.constant 0 : index
    %5 = vector.load %arg4[%c0_4, %c0_5] : memref<512x256xbf16, #tpu.memory_space<vmem>>, vector<512x256xbf16>
    %cst = arith.constant dense<0.000000e+00> : vector<8x256xf32>
    %6 = tpu.matmul %4, %5, %cst {dimension_numbers = #tpu.dot_dimension_numbers<[1], [0], [0], [1], [0, 0, 1, 1], [], []>} : vector<8x512xbf16>, vector<512x256xbf16>, vector<8x256xf32> -> vector<8x256xf32>
    %7 = arith.addf %3, %6 : vector<8x256xf32>
    %c0_6 = arith.constant 0 : index
    %c0_7 = arith.constant 0 : index
    %8 = vector.load %arg7[%c0_6, %c0_7] : memref<8x256xf32, #tpu.memory_space<vmem>>, vector<8x256xf32>
    tpu.vector_store %arg7[%c0_6, %c0_7], %7 {strides = array<i32>} : memref<8x256xf32, #tpu.memory_space<vmem>>, vector<8x256xf32>,
    %c0_i32_8 = arith.constant 0 : i32
    %9 = arith.cmpi eq, %arg2, %c0_i32_8 : i32
    %10 = arith.extui %9 : i1 to i32
    %c0_i32_9 = arith.constant 0 : i32
    %11 = arith.cmpi ne, %10, %c0_i32_9 : i32
    scf.if %11 {
      %c0_10 = arith.constant 0 : index
      %c0_11 = arith.constant 0 : index
      %12 = vector.load %arg7[%c0_10, %c0_11] : memref<8x256xf32, #tpu.memory_space<vmem>>, vector<8x256xf32>
      %c0_12 = arith.constant 0 : index
      %c0_13 = arith.constant 0 : index
      %13 = vector.load %arg5[%c0_12, %c0_13] : memref<1x256xf32, #tpu.memory_space<vmem>>, vector<1x256xf32>
      %14 = vector.broadcast %13 : vector<1x256xf32> to vector<8x256xf32>
      %15 = arith.addf %12, %14 : vector<8x256xf32>
      %c0_14 = arith.constant 0 : index
      %c0_15 = arith.constant 0 : index
      %16 = vector.load %arg6[%c0_14, %c0_15] : memref<8x256xf32, #tpu.memory_space<vmem>>, vector<8x256xf32>
      tpu.vector_store %arg6[%c0_14, %c0_15], %15 {strides = array<i32>} : memref<8x256xf32, #tpu.memory_space<vmem>>, vector<8x256xf32>,
    } else {
    }
    return
  }
  func.func @transform_0(%arg0: i32, %arg1: i32, %arg2: i32) -> (i32, i32) {
    %c0_i32 = arith.constant 0 : i32
    return %arg0, %arg2 : i32, i32
  }
  func.func @transform_1(%arg0: i32, %arg1: i32, %arg2: i32) -> (i32, i32) {
    %c0_i32 = arith.constant 0 : i32
    return %arg2, %arg1 : i32, i32
  }
  func.func @transform_2(%arg0: i32, %arg1: i32, %arg2: i32) -> (i32, i32) {
    %c0_i32 = arith.constant 0 : i32
    %c0_i32_0 = arith.constant 0 : i32
    return %c0_i32, %arg1 : i32, i32
  }
  func.func @transform_3(%arg0: i32, %arg1: i32, %arg2: i32) -> (i32, i32) {
    %c0_i32 = arith.constant 0 : i32
    return %arg0, %arg1 : i32, i32
  }
}

module attributes {stable_mosaic.version = 11 : i64} {
  func.func @_fused_matmul_kernel(%arg0: i32, %arg1: i32, %arg2: i32, %arg3: memref<8x256xbf16, #tpu.memory_space<vmem>>, %arg4: memref<256x256xbf16, #tpu.memory_space<vmem>>, %arg5: memref<1x256xf32, #tpu.memory_space<vmem>>, %arg6: memref<8x256xf32, #tpu.memory_space<vmem>>, %arg7: memref<8x256xf32, #tpu.memory_space<vmem>>) attributes {dimension_semantics = [#tpu.dimension_semantics<parallel>, #tpu.dimension_semantics<parallel>, #tpu.dimension_semantics<arbitrary>], iteration_bounds = array<i64: 1, 1, 9>, scalar_prefetch = 0 : i64, scratch_operands = 1 : i64, tpu.core_type = #tpu.core_type<tc>, window_params = [{transform_indices = @transform_0, window_bounds = array<i64: 8, 256>}, {transform_indices = @transform_1, window_bounds = array<i64: 256, 256>}, {transform_indices = @transform_2, window_bounds = array<i64: 1, 256>}, {transform_indices = @transform_3, window_bounds = array<i64: 8, 256>}]} {
    %c0_i32 = arith.constant 0 : i32
    %0 = arith.cmpi eq, %arg2, %c0_i32 : i32
    %1 = arith.extui %0 : i1 to i32
    %c0_i32_0 = arith.constant 0 : i32
    %2 = arith.cmpi ne, %1, %c0_i32_0 : i32
    scf.if %2 {
      %cst_9 = arith.constant 0.000000e+00 : f32
      %12 = vector.broadcast %cst_9 : f32 to vector<8x256xf32>
      %c0_10 = arith.constant 0 : index
      %c0_11 = arith.constant 0 : index
      %13 = vector.load %arg7[%c0_10, %c0_11] : memref<8x256xf32, #tpu.memory_space<vmem>>, vector<8x256xf32>
      tpu.vector_store %arg7[%c0_10, %c0_11], %12 {strides = array<i32>} : memref<8x256xf32, #tpu.memory_space<vmem>>, vector<8x256xf32>,
    } else {
    }
    %c0 = arith.constant 0 : index
    %c0_1 = arith.constant 0 : index
    %3 = vector.load %arg7[%c0, %c0_1] : memref<8x256xf32, #tpu.memory_space<vmem>>, vector<8x256xf32>
    %c0_2 = arith.constant 0 : index
    %c0_3 = arith.constant 0 : index
    %4 = vector.load %arg3[%c0_2, %c0_3] : memref<8x256xbf16, #tpu.memory_space<vmem>>, vector<8x256xbf16>
    %c0_4 = arith.constant 0 : index
    %c0_5 = arith.constant 0 : index
    %5 = vector.load %arg4[%c0_4, %c0_5] : memref<256x256xbf16, #tpu.memory_space<vmem>>, vector<256x256xbf16>
    %cst = arith.constant dense<0.000000e+00> : vector<8x256xf32>
    %6 = tpu.matmul %4, %5, %cst {dimension_numbers = #tpu.dot_dimension_numbers<[1], [0], [0], [1], [0, 0, 1, 1], [], []>} : vector<8x256xbf16>, vector<256x256xbf16>, vector<8x256xf32> -> vector<8x256xf32>
    %7 = arith.addf %3, %6 : vector<8x256xf32>
    %c0_6 = arith.constant 0 : index
    %c0_7 = arith.constant 0 : index
    %8 = vector.load %arg7[%c0_6, %c0_7] : memref<8x256xf32, #tpu.memory_space<vmem>>, vector<8x256xf32>
    tpu.vector_store %arg7[%c0_6, %c0_7], %7 {strides = array<i32>} : memref<8x256xf32, #tpu.memory_space<vmem>>, vector<8x256xf32>,
    %c8_i32 = arith.constant 8 : i32
    %9 = arith.cmpi eq, %arg2, %c8_i32 : i32
    %10 = arith.extui %9 : i1 to i32
    %c0_i32_8 = arith.constant 0 : i32
    %11 = arith.cmpi ne, %10, %c0_i32_8 : i32
    scf.if %11 {
      %c0_9 = arith.constant 0 : index
      %c0_10 = arith.constant 0 : index
      %12 = vector.load %arg7[%c0_9, %c0_10] : memref<8x256xf32, #tpu.memory_space<vmem>>, vector<8x256xf32>
      %c0_11 = arith.constant 0 : index
      %c0_12 = arith.constant 0 : index
      %13 = vector.load %arg5[%c0_11, %c0_12] : memref<1x256xf32, #tpu.memory_space<vmem>>, vector<1x256xf32>
      %14 = vector.broadcast %13 : vector<1x256xf32> to vector<8x256xf32>
      %15 = arith.addf %12, %14 : vector<8x256xf32>
      %cst_13 = arith.constant 0.000000e+00 : f32
      %16 = vector.broadcast %cst_13 : f32 to vector<8x256xf32>
      %17 = arith.maximumf %15, %16 : vector<8x256xf32>
      %c0_14 = arith.constant 0 : index
      %c0_15 = arith.constant 0 : index
      %18 = vector.load %arg6[%c0_14, %c0_15] : memref<8x256xf32, #tpu.memory_space<vmem>>, vector<8x256xf32>
      tpu.vector_store %arg6[%c0_14, %c0_15], %17 {strides = array<i32>} : memref<8x256xf32, #tpu.memory_space<vmem>>, vector<8x256xf32>,
    } else {
    }
    return
  }
  func.func @transform_0(%arg0: i32, %arg1: i32, %arg2: i32) -> (i32, i32) {
    %c0_i32 = arith.constant 0 : i32
    return %arg0, %arg2 : i32, i32
  }
  func.func @transform_1(%arg0: i32, %arg1: i32, %arg2: i32) -> (i32, i32) {
    %c0_i32 = arith.constant 0 : i32
    return %arg2, %arg1 : i32, i32
  }
  func.func @transform_2(%arg0: i32, %arg1: i32, %arg2: i32) -> (i32, i32) {
    %c0_i32 = arith.constant 0 : i32
    %c0_i32_0 = arith.constant 0 : i32
    return %c0_i32, %arg1 : i32, i32
  }
  func.func @transform_3(%arg0: i32, %arg1: i32, %arg2: i32) -> (i32, i32) {
    %c0_i32 = arith.constant 0 : i32
    return %arg0, %arg1 : i32, i32
  }
}

module attributes {stable_mosaic.version = 11 : i64} {
  func.func @_fused_matmul_kernel(%arg0: i32, %arg1: i32, %arg2: i32, %arg3: memref<8x256xbf16, #tpu.memory_space<vmem>>, %arg4: memref<256x256xbf16, #tpu.memory_space<vmem>>, %arg5: memref<1x256xf32, #tpu.memory_space<vmem>>, %arg6: memref<8x256xf32, #tpu.memory_space<vmem>>, %arg7: memref<8x256xf32, #tpu.memory_space<vmem>>, %arg8: memref<8x256xf32, #tpu.memory_space<vmem>>) attributes {dimension_semantics = [#tpu.dimension_semantics<parallel>, #tpu.dimension_semantics<parallel>, #tpu.dimension_semantics<arbitrary>], iteration_bounds = array<i64: 1, 4, 1>, scalar_prefetch = 0 : i64, scratch_operands = 1 : i64, tpu.core_type = #tpu.core_type<tc>, window_params = [{transform_indices = @transform_0, window_bounds = array<i64: 8, 256>}, {transform_indices = @transform_1, window_bounds = array<i64: 256, 256>}, {transform_indices = @transform_2, window_bounds = array<i64: 1, 256>}, {transform_indices = @transform_3, window_bounds = array<i64: 8, 256>}, {transform_indices = @transform_4, window_bounds = array<i64: 8, 256>}]} {
    %c0_i32 = arith.constant 0 : i32
    %0 = arith.cmpi eq, %arg2, %c0_i32 : i32
    %1 = arith.extui %0 : i1 to i32
    %c0_i32_0 = arith.constant 0 : i32
    %2 = arith.cmpi ne, %1, %c0_i32_0 : i32
    scf.if %2 {
      %cst_10 = arith.constant 0.000000e+00 : f32
      %12 = vector.broadcast %cst_10 : f32 to vector<8x256xf32>
      %c0_11 = arith.constant 0 : index
      %c0_12 = arith.constant 0 : index
      %13 = vector.load %arg8[%c0_11, %c0_12] : memref<8x256xf32, #tpu.memory_space<vmem>>, vector<8x256xf32>
      tpu.vector_store %arg8[%c0_11, %c0_12], %12 {strides = array<i32>} : memref<8x256xf32, #tpu.memory_space<vmem>>, vector<8x256xf32>,
    } else {
    }
    %c0 = arith.constant 0 : index
    %c0_1 = arith.constant 0 : index
    %3 = vector.load %arg8[%c0, %c0_1] : memref<8x256xf32, #tpu.memory_space<vmem>>, vector<8x256xf32>
    %c0_2 = arith.constant 0 : index
    %c0_3 = arith.constant 0 : index
    %4 = vector.load %arg3[%c0_2, %c0_3] : memref<8x256xbf16, #tpu.memory_space<vmem>>, vector<8x256xbf16>
    %c0_4 = arith.constant 0 : index
    %c0_5 = arith.constant 0 : index
    %5 = vector.load %arg4[%c0_4, %c0_5] : memref<256x256xbf16, #tpu.memory_space<vmem>>, vector<256x256xbf16>
    %cst = arith.constant dense<0.000000e+00> : vector<8x256xf32>
    %6 = tpu.matmul %4, %5, %cst {dimension_numbers = #tpu.dot_dimension_numbers<[1], [0], [0], [1], [0, 0, 1, 1], [], []>} : vector<8x256xbf16>, vector<256x256xbf16>, vector<8x256xf32> -> vector<8x256xf32>
    %7 = arith.addf %3, %6 : vector<8x256xf32>
    %c0_6 = arith.constant 0 : index
    %c0_7 = arith.constant 0 : index
    %8 = vector.load %arg8[%c0_6, %c0_7] : memref<8x256xf32, #tpu.memory_space<vmem>>, vector<8x256xf32>
    tpu.vector_store %arg8[%c0_6, %c0_7], %7 {strides = array<i32>} : memref<8x256xf32, #tpu.memory_space<vmem>>, vector<8x256xf32>,
    %c0_i32_8 = arith.constant 0 : i32
    %9 = arith.cmpi eq, %arg2, %c0_i32_8 : i32
    %10 = arith.extui %9 : i1 to i32
    %c0_i32_9 = arith.constant 0 : i32
    %11 = arith.cmpi ne, %10, %c0_i32_9 : i32
    scf.if %11 {
      %c0_10 = arith.constant 0 : index
      %c0_11 = arith.constant 0 : index
      %12 = vector.load %arg8[%c0_10, %c0_11] : memref<8x256xf32, #tpu.memory_space<vmem>>, vector<8x256xf32>
      %c0_12 = arith.constant 0 : index
      %c0_13 = arith.constant 0 : index
      %13 = vector.load %arg5[%c0_12, %c0_13] : memref<1x256xf32, #tpu.memory_space<vmem>>, vector<1x256xf32>
      %14 = vector.broadcast %13 : vector<1x256xf32> to vector<8x256xf32>
      %15 = arith.addf %12, %14 : vector<8x256xf32>
      %c0_14 = arith.constant 0 : index
      %c0_15 = arith.constant 0 : index
      %16 = vector.load %arg6[%c0_14, %c0_15] : memref<8x256xf32, #tpu.memory_space<vmem>>, vector<8x256xf32>
      %17 = arith.addf %15, %16 : vector<8x256xf32>
      %cst_16 = arith.constant 0.000000e+00 : f32
      %18 = vector.broadcast %cst_16 : f32 to vector<8x256xf32>
      %19 = arith.maximumf %17, %18 : vector<8x256xf32>
      %c0_17 = arith.constant 0 : index
      %c0_18 = arith.constant 0 : index
      %20 = vector.load %arg7[%c0_17, %c0_18] : memref<8x256xf32, #tpu.memory_space<vmem>>, vector<8x256xf32>
      tpu.vector_store %arg7[%c0_17, %c0_18], %19 {strides = array<i32>} : memref<8x256xf32, #tpu.memory_space<vmem>>, vector<8x256xf32>,
    } else {
    }
    return
  }
  func.func @transform_0(%arg0: i32, %arg1: i32, %arg2: i32) -> (i32, i32) {
    %c0_i32 = arith.constant 0 : i32
    return %arg0, %arg2 : i32, i32
  }
  func.func @transform_1(%arg0: i32, %arg1: i32, %arg2: i32) -> (i32, i32) {
    %c0_i32 = arith.constant 0 : i32
    return %arg2, %arg1 : i32, i32
  }
  func.func @transform_2(%arg0: i32, %arg1: i32, %arg2: i32) -> (i32, i32) {
    %c0_i32 = arith.constant 0 : i32
    %c0_i32_0 = arith.constant 0 : i32
    return %c0_i32, %arg1 : i32, i32
  }
  func.func @transform_3(%arg0: i32, %arg1: i32, %arg2: i32) -> (i32, i32) {
    %c0_i32 = arith.constant 0 : i32
    return %arg0, %arg1 : i32, i32
  }
  func.func @transform_4(%arg0: i32, %arg1: i32, %arg2: i32) -> (i32, i32) {
    %c0_i32 = arith.constant 0 : i32
    return %arg0, %arg1 : i32, i32
  }
}

module attributes {stable_mosaic.version = 11 : i64} {
  func.func @_fused_matmul_kernel(%arg0: i32, %arg1: i32, %arg2: i32, %arg3: memref<8x512xbf16, #tpu.memory_space<vmem>>, %arg4: memref<512x256xbf16, #tpu.memory_space<vmem>>, %arg5: memref<1x256xf32, #tpu.memory_space<vmem>>, %arg6: memref<8x256xf32, #tpu.memory_space<vmem>>, %arg7: memref<8x256xf32, #tpu.memory_space<vmem>>) attributes {dimension_semantics = [#tpu.dimension_semantics<parallel>, #tpu.dimension_semantics<parallel>, #tpu.dimension_semantics<arbitrary>], iteration_bounds = array<i64: 1, 1, 2>, scalar_prefetch = 0 : i64, scratch_operands = 1 : i64, tpu.core_type = #tpu.core_type<tc>, window_params = [{transform_indices = @transform_0, window_bounds = array<i64: 8, 512>}, {transform_indices = @transform_1, window_bounds = array<i64: 512, 256>}, {transform_indices = @transform_2, window_bounds = array<i64: 1, 256>}, {transform_indices = @transform_3, window_bounds = array<i64: 8, 256>}]} {
    %c0_i32 = arith.constant 0 : i32
    %0 = arith.cmpi eq, %arg2, %c0_i32 : i32
    %1 = arith.extui %0 : i1 to i32
    %c0_i32_0 = arith.constant 0 : i32
    %2 = arith.cmpi ne, %1, %c0_i32_0 : i32
    scf.if %2 {
      %cst_9 = arith.constant 0.000000e+00 : f32
      %12 = vector.broadcast %cst_9 : f32 to vector<8x256xf32>
      %c0_10 = arith.constant 0 : index
      %c0_11 = arith.constant 0 : index
      %13 = vector.load %arg7[%c0_10, %c0_11] : memref<8x256xf32, #tpu.memory_space<vmem>>, vector<8x256xf32>
      tpu.vector_store %arg7[%c0_10, %c0_11], %12 {strides = array<i32>} : memref<8x256xf32, #tpu.memory_space<vmem>>, vector<8x256xf32>,
    } else {
    }
    %c0 = arith.constant 0 : index
    %c0_1 = arith.constant 0 : index
    %3 = vector.load %arg7[%c0, %c0_1] : memref<8x256xf32, #tpu.memory_space<vmem>>, vector<8x256xf32>
    %c0_2 = arith.constant 0 : index
    %c0_3 = arith.constant 0 : index
    %4 = vector.load %arg3[%c0_2, %c0_3] : memref<8x512xbf16, #tpu.memory_space<vmem>>, vector<8x512xbf16>
    %c0_4 = arith.constant 0 : index
    %c0_5 = arith.constant 0 : index
    %5 = vector.load %arg4[%c0_4, %c0_5] : memref<512x256xbf16, #tpu.memory_space<vmem>>, vector<512x256xbf16>
    %cst = arith.constant dense<0.000000e+00> : vector<8x256xf32>
    %6 = tpu.matmul %4, %5, %cst {dimension_numbers = #tpu.dot_dimension_numbers<[1], [0], [0], [1], [0, 0, 1, 1], [], []>} : vector<8x512xbf16>, vector<512x256xbf16>, vector<8x256xf32> -> vector<8x256xf32>
    %7 = arith.addf %3, %6 : vector<8x256xf32>
    %c0_6 = arith.constant 0 : index
    %c0_7 = arith.constant 0 : index
    %8 = vector.load %arg7[%c0_6, %c0_7] : memref<8x256xf32, #tpu.memory_space<vmem>>, vector<8x256xf32>
    tpu.vector_store %arg7[%c0_6, %c0_7], %7 {strides = array<i32>} : memref<8x256xf32, #tpu.memory_space<vmem>>, vector<8x256xf32>,
    %c1_i32 = arith.constant 1 : i32
    %9 = arith.cmpi eq, %arg2, %c1_i32 : i32
    %10 = arith.extui %9 : i1 to i32
    %c0_i32_8 = arith.constant 0 : i32
    %11 = arith.cmpi ne, %10, %c0_i32_8 : i32
    scf.if %11 {
      %c0_9 = arith.constant 0 : index
      %c0_10 = arith.constant 0 : index
      %12 = vector.load %arg7[%c0_9, %c0_10] : memref<8x256xf32, #tpu.memory_space<vmem>>, vector<8x256xf32>
      %c0_11 = arith.constant 0 : index
      %c0_12 = arith.constant 0 : index
      %13 = vector.load %arg5[%c0_11, %c0_12] : memref<1x256xf32, #tpu.memory_space<vmem>>, vector<1x256xf32>
      %14 = vector.broadcast %13 : vector<1x256xf32> to vector<8x256xf32>
      %15 = arith.addf %12, %14 : vector<8x256xf32>
      %cst_13 = arith.constant 0.000000e+00 : f32
      %16 = vector.broadcast %cst_13 : f32 to vector<8x256xf32>
      %17 = arith.maximumf %15, %16 : vector<8x256xf32>
      %c0_14 = arith.constant 0 : index
      %c0_15 = arith.constant 0 : index
      %18 = vector.load %arg6[%c0_14, %c0_15] : memref<8x256xf32, #tpu.memory_space<vmem>>, vector<8x256xf32>
      tpu.vector_store %arg6[%c0_14, %c0_15], %17 {strides = array<i32>} : memref<8x256xf32, #tpu.memory_space<vmem>>, vector<8x256xf32>,
    } else {
    }
    return
  }
  func.func @transform_0(%arg0: i32, %arg1: i32, %arg2: i32) -> (i32, i32) {
    %c0_i32 = arith.constant 0 : i32
    return %arg0, %arg2 : i32, i32
  }
  func.func @transform_1(%arg0: i32, %arg1: i32, %arg2: i32) -> (i32, i32) {
    %c0_i32 = arith.constant 0 : i32
    return %arg2, %arg1 : i32, i32
  }
  func.func @transform_2(%arg0: i32, %arg1: i32, %arg2: i32) -> (i32, i32) {
    %c0_i32 = arith.constant 0 : i32
    %c0_i32_0 = arith.constant 0 : i32
    return %c0_i32, %arg1 : i32, i32
  }
  func.func @transform_3(%arg0: i32, %arg1: i32, %arg2: i32) -> (i32, i32) {
    %c0_i32 = arith.constant 0 : i32
    return %arg0, %arg1 : i32, i32
  }
}

module attributes {stable_mosaic.version = 11 : i64} {
  func.func @_fused_matmul_kernel(%arg0: i32, %arg1: i32, %arg2: i32, %arg3: memref<8x512xbf16, #tpu.memory_space<vmem>>, %arg4: memref<512x256xbf16, #tpu.memory_space<vmem>>, %arg5: memref<1x256xf32, #tpu.memory_space<vmem>>, %arg6: memref<8x256xf32, #tpu.memory_space<vmem>>, %arg7: memref<8x256xf32, #tpu.memory_space<vmem>>) attributes {dimension_semantics = [#tpu.dimension_semantics<parallel>, #tpu.dimension_semantics<parallel>, #tpu.dimension_semantics<arbitrary>], iteration_bounds = array<i64: 1, 2, 2>, scalar_prefetch = 0 : i64, scratch_operands = 1 : i64, tpu.core_type = #tpu.core_type<tc>, window_params = [{transform_indices = @transform_0, window_bounds = array<i64: 8, 512>}, {transform_indices = @transform_1, window_bounds = array<i64: 512, 256>}, {transform_indices = @transform_2, window_bounds = array<i64: 1, 256>}, {transform_indices = @transform_3, window_bounds = array<i64: 8, 256>}]} {
    %c0_i32 = arith.constant 0 : i32
    %0 = arith.cmpi eq, %arg2, %c0_i32 : i32
    %1 = arith.extui %0 : i1 to i32
    %c0_i32_0 = arith.constant 0 : i32
    %2 = arith.cmpi ne, %1, %c0_i32_0 : i32
    scf.if %2 {
      %cst_9 = arith.constant 0.000000e+00 : f32
      %12 = vector.broadcast %cst_9 : f32 to vector<8x256xf32>
      %c0_10 = arith.constant 0 : index
      %c0_11 = arith.constant 0 : index
      %13 = vector.load %arg7[%c0_10, %c0_11] : memref<8x256xf32, #tpu.memory_space<vmem>>, vector<8x256xf32>
      tpu.vector_store %arg7[%c0_10, %c0_11], %12 {strides = array<i32>} : memref<8x256xf32, #tpu.memory_space<vmem>>, vector<8x256xf32>,
    } else {
    }
    %c0 = arith.constant 0 : index
    %c0_1 = arith.constant 0 : index
    %3 = vector.load %arg7[%c0, %c0_1] : memref<8x256xf32, #tpu.memory_space<vmem>>, vector<8x256xf32>
    %c0_2 = arith.constant 0 : index
    %c0_3 = arith.constant 0 : index
    %4 = vector.load %arg3[%c0_2, %c0_3] : memref<8x512xbf16, #tpu.memory_space<vmem>>, vector<8x512xbf16>
    %c0_4 = arith.constant 0 : index
    %c0_5 = arith.constant 0 : index
    %5 = vector.load %arg4[%c0_4, %c0_5] : memref<512x256xbf16, #tpu.memory_space<vmem>>, vector<512x256xbf16>
    %cst = arith.constant dense<0.000000e+00> : vector<8x256xf32>
    %6 = tpu.matmul %4, %5, %cst {dimension_numbers = #tpu.dot_dimension_numbers<[1], [0], [0], [1], [0, 0, 1, 1], [], []>} : vector<8x512xbf16>, vector<512x256xbf16>, vector<8x256xf32> -> vector<8x256xf32>
    %7 = arith.addf %3, %6 : vector<8x256xf32>
    %c0_6 = arith.constant 0 : index
    %c0_7 = arith.constant 0 : index
    %8 = vector.load %arg7[%c0_6, %c0_7] : memref<8x256xf32, #tpu.memory_space<vmem>>, vector<8x256xf32>
    tpu.vector_store %arg7[%c0_6, %c0_7], %7 {strides = array<i32>} : memref<8x256xf32, #tpu.memory_space<vmem>>, vector<8x256xf32>,
    %c1_i32 = arith.constant 1 : i32
    %9 = arith.cmpi eq, %arg2, %c1_i32 : i32
    %10 = arith.extui %9 : i1 to i32
    %c0_i32_8 = arith.constant 0 : i32
    %11 = arith.cmpi ne, %10, %c0_i32_8 : i32
    scf.if %11 {
      %c0_9 = arith.constant 0 : index
      %c0_10 = arith.constant 0 : index
      %12 = vector.load %arg7[%c0_9, %c0_10] : memref<8x256xf32, #tpu.memory_space<vmem>>, vector<8x256xf32>
      %c0_11 = arith.constant 0 : index
      %c0_12 = arith.constant 0 : index
      %13 = vector.load %arg5[%c0_11, %c0_12] : memref<1x256xf32, #tpu.memory_space<vmem>>, vector<1x256xf32>
      %14 = vector.broadcast %13 : vector<1x256xf32> to vector<8x256xf32>
      %15 = arith.addf %12, %14 : vector<8x256xf32>
      %cst_13 = arith.constant 0.000000e+00 : f32
      %16 = vector.broadcast %cst_13 : f32 to vector<8x256xf32>
      %17 = arith.maximumf %15, %16 : vector<8x256xf32>
      %c0_14 = arith.constant 0 : index
      %c0_15 = arith.constant 0 : index
      %18 = vector.load %arg6[%c0_14, %c0_15] : memref<8x256xf32, #tpu.memory_space<vmem>>, vector<8x256xf32>
      tpu.vector_store %arg6[%c0_14, %c0_15], %17 {strides = array<i32>} : memref<8x256xf32, #tpu.memory_space<vmem>>, vector<8x256xf32>,
    } else {
    }
    return
  }
  func.func @transform_0(%arg0: i32, %arg1: i32, %arg2: i32) -> (i32, i32) {
    %c0_i32 = arith.constant 0 : i32
    return %arg0, %arg2 : i32, i32
  }
  func.func @transform_1(%arg0: i32, %arg1: i32, %arg2: i32) -> (i32, i32) {
    %c0_i32 = arith.constant 0 : i32
    return %arg2, %arg1 : i32, i32
  }
  func.func @transform_2(%arg0: i32, %arg1: i32, %arg2: i32) -> (i32, i32) {
    %c0_i32 = arith.constant 0 : i32
    %c0_i32_0 = arith.constant 0 : i32
    return %c0_i32, %arg1 : i32, i32
  }
  func.func @transform_3(%arg0: i32, %arg1: i32, %arg2: i32) -> (i32, i32) {
    %c0_i32 = arith.constant 0 : i32
    return %arg0, %arg1 : i32, i32
  }
}

module attributes {stable_mosaic.version = 11 : i64} {
  func.func @_fused_matmul_kernel(%arg0: i32, %arg1: i32, %arg2: i32, %arg3: memref<8x512xbf16, #tpu.memory_space<vmem>>, %arg4: memref<512x256xbf16, #tpu.memory_space<vmem>>, %arg5: memref<1x256xf32, #tpu.memory_space<vmem>>, %arg6: memref<8x256xf32, #tpu.memory_space<vmem>>, %arg7: memref<8x256xf32, #tpu.memory_space<vmem>>) attributes {dimension_semantics = [#tpu.dimension_semantics<parallel>, #tpu.dimension_semantics<parallel>, #tpu.dimension_semantics<arbitrary>], iteration_bounds = array<i64: 1, 2, 9>, scalar_prefetch = 0 : i64, scratch_operands = 1 : i64, tpu.core_type = #tpu.core_type<tc>, window_params = [{transform_indices = @transform_0, window_bounds = array<i64: 8, 512>}, {transform_indices = @transform_1, window_bounds = array<i64: 512, 256>}, {transform_indices = @transform_2, window_bounds = array<i64: 1, 256>}, {transform_indices = @transform_3, window_bounds = array<i64: 8, 256>}]} {
    %c0_i32 = arith.constant 0 : i32
    %0 = arith.cmpi eq, %arg2, %c0_i32 : i32
    %1 = arith.extui %0 : i1 to i32
    %c0_i32_0 = arith.constant 0 : i32
    %2 = arith.cmpi ne, %1, %c0_i32_0 : i32
    scf.if %2 {
      %cst_9 = arith.constant 0.000000e+00 : f32
      %12 = vector.broadcast %cst_9 : f32 to vector<8x256xf32>
      %c0_10 = arith.constant 0 : index
      %c0_11 = arith.constant 0 : index
      %13 = vector.load %arg7[%c0_10, %c0_11] : memref<8x256xf32, #tpu.memory_space<vmem>>, vector<8x256xf32>
      tpu.vector_store %arg7[%c0_10, %c0_11], %12 {strides = array<i32>} : memref<8x256xf32, #tpu.memory_space<vmem>>, vector<8x256xf32>,
    } else {
    }
    %c0 = arith.constant 0 : index
    %c0_1 = arith.constant 0 : index
    %3 = vector.load %arg7[%c0, %c0_1] : memref<8x256xf32, #tpu.memory_space<vmem>>, vector<8x256xf32>
    %c0_2 = arith.constant 0 : index
    %c0_3 = arith.constant 0 : index
    %4 = vector.load %arg3[%c0_2, %c0_3] : memref<8x512xbf16, #tpu.memory_space<vmem>>, vector<8x512xbf16>
    %c0_4 = arith.constant 0 : index
    %c0_5 = arith.constant 0 : index
    %5 = vector.load %arg4[%c0_4, %c0_5] : memref<512x256xbf16, #tpu.memory_space<vmem>>, vector<512x256xbf16>
    %cst = arith.constant dense<0.000000e+00> : vector<8x256xf32>
    %6 = tpu.matmul %4, %5, %cst {dimension_numbers = #tpu.dot_dimension_numbers<[1], [0], [0], [1], [0, 0, 1, 1], [], []>} : vector<8x512xbf16>, vector<512x256xbf16>, vector<8x256xf32> -> vector<8x256xf32>
    %7 = arith.addf %3, %6 : vector<8x256xf32>
    %c0_6 = arith.constant 0 : index
    %c0_7 = arith.constant 0 : index
    %8 = vector.load %arg7[%c0_6, %c0_7] : memref<8x256xf32, #tpu.memory_space<vmem>>, vector<8x256xf32>
    tpu.vector_store %arg7[%c0_6, %c0_7], %7 {strides = array<i32>} : memref<8x256xf32, #tpu.memory_space<vmem>>, vector<8x256xf32>,
    %c8_i32 = arith.constant 8 : i32
    %9 = arith.cmpi eq, %arg2, %c8_i32 : i32
    %10 = arith.extui %9 : i1 to i32
    %c0_i32_8 = arith.constant 0 : i32
    %11 = arith.cmpi ne, %10, %c0_i32_8 : i32
    scf.if %11 {
      %c0_9 = arith.constant 0 : index
      %c0_10 = arith.constant 0 : index
      %12 = vector.load %arg7[%c0_9, %c0_10] : memref<8x256xf32, #tpu.memory_space<vmem>>, vector<8x256xf32>
      %c0_11 = arith.constant 0 : index
      %c0_12 = arith.constant 0 : index
      %13 = vector.load %arg5[%c0_11, %c0_12] : memref<1x256xf32, #tpu.memory_space<vmem>>, vector<1x256xf32>
      %14 = vector.broadcast %13 : vector<1x256xf32> to vector<8x256xf32>
      %15 = arith.addf %12, %14 : vector<8x256xf32>
      %cst_13 = arith.constant 0.000000e+00 : f32
      %16 = vector.broadcast %cst_13 : f32 to vector<8x256xf32>
      %17 = arith.maximumf %15, %16 : vector<8x256xf32>
      %c0_14 = arith.constant 0 : index
      %c0_15 = arith.constant 0 : index
      %18 = vector.load %arg6[%c0_14, %c0_15] : memref<8x256xf32, #tpu.memory_space<vmem>>, vector<8x256xf32>
      tpu.vector_store %arg6[%c0_14, %c0_15], %17 {strides = array<i32>} : memref<8x256xf32, #tpu.memory_space<vmem>>, vector<8x256xf32>,
    } else {
    }
    return
  }
  func.func @transform_0(%arg0: i32, %arg1: i32, %arg2: i32) -> (i32, i32) {
    %c0_i32 = arith.constant 0 : i32
    return %arg0, %arg2 : i32, i32
  }
  func.func @transform_1(%arg0: i32, %arg1: i32, %arg2: i32) -> (i32, i32) {
    %c0_i32 = arith.constant 0 : i32
    return %arg2, %arg1 : i32, i32
  }
  func.func @transform_2(%arg0: i32, %arg1: i32, %arg2: i32) -> (i32, i32) {
    %c0_i32 = arith.constant 0 : i32
    %c0_i32_0 = arith.constant 0 : i32
    return %c0_i32, %arg1 : i32, i32
  }
  func.func @transform_3(%arg0: i32, %arg1: i32, %arg2: i32) -> (i32, i32) {
    %c0_i32 = arith.constant 0 : i32
    return %arg0, %arg1 : i32, i32
  }
}

module attributes {stable_mosaic.version = 11 : i64} {
  func.func @_fused_matmul_kernel(%arg0: i32, %arg1: i32, %arg2: i32, %arg3: memref<8x512xbf16, #tpu.memory_space<vmem>>, %arg4: memref<512x256xbf16, #tpu.memory_space<vmem>>, %arg5: memref<1x256xf32, #tpu.memory_space<vmem>>, %arg6: memref<8x256xf32, #tpu.memory_space<vmem>>, %arg7: memref<8x256xf32, #tpu.memory_space<vmem>>) attributes {dimension_semantics = [#tpu.dimension_semantics<parallel>, #tpu.dimension_semantics<parallel>, #tpu.dimension_semantics<arbitrary>], iteration_bounds = array<i64: 1, 8, 2>, scalar_prefetch = 0 : i64, scratch_operands = 1 : i64, tpu.core_type = #tpu.core_type<tc>, window_params = [{transform_indices = @transform_0, window_bounds = array<i64: 8, 512>}, {transform_indices = @transform_1, window_bounds = array<i64: 512, 256>}, {transform_indices = @transform_2, window_bounds = array<i64: 1, 256>}, {transform_indices = @transform_3, window_bounds = array<i64: 8, 256>}]} {
    %c0_i32 = arith.constant 0 : i32
    %0 = arith.cmpi eq, %arg2, %c0_i32 : i32
    %1 = arith.extui %0 : i1 to i32
    %c0_i32_0 = arith.constant 0 : i32
    %2 = arith.cmpi ne, %1, %c0_i32_0 : i32
    scf.if %2 {
      %cst_9 = arith.constant 0.000000e+00 : f32
      %12 = vector.broadcast %cst_9 : f32 to vector<8x256xf32>
      %c0_10 = arith.constant 0 : index
      %c0_11 = arith.constant 0 : index
      %13 = vector.load %arg7[%c0_10, %c0_11] : memref<8x256xf32, #tpu.memory_space<vmem>>, vector<8x256xf32>
      tpu.vector_store %arg7[%c0_10, %c0_11], %12 {strides = array<i32>} : memref<8x256xf32, #tpu.memory_space<vmem>>, vector<8x256xf32>,
    } else {
    }
    %c0 = arith.constant 0 : index
    %c0_1 = arith.constant 0 : index
    %3 = vector.load %arg7[%c0, %c0_1] : memref<8x256xf32, #tpu.memory_space<vmem>>, vector<8x256xf32>
    %c0_2 = arith.constant 0 : index
    %c0_3 = arith.constant 0 : index
    %4 = vector.load %arg3[%c0_2, %c0_3] : memref<8x512xbf16, #tpu.memory_space<vmem>>, vector<8x512xbf16>
    %c0_4 = arith.constant 0 : index
    %c0_5 = arith.constant 0 : index
    %5 = vector.load %arg4[%c0_4, %c0_5] : memref<512x256xbf16, #tpu.memory_space<vmem>>, vector<512x256xbf16>
    %cst = arith.constant dense<0.000000e+00> : vector<8x256xf32>
    %6 = tpu.matmul %4, %5, %cst {dimension_numbers = #tpu.dot_dimension_numbers<[1], [0], [0], [1], [0, 0, 1, 1], [], []>} : vector<8x512xbf16>, vector<512x256xbf16>, vector<8x256xf32> -> vector<8x256xf32>
    %7 = arith.addf %3, %6 : vector<8x256xf32>
    %c0_6 = arith.constant 0 : index
    %c0_7 = arith.constant 0 : index
    %8 = vector.load %arg7[%c0_6, %c0_7] : memref<8x256xf32, #tpu.memory_space<vmem>>, vector<8x256xf32>
    tpu.vector_store %arg7[%c0_6, %c0_7], %7 {strides = array<i32>} : memref<8x256xf32, #tpu.memory_space<vmem>>, vector<8x256xf32>,
    %c1_i32 = arith.constant 1 : i32
    %9 = arith.cmpi eq, %arg2, %c1_i32 : i32
    %10 = arith.extui %9 : i1 to i32
    %c0_i32_8 = arith.constant 0 : i32
    %11 = arith.cmpi ne, %10, %c0_i32_8 : i32
    scf.if %11 {
      %c0_9 = arith.constant 0 : index
      %c0_10 = arith.constant 0 : index
      %12 = vector.load %arg7[%c0_9, %c0_10] : memref<8x256xf32, #tpu.memory_space<vmem>>, vector<8x256xf32>
      %c0_11 = arith.constant 0 : index
      %c0_12 = arith.constant 0 : index
      %13 = vector.load %arg5[%c0_11, %c0_12] : memref<1x256xf32, #tpu.memory_space<vmem>>, vector<1x256xf32>
      %14 = vector.broadcast %13 : vector<1x256xf32> to vector<8x256xf32>
      %15 = arith.addf %12, %14 : vector<8x256xf32>
      %c0_13 = arith.constant 0 : index
      %c0_14 = arith.constant 0 : index
      %16 = vector.load %arg6[%c0_13, %c0_14] : memref<8x256xf32, #tpu.memory_space<vmem>>, vector<8x256xf32>
      tpu.vector_store %arg6[%c0_13, %c0_14], %15 {strides = array<i32>} : memref<8x256xf32, #tpu.memory_space<vmem>>, vector<8x256xf32>,
    } else {
    }
    return
  }
  func.func @transform_0(%arg0: i32, %arg1: i32, %arg2: i32) -> (i32, i32) {
    %c0_i32 = arith.constant 0 : i32
    return %arg0, %arg2 : i32, i32
  }
  func.func @transform_1(%arg0: i32, %arg1: i32, %arg2: i32) -> (i32, i32) {
    %c0_i32 = arith.constant 0 : i32
    return %arg2, %arg1 : i32, i32
  }
  func.func @transform_2(%arg0: i32, %arg1: i32, %arg2: i32) -> (i32, i32) {
    %c0_i32 = arith.constant 0 : i32
    %c0_i32_0 = arith.constant 0 : i32
    return %c0_i32, %arg1 : i32, i32
  }
  func.func @transform_3(%arg0: i32, %arg1: i32, %arg2: i32) -> (i32, i32) {
    %c0_i32 = arith.constant 0 : i32
    return %arg0, %arg1 : i32, i32
  }
}

module attributes {stable_mosaic.version = 11 : i64} {
  func.func @_fused_matmul_kernel(%arg0: i32, %arg1: i32, %arg2: i32, %arg3: memref<8x512xbf16, #tpu.memory_space<vmem>>, %arg4: memref<512x256xbf16, #tpu.memory_space<vmem>>, %arg5: memref<1x256xf32, #tpu.memory_space<vmem>>, %arg6: memref<8x256xf32, #tpu.memory_space<vmem>>, %arg7: memref<8x256xf32, #tpu.memory_space<vmem>>, %arg8: memref<8x256xf32, #tpu.memory_space<vmem>>) attributes {dimension_semantics = [#tpu.dimension_semantics<parallel>, #tpu.dimension_semantics<parallel>, #tpu.dimension_semantics<arbitrary>], iteration_bounds = array<i64: 1, 8, 1>, scalar_prefetch = 0 : i64, scratch_operands = 1 : i64, tpu.core_type = #tpu.core_type<tc>, window_params = [{transform_indices = @transform_0, window_bounds = array<i64: 8, 512>}, {transform_indices = @transform_1, window_bounds = array<i64: 512, 256>}, {transform_indices = @transform_2, window_bounds = array<i64: 1, 256>}, {transform_indices = @transform_3, window_bounds = array<i64: 8, 256>}, {transform_indices = @transform_4, window_bounds = array<i64: 8, 256>}]} {
    %c0_i32 = arith.constant 0 : i32
    %0 = arith.cmpi eq, %arg2, %c0_i32 : i32
    %1 = arith.extui %0 : i1 to i32
    %c0_i32_0 = arith.constant 0 : i32
    %2 = arith.cmpi ne, %1, %c0_i32_0 : i32
    scf.if %2 {
      %cst_10 = arith.constant 0.000000e+00 : f32
      %12 = vector.broadcast %cst_10 : f32 to vector<8x256xf32>
      %c0_11 = arith.constant 0 : index
      %c0_12 = arith.constant 0 : index
      %13 = vector.load %arg8[%c0_11, %c0_12] : memref<8x256xf32, #tpu.memory_space<vmem>>, vector<8x256xf32>
      tpu.vector_store %arg8[%c0_11, %c0_12], %12 {strides = array<i32>} : memref<8x256xf32, #tpu.memory_space<vmem>>, vector<8x256xf32>,
    } else {
    }
    %c0 = arith.constant 0 : index
    %c0_1 = arith.constant 0 : index
    %3 = vector.load %arg8[%c0, %c0_1] : memref<8x256xf32, #tpu.memory_space<vmem>>, vector<8x256xf32>
    %c0_2 = arith.constant 0 : index
    %c0_3 = arith.constant 0 : index
    %4 = vector.load %arg3[%c0_2, %c0_3] : memref<8x512xbf16, #tpu.memory_space<vmem>>, vector<8x512xbf16>
    %c0_4 = arith.constant 0 : index
    %c0_5 = arith.constant 0 : index
    %5 = vector.load %arg4[%c0_4, %c0_5] : memref<512x256xbf16, #tpu.memory_space<vmem>>, vector<512x256xbf16>
    %cst = arith.constant dense<0.000000e+00> : vector<8x256xf32>
    %6 = tpu.matmul %4, %5, %cst {dimension_numbers = #tpu.dot_dimension_numbers<[1], [0], [0], [1], [0, 0, 1, 1], [], []>} : vector<8x512xbf16>, vector<512x256xbf16>, vector<8x256xf32> -> vector<8x256xf32>
    %7 = arith.addf %3, %6 : vector<8x256xf32>
    %c0_6 = arith.constant 0 : index
    %c0_7 = arith.constant 0 : index
    %8 = vector.load %arg8[%c0_6, %c0_7] : memref<8x256xf32, #tpu.memory_space<vmem>>, vector<8x256xf32>
    tpu.vector_store %arg8[%c0_6, %c0_7], %7 {strides = array<i32>} : memref<8x256xf32, #tpu.memory_space<vmem>>, vector<8x256xf32>,
    %c0_i32_8 = arith.constant 0 : i32
    %9 = arith.cmpi eq, %arg2, %c0_i32_8 : i32
    %10 = arith.extui %9 : i1 to i32
    %c0_i32_9 = arith.constant 0 : i32
    %11 = arith.cmpi ne, %10, %c0_i32_9 : i32
    scf.if %11 {
      %c0_10 = arith.constant 0 : index
      %c0_11 = arith.constant 0 : index
      %12 = vector.load %arg8[%c0_10, %c0_11] : memref<8x256xf32, #tpu.memory_space<vmem>>, vector<8x256xf32>
      %c0_12 = arith.constant 0 : index
      %c0_13 = arith.constant 0 : index
      %13 = vector.load %arg5[%c0_12, %c0_13] : memref<1x256xf32, #tpu.memory_space<vmem>>, vector<1x256xf32>
      %14 = vector.broadcast %13 : vector<1x256xf32> to vector<8x256xf32>
      %15 = arith.addf %12, %14 : vector<8x256xf32>
      %c0_14 = arith.constant 0 : index
      %c0_15 = arith.constant 0 : index
      %16 = vector.load %arg6[%c0_14, %c0_15] : memref<8x256xf32, #tpu.memory_space<vmem>>, vector<8x256xf32>
      %17 = arith.addf %15, %16 : vector<8x256xf32>
      %cst_16 = arith.constant 0.000000e+00 : f32
      %18 = vector.broadcast %cst_16 : f32 to vector<8x256xf32>
      %19 = arith.maximumf %17, %18 : vector<8x256xf32>
      %c0_17 = arith.constant 0 : index
      %c0_18 = arith.constant 0 : index
      %20 = vector.load %arg7[%c0_17, %c0_18] : memref<8x256xf32, #tpu.memory_space<vmem>>, vector<8x256xf32>
      tpu.vector_store %arg7[%c0_17, %c0_18], %19 {strides = array<i32>} : memref<8x256xf32, #tpu.memory_space<vmem>>, vector<8x256xf32>,
    } else {
    }
    return
  }
  func.func @transform_0(%arg0: i32, %arg1: i32, %arg2: i32) -> (i32, i32) {
    %c0_i32 = arith.constant 0 : i32
    return %arg0, %arg2 : i32, i32
  }
  func.func @transform_1(%arg0: i32, %arg1: i32, %arg2: i32) -> (i32, i32) {
    %c0_i32 = arith.constant 0 : i32
    return %arg2, %arg1 : i32, i32
  }
  func.func @transform_2(%arg0: i32, %arg1: i32, %arg2: i32) -> (i32, i32) {
    %c0_i32 = arith.constant 0 : i32
    %c0_i32_0 = arith.constant 0 : i32
    return %c0_i32, %arg1 : i32, i32
  }
  func.func @transform_3(%arg0: i32, %arg1: i32, %arg2: i32) -> (i32, i32) {
    %c0_i32 = arith.constant 0 : i32
    return %arg0, %arg1 : i32, i32
  }
  func.func @transform_4(%arg0: i32, %arg1: i32, %arg2: i32) -> (i32, i32) {
    %c0_i32 = arith.constant 0 : i32
    return %arg0, %arg1 : i32, i32
  }
}

module attributes {stable_mosaic.version = 11 : i64} {
  func.func @_fused_matmul_kernel(%arg0: i32, %arg1: i32, %arg2: i32, %arg3: memref<8x512xbf16, #tpu.memory_space<vmem>>, %arg4: memref<512x256xbf16, #tpu.memory_space<vmem>>, %arg5: memref<1x256xf32, #tpu.memory_space<vmem>>, %arg6: memref<8x256xf32, #tpu.memory_space<vmem>>, %arg7: memref<8x256xf32, #tpu.memory_space<vmem>>) attributes {dimension_semantics = [#tpu.dimension_semantics<parallel>, #tpu.dimension_semantics<parallel>, #tpu.dimension_semantics<arbitrary>], iteration_bounds = array<i64: 1, 2, 4>, scalar_prefetch = 0 : i64, scratch_operands = 1 : i64, tpu.core_type = #tpu.core_type<tc>, window_params = [{transform_indices = @transform_0, window_bounds = array<i64: 8, 512>}, {transform_indices = @transform_1, window_bounds = array<i64: 512, 256>}, {transform_indices = @transform_2, window_bounds = array<i64: 1, 256>}, {transform_indices = @transform_3, window_bounds = array<i64: 8, 256>}]} {
    %c0_i32 = arith.constant 0 : i32
    %0 = arith.cmpi eq, %arg2, %c0_i32 : i32
    %1 = arith.extui %0 : i1 to i32
    %c0_i32_0 = arith.constant 0 : i32
    %2 = arith.cmpi ne, %1, %c0_i32_0 : i32
    scf.if %2 {
      %cst_9 = arith.constant 0.000000e+00 : f32
      %12 = vector.broadcast %cst_9 : f32 to vector<8x256xf32>
      %c0_10 = arith.constant 0 : index
      %c0_11 = arith.constant 0 : index
      %13 = vector.load %arg7[%c0_10, %c0_11] : memref<8x256xf32, #tpu.memory_space<vmem>>, vector<8x256xf32>
      tpu.vector_store %arg7[%c0_10, %c0_11], %12 {strides = array<i32>} : memref<8x256xf32, #tpu.memory_space<vmem>>, vector<8x256xf32>,
    } else {
    }
    %c0 = arith.constant 0 : index
    %c0_1 = arith.constant 0 : index
    %3 = vector.load %arg7[%c0, %c0_1] : memref<8x256xf32, #tpu.memory_space<vmem>>, vector<8x256xf32>
    %c0_2 = arith.constant 0 : index
    %c0_3 = arith.constant 0 : index
    %4 = vector.load %arg3[%c0_2, %c0_3] : memref<8x512xbf16, #tpu.memory_space<vmem>>, vector<8x512xbf16>
    %c0_4 = arith.constant 0 : index
    %c0_5 = arith.constant 0 : index
    %5 = vector.load %arg4[%c0_4, %c0_5] : memref<512x256xbf16, #tpu.memory_space<vmem>>, vector<512x256xbf16>
    %cst = arith.constant dense<0.000000e+00> : vector<8x256xf32>
    %6 = tpu.matmul %4, %5, %cst {dimension_numbers = #tpu.dot_dimension_numbers<[1], [0], [0], [1], [0, 0, 1, 1], [], []>} : vector<8x512xbf16>, vector<512x256xbf16>, vector<8x256xf32> -> vector<8x256xf32>
    %7 = arith.addf %3, %6 : vector<8x256xf32>
    %c0_6 = arith.constant 0 : index
    %c0_7 = arith.constant 0 : index
    %8 = vector.load %arg7[%c0_6, %c0_7] : memref<8x256xf32, #tpu.memory_space<vmem>>, vector<8x256xf32>
    tpu.vector_store %arg7[%c0_6, %c0_7], %7 {strides = array<i32>} : memref<8x256xf32, #tpu.memory_space<vmem>>, vector<8x256xf32>,
    %c3_i32 = arith.constant 3 : i32
    %9 = arith.cmpi eq, %arg2, %c3_i32 : i32
    %10 = arith.extui %9 : i1 to i32
    %c0_i32_8 = arith.constant 0 : i32
    %11 = arith.cmpi ne, %10, %c0_i32_8 : i32
    scf.if %11 {
      %c0_9 = arith.constant 0 : index
      %c0_10 = arith.constant 0 : index
      %12 = vector.load %arg7[%c0_9, %c0_10] : memref<8x256xf32, #tpu.memory_space<vmem>>, vector<8x256xf32>
      %c0_11 = arith.constant 0 : index
      %c0_12 = arith.constant 0 : index
      %13 = vector.load %arg5[%c0_11, %c0_12] : memref<1x256xf32, #tpu.memory_space<vmem>>, vector<1x256xf32>
      %14 = vector.broadcast %13 : vector<1x256xf32> to vector<8x256xf32>
      %15 = arith.addf %12, %14 : vector<8x256xf32>
      %cst_13 = arith.constant 0.000000e+00 : f32
      %16 = vector.broadcast %cst_13 : f32 to vector<8x256xf32>
      %17 = arith.maximumf %15, %16 : vector<8x256xf32>
      %c0_14 = arith.constant 0 : index
      %c0_15 = arith.constant 0 : index
      %18 = vector.load %arg6[%c0_14, %c0_15] : memref<8x256xf32, #tpu.memory_space<vmem>>, vector<8x256xf32>
      tpu.vector_store %arg6[%c0_14, %c0_15], %17 {strides = array<i32>} : memref<8x256xf32, #tpu.memory_space<vmem>>, vector<8x256xf32>,
    } else {
    }
    return
  }
  func.func @transform_0(%arg0: i32, %arg1: i32, %arg2: i32) -> (i32, i32) {
    %c0_i32 = arith.constant 0 : i32
    return %arg0, %arg2 : i32, i32
  }
  func.func @transform_1(%arg0: i32, %arg1: i32, %arg2: i32) -> (i32, i32) {
    %c0_i32 = arith.constant 0 : i32
    return %arg2, %arg1 : i32, i32
  }
  func.func @transform_2(%arg0: i32, %arg1: i32, %arg2: i32) -> (i32, i32) {
    %c0_i32 = arith.constant 0 : i32
    %c0_i32_0 = arith.constant 0 : i32
    return %c0_i32, %arg1 : i32, i32
  }
  func.func @transform_3(%arg0: i32, %arg1: i32, %arg2: i32) -> (i32, i32) {
    %c0_i32 = arith.constant 0 : i32
    return %arg0, %arg1 : i32, i32
  }
}

module attributes {stable_mosaic.version = 11 : i64} {
  func.func @_fused_matmul_kernel(%arg0: i32, %arg1: i32, %arg2: i32, %arg3: memref<8x512xbf16, #tpu.memory_space<vmem>>, %arg4: memref<512x128xbf16, #tpu.memory_space<vmem>>, %arg5: memref<1x128xf32, #tpu.memory_space<vmem>>, %arg6: memref<8x128xf32, #tpu.memory_space<vmem>>, %arg7: memref<8x128xf32, #tpu.memory_space<vmem>>) attributes {dimension_semantics = [#tpu.dimension_semantics<parallel>, #tpu.dimension_semantics<parallel>, #tpu.dimension_semantics<arbitrary>], iteration_bounds = array<i64: 1, 1, 4>, scalar_prefetch = 0 : i64, scratch_operands = 1 : i64, tpu.core_type = #tpu.core_type<tc>, window_params = [{transform_indices = @transform_0, window_bounds = array<i64: 8, 512>}, {transform_indices = @transform_1, window_bounds = array<i64: 512, 128>}, {transform_indices = @transform_2, window_bounds = array<i64: 1, 128>}, {transform_indices = @transform_3, window_bounds = array<i64: 8, 128>}]} {
    %c0_i32 = arith.constant 0 : i32
    %0 = arith.cmpi eq, %arg2, %c0_i32 : i32
    %1 = arith.extui %0 : i1 to i32
    %c0_i32_0 = arith.constant 0 : i32
    %2 = arith.cmpi ne, %1, %c0_i32_0 : i32
    scf.if %2 {
      %cst_9 = arith.constant 0.000000e+00 : f32
      %12 = vector.broadcast %cst_9 : f32 to vector<8x128xf32>
      %c0_10 = arith.constant 0 : index
      %c0_11 = arith.constant 0 : index
      %13 = vector.load %arg7[%c0_10, %c0_11] : memref<8x128xf32, #tpu.memory_space<vmem>>, vector<8x128xf32>
      tpu.vector_store %arg7[%c0_10, %c0_11], %12 {strides = array<i32>} : memref<8x128xf32, #tpu.memory_space<vmem>>, vector<8x128xf32>,
    } else {
    }
    %c0 = arith.constant 0 : index
    %c0_1 = arith.constant 0 : index
    %3 = vector.load %arg7[%c0, %c0_1] : memref<8x128xf32, #tpu.memory_space<vmem>>, vector<8x128xf32>
    %c0_2 = arith.constant 0 : index
    %c0_3 = arith.constant 0 : index
    %4 = vector.load %arg3[%c0_2, %c0_3] : memref<8x512xbf16, #tpu.memory_space<vmem>>, vector<8x512xbf16>
    %c0_4 = arith.constant 0 : index
    %c0_5 = arith.constant 0 : index
    %5 = vector.load %arg4[%c0_4, %c0_5] : memref<512x128xbf16, #tpu.memory_space<vmem>>, vector<512x128xbf16>
    %cst = arith.constant dense<0.000000e+00> : vector<8x128xf32>
    %6 = tpu.matmul %4, %5, %cst {dimension_numbers = #tpu.dot_dimension_numbers<[1], [0], [0], [1], [0, 0, 1, 1], [], []>} : vector<8x512xbf16>, vector<512x128xbf16>, vector<8x128xf32> -> vector<8x128xf32>
    %7 = arith.addf %3, %6 : vector<8x128xf32>
    %c0_6 = arith.constant 0 : index
    %c0_7 = arith.constant 0 : index
    %8 = vector.load %arg7[%c0_6, %c0_7] : memref<8x128xf32, #tpu.memory_space<vmem>>, vector<8x128xf32>
    tpu.vector_store %arg7[%c0_6, %c0_7], %7 {strides = array<i32>} : memref<8x128xf32, #tpu.memory_space<vmem>>, vector<8x128xf32>,
    %c3_i32 = arith.constant 3 : i32
    %9 = arith.cmpi eq, %arg2, %c3_i32 : i32
    %10 = arith.extui %9 : i1 to i32
    %c0_i32_8 = arith.constant 0 : i32
    %11 = arith.cmpi ne, %10, %c0_i32_8 : i32
    scf.if %11 {
      %c0_9 = arith.constant 0 : index
      %c0_10 = arith.constant 0 : index
      %12 = vector.load %arg7[%c0_9, %c0_10] : memref<8x128xf32, #tpu.memory_space<vmem>>, vector<8x128xf32>
      %c0_11 = arith.constant 0 : index
      %c0_12 = arith.constant 0 : index
      %13 = vector.load %arg5[%c0_11, %c0_12] : memref<1x128xf32, #tpu.memory_space<vmem>>, vector<1x128xf32>
      %14 = vector.broadcast %13 : vector<1x128xf32> to vector<8x128xf32>
      %15 = arith.addf %12, %14 : vector<8x128xf32>
      %c0_13 = arith.constant 0 : index
      %c0_14 = arith.constant 0 : index
      %16 = vector.load %arg6[%c0_13, %c0_14] : memref<8x128xf32, #tpu.memory_space<vmem>>, vector<8x128xf32>
      tpu.vector_store %arg6[%c0_13, %c0_14], %15 {strides = array<i32>} : memref<8x128xf32, #tpu.memory_space<vmem>>, vector<8x128xf32>,
    } else {
    }
    return
  }
  func.func @transform_0(%arg0: i32, %arg1: i32, %arg2: i32) -> (i32, i32) {
    %c0_i32 = arith.constant 0 : i32
    return %arg0, %arg2 : i32, i32
  }
  func.func @transform_1(%arg0: i32, %arg1: i32, %arg2: i32) -> (i32, i32) {
    %c0_i32 = arith.constant 0 : i32
    return %arg2, %arg1 : i32, i32
  }
  func.func @transform_2(%arg0: i32, %arg1: i32, %arg2: i32) -> (i32, i32) {
    %c0_i32 = arith.constant 0 : i32
    %c0_i32_0 = arith.constant 0 : i32
    return %c0_i32, %arg1 : i32, i32
  }
  func.func @transform_3(%arg0: i32, %arg1: i32, %arg2: i32) -> (i32, i32) {
    %c0_i32 = arith.constant 0 : i32
    return %arg0, %arg1 : i32, i32
  }
}

module attributes {stable_mosaic.version = 11 : i64} {
  func.func @_avgpool_kernel(%arg0: memref<2x1x2048xf32, #tpu.memory_space<vmem>>, %arg1: memref<2x2048xf32, #tpu.memory_space<vmem>>) attributes {dimension_semantics = [], scalar_prefetch = 0 : i64, scratch_operands = 0 : i64, tpu.core_type = #tpu.core_type<tc>} {
    %c0 = arith.constant 0 : index
    %c0_0 = arith.constant 0 : index
    %c0_1 = arith.constant 0 : index
    %0 = vector.load %arg0[%c0, %c0_0, %c0_1] : memref<2x1x2048xf32, #tpu.memory_space<vmem>>, vector<2x1x2048xf32>
    %cst = arith.constant dense<0.000000e+00> : vector<2x2048xf32>
    %1 = vector.multi_reduction <add>, %0, %cst [1] : vector<2x1x2048xf32> to vector<2x2048xf32>
    %cst_2 = arith.constant 1.000000e+00 : f32
    %2 = vector.broadcast %cst_2 : f32 to vector<2x2048xf32>
    %3 = arith.mulf %1, %2 : vector<2x2048xf32>
    %c0_3 = arith.constant 0 : index
    %c0_4 = arith.constant 0 : index
    %4 = vector.load %arg1[%c0_3, %c0_4] : memref<2x2048xf32, #tpu.memory_space<vmem>>, vector<2x2048xf32>
    tpu.vector_store %arg1[%c0_3, %c0_4], %3 {strides = array<i32>} : memref<2x2048xf32, #tpu.memory_space<vmem>>, vector<2x2048xf32>,
    return
  }
}

</mosaic_0001>

<bundles_post_ra>
// kernel: mammography_forward.55
= control target key start
LH: loop header
LB: loop body
LE: loop exit
PB: predicated region body
PF: predicated region fallthrough
CT: control target
= control target key end

     0   :  { %s1091_s12 = smov 0   ;;  %s1093_s13 = smov 0   ;;  %s1244_s0 = inlined_call_operand.vmem [shape: bf16[512,256], index: 0, kind: input, shape index: {}]   ;;  %s1245_s1 = inlined_call_operand.vmem [shape: bf16[256,128], index: 1, kind: input, shape index: {}]   ;;  %s1246_s2 = inlined_call_operand.vmem [shape: f32[1,128], index: 2, kind: input, shape index: {}]   ;;  %s1247_s3 = inlined_call_operand.vmem [shape: f32[512,128], index: 3, kind: output, shape index: {}]  }
   0x1   :  { %s1095_s14 = smov 0   ;;  %s1097_s15 = smov 0  }
   0x2   :  { %s1099_s16 = smov 0   ;;  %s1101_s17 = smov 0  }
   0x3   :  { %s1103_s18 = smov 0  }
   0x4 LB: > { %s25_s19 = sadd.s32 1, %s1060_s16  ;;  %s32_s20 = sadd.s32 1, %s1064_s17  ;;  %s1068_s18 = sphi %s1103_s18, %s13_s18   ;;  %s1064_s17 = sphi %s1101_s17, %s1253_s17   ;;  %s1060_s16 = sphi %s1099_s16, %s1252_s16   ;;  %s1056_s15 = sphi %s1097_s15, %s1251_s15   ;;  %s1052_s14 = sphi %s1095_s14, %s1250_s14   ;;  %s1048_s13 = sphi %s1093_s13, %s1249_s13   ;;  %s1044_s12 = sphi %s1091_s12, %s1248_s12  }
   0x5   : > { %p26_p0 = scmp.ge.s32.totalorder %s25_s19, 2  ;;  %p48_p1 = scmp.ne.s32.totalorder %s1048_s13, %s1044_s12 }
   0x6   : > { %p49_p2 = scmp.eq.s32.totalorder %s1068_s18, 0  ;;  %s41_s24 = sadd.s32 1, %s1048_s13 }
   0x7   : > { %s1255_s19 = smov (%p26_p0, %s25_s19), 0  ;;  %s1257_s20 = smov (!%p26_p0, %s32_s20), %s1064_s17 }
   0x8   : > { %p50_p3 = por %p49_p2, %p48_p1  ;;  %p34_p4 = scmp.ge.s32.totalorder %s1257_s20, 4 }
   0x9   : > { %s37_s21 = ssub.s32 %s1060_s16, %s1255_s19  ;;  %p844_p6 = scmp.ge.s32.totalorder %s1068_s18, 8 }
   0xa   : > { %s1259_s20 = smov (%p34_p4, %s1257_s20), 0 }
   0xb   : > { %s36_s22 = ssub.s32 %s1064_s17, %s1259_s20  ;;  %162 = sbr.rel (%p844_p6) target bundleno = 32 (0x20), region = 20 }
   0xc   : > { %s38_s23 = sor.u32 %s37_s21, %s36_s22 }
   0xd   : > { %p39_p5 = scmp.eq.s32.totalorder %s38_s23, 0 }
   0xf   : > { %s1142_s25 = scalar_select %p39_p5, %s1048_s13, %s41_s24  }
  0x10   : > { %165 = sbr.rel (!%p50_p3) target bundleno = 32 (0x20), region = 24  ;;  %s167_s26 = sand.u32 (%p50_p3), 1, %s1048_s13  }
  0x11   : > { %s876_s27 = sshll.u32 (%p50_p3), %s1064_s17, 5  ;;  %s845_s28 = sshll.u32 (%p50_p3), %s167_s26, 6 }
  0x12   : > { %s172_s29 = sadd.s32 (%p50_p3), %s1060_s16, %s876_s27  ;;  %s169_s7 = scalar_lea.vmem (%p50_p3), [#allocation3], %s845_s28 }
  0x13   : > { %s848_s30 = sshll.u32 (%p50_p3), %s172_s29, 2 }
  0x14   : > { %s1151_s6 = scalar_lea.vmem (%p50_p3), %s1244_s0, %s848_s30 }
  0x15   : > { %v191_v0 = vld [vmem:[%s1151_s6] sm:$0xf]  ;;  %v193_v1 = vld [vmem:[%s1151_s6 + $0x8] sm:$0xf]  ;;  %v195_v2 = vld [vmem:[%s1151_s6 + $0x10] sm:$0xf] }
  0x16   : > { %192 = vst [vmem:[%s169_s7] sm:$0xf] %v191_v0  ;;  %194 = vst [vmem:[%s169_s7 + $0x4] sm:$0xf] %v193_v1  ;;  %v197_v3 = vld [vmem:[%s1151_s6 + $0x18] sm:$0xf] }
  0x17   : > { %196 = vst [vmem:[%s169_s7 + $0x8] sm:$0xf] %v195_v2  ;;  %v199_v4 = vld [vmem:[%s1151_s6 + $0x20] sm:$0xf]  ;;  %v201_v5 = vld [vmem:[%s1151_s6 + $0x28] sm:$0xf] }
  0x18   : > { %198 = vst [vmem:[%s169_s7 + $0xc] sm:$0xf] %v197_v3  ;;  %200 = vst [vmem:[%s169_s7 + $0x10] sm:$0xf] %v199_v4  ;;  %v203_v6 = vld [vmem:[%s1151_s6 + $0x30] sm:$0xf] }
  0x19   : > { %202 = vst [vmem:[%s169_s7 + $0x14] sm:$0xf] %v201_v5  ;;  %v205_v7 = vld [vmem:[%s1151_s6 + $0x38] sm:$0xf]  ;;  %v207_v8 = vld [vmem:[%s1151_s6 + $0x40] sm:$0xf] }
  0x1a   : > { %204 = vst [vmem:[%s169_s7 + $0x18] sm:$0xf] %v203_v6  ;;  %206 = vst [vmem:[%s169_s7 + $0x1c] sm:$0xf] %v205_v7  ;;  %v209_v9 = vld [vmem:[%s1151_s6 + $0x48] sm:$0xf] }
  0x1b   : > { %208 = vst [vmem:[%s169_s7 + $0x20] sm:$0xf] %v207_v8  ;;  %v211_v10 = vld [vmem:[%s1151_s6 + $0x50] sm:$0xf]  ;;  %v213_v11 = vld [vmem:[%s1151_s6 + $0x58] sm:$0xf] }
  0x1c   : > { %210 = vst [vmem:[%s169_s7 + $0x24] sm:$0xf] %v209_v9  ;;  %212 = vst [vmem:[%s169_s7 + $0x28] sm:$0xf] %v211_v10  ;;  %v215_v12 = vld [vmem:[%s1151_s6 + $0x60] sm:$0xf] }
  0x1d   : > { %214 = vst [vmem:[%s169_s7 + $0x2c] sm:$0xf] %v213_v11  ;;  %v217_v13 = vld [vmem:[%s1151_s6 + $0x68] sm:$0xf]  ;;  %v219_v14 = vld [vmem:[%s1151_s6 + $0x70] sm:$0xf] }
  0x1e   : > { %216 = vst [vmem:[%s169_s7 + $0x30] sm:$0xf] %v215_v12  ;;  %218 = vst [vmem:[%s169_s7 + $0x34] sm:$0xf] %v217_v13  ;;  %v221_v15 = vld [vmem:[%s1151_s6 + $0x78] sm:$0xf] }
  0x1f   : > { %220 = vst [vmem:[%s169_s7 + $0x38] sm:$0xf] %v219_v14  ;;  %222 = vst [vmem:[%s169_s7 + $0x3c] sm:$0xf] %v221_v15 }
  0x20 PF: > { %p849_p7 = scmp.ge.s32.totalorder %s1068_s18, 1  ;;  %p289_p8 = scmp.lt.s32.totalorder %s1068_s18, 9 }
  0x22   : > { %p290_p9 = pnand %p849_p7, %p289_p8 }
  0x23   : > { %s296_s8 = sand.u32 (!%p290_p9), 1, %s1044_s12   ;;  %s851_s9 = sshll.u32 (!%p290_p9), %s1052_s14, 4 }
  0x24   : > { %293 = sbr.rel (%p290_p9) target bundleno = 314 (0x13a), region = 69  ;;  %s850_s10 = sshll.u32 (!%p290_p9), %s296_s8, 6 }
  0x25   : > { %p335_p10 = scmp.lt.s32.totalorder (!%p290_p9), %s851_s9, 31  ;;  %s853_s11 = sshll.u32 (!%p290_p9), %s1056_s15, 4 }
  0x26   : > { %p347_p11 = scmp.lt.s32.totalorder (!%p290_p9), %s853_s11, 63  ;;  %s1184_s12 = scalar_lea.vmem (!%p290_p9), [#allocation3], %s850_s10 }
  0x27   : > { %p855_p12 = scmp.ne.s32.totalorder (!%p290_p9), %s1052_s14, 0 }
  0x29   : > { %s1261_s9 = smov (!%p335_p10, %s851_s9), 31  ;;  %s1263_s11 = smov (!%p347_p11, %s853_s11), 63 }
  0x2a   : > { %s852_s21 = sshll.u32 %s1261_s9, 2  ;;  %s854_s26 = sshll.u32 %s1263_s11, 3 }
  0x2b   : > { %s1177_s24 = scalar_lea.vmem %s1245_s1, %s852_s21  ;;  %s1182_s29 = scalar_lea.vmem %s1247_s3, %s854_s26 }
  0x2c   : > { %359 = sbr.rel (%p855_p12) target bundleno = 58 (0x3a), region = 77 }
  0x31   : > { %v1070_v16 = vmov 0.0  }
  0x32   : > { %360 = vst [vmem:[#allocation2 + $0x30] sm:$0xff] %v1070_v16  ;;  %361 = vst [vmem:[#allocation2] sm:$0xff] %v1070_v16 }
  0x33   : > { %362 = vst [vmem:[#allocation2 + $0x58] sm:$0xff] %v1070_v16  ;;  %363 = vst [vmem:[#allocation2 + $0x18] sm:$0xff] %v1070_v16 }
  0x34   : > { %364 = vst [vmem:[#allocation2 + $0x50] sm:$0xff] %v1070_v16  ;;  %365 = vst [vmem:[#allocation2 + $0x68] sm:$0xff] %v1070_v16 }
  0x35   : > { %366 = vst [vmem:[#allocation2 + $0x8] sm:$0xff] %v1070_v16  ;;  %367 = vst [vmem:[#allocation2 + $0x48] sm:$0xff] %v1070_v16 }
  0x36   : > { %368 = vst [vmem:[#allocation2 + $0x40] sm:$0xff] %v1070_v16  ;;  %369 = vst [vmem:[#allocation2 + $0x20] sm:$0xff] %v1070_v16 }
  0x37   : > { %370 = vst [vmem:[#allocation2 + $0x10] sm:$0xff] %v1070_v16  ;;  %371 = vst [vmem:[#allocation2 + $0x38] sm:$0xff] %v1070_v16 }
  0x38   : > { %372 = vst [vmem:[#allocation2 + $0x60] sm:$0xff] %v1070_v16  ;;  %373 = vst [vmem:[#allocation2 + $0x70] sm:$0xff] %v1070_v16 }
  0x39   : > { %374 = vst [vmem:[#allocation2 + $0x78] sm:$0xff] %v1070_v16  ;;  %375 = vst [vmem:[#allocation2 + $0x28] sm:$0xff] %v1070_v16 }
  0x3a PF: > { %v998_v17 = vld [vmem:[%s1177_s24 + $0x38] sm:$0xff]   ;;  %v999_v18 = vld [vmem:[%s1177_s24 + $0x30] sm:$0xff]   ;;  %v1000_v19 = vld [vmem:[%s1177_s24 + $0x28] sm:$0xff]   ;;  %p872_p13 = scmp.ne.s32.totalorder %s1052_s14, 1 }
  0x3b   : > { %893 = vmatprep.subr.bf16.mxu0 %v998_v17  ;;  %925 = vmatprep.subr.bf16.mxu1 %v998_v17  ;;  %v1001_v20 = vld [vmem:[%s1177_s24 + $0x20] sm:$0xff]   ;;  %v1002_v23 = vld [vmem:[%s1177_s24 + $0x18] sm:$0xff]   ;;  %v1003_v24 = vld [vmem:[%s1177_s24 + $0x10] sm:$0xff]  }
  0x3c   : > { %894 = vmatpush3.bf16.msra.mxu0 %v998_v17  ;;  %933 = vmatpush3.bf16.msra.mxu1 %v998_v17  ;;  %v1006_v21 = vld [vmem:[%s1184_s12] sm:$0xff]   ;;  %v1004_v25 = vld [vmem:[%s1177_s24 + $0x8] sm:$0xff]   ;;  %v1010_v29 = vld [vmem:[%s1184_s12 + $0x10] sm:$0xff]  }
  0x3d   : > { %895 = vmatprep.subr.bf16.mxu0 %v999_v18  ;;  %926 = vmatprep.subr.bf16.mxu1 %v999_v18  ;;  %v1007_v22 = vld [vmem:[%s1184_s12 + $0x20] sm:$0xff]   ;;  %v1008_v27 = vld [vmem:[%s1184_s12 + $0x8] sm:$0xff]   ;;  %v1011_v30 = vld [vmem:[%s1184_s12 + $0x30] sm:$0xff]  }
  0x3e   : > { %909 = vmatprep.mubr.bf16.mxu0 %v1006_v21  ;;  %917 = vmatprep.mubr.bf16.mxu1 %v1007_v22  ;;  %v1005_v26 = vld [vmem:[%s1177_s24] sm:$0xff]   ;;  %v1009_v28 = vld [vmem:[%s1184_s12 + $0x28] sm:$0xff]   ;;  %v1012_v31 = vld [vmem:[%s1184_s12 + $0x18] sm:$0xff]  }
  0x3f   : > { %v1013_v32 = vld [vmem:[%s1184_s12 + $0x38] sm:$0xff]   ;;  %v386_v34 = vld [vmem:[#allocation2 + $0x10] sm:$0xff]  ;;  %v384_v38 = vld [vmem:[#allocation2 + $0x40] sm:$0xff] }
  0x40   : > { %896 = vmatpush3.bf16.msra.mxu0 %v999_v18  ;;  %934 = vmatpush3.bf16.msra.mxu1 %v999_v18  ;;  %v378_v33 = vld [vmem:[#allocation2 + $0x58] sm:$0xff]  ;;  %v376_v37 = vld [vmem:[#allocation2 + $0x30] sm:$0xff]  ;;  %v377_v49 = vld [vmem:[#allocation2] sm:$0xff] }
  0x41   : > { %897 = vmatprep.subr.bf16.mxu0 %v1000_v19  ;;  %927 = vmatprep.subr.bf16.mxu1 %v1000_v19  ;;  %v379_v43 = vld [vmem:[#allocation2 + $0x18] sm:$0xff]  ;;  %v385_v50 = vld [vmem:[#allocation2 + $0x20] sm:$0xff]  ;;  %v382_v55 = vld [vmem:[#allocation2 + $0x8] sm:$0xff] }
  0x42   : > { %v387_v44 = vld [vmem:[#allocation2 + $0x38] sm:$0xff]  ;;  %v380_v61 = vld [vmem:[#allocation2 + $0x50] sm:$0xff]  ;;  %v388_v62 = vld [vmem:[#allocation2 + $0x60] sm:$0xff] }
  0x43   : > { %v390_v56 = vld [vmem:[#allocation2 + $0x78] sm:$0xff]  ;;  %v383_v3 = vld [vmem:[#allocation2 + $0x48] sm:$0xff]  ;;  %v389_v10 = vld [vmem:[#allocation2 + $0x70] sm:$0xff] }
  0x44   : > { %898 = vmatpush3.bf16.msra.mxu0 %v1000_v19  ;;  %935 = vmatpush3.bf16.msra.mxu1 %v1000_v19  ;;  %v391_v4 = vld [vmem:[#allocation2 + $0x28] sm:$0xff] }
  0x45   : > { %899 = vmatprep.subr.bf16.mxu0 %v1001_v20  ;;  %928 = vmatprep.subr.bf16.mxu1 %v1001_v20  ;;  %v381_v9 = vld [vmem:[#allocation2 + $0x68] sm:$0xff] }
  0x48   : > { %900 = vmatpush3.bf16.msra.mxu0 %v1001_v20  ;;  %936 = vmatpush3.bf16.msra.mxu1 %v1001_v20 }
  0x49   : > { %901 = vmatprep.subr.bf16.mxu0 %v1002_v23  ;;  %929 = vmatprep.subr.bf16.mxu1 %v1002_v23 }
  0x4c   : > { %902 = vmatpush3.bf16.msra.mxu0 %v1002_v23  ;;  %937 = vmatpush3.bf16.msra.mxu1 %v1002_v23 }
  0x4d   : > { %903 = vmatprep.subr.bf16.mxu0 %v1003_v24  ;;  %930 = vmatprep.subr.bf16.mxu1 %v1003_v24 }
  0x50   : > { %904 = vmatpush3.bf16.msra.mxu0 %v1003_v24  ;;  %938 = vmatpush3.bf16.msra.mxu1 %v1003_v24 }
  0x51   : > { %905 = vmatprep.subr.bf16.mxu0 %v1004_v25  ;;  %931 = vmatprep.subr.bf16.mxu1 %v1004_v25 }
  0x54   : > { %906 = vmatpush3.bf16.msra.mxu0 %v1004_v25  ;;  %939 = vmatpush3.bf16.msra.mxu1 %v1004_v25 }
  0x55   : > { %907 = vmatprep.subr.bf16.mxu0 %v1005_v26  ;;  %932 = vmatprep.subr.bf16.mxu1 %v1005_v26 }
  0x58   : > { %908 = vmatpush3.bf16.msra.mxu0 %v1005_v26  ;;  %940 = vmatpush3.bf16.msra.mxu1 %v1005_v26 }
  0x5b   : > { %910 = vmatmul.mubr.bf16.vlgmr.msra.gmra.mxu0 %v1008_v27  ;;  %918 = vmatmul.mubr.bf16.vlgmr.msra.gmra.mxu1 %v1009_v28 }
  0x5c   : > { %913 = vmatprep.mubr.bf16.mxu0 %v1010_v29  ;;  %921 = vmatprep.mubr.bf16.mxu1 %v1011_v30 }
  0x63   : > { %914 = vmatmul.mubr.bf16.gmra.mxu0 %v1012_v31  ;;  %922 = vmatmul.mubr.bf16.gmra.mxu1 %v1013_v32 }
 0x11b   : > { %v911_v35 = vpop.f32.mrf.mxu0  ;;  %v919_v36 = vpop.f32.mrf.mxu1 }
 0x11c   : > { %v619_v39 = vadd.f32 %v911_v35, %v378_v33  ;;  %v627_v40 = vadd.f32 %v919_v36, %v386_v34 }
 0x11d   : > { %v554_v41 = vpop.f32.mrf.mxu0  ;;  %v586_v42 = vpop.f32.mrf.mxu1 }
 0x11e   : > { %635 = vst [vmem:[#allocation2 + $0x58] sm:$0xff] %v619_v39  ;;  %643 = vst [vmem:[#allocation2 + $0x10] sm:$0xff] %v627_v40  ;;  %v617_v45 = vadd.f32 %v554_v41, %v376_v37  ;;  %v625_v46 = vadd.f32 %v586_v42, %v384_v38 }
 0x11f   : > { %v912_v47 = vpop.f32.mrf.mxu0  ;;  %v920_v48 = vpop.f32.mrf.mxu1 }
 0x120   : > { %633 = vst [vmem:[#allocation2 + $0x30] sm:$0xff] %v617_v45  ;;  %641 = vst [vmem:[#allocation2 + $0x40] sm:$0xff] %v625_v46  ;;  %v620_v51 = vadd.f32 %v912_v47, %v379_v43  ;;  %v628_v52 = vadd.f32 %v920_v48, %v387_v44 }
 0x121   : > { %v557_v53 = vpop.f32.mrf.mxu0  ;;  %v589_v54 = vpop.f32.mrf.mxu1 }
 0x122   : > { %636 = vst [vmem:[#allocation2 + $0x18] sm:$0xff] %v620_v51  ;;  %644 = vst [vmem:[#allocation2 + $0x38] sm:$0xff] %v628_v52  ;;  %v618_v57 = vadd.f32 %v557_v53, %v377_v49  ;;  %v626_v58 = vadd.f32 %v589_v54, %v385_v50 }
 0x123   : > { %v915_v59 = vpop.f32.mrf.mxu0  ;;  %v923_v60 = vpop.f32.mrf.mxu1 }
 0x124   : > { %634 = vst [vmem:[#allocation2] sm:$0xff] %v618_v57  ;;  %642 = vst [vmem:[#allocation2 + $0x20] sm:$0xff] %v626_v58  ;;  %v623_v63 = vadd.f32 %v915_v59, %v382_v55  ;;  %v631_v0 = vadd.f32 %v923_v60, %v390_v56 }
 0x125   : > { %v570_v1 = vpop.f32.mrf.mxu0  ;;  %v602_v2 = vpop.f32.mrf.mxu1 }
 0x126   : > { %639 = vst [vmem:[#allocation2 + $0x8] sm:$0xff] %v623_v63  ;;  %647 = vst [vmem:[#allocation2 + $0x78] sm:$0xff] %v631_v0  ;;  %v621_v5 = vadd.f32 %v570_v1, %v380_v61  ;;  %v629_v6 = vadd.f32 %v602_v2, %v388_v62 }
 0x127   : > { %v916_v7 = vpop.f32.mrf.mxu0  ;;  %v924_v8 = vpop.f32.mrf.mxu1 }
 0x128   : > { %637 = vst [vmem:[#allocation2 + $0x50] sm:$0xff] %v621_v5  ;;  %645 = vst [vmem:[#allocation2 + $0x60] sm:$0xff] %v629_v6  ;;  %v624_v11 = vadd.f32 %v916_v7, %v383_v3  ;;  %v632_v12 = vadd.f32 %v924_v8, %v391_v4  ;;  %652 = sbr.rel (%p872_p13) target bundleno = 314 (0x13a), region = 81 }
 0x129   : > { %v573_v13 = vpop.f32.mrf.mxu0  ;;  %v605_v14 = vpop.f32.mrf.mxu1 }
 0x12a   : > { %640 = vst [vmem:[#allocation2 + $0x48] sm:$0xff] %v624_v11  ;;  %648 = vst [vmem:[#allocation2 + $0x28] sm:$0xff] %v632_v12  ;;  %v622_v15 = vadd.f32 %v573_v13, %v381_v9  ;;  %v630_v16 = vadd.f32 %v605_v14, %v389_v10 }
 0x12c   : > { %638 = vst [vmem:[#allocation2 + $0x68] sm:$0xff] %v622_v15  ;;  %646 = vst [vmem:[#allocation2 + $0x70] sm:$0xff] %v630_v16 }
 0x12d   : > { %v653_v17 = vld [vmem:[#allocation2 + $0x30] sm:$0xff]  ;;  %v873_v18 = vld [vmem:[%s1246_s2] ss:$0 sm:$0xff]  ;;  %v655_v22 = vld [vmem:[#allocation2 + $0x58] sm:$0xff] }
 0x12e   : > { %v654_v19 = vld [vmem:[#allocation2] sm:$0xff]  ;;  %v676_v20 = vadd.f32 %v873_v18, %v653_v17  ;;  %v656_v23 = vld [vmem:[#allocation2 + $0x18] sm:$0xff]  ;;  %v678_v25 = vadd.f32 %v873_v18, %v655_v22  ;;  %v659_v29 = vld [vmem:[#allocation2 + $0x8] sm:$0xff] }
 0x12f   : > { %v677_v21 = vadd.f32 %v873_v18, %v654_v19  ;;  %v657_v24 = vld [vmem:[#allocation2 + $0x50] sm:$0xff]  ;;  %v679_v26 = vadd.f32 %v873_v18, %v656_v23  ;;  %v682_v34 = vadd.f32 %v873_v18, %v659_v29  ;;  %v661_v35 = vld [vmem:[#allocation2 + $0x40] sm:$0xff]  ;;  %v664_v42 = vld [vmem:[#allocation2 + $0x38] sm:$0xff] }
 0x130   : > { %v680_v27 = vadd.f32 %v873_v18, %v657_v24  ;;  %v692_v31 = vmax.f32 %v676_v20, 0.0  ;;  %v662_v36 = vld [vmem:[#allocation2 + $0x20] sm:$0xff]  ;;  %v663_v37 = vld [vmem:[#allocation2 + $0x10] sm:$0xff]  ;;  %v694_v38 = vmax.f32 %v678_v25, 0.0  ;;  %v684_v47 = vadd.f32 %v873_v18, %v661_v35  ;;  %v667_v49 = vld [vmem:[#allocation2 + $0x78] sm:$0xff] }
 0x131   : > { %v660_v30 = vld [vmem:[#allocation2 + $0x48] sm:$0xff]  ;;  %v693_v32 = vmax.f32 %v677_v21, 0.0  ;;  %v695_v39 = vmax.f32 %v679_v26, 0.0  ;;  %v665_v43 = vld [vmem:[#allocation2 + $0x60] sm:$0xff]  ;;  %v698_v46 = vmax.f32 %v682_v34, 0.0  ;;  %v685_v48 = vadd.f32 %v873_v18, %v662_v36 }
 0x132   : > { %v696_v40 = vmax.f32 %v680_v27, 0.0  ;;  %v683_v41 = vadd.f32 %v873_v18, %v660_v30  ;;  %708 = vst [vmem:[%s1182_s29] sm:$0xff] %v692_v31  ;;  %v668_v50 = vld [vmem:[#allocation2 + $0x28] sm:$0xff]  ;;  %710 = vst [vmem:[%s1182_s29 + $0x10] sm:$0xff] %v694_v38  ;;  %v686_v52 = vadd.f32 %v873_v18, %v663_v37  ;;  %v687_v53 = vadd.f32 %v873_v18, %v664_v42 }
 0x133   : > { %v658_v28 = vld [vmem:[#allocation2 + $0x68] sm:$0xff]  ;;  %v666_v44 = vld [vmem:[#allocation2 + $0x70] sm:$0xff]  ;;  %709 = vst [vmem:[%s1182_s29 + $0x8] sm:$0xff] %v693_v32  ;;  %711 = vst [vmem:[%s1182_s29 + $0x18] sm:$0xff] %v695_v39  ;;  %v688_v54 = vadd.f32 %v873_v18, %v665_v43  ;;  %v700_v55 = vmax.f32 %v684_v47, 0.0  ;;  %v701_v56 = vmax.f32 %v685_v48, 0.0  ;;  %v690_v58 = vadd.f32 %v873_v18, %v667_v49 }
 0x134   : > { %v681_v33 = vadd.f32 %v873_v18, %v658_v28  ;;  %712 = vst [vmem:[%s1182_s29 + $0x20] sm:$0xff] %v696_v40  ;;  %v699_v51 = vmax.f32 %v683_v41, 0.0  ;;  %714 = vst [vmem:[%s1182_s29 + $0x30] sm:$0xff] %v698_v46  ;;  %v689_v57 = vadd.f32 %v873_v18, %v666_v44  ;;  %v702_v59 = vmax.f32 %v686_v52, 0.0 }
 0x135   : > { %v703_v60 = vmax.f32 %v687_v53, 0.0  ;;  %v704_v61 = vmax.f32 %v688_v54, 0.0  ;;  %v691_v62 = vadd.f32 %v873_v18, %v668_v50  ;;  %716 = vst [vmem:[%s1182_s29 + $0x40] sm:$0xff] %v700_v55  ;;  %717 = vst [vmem:[%s1182_s29 + $0x48] sm:$0xff] %v701_v56  ;;  %v706_v0 = vmax.f32 %v690_v58, 0.0 }
 0x136   : > { %v697_v45 = vmax.f32 %v681_v33, 0.0  ;;  %715 = vst [vmem:[%s1182_s29 + $0x38] sm:$0xff] %v699_v51  ;;  %v705_v63 = vmax.f32 %v689_v57, 0.0  ;;  %718 = vst [vmem:[%s1182_s29 + $0x50] sm:$0xff] %v702_v59 }
 0x137   : > { %719 = vst [vmem:[%s1182_s29 + $0x58] sm:$0xff] %v703_v60  ;;  %720 = vst [vmem:[%s1182_s29 + $0x60] sm:$0xff] %v704_v61  ;;  %v707_v1 = vmax.f32 %v691_v62, 0.0 }
 0x138   : > { %713 = vst [vmem:[%s1182_s29 + $0x28] sm:$0xff] %v697_v45  ;;  %721 = vst [vmem:[%s1182_s29 + $0x68] sm:$0xff] %v705_v63 }
 0x139   : > { %722 = vst [vmem:[%s1182_s29 + $0x70] sm:$0xff] %v706_v0  ;;  %723 = vst [vmem:[%s1182_s29 + $0x78] sm:$0xff] %v707_v1 }
 0x13a PF: > { %s13_s18 = sadd.s32 1, %s1068_s18   ;;  %s1248_s12 = smov %s1048_s13 }
 0x13b   : > { %p10_p0 = scmp.ge.s32.totalorder %s13_s18, 10   ;;  %s1249_s13 = smov %s1142_s25 }
 0x13c   : > { %s1250_s14 = smov %s1060_s16  ;;  %s1251_s15 = smov %s1064_s17 }
 0x13d   : > { %s1252_s16 = smov %s1255_s19  ;;  %s1253_s17 = smov %s1259_s20 }
 0x13e   :  { %12 = sbr.rel (!%p10_p0) target bundleno = 4 (0x4), region = 122 }

// kernel: mammography_forward.57
= control target key start
LH: loop header
LB: loop body
LE: loop exit
PB: predicated region body
PF: predicated region fallthrough
CT: control target
= control target key end

     0   :  { %s602_s1 = inlined_call_operand.vmem [shape: bf16[128,128], index: 1, kind: input, shape index: {}]   ;;  %s603_s0 = inlined_call_operand.vmem [shape: bf16[128,128], index: 0, kind: input, shape index: {}]   ;;  %s604_s2 = inlined_call_operand.vmem [shape: f32[1,128], index: 2, kind: input, shape index: {}]   ;;  %s605_s3 = inlined_call_operand.vmem [shape: f32[128,128], index: 3, kind: output, shape index: {}]  }
   0x1   :  { %v467_v0 = vld [vmem:[%s602_s1 + $0x38] sm:$0xff]   ;;  %v468_v1 = vld [vmem:[%s602_s1 + $0x30] sm:$0xff]   ;;  %v469_v2 = vld [vmem:[%s602_s1 + $0x28] sm:$0xff]  }
   0x2   :  { %419 = vmatprep.subr.bf16.mxu0 %v467_v0  ;;  %451 = vmatprep.subr.bf16.mxu1 %v467_v0  ;;  %v470_v3 = vld [vmem:[%s602_s1 + $0x20] sm:$0xff]   ;;  %v471_v6 = vld [vmem:[%s602_s1 + $0x18] sm:$0xff]   ;;  %v472_v7 = vld [vmem:[%s602_s1 + $0x10] sm:$0xff]  }
   0x3   :  { %420 = vmatpush3.bf16.msra.mxu0 %v467_v0  ;;  %459 = vmatpush3.bf16.msra.mxu1 %v467_v0  ;;  %v475_v4 = vld [vmem:[%s603_s0] sm:$0xff]   ;;  %v473_v8 = vld [vmem:[%s602_s1 + $0x8] sm:$0xff]   ;;  %v479_v12 = vld [vmem:[%s603_s0 + $0x10] sm:$0xff]  }
   0x4   :  { %421 = vmatprep.subr.bf16.mxu0 %v468_v1  ;;  %452 = vmatprep.subr.bf16.mxu1 %v468_v1  ;;  %v476_v5 = vld [vmem:[%s603_s0 + $0x20] sm:$0xff]   ;;  %v477_v10 = vld [vmem:[%s603_s0 + $0x8] sm:$0xff]   ;;  %v480_v13 = vld [vmem:[%s603_s0 + $0x30] sm:$0xff]  }
   0x5   :  { %435 = vmatprep.mubr.bf16.mxu0 %v475_v4  ;;  %443 = vmatprep.mubr.bf16.mxu1 %v476_v5  ;;  %v474_v9 = vld [vmem:[%s602_s1] sm:$0xff]   ;;  %v478_v11 = vld [vmem:[%s603_s0 + $0x28] sm:$0xff]   ;;  %v481_v14 = vld [vmem:[%s603_s0 + $0x18] sm:$0xff]  }
   0x6   :  { %v482_v15 = vld [vmem:[%s603_s0 + $0x38] sm:$0xff]   ;;  %v402_v16 = vld [vmem:[%s604_s2] ss:$0 sm:$0xff] }
   0x7   :  { %422 = vmatpush3.bf16.msra.mxu0 %v468_v1  ;;  %460 = vmatpush3.bf16.msra.mxu1 %v468_v1 }
   0x8   :  { %423 = vmatprep.subr.bf16.mxu0 %v469_v2  ;;  %453 = vmatprep.subr.bf16.mxu1 %v469_v2 }
   0xb   :  { %424 = vmatpush3.bf16.msra.mxu0 %v469_v2  ;;  %461 = vmatpush3.bf16.msra.mxu1 %v469_v2 }
   0xc   :  { %425 = vmatprep.subr.bf16.mxu0 %v470_v3  ;;  %454 = vmatprep.subr.bf16.mxu1 %v470_v3 }
   0xf   :  { %426 = vmatpush3.bf16.msra.mxu0 %v470_v3  ;;  %462 = vmatpush3.bf16.msra.mxu1 %v470_v3 }
  0x10   :  { %427 = vmatprep.subr.bf16.mxu0 %v471_v6  ;;  %455 = vmatprep.subr.bf16.mxu1 %v471_v6 }
  0x13   :  { %428 = vmatpush3.bf16.msra.mxu0 %v471_v6  ;;  %463 = vmatpush3.bf16.msra.mxu1 %v471_v6 }
  0x14   :  { %429 = vmatprep.subr.bf16.mxu0 %v472_v7  ;;  %456 = vmatprep.subr.bf16.mxu1 %v472_v7 }
  0x17   :  { %430 = vmatpush3.bf16.msra.mxu0 %v472_v7  ;;  %464 = vmatpush3.bf16.msra.mxu1 %v472_v7 }
  0x18   :  { %431 = vmatprep.subr.bf16.mxu0 %v473_v8  ;;  %457 = vmatprep.subr.bf16.mxu1 %v473_v8 }
  0x1b   :  { %432 = vmatpush3.bf16.msra.mxu0 %v473_v8  ;;  %465 = vmatpush3.bf16.msra.mxu1 %v473_v8 }
  0x1c   :  { %433 = vmatprep.subr.bf16.mxu0 %v474_v9  ;;  %458 = vmatprep.subr.bf16.mxu1 %v474_v9 }
  0x1f   :  { %434 = vmatpush3.bf16.msra.mxu0 %v474_v9  ;;  %466 = vmatpush3.bf16.msra.mxu1 %v474_v9 }
  0x22   :  { %436 = vmatmul.mubr.bf16.vlgmr.msra.gmra.mxu0 %v477_v10  ;;  %444 = vmatmul.mubr.bf16.vlgmr.msra.gmra.mxu1 %v478_v11 }
  0x23   :  { %439 = vmatprep.mubr.bf16.mxu0 %v479_v12  ;;  %447 = vmatprep.mubr.bf16.mxu1 %v480_v13 }
  0x2a   :  { %440 = vmatmul.mubr.bf16.gmra.mxu0 %v481_v14  ;;  %448 = vmatmul.mubr.bf16.gmra.mxu1 %v482_v15 }
  0xe2   :  { %v437_v17 = vpop.f32.mrf.mxu0  ;;  %v445_v18 = vpop.f32.mrf.mxu1 }
  0xe3   :  { %v336_v19 = vadd.f32 %v437_v17, %v402_v16  ;;  %v344_v20 = vadd.f32 %v445_v18, %v402_v16 }
  0xe4   :  { %v213_v21 = vpop.f32.mrf.mxu0  ;;  %v245_v22 = vpop.f32.mrf.mxu1 }
  0xe5   :  { %v352_v23 = vmax.f32 %v336_v19, 0.0  ;;  %v360_v24 = vmax.f32 %v344_v20, 0.0  ;;  %v334_v25 = vadd.f32 %v402_v16, %v213_v21  ;;  %v342_v26 = vadd.f32 %v402_v16, %v245_v22 }
  0xe6   :  { %v438_v27 = vpop.f32.mrf.mxu0  ;;  %v446_v28 = vpop.f32.mrf.mxu1 }
  0xe7   :  { %368 = vst [vmem:[%s605_s3 + $0x10] sm:$0xff] %v352_v23  ;;  %376 = vst [vmem:[%s605_s3 + $0x50] sm:$0xff] %v360_v24  ;;  %v350_v29 = vmax.f32 %v334_v25, 0.0  ;;  %v358_v30 = vmax.f32 %v342_v26, 0.0  ;;  %v337_v31 = vadd.f32 %v438_v27, %v402_v16  ;;  %v345_v32 = vadd.f32 %v446_v28, %v402_v16 }
  0xe8   :  { %v216_v33 = vpop.f32.mrf.mxu0  ;;  %v248_v34 = vpop.f32.mrf.mxu1 }
  0xe9   :  { %366 = vst [vmem:[%s605_s3] sm:$0xff] %v350_v29  ;;  %374 = vst [vmem:[%s605_s3 + $0x40] sm:$0xff] %v358_v30  ;;  %v353_v35 = vmax.f32 %v337_v31, 0.0  ;;  %v361_v36 = vmax.f32 %v345_v32, 0.0  ;;  %v335_v37 = vadd.f32 %v402_v16, %v216_v33  ;;  %v343_v38 = vadd.f32 %v402_v16, %v248_v34 }
  0xea   :  { %v441_v39 = vpop.f32.mrf.mxu0  ;;  %v449_v40 = vpop.f32.mrf.mxu1 }
  0xeb   :  { %369 = vst [vmem:[%s605_s3 + $0x18] sm:$0xff] %v353_v35  ;;  %377 = vst [vmem:[%s605_s3 + $0x58] sm:$0xff] %v361_v36  ;;  %v351_v41 = vmax.f32 %v335_v37, 0.0  ;;  %v359_v42 = vmax.f32 %v343_v38, 0.0  ;;  %v340_v43 = vadd.f32 %v441_v39, %v402_v16  ;;  %v348_v44 = vadd.f32 %v449_v40, %v402_v16 }
  0xec   :  { %v229_v45 = vpop.f32.mrf.mxu0  ;;  %v261_v46 = vpop.f32.mrf.mxu1 }
  0xed   :  { %367 = vst [vmem:[%s605_s3 + $0x8] sm:$0xff] %v351_v41  ;;  %375 = vst [vmem:[%s605_s3 + $0x48] sm:$0xff] %v359_v42  ;;  %v356_v47 = vmax.f32 %v340_v43, 0.0  ;;  %v364_v48 = vmax.f32 %v348_v44, 0.0  ;;  %v338_v49 = vadd.f32 %v402_v16, %v229_v45  ;;  %v346_v50 = vadd.f32 %v402_v16, %v261_v46 }
  0xee   :  { %v442_v51 = vpop.f32.mrf.mxu0  ;;  %v450_v52 = vpop.f32.mrf.mxu1 }
  0xef   :  { %372 = vst [vmem:[%s605_s3 + $0x30] sm:$0xff] %v356_v47  ;;  %380 = vst [vmem:[%s605_s3 + $0x70] sm:$0xff] %v364_v48  ;;  %v354_v53 = vmax.f32 %v338_v49, 0.0  ;;  %v362_v54 = vmax.f32 %v346_v50, 0.0  ;;  %v341_v55 = vadd.f32 %v442_v51, %v402_v16  ;;  %v349_v56 = vadd.f32 %v450_v52, %v402_v16 }
  0xf0   :  { %v232_v57 = vpop.f32.mrf.mxu0  ;;  %v264_v58 = vpop.f32.mrf.mxu1 }
  0xf1   :  { %370 = vst [vmem:[%s605_s3 + $0x20] sm:$0xff] %v354_v53  ;;  %378 = vst [vmem:[%s605_s3 + $0x60] sm:$0xff] %v362_v54  ;;  %v357_v59 = vmax.f32 %v341_v55, 0.0  ;;  %v365_v60 = vmax.f32 %v349_v56, 0.0  ;;  %v339_v61 = vadd.f32 %v402_v16, %v232_v57  ;;  %v347_v62 = vadd.f32 %v402_v16, %v264_v58 }
  0xf3   :  { %373 = vst [vmem:[%s605_s3 + $0x38] sm:$0xff] %v357_v59  ;;  %381 = vst [vmem:[%s605_s3 + $0x78] sm:$0xff] %v365_v60  ;;  %v355_v63 = vmax.f32 %v339_v61, 0.0  ;;  %v363_v0 = vmax.f32 %v347_v62, 0.0 }
  0xf5   :  { %371 = vst [vmem:[%s605_s3 + $0x28] sm:$0xff] %v355_v63  ;;  %379 = vst [vmem:[%s605_s3 + $0x68] sm:$0xff] %v363_v0 }

// kernel: mammography_forward.58
= control target key start
LH: loop header
LB: loop body
LE: loop exit
PB: predicated region body
PF: predicated region fallthrough
CT: control target
= control target key end

     0   :  { %s1049_s12 = smov 0   ;;  %s1051_s13 = smov 0   ;;  %s1205_s0 = inlined_call_operand.vmem [shape: bf16[128,640], index: 0, kind: input, shape index: {}]   ;;  %s1206_s1 = inlined_call_operand.vmem [shape: bf16[640,128], index: 1, kind: input, shape index: {}]   ;;  %s1207_s2 = inlined_call_operand.vmem [shape: f32[1,128], index: 2, kind: input, shape index: {}]   ;;  %s1208_s3 = inlined_call_operand.vmem [shape: f32[128,128], index: 3, kind: output, shape index: {}]  }
   0x1   :  { %s1053_s14 = smov 0   ;;  %s1055_s15 = smov 0  }
   0x2   :  { %s1057_s16 = smov 0  }
   0x3 LB: > { %s25_s17 = sadd.s32 1, %s1022_s15  ;;  %p48_p1 = scmp.ne.s32.totalorder %s1014_s13, %s1010_s12  ;;  %s1026_s16 = sphi %s1057_s16, %s13_s16   ;;  %s1022_s15 = sphi %s1055_s15, %s1212_s15   ;;  %s1018_s14 = sphi %s1053_s14, %s1211_s14   ;;  %s1014_s13 = sphi %s1051_s13, %s1210_s13   ;;  %s1010_s12 = sphi %s1049_s12, %s1209_s12  }
   0x4   : > { %p26_p0 = scmp.ge.s32.totalorder %s25_s17, 5  ;;  %p49_p2 = scmp.eq.s32.totalorder %s1026_s16, 0 }
   0x5   : > { %s41_s19 = sadd.s32 1, %s1014_s13  ;;  %p837_p5 = scmp.ge.s32.totalorder %s1026_s16, 5 }
   0x6   : > { %s1214_s17 = smov (%p26_p0, %s25_s17), 0  ;;  %p50_p3 = por %p49_p2, %p48_p1 }
   0x7   : > { %s37_s18 = ssub.s32 %s1022_s15, %s1214_s17  ;;  %162 = sbr.rel (%p837_p5) target bundleno = 26 (0x1a), region = 20 }
   0x8   : > { %p39_p4 = scmp.eq.s32.totalorder %s37_s18, 0 }
   0xa   : > { %s1084_s20 = scalar_select %p39_p4, %s1014_s13, %s41_s19  }
   0xc   : > { %165 = sbr.rel (!%p50_p3) target bundleno = 26 (0x1a), region = 24  ;;  %s167_s21 = sand.u32 (%p50_p3), 1, %s1014_s13  }
   0xd   : > { %s839_s22 = sshll.u32 (%p50_p3), %s1022_s15, 2  ;;  %s838_s23 = sshll.u32 (%p50_p3), %s167_s21, 6 }
   0xe   : > { %s1092_s26 = scalar_lea.vmem (%p50_p3), %s1205_s0, %s839_s22  ;;  %s169_s27 = scalar_lea.vmem (%p50_p3), [#allocation3], %s838_s23 }
   0xf   : > { %v191_v0 = vld [vmem:[%s1092_s26] sm:$0xf] (%p50_p3)  ;;  %v193_v1 = vld [vmem:[%s1092_s26 + $0x14] sm:$0xf] (%p50_p3)  ;;  %v195_v2 = vld [vmem:[%s1092_s26 + $0x28] sm:$0xf] (%p50_p3) }
  0x10   : > { %192 = vst [vmem:[%s169_s27] sm:$0xf] (%p50_p3), %v191_v0  ;;  %194 = vst [vmem:[%s169_s27 + $0x4] sm:$0xf] (%p50_p3), %v193_v1  ;;  %v197_v3 = vld [vmem:[%s1092_s26 + $0x3c] sm:$0xf] (%p50_p3) }
  0x11   : > { %v199_v4 = vld [vmem:[%s1092_s26 + $0x50] sm:$0xf]  ;;  %196 = vst [vmem:[%s169_s27 + $0x8] sm:$0xf] %v195_v2  ;;  %198 = vst [vmem:[%s169_s27 + $0xc] sm:$0xf] %v197_v3 }
  0x12   : > { %200 = vst [vmem:[%s169_s27 + $0x10] sm:$0xf] %v199_v4  ;;  %v201_v5 = vld [vmem:[%s1092_s26 + $0x64] sm:$0xf]  ;;  %v203_v6 = vld [vmem:[%s1092_s26 + $0x78] sm:$0xf] }
  0x13   : > { %v205_v7 = vld [vmem:[%s1092_s26 + $0x8c] sm:$0xf]  ;;  %202 = vst [vmem:[%s169_s27 + $0x14] sm:$0xf] %v201_v5  ;;  %204 = vst [vmem:[%s169_s27 + $0x18] sm:$0xf] %v203_v6 }
  0x14   : > { %206 = vst [vmem:[%s169_s27 + $0x1c] sm:$0xf] %v205_v7  ;;  %v207_v8 = vld [vmem:[%s1092_s26 + $0xa0] sm:$0xf]  ;;  %v209_v9 = vld [vmem:[%s1092_s26 + $0xb4] sm:$0xf] }
  0x15   : > { %v211_v10 = vld [vmem:[%s1092_s26 + $0xc8] sm:$0xf]  ;;  %208 = vst [vmem:[%s169_s27 + $0x20] sm:$0xf] %v207_v8  ;;  %210 = vst [vmem:[%s169_s27 + $0x24] sm:$0xf] %v209_v9 }
  0x16   : > { %212 = vst [vmem:[%s169_s27 + $0x28] sm:$0xf] %v211_v10  ;;  %v213_v11 = vld [vmem:[%s1092_s26 + $0xdc] sm:$0xf]  ;;  %v215_v12 = vld [vmem:[%s1092_s26 + $0xf0] sm:$0xf] }
  0x17   : > { %v217_v13 = vld [vmem:[%s1092_s26 + $0x104] sm:$0xf]  ;;  %214 = vst [vmem:[%s169_s27 + $0x2c] sm:$0xf] %v213_v11  ;;  %216 = vst [vmem:[%s169_s27 + $0x30] sm:$0xf] %v215_v12 }
  0x18   : > { %218 = vst [vmem:[%s169_s27 + $0x34] sm:$0xf] %v217_v13  ;;  %v219_v14 = vld [vmem:[%s1092_s26 + $0x118] sm:$0xf]  ;;  %v221_v15 = vld [vmem:[%s1092_s26 + $0x12c] sm:$0xf] }
  0x19   : > { %220 = vst [vmem:[%s169_s27 + $0x38] sm:$0xf] %v219_v14  ;;  %222 = vst [vmem:[%s169_s27 + $0x3c] sm:$0xf] %v221_v15 }
  0x1a PF: > { %p840_p6 = scmp.ge.s32.totalorder %s1026_s16, 1  ;;  %p289_p7 = scmp.lt.s32.totalorder %s1026_s16, 6 }
  0x1c   : > { %p290_p8 = pnand %p840_p6, %p289_p7 }
  0x1d   : > { %s296_s28 = sand.u32 (!%p290_p8), 1, %s1010_s12   ;;  %s842_s29 = sshll.u32 (!%p290_p8), %s1018_s14, 4 }
  0x1e   : > { %293 = sbr.rel (%p290_p8) target bundleno = 305 (0x131), region = 69  ;;  %s841_s30 = sshll.u32 (!%p290_p8), %s296_s28, 6 }
  0x1f   : > { %p335_p9 = scmp.lt.s32.totalorder (!%p290_p8), %s842_s29, 79  ;;  %s1119_s8 = scalar_lea.vmem (!%p290_p8), [#allocation3], %s841_s30 }
  0x20   : > { %p844_p10 = scmp.ne.s32.totalorder (!%p290_p8), %s1018_s14, 0 }
  0x23   : > { %s1216_s29 = smov (!%p335_p9, %s842_s29), 79  ;;  %359 = sbr.rel (%p844_p10) target bundleno = 49 (0x31), region = 77 }
  0x24   : > { %s843_s4 = sshll.u32 %s1216_s29, 2 }
  0x25   : > { %s1117_s7 = scalar_lea.vmem %s1206_s1, %s843_s4 }
  0x28   : > { %v1028_v16 = vmov 0.0  }
  0x29   : > { %360 = vst [vmem:[#allocation2 + $0x30] sm:$0xff] %v1028_v16  ;;  %361 = vst [vmem:[#allocation2] sm:$0xff] %v1028_v16 }
  0x2a   : > { %362 = vst [vmem:[#allocation2 + $0x58] sm:$0xff] %v1028_v16  ;;  %363 = vst [vmem:[#allocation2 + $0x18] sm:$0xff] %v1028_v16 }
  0x2b   : > { %364 = vst [vmem:[#allocation2 + $0x50] sm:$0xff] %v1028_v16  ;;  %365 = vst [vmem:[#allocation2 + $0x68] sm:$0xff] %v1028_v16 }
  0x2c   : > { %366 = vst [vmem:[#allocation2 + $0x8] sm:$0xff] %v1028_v16  ;;  %367 = vst [vmem:[#allocation2 + $0x48] sm:$0xff] %v1028_v16 }
  0x2d   : > { %368 = vst [vmem:[#allocation2 + $0x40] sm:$0xff] %v1028_v16  ;;  %369 = vst [vmem:[#allocation2 + $0x20] sm:$0xff] %v1028_v16 }
  0x2e   : > { %370 = vst [vmem:[#allocation2 + $0x10] sm:$0xff] %v1028_v16  ;;  %371 = vst [vmem:[#allocation2 + $0x38] sm:$0xff] %v1028_v16 }
  0x2f   : > { %372 = vst [vmem:[#allocation2 + $0x60] sm:$0xff] %v1028_v16  ;;  %373 = vst [vmem:[#allocation2 + $0x70] sm:$0xff] %v1028_v16 }
  0x30   : > { %374 = vst [vmem:[#allocation2 + $0x78] sm:$0xff] %v1028_v16  ;;  %375 = vst [vmem:[#allocation2 + $0x28] sm:$0xff] %v1028_v16 }
  0x31 PF: > { %v972_v17 = vld [vmem:[%s1117_s7 + $0x38] sm:$0xff]   ;;  %v973_v18 = vld [vmem:[%s1117_s7 + $0x30] sm:$0xff]   ;;  %v974_v19 = vld [vmem:[%s1117_s7 + $0x28] sm:$0xff]   ;;  %p861_p11 = scmp.ne.s32.totalorder %s1018_s14, 4 }
  0x32   : > { %883 = vmatprep.subr.bf16.mxu0 %v972_v17  ;;  %915 = vmatprep.subr.bf16.mxu1 %v972_v17  ;;  %v975_v20 = vld [vmem:[%s1117_s7 + $0x20] sm:$0xff]   ;;  %v976_v23 = vld [vmem:[%s1117_s7 + $0x18] sm:$0xff]   ;;  %v977_v24 = vld [vmem:[%s1117_s7 + $0x10] sm:$0xff]  }
  0x33   : > { %884 = vmatpush3.bf16.msra.mxu0 %v972_v17  ;;  %923 = vmatpush3.bf16.msra.mxu1 %v972_v17  ;;  %v980_v21 = vld [vmem:[%s1119_s8] sm:$0xff]   ;;  %v978_v25 = vld [vmem:[%s1117_s7 + $0x8] sm:$0xff]   ;;  %v984_v29 = vld [vmem:[%s1119_s8 + $0x10] sm:$0xff]  }
  0x34   : > { %885 = vmatprep.subr.bf16.mxu0 %v973_v18  ;;  %916 = vmatprep.subr.bf16.mxu1 %v973_v18  ;;  %v981_v22 = vld [vmem:[%s1119_s8 + $0x20] sm:$0xff]   ;;  %v982_v27 = vld [vmem:[%s1119_s8 + $0x8] sm:$0xff]   ;;  %v985_v30 = vld [vmem:[%s1119_s8 + $0x30] sm:$0xff]  }
  0x35   : > { %899 = vmatprep.mubr.bf16.mxu0 %v980_v21  ;;  %907 = vmatprep.mubr.bf16.mxu1 %v981_v22  ;;  %v979_v26 = vld [vmem:[%s1117_s7] sm:$0xff]   ;;  %v983_v28 = vld [vmem:[%s1119_s8 + $0x28] sm:$0xff]   ;;  %v986_v31 = vld [vmem:[%s1119_s8 + $0x18] sm:$0xff]  }
  0x36   : > { %v987_v32 = vld [vmem:[%s1119_s8 + $0x38] sm:$0xff]   ;;  %v386_v34 = vld [vmem:[#allocation2 + $0x10] sm:$0xff]  ;;  %v384_v38 = vld [vmem:[#allocation2 + $0x40] sm:$0xff] }
  0x37   : > { %886 = vmatpush3.bf16.msra.mxu0 %v973_v18  ;;  %924 = vmatpush3.bf16.msra.mxu1 %v973_v18  ;;  %v378_v33 = vld [vmem:[#allocation2 + $0x58] sm:$0xff]  ;;  %v376_v37 = vld [vmem:[#allocation2 + $0x30] sm:$0xff]  ;;  %v377_v49 = vld [vmem:[#allocation2] sm:$0xff] }
  0x38   : > { %887 = vmatprep.subr.bf16.mxu0 %v974_v19  ;;  %917 = vmatprep.subr.bf16.mxu1 %v974_v19  ;;  %v379_v43 = vld [vmem:[#allocation2 + $0x18] sm:$0xff]  ;;  %v385_v50 = vld [vmem:[#allocation2 + $0x20] sm:$0xff]  ;;  %v382_v55 = vld [vmem:[#allocation2 + $0x8] sm:$0xff] }
  0x39   : > { %v387_v44 = vld [vmem:[#allocation2 + $0x38] sm:$0xff]  ;;  %v380_v61 = vld [vmem:[#allocation2 + $0x50] sm:$0xff]  ;;  %v388_v62 = vld [vmem:[#allocation2 + $0x60] sm:$0xff] }
  0x3a   : > { %v390_v56 = vld [vmem:[#allocation2 + $0x78] sm:$0xff]  ;;  %v383_v3 = vld [vmem:[#allocation2 + $0x48] sm:$0xff]  ;;  %v389_v10 = vld [vmem:[#allocation2 + $0x70] sm:$0xff] }
  0x3b   : > { %888 = vmatpush3.bf16.msra.mxu0 %v974_v19  ;;  %925 = vmatpush3.bf16.msra.mxu1 %v974_v19  ;;  %v391_v4 = vld [vmem:[#allocation2 + $0x28] sm:$0xff] }
  0x3c   : > { %889 = vmatprep.subr.bf16.mxu0 %v975_v20  ;;  %918 = vmatprep.subr.bf16.mxu1 %v975_v20  ;;  %v381_v9 = vld [vmem:[#allocation2 + $0x68] sm:$0xff] }
  0x3f   : > { %890 = vmatpush3.bf16.msra.mxu0 %v975_v20  ;;  %926 = vmatpush3.bf16.msra.mxu1 %v975_v20 }
  0x40   : > { %891 = vmatprep.subr.bf16.mxu0 %v976_v23  ;;  %919 = vmatprep.subr.bf16.mxu1 %v976_v23 }
  0x43   : > { %892 = vmatpush3.bf16.msra.mxu0 %v976_v23  ;;  %927 = vmatpush3.bf16.msra.mxu1 %v976_v23 }
  0x44   : > { %893 = vmatprep.subr.bf16.mxu0 %v977_v24  ;;  %920 = vmatprep.subr.bf16.mxu1 %v977_v24 }
  0x47   : > { %894 = vmatpush3.bf16.msra.mxu0 %v977_v24  ;;  %928 = vmatpush3.bf16.msra.mxu1 %v977_v24 }
  0x48   : > { %895 = vmatprep.subr.bf16.mxu0 %v978_v25  ;;  %921 = vmatprep.subr.bf16.mxu1 %v978_v25 }
  0x4b   : > { %896 = vmatpush3.bf16.msra.mxu0 %v978_v25  ;;  %929 = vmatpush3.bf16.msra.mxu1 %v978_v25 }
  0x4c   : > { %897 = vmatprep.subr.bf16.mxu0 %v979_v26  ;;  %922 = vmatprep.subr.bf16.mxu1 %v979_v26 }
  0x4f   : > { %898 = vmatpush3.bf16.msra.mxu0 %v979_v26  ;;  %930 = vmatpush3.bf16.msra.mxu1 %v979_v26 }
  0x52   : > { %900 = vmatmul.mubr.bf16.vlgmr.msra.gmra.mxu0 %v982_v27  ;;  %908 = vmatmul.mubr.bf16.vlgmr.msra.gmra.mxu1 %v983_v28 }
  0x53   : > { %903 = vmatprep.mubr.bf16.mxu0 %v984_v29  ;;  %911 = vmatprep.mubr.bf16.mxu1 %v985_v30 }
  0x5a   : > { %904 = vmatmul.mubr.bf16.gmra.mxu0 %v986_v31  ;;  %912 = vmatmul.mubr.bf16.gmra.mxu1 %v987_v32 }
 0x112   : > { %v901_v35 = vpop.f32.mrf.mxu0  ;;  %v909_v36 = vpop.f32.mrf.mxu1 }
 0x113   : > { %v619_v39 = vadd.f32 %v901_v35, %v378_v33  ;;  %v627_v40 = vadd.f32 %v909_v36, %v386_v34 }
 0x114   : > { %v554_v41 = vpop.f32.mrf.mxu0  ;;  %v586_v42 = vpop.f32.mrf.mxu1 }
 0x115   : > { %635 = vst [vmem:[#allocation2 + $0x58] sm:$0xff] %v619_v39  ;;  %643 = vst [vmem:[#allocation2 + $0x10] sm:$0xff] %v627_v40  ;;  %v617_v45 = vadd.f32 %v554_v41, %v376_v37  ;;  %v625_v46 = vadd.f32 %v586_v42, %v384_v38 }
 0x116   : > { %v902_v47 = vpop.f32.mrf.mxu0  ;;  %v910_v48 = vpop.f32.mrf.mxu1 }
 0x117   : > { %633 = vst [vmem:[#allocation2 + $0x30] sm:$0xff] %v617_v45  ;;  %641 = vst [vmem:[#allocation2 + $0x40] sm:$0xff] %v625_v46  ;;  %v620_v51 = vadd.f32 %v902_v47, %v379_v43  ;;  %v628_v52 = vadd.f32 %v910_v48, %v387_v44 }
 0x118   : > { %v557_v53 = vpop.f32.mrf.mxu0  ;;  %v589_v54 = vpop.f32.mrf.mxu1 }
 0x119   : > { %636 = vst [vmem:[#allocation2 + $0x18] sm:$0xff] %v620_v51  ;;  %644 = vst [vmem:[#allocation2 + $0x38] sm:$0xff] %v628_v52  ;;  %v618_v57 = vadd.f32 %v557_v53, %v377_v49  ;;  %v626_v58 = vadd.f32 %v589_v54, %v385_v50 }
 0x11a   : > { %v905_v59 = vpop.f32.mrf.mxu0  ;;  %v913_v60 = vpop.f32.mrf.mxu1 }
 0x11b   : > { %634 = vst [vmem:[#allocation2] sm:$0xff] %v618_v57  ;;  %642 = vst [vmem:[#allocation2 + $0x20] sm:$0xff] %v626_v58  ;;  %v623_v63 = vadd.f32 %v905_v59, %v382_v55  ;;  %v631_v0 = vadd.f32 %v913_v60, %v390_v56 }
 0x11c   : > { %v570_v1 = vpop.f32.mrf.mxu0  ;;  %v602_v2 = vpop.f32.mrf.mxu1 }
 0x11d   : > { %639 = vst [vmem:[#allocation2 + $0x8] sm:$0xff] %v623_v63  ;;  %647 = vst [vmem:[#allocation2 + $0x78] sm:$0xff] %v631_v0  ;;  %v621_v5 = vadd.f32 %v570_v1, %v380_v61  ;;  %v629_v6 = vadd.f32 %v602_v2, %v388_v62 }
 0x11e   : > { %v906_v7 = vpop.f32.mrf.mxu0  ;;  %v914_v8 = vpop.f32.mrf.mxu1 }
 0x11f   : > { %637 = vst [vmem:[#allocation2 + $0x50] sm:$0xff] %v621_v5  ;;  %645 = vst [vmem:[#allocation2 + $0x60] sm:$0xff] %v629_v6  ;;  %v624_v11 = vadd.f32 %v906_v7, %v383_v3  ;;  %v632_v12 = vadd.f32 %v914_v8, %v391_v4  ;;  %652 = sbr.rel (%p861_p11) target bundleno = 305 (0x131), region = 81 }
 0x120   : > { %v573_v13 = vpop.f32.mrf.mxu0  ;;  %v605_v14 = vpop.f32.mrf.mxu1 }
 0x121   : > { %640 = vst [vmem:[#allocation2 + $0x48] sm:$0xff] %v624_v11  ;;  %648 = vst [vmem:[#allocation2 + $0x28] sm:$0xff] %v632_v12  ;;  %v622_v15 = vadd.f32 %v573_v13, %v381_v9  ;;  %v630_v16 = vadd.f32 %v605_v14, %v389_v10 }
 0x123   : > { %638 = vst [vmem:[#allocation2 + $0x68] sm:$0xff] %v622_v15  ;;  %646 = vst [vmem:[#allocation2 + $0x70] sm:$0xff] %v630_v16 }
 0x124   : > { %v653_v17 = vld [vmem:[#allocation2 + $0x30] sm:$0xff]  ;;  %v862_v18 = vld [vmem:[%s1207_s2] ss:$0 sm:$0xff]  ;;  %v655_v22 = vld [vmem:[#allocation2 + $0x58] sm:$0xff] }
 0x125   : > { %v654_v19 = vld [vmem:[#allocation2] sm:$0xff]  ;;  %v676_v20 = vadd.f32 %v862_v18, %v653_v17  ;;  %v656_v23 = vld [vmem:[#allocation2 + $0x18] sm:$0xff]  ;;  %v678_v25 = vadd.f32 %v862_v18, %v655_v22  ;;  %v659_v29 = vld [vmem:[#allocation2 + $0x8] sm:$0xff] }
 0x126   : > { %v677_v21 = vadd.f32 %v862_v18, %v654_v19  ;;  %v657_v24 = vld [vmem:[#allocation2 + $0x50] sm:$0xff]  ;;  %v679_v26 = vadd.f32 %v862_v18, %v656_v23  ;;  %v682_v34 = vadd.f32 %v862_v18, %v659_v29  ;;  %v661_v35 = vld [vmem:[#allocation2 + $0x40] sm:$0xff]  ;;  %v664_v42 = vld [vmem:[#allocation2 + $0x38] sm:$0xff] }
 0x127   : > { %v680_v27 = vadd.f32 %v862_v18, %v657_v24  ;;  %v692_v31 = vmax.f32 %v676_v20, 0.0  ;;  %v662_v36 = vld [vmem:[#allocation2 + $0x20] sm:$0xff]  ;;  %v663_v37 = vld [vmem:[#allocation2 + $0x10] sm:$0xff]  ;;  %v694_v38 = vmax.f32 %v678_v25, 0.0  ;;  %v684_v47 = vadd.f32 %v862_v18, %v661_v35  ;;  %v667_v49 = vld [vmem:[#allocation2 + $0x78] sm:$0xff] }
 0x128   : > { %v660_v30 = vld [vmem:[#allocation2 + $0x48] sm:$0xff]  ;;  %v693_v32 = vmax.f32 %v677_v21, 0.0  ;;  %v695_v39 = vmax.f32 %v679_v26, 0.0  ;;  %v665_v43 = vld [vmem:[#allocation2 + $0x60] sm:$0xff]  ;;  %v698_v46 = vmax.f32 %v682_v34, 0.0  ;;  %v685_v48 = vadd.f32 %v862_v18, %v662_v36 }
 0x129   : > { %v696_v40 = vmax.f32 %v680_v27, 0.0  ;;  %v683_v41 = vadd.f32 %v862_v18, %v660_v30  ;;  %708 = vst [vmem:[%s1208_s3] sm:$0xff] %v692_v31  ;;  %v668_v50 = vld [vmem:[#allocation2 + $0x28] sm:$0xff]  ;;  %710 = vst [vmem:[%s1208_s3 + $0x10] sm:$0xff] %v694_v38  ;;  %v686_v52 = vadd.f32 %v862_v18, %v663_v37  ;;  %v687_v53 = vadd.f32 %v862_v18, %v664_v42 }
 0x12a   : > { %v658_v28 = vld [vmem:[#allocation2 + $0x68] sm:$0xff]  ;;  %v666_v44 = vld [vmem:[#allocation2 + $0x70] sm:$0xff]  ;;  %709 = vst [vmem:[%s1208_s3 + $0x8] sm:$0xff] %v693_v32  ;;  %711 = vst [vmem:[%s1208_s3 + $0x18] sm:$0xff] %v695_v39  ;;  %v688_v54 = vadd.f32 %v862_v18, %v665_v43  ;;  %v700_v55 = vmax.f32 %v684_v47, 0.0  ;;  %v701_v56 = vmax.f32 %v685_v48, 0.0  ;;  %v690_v58 = vadd.f32 %v862_v18, %v667_v49 }
 0x12b   : > { %v681_v33 = vadd.f32 %v862_v18, %v658_v28  ;;  %712 = vst [vmem:[%s1208_s3 + $0x20] sm:$0xff] %v696_v40  ;;  %v699_v51 = vmax.f32 %v683_v41, 0.0  ;;  %714 = vst [vmem:[%s1208_s3 + $0x30] sm:$0xff] %v698_v46  ;;  %v689_v57 = vadd.f32 %v862_v18, %v666_v44  ;;  %v702_v59 = vmax.f32 %v686_v52, 0.0 }
 0x12c   : > { %v703_v60 = vmax.f32 %v687_v53, 0.0  ;;  %v704_v61 = vmax.f32 %v688_v54, 0.0  ;;  %v691_v62 = vadd.f32 %v862_v18, %v668_v50  ;;  %716 = vst [vmem:[%s1208_s3 + $0x40] sm:$0xff] %v700_v55  ;;  %717 = vst [vmem:[%s1208_s3 + $0x48] sm:$0xff] %v701_v56  ;;  %v706_v0 = vmax.f32 %v690_v58, 0.0 }
 0x12d   : > { %v697_v45 = vmax.f32 %v681_v33, 0.0  ;;  %715 = vst [vmem:[%s1208_s3 + $0x38] sm:$0xff] %v699_v51  ;;  %v705_v63 = vmax.f32 %v689_v57, 0.0  ;;  %718 = vst [vmem:[%s1208_s3 + $0x50] sm:$0xff] %v702_v59 }
 0x12e   : > { %719 = vst [vmem:[%s1208_s3 + $0x58] sm:$0xff] %v703_v60  ;;  %720 = vst [vmem:[%s1208_s3 + $0x60] sm:$0xff] %v704_v61  ;;  %v707_v1 = vmax.f32 %v691_v62, 0.0 }
 0x12f   : > { %713 = vst [vmem:[%s1208_s3 + $0x28] sm:$0xff] %v697_v45  ;;  %721 = vst [vmem:[%s1208_s3 + $0x68] sm:$0xff] %v705_v63 }
 0x130   : > { %722 = vst [vmem:[%s1208_s3 + $0x70] sm:$0xff] %v706_v0  ;;  %723 = vst [vmem:[%s1208_s3 + $0x78] sm:$0xff] %v707_v1 }
 0x131 PF: > { %s13_s16 = sadd.s32 1, %s1026_s16   ;;  %s1209_s12 = smov %s1014_s13 }
 0x132   : > { %p10_p12 = scmp.ge.s32.totalorder %s13_s16, 7   ;;  %s1210_s13 = smov %s1084_s20 }
 0x133   : > { %s1211_s14 = smov %s1022_s15  ;;  %s1212_s15 = smov %s1214_s17 }
 0x134   :  { %12 = sbr.rel (!%p10_p12) target bundleno = 3 (0x3), region = 122 }

// kernel: mammography_forward.60
= control target key start
LH: loop header
LB: loop body
LE: loop exit
PB: predicated region body
PF: predicated region fallthrough
CT: control target
= control target key end

     0   :  { %s820_s1 = inlined_call_operand.vmem [shape: bf16[256,128], index: 1, kind: input, shape index: {}]   ;;  %s821_s0 = inlined_call_operand.vmem [shape: bf16[128,256], index: 0, kind: input, shape index: {}]   ;;  %s822_s2 = inlined_call_operand.vmem [shape: f32[1,128], index: 2, kind: input, shape index: {}]   ;;  %s823_s3 = inlined_call_operand.vmem [shape: f32[128,128], index: 3, kind: output, shape index: {}]  }
   0x1   :  { %v595_v0 = vld [vmem:[%s820_s1 + $0x78] sm:$0xff]   ;;  %v597_v2 = vld [vmem:[%s820_s1 + $0x70] sm:$0xff]   ;;  %v599_v4 = vld [vmem:[%s820_s1 + $0x68] sm:$0xff]  }
   0x2   :  { %v596_v1 = vld [vmem:[%s820_s1 + $0x38] sm:$0xff]   ;;  %515 = vmatprep.subr.bf16.mxu0 %v595_v0  ;;  %579 = vmatprep.subr.bf16.mxu1 %v595_v0  ;;  %v598_v3 = vld [vmem:[%s820_s1 + $0x30] sm:$0xff]   ;;  %v600_v5 = vld [vmem:[%s820_s1 + $0x28] sm:$0xff]  }
   0x3   :  { %516 = vmatpush3.bf16.msra.mxu0 %v596_v1  ;;  %587 = vmatpush3.bf16.msra.mxu1 %v596_v1  ;;  %v601_v6 = vld [vmem:[%s820_s1 + $0x60] sm:$0xff]   ;;  %v603_v8 = vld [vmem:[%s820_s1 + $0x58] sm:$0xff]   ;;  %v605_v10 = vld [vmem:[%s820_s1 + $0x50] sm:$0xff]  }
   0x4   :  { %517 = vmatprep.subr.bf16.mxu0 %v597_v2  ;;  %580 = vmatprep.subr.bf16.mxu1 %v597_v2  ;;  %v602_v7 = vld [vmem:[%s820_s1 + $0x20] sm:$0xff]   ;;  %v604_v9 = vld [vmem:[%s820_s1 + $0x18] sm:$0xff]   ;;  %v606_v13 = vld [vmem:[%s820_s1 + $0x10] sm:$0xff]  }
   0x5   :  { %v613_v11 = vld [vmem:[%s821_s0 + $0x4] ss:$8 sps:$4 sm:$0xff]   ;;  %v611_v18 = vld [vmem:[%s821_s0] ss:$8 sps:$4 sm:$0xff]   ;;  %v617_v20 = vld [vmem:[%s821_s0 + $0x14] ss:$8 sps:$4 sm:$0xff]  }
   0x6   :  { %v616_v12 = vld [vmem:[%s821_s0 + $0x44] ss:$8 sps:$4 sm:$0xff]   ;;  %307 = vmatprep.mubr.bf16.mxu0 %v613_v11  ;;  %v614_v19 = vld [vmem:[%s821_s0 + $0x40] ss:$8 sps:$4 sm:$0xff]   ;;  %v619_v21 = vld [vmem:[%s821_s0 + $0x54] ss:$8 sps:$4 sm:$0xff]  }
   0x7   :  { %518 = vmatpush3.bf16.msra.mxu0 %v598_v3  ;;  %588 = vmatpush3.bf16.msra.mxu1 %v598_v3  ;;  %v607_v14 = vld [vmem:[%s820_s1 + $0x48] sm:$0xff]   ;;  %v609_v16 = vld [vmem:[%s820_s1 + $0x40] sm:$0xff]   ;;  %v621_v22 = vld [vmem:[%s821_s0 + $0x10] ss:$8 sps:$4 sm:$0xff]  }
   0x8   :  { %519 = vmatprep.subr.bf16.mxu0 %v599_v4  ;;  %581 = vmatprep.subr.bf16.mxu1 %v599_v4  ;;  %v608_v15 = vld [vmem:[%s820_s1 + $0x8] sm:$0xff]   ;;  %v610_v17 = vld [vmem:[%s820_s1] sm:$0xff]   ;;  %v622_v23 = vld [vmem:[%s821_s0 + $0x50] ss:$8 sps:$4 sm:$0xff]  }
   0x9   :  { %339 = vmatprep.mubr.bf16.mxu1 %v616_v12  ;;  %v623_v24 = vld [vmem:[%s821_s0 + $0x24] ss:$8 sps:$4 sm:$0xff]   ;;  %v627_v26 = vld [vmem:[%s821_s0 + $0x20] ss:$8 sps:$4 sm:$0xff]   ;;  %v629_v28 = vld [vmem:[%s821_s0 + $0x34] ss:$8 sps:$4 sm:$0xff]  }
   0xa   :  { %v625_v25 = vld [vmem:[%s821_s0 + $0x64] ss:$8 sps:$4 sm:$0xff]   ;;  %v628_v27 = vld [vmem:[%s821_s0 + $0x60] ss:$8 sps:$4 sm:$0xff]   ;;  %v631_v29 = vld [vmem:[%s821_s0 + $0x74] ss:$8 sps:$4 sm:$0xff]  }
   0xb   :  { %520 = vmatpush3.bf16.msra.mxu0 %v600_v5  ;;  %589 = vmatpush3.bf16.msra.mxu1 %v600_v5  ;;  %v633_v30 = vld [vmem:[%s821_s0 + $0x30] ss:$8 sps:$4 sm:$0xff]   ;;  %v754_v35 = vld [vmem:[%s822_s2] ss:$0 sm:$0xff] }
   0xc   :  { %521 = vmatprep.subr.bf16.mxu0 %v601_v6  ;;  %582 = vmatprep.subr.bf16.mxu1 %v601_v6  ;;  %v634_v31 = vld [vmem:[%s821_s0 + $0x70] ss:$8 sps:$4 sm:$0xff]  }
   0xf   :  { %522 = vmatpush3.bf16.msra.mxu0 %v602_v7  ;;  %590 = vmatpush3.bf16.msra.mxu1 %v602_v7 }
  0x10   :  { %523 = vmatprep.subr.bf16.mxu0 %v603_v8  ;;  %583 = vmatprep.subr.bf16.mxu1 %v603_v8 }
  0x13   :  { %524 = vmatpush3.bf16.msra.mxu0 %v604_v9  ;;  %591 = vmatpush3.bf16.msra.mxu1 %v604_v9 }
  0x14   :  { %525 = vmatprep.subr.bf16.mxu0 %v605_v10  ;;  %584 = vmatprep.subr.bf16.mxu1 %v605_v10 }
  0x17   :  { %526 = vmatpush3.bf16.msra.mxu0 %v606_v13  ;;  %592 = vmatpush3.bf16.msra.mxu1 %v606_v13 }
  0x18   :  { %527 = vmatprep.subr.bf16.mxu0 %v607_v14  ;;  %585 = vmatprep.subr.bf16.mxu1 %v607_v14 }
  0x1b   :  { %528 = vmatpush3.bf16.msra.mxu0 %v608_v15  ;;  %593 = vmatpush3.bf16.msra.mxu1 %v608_v15 }
  0x1c   :  { %529 = vmatprep.subr.bf16.mxu0 %v609_v16  ;;  %586 = vmatprep.subr.bf16.mxu1 %v609_v16 }
  0x1f   :  { %530 = vmatpush3.bf16.msra.mxu0 %v610_v17  ;;  %594 = vmatpush3.bf16.msra.mxu1 %v610_v17 }
  0x22   :  { %308 = vmatmul.mubr.bf16.vlgmr.msra.gmra.mxu0 %v611_v18  ;;  %340 = vmatmul.mubr.bf16.vlgmr.msra.gmra.mxu1 %v614_v19 }
  0x23   :  { %315 = vmatprep.mubr.bf16.mxu0 %v617_v20  ;;  %347 = vmatprep.mubr.bf16.mxu1 %v619_v21 }
  0x2a   :  { %316 = vmatmul.mubr.bf16.gmra.mxu0 %v621_v22  ;;  %348 = vmatmul.mubr.bf16.gmra.mxu1 %v622_v23 }
  0x2b   :  { %323 = vmatprep.mubr.bf16.mxu0 %v623_v24  ;;  %355 = vmatprep.mubr.bf16.mxu1 %v625_v25 }
  0x32   :  { %324 = vmatmul.mubr.bf16.gmra.mxu0 %v627_v26  ;;  %356 = vmatmul.mubr.bf16.gmra.mxu1 %v628_v27 }
  0x33   :  { %331 = vmatprep.mubr.bf16.mxu0 %v629_v28  ;;  %363 = vmatprep.mubr.bf16.mxu1 %v631_v29 }
  0x3a   :  { %332 = vmatmul.mubr.bf16.gmra.mxu0 %v633_v30  ;;  %364 = vmatmul.mubr.bf16.gmra.mxu1 %v634_v31 }
  0xe2   :  { %v531_v32 = vpop.f32.mrf.mxu0  ;;  %v555_v33 = vpop.f32.mrf.mxu1 }
  0xe4   :  { %v532_v34 = vpop.f32.mrf.mxu0  ;;  %v556_v36 = vpop.f32.mrf.mxu1 }
  0xe5   :  { %v533_v37 = vadd.f32 %v532_v34, %v531_v32  ;;  %v557_v38 = vadd.f32 %v556_v36, %v555_v33 }
  0xe6   :  { %v534_v39 = vpop.f32.mrf.mxu0  ;;  %v558_v40 = vpop.f32.mrf.mxu1 }
  0xe7   :  { %v430_v41 = vadd.f32 %v533_v37, %v754_v35  ;;  %v438_v42 = vadd.f32 %v557_v38, %v754_v35 }
  0xe8   :  { %v535_v43 = vpop.f32.mrf.mxu0  ;;  %v559_v44 = vpop.f32.mrf.mxu1 }
  0xe9   :  { %v446_v45 = vmax.f32 %v430_v41, 0.0  ;;  %v454_v46 = vmax.f32 %v438_v42, 0.0  ;;  %v536_v47 = vadd.f32 %v535_v43, %v534_v39  ;;  %v560_v48 = vadd.f32 %v559_v44, %v558_v40 }
  0xea   :  { %v537_v49 = vpop.f32.mrf.mxu0  ;;  %v561_v50 = vpop.f32.mrf.mxu1 }
  0xeb   :  { %462 = vst [vmem:[%s823_s3] sm:$0xff] %v446_v45  ;;  %470 = vst [vmem:[%s823_s3 + $0x40] sm:$0xff] %v454_v46  ;;  %v431_v51 = vadd.f32 %v536_v47, %v754_v35  ;;  %v439_v52 = vadd.f32 %v560_v48, %v754_v35 }
  0xec   :  { %v538_v53 = vpop.f32.mrf.mxu0  ;;  %v562_v54 = vpop.f32.mrf.mxu1 }
  0xed   :  { %v447_v55 = vmax.f32 %v431_v51, 0.0  ;;  %v455_v56 = vmax.f32 %v439_v52, 0.0  ;;  %v539_v57 = vadd.f32 %v538_v53, %v537_v49  ;;  %v563_v58 = vadd.f32 %v562_v54, %v561_v50 }
  0xee   :  { %v540_v59 = vpop.f32.mrf.mxu0  ;;  %v564_v60 = vpop.f32.mrf.mxu1 }
  0xef   :  { %463 = vst [vmem:[%s823_s3 + $0x8] sm:$0xff] %v447_v55  ;;  %471 = vst [vmem:[%s823_s3 + $0x48] sm:$0xff] %v455_v56  ;;  %v432_v61 = vadd.f32 %v539_v57, %v754_v35  ;;  %v440_v62 = vadd.f32 %v563_v58, %v754_v35 }
  0xf0   :  { %v541_v63 = vpop.f32.mrf.mxu0  ;;  %v565_v0 = vpop.f32.mrf.mxu1 }
  0xf1   :  { %v448_v1 = vmax.f32 %v432_v61, 0.0  ;;  %v456_v2 = vmax.f32 %v440_v62, 0.0  ;;  %v542_v3 = vadd.f32 %v541_v63, %v540_v59  ;;  %v566_v4 = vadd.f32 %v565_v0, %v564_v60 }
  0xf2   :  { %v543_v5 = vpop.f32.mrf.mxu0  ;;  %v567_v6 = vpop.f32.mrf.mxu1 }
  0xf3   :  { %464 = vst [vmem:[%s823_s3 + $0x10] sm:$0xff] %v448_v1  ;;  %472 = vst [vmem:[%s823_s3 + $0x50] sm:$0xff] %v456_v2  ;;  %v433_v7 = vadd.f32 %v542_v3, %v754_v35  ;;  %v441_v8 = vadd.f32 %v566_v4, %v754_v35 }
  0xf4   :  { %v544_v9 = vpop.f32.mrf.mxu0  ;;  %v568_v10 = vpop.f32.mrf.mxu1 }
  0xf5   :  { %v449_v11 = vmax.f32 %v433_v7, 0.0  ;;  %v457_v12 = vmax.f32 %v441_v8, 0.0  ;;  %v545_v13 = vadd.f32 %v544_v9, %v543_v5  ;;  %v569_v14 = vadd.f32 %v568_v10, %v567_v6 }
  0xf6   :  { %v546_v15 = vpop.f32.mrf.mxu0  ;;  %v570_v16 = vpop.f32.mrf.mxu1 }
  0xf7   :  { %465 = vst [vmem:[%s823_s3 + $0x18] sm:$0xff] %v449_v11  ;;  %473 = vst [vmem:[%s823_s3 + $0x58] sm:$0xff] %v457_v12  ;;  %v434_v17 = vadd.f32 %v545_v13, %v754_v35  ;;  %v442_v18 = vadd.f32 %v569_v14, %v754_v35 }
  0xf8   :  { %v547_v19 = vpop.f32.mrf.mxu0  ;;  %v571_v20 = vpop.f32.mrf.mxu1 }
  0xf9   :  { %v450_v21 = vmax.f32 %v434_v17, 0.0  ;;  %v458_v22 = vmax.f32 %v442_v18, 0.0  ;;  %v548_v23 = vadd.f32 %v547_v19, %v546_v15  ;;  %v572_v24 = vadd.f32 %v571_v20, %v570_v16 }
  0xfa   :  { %v549_v25 = vpop.f32.mrf.mxu0  ;;  %v573_v26 = vpop.f32.mrf.mxu1 }
  0xfb   :  { %466 = vst [vmem:[%s823_s3 + $0x20] sm:$0xff] %v450_v21  ;;  %474 = vst [vmem:[%s823_s3 + $0x60] sm:$0xff] %v458_v22  ;;  %v435_v27 = vadd.f32 %v548_v23, %v754_v35  ;;  %v443_v28 = vadd.f32 %v572_v24, %v754_v35 }
  0xfc   :  { %v550_v29 = vpop.f32.mrf.mxu0  ;;  %v574_v30 = vpop.f32.mrf.mxu1 }
  0xfd   :  { %v451_v31 = vmax.f32 %v435_v27, 0.0  ;;  %v459_v32 = vmax.f32 %v443_v28, 0.0  ;;  %v551_v33 = vadd.f32 %v550_v29, %v549_v25  ;;  %v575_v34 = vadd.f32 %v574_v30, %v573_v26 }
  0xfe   :  { %v552_v36 = vpop.f32.mrf.mxu0  ;;  %v576_v37 = vpop.f32.mrf.mxu1 }
  0xff   :  { %467 = vst [vmem:[%s823_s3 + $0x28] sm:$0xff] %v451_v31  ;;  %475 = vst [vmem:[%s823_s3 + $0x68] sm:$0xff] %v459_v32  ;;  %v436_v38 = vadd.f32 %v551_v33, %v754_v35  ;;  %v444_v39 = vadd.f32 %v575_v34, %v754_v35 }
 0x100   :  { %v553_v40 = vpop.f32.mrf.mxu0  ;;  %v577_v41 = vpop.f32.mrf.mxu1 }
 0x101   :  { %v452_v42 = vmax.f32 %v436_v38, 0.0  ;;  %v460_v43 = vmax.f32 %v444_v39, 0.0  ;;  %v554_v44 = vadd.f32 %v553_v40, %v552_v36  ;;  %v578_v45 = vadd.f32 %v577_v41, %v576_v37 }
 0x103   :  { %468 = vst [vmem:[%s823_s3 + $0x30] sm:$0xff] %v452_v42  ;;  %476 = vst [vmem:[%s823_s3 + $0x70] sm:$0xff] %v460_v43  ;;  %v437_v46 = vadd.f32 %v554_v44, %v754_v35  ;;  %v445_v47 = vadd.f32 %v578_v45, %v754_v35 }
 0x105   :  { %v453_v48 = vmax.f32 %v437_v46, 0.0  ;;  %v461_v49 = vmax.f32 %v445_v47, 0.0 }
 0x107   :  { %469 = vst [vmem:[%s823_s3 + $0x38] sm:$0xff] %v453_v48  ;;  %477 = vst [vmem:[%s823_s3 + $0x78] sm:$0xff] %v461_v49 }

// kernel: mammography_forward.59
= control target key start
LH: loop header
LB: loop body
LE: loop exit
PB: predicated region body
PF: predicated region fallthrough
CT: control target
= control target key end

     0   :  { %v707_v1 = vmov 0   ;;  %v460_v25 = vlaneseq  ;;  %s1044_s1 = inlined_call_operand.vmem [shape: bf16[128,256], index: 1, kind: input, shape index: {}]   ;;  %s1045_s0 = inlined_call_operand.vmem [shape: bf16[128,128], index: 0, kind: input, shape index: {}]   ;;  %s1046_s2 = inlined_call_operand.vmem [shape: f32[1,256], index: 2, kind: input, shape index: {}]   ;;  %s1047_s3 = inlined_call_operand.vmem [shape: f32[128,256], index: 3, kind: input, shape index: {}]   ;;  %s1048_s4 = inlined_call_operand.vmem [shape: f32[128,256], index: 4, kind: output, shape index: {}]  }
   0x1   :  { %v675_v0 = vld [vmem:[%s1044_s1 + $0x74] ss:$8 sps:$4 sm:$0xff]   ;;  %278 = vmatprep.mubr.bf16.mxu0 %v707_v1  ;;  %318 = vmatprep.mubr.bf16.mxu1 %v707_v1  ;;  %v677_v2 = vld [vmem:[%s1044_s1 + $0x70] ss:$8 sps:$4 sm:$0xff]   ;;  %v678_v3 = vld [vmem:[%s1044_s1 + $0x64] ss:$8 sps:$4 sm:$0xff]  }
   0x2   :  { %246 = vmatprep.subr.bf16.mxu0 %v675_v0  ;;  %658 = vmatprep.subr.bf16.mxu1 %v675_v0  ;;  %v680_v4 = vld [vmem:[%s1044_s1 + $0x60] ss:$8 sps:$4 sm:$0xff]   ;;  %v681_v5 = vld [vmem:[%s1044_s1 + $0x54] ss:$8 sps:$4 sm:$0xff]   ;;  %v683_v6 = vld [vmem:[%s1044_s1 + $0x50] ss:$8 sps:$4 sm:$0xff]  }
   0x3   :  { %247 = vmatpush1.bf16.msra.mxu0 %v677_v2  ;;  %666 = vmatpush1.bf16.msra.mxu1 %v677_v2  ;;  %v684_v7 = vld [vmem:[%s1044_s1 + $0x44] ss:$8 sps:$4 sm:$0xff]   ;;  %v686_v8 = vld [vmem:[%s1044_s1 + $0x40] ss:$8 sps:$4 sm:$0xff]   ;;  %v687_v9 = vld [vmem:[%s1044_s1 + $0x34] ss:$8 sps:$4 sm:$0xff]  }
   0x4   :  { %248 = vmatprep.subr.bf16.mxu0 %v678_v3  ;;  %659 = vmatprep.subr.bf16.mxu1 %v678_v3  ;;  %v689_v10 = vld [vmem:[%s1044_s1 + $0x30] ss:$8 sps:$4 sm:$0xff]   ;;  %v690_v11 = vld [vmem:[%s1044_s1 + $0x24] ss:$8 sps:$4 sm:$0xff]   ;;  %v692_v12 = vld [vmem:[%s1044_s1 + $0x20] ss:$8 sps:$4 sm:$0xff]  }
   0x5   :  { %v693_v13 = vld [vmem:[%s1044_s1 + $0x14] ss:$8 sps:$4 sm:$0xff]   ;;  %v695_v14 = vld [vmem:[%s1044_s1 + $0x10] ss:$8 sps:$4 sm:$0xff]   ;;  %v696_v15 = vld [vmem:[%s1044_s1 + $0x4] ss:$8 sps:$4 sm:$0xff]  }
   0x6   :  { %v698_v16 = vld [vmem:[%s1044_s1] ss:$8 sps:$4 sm:$0xff]   ;;  %v703_v21 = vld [vmem:[%s1045_s0 + $0x10] sm:$0xff]   ;;  %v705_v23 = vld [vmem:[%s1045_s0 + $0x18] sm:$0xff]   ;;  %v461_v26 = vshrl.u32 %v460_v25, 7 }
   0x7   :  { %249 = vmatpush1.bf16.msra.mxu0 %v680_v4  ;;  %667 = vmatpush1.bf16.msra.mxu1 %v680_v4  ;;  %v699_v17 = vld [vmem:[%s1045_s0] sm:$0xff]   ;;  %v701_v19 = vld [vmem:[%s1045_s0 + $0x8] sm:$0xff]   ;;  %v704_v22 = vld [vmem:[%s1045_s0 + $0x30] sm:$0xff]  }
   0x8   :  { %250 = vmatprep.subr.bf16.mxu0 %v681_v5  ;;  %660 = vmatprep.subr.bf16.mxu1 %v681_v5  ;;  %v700_v18 = vld [vmem:[%s1045_s0 + $0x20] sm:$0xff]   ;;  %v702_v20 = vld [vmem:[%s1045_s0 + $0x28] sm:$0xff]   ;;  %v706_v24 = vld [vmem:[%s1045_s0 + $0x38] sm:$0xff]   ;;  %v462_v27 = vsub.s32 0, %v461_v26  ;;  %v466_v29 = vsub.s32 1, %v461_v26 }
   0x9   :  { %v458_v28 = vld [vmem:[%s1046_s2] sm:$0x3]  ;;  %v503_v39 = vld [vmem:[%s1047_s3 + $0x8] sm:$0xff]  ;;  %v504_v52 = vld [vmem:[%s1047_s3 + $0x10] sm:$0xff] }
   0xa   :  { %v816_v30 = vrot.slane %v458_v28, %v462_v27  ;;  %v818_v31 = vrot.slane %v458_v28, %v466_v29  ;;  %v502_v33 = vld [vmem:[%s1047_s3] sm:$0xff]  ;;  %v519_v41 = vld [vmem:[%s1047_s3 + $0x88] sm:$0xff]  ;;  %v520_v53 = vld [vmem:[%s1047_s3 + $0x90] sm:$0xff] }
   0xb   :  { %251 = vmatpush1.bf16.msra.mxu0 %v683_v6  ;;  %668 = vmatpush1.bf16.msra.mxu1 %v683_v6  ;;  %v518_v35 = vld [vmem:[%s1047_s3 + $0x80] sm:$0xff]  ;;  %v505_v57 = vld [vmem:[%s1047_s3 + $0x18] sm:$0xff]  ;;  %v524_v25 = vld [vmem:[%s1047_s3 + $0xb0] sm:$0xff] }
   0xc   :  { %252 = vmatprep.subr.bf16.mxu0 %v684_v7  ;;  %661 = vmatprep.subr.bf16.mxu1 %v684_v7  ;;  %v521_v59 = vld [vmem:[%s1047_s3 + $0x98] sm:$0xff]  ;;  %v506_v3 = vld [vmem:[%s1047_s3 + $0x20] sm:$0xff] }
   0xd   :  { %v522_v5 = vld [vmem:[%s1047_s3 + $0xa0] sm:$0xff] }
   0xf   :  { %253 = vmatpush1.bf16.msra.mxu0 %v686_v8  ;;  %669 = vmatpush1.bf16.msra.mxu1 %v686_v8 }
  0x10   :  { %254 = vmatprep.subr.bf16.mxu0 %v687_v9  ;;  %662 = vmatprep.subr.bf16.mxu1 %v687_v9 }
  0x13   :  { %255 = vmatpush1.bf16.msra.mxu0 %v689_v10  ;;  %670 = vmatpush1.bf16.msra.mxu1 %v689_v10 }
  0x14   :  { %256 = vmatprep.subr.bf16.mxu0 %v690_v11  ;;  %663 = vmatprep.subr.bf16.mxu1 %v690_v11 }
  0x17   :  { %257 = vmatpush1.bf16.msra.mxu0 %v692_v12  ;;  %671 = vmatpush1.bf16.msra.mxu1 %v692_v12 }
  0x18   :  { %258 = vmatprep.subr.bf16.mxu0 %v693_v13  ;;  %664 = vmatprep.subr.bf16.mxu1 %v693_v13 }
  0x1b   :  { %259 = vmatpush1.bf16.msra.mxu0 %v695_v14  ;;  %672 = vmatpush1.bf16.msra.mxu1 %v695_v14 }
  0x1c   :  { %260 = vmatprep.subr.bf16.mxu0 %v696_v15  ;;  %665 = vmatprep.subr.bf16.mxu1 %v696_v15 }
  0x1f   :  { %261 = vmatpush1.bf16.msra.mxu0 %v698_v16  ;;  %673 = vmatpush1.bf16.msra.mxu1 %v698_v16 }
  0x22   :  { %279 = vmatmul.mubr.bf16.vlgmr.msra.gmra.mxu0 %v699_v17  ;;  %319 = vmatmul.mubr.bf16.vlgmr.msra.gmra.mxu1 %v700_v18  ;;  %v507_v18 = vld [vmem:[%s1047_s3 + $0x28] sm:$0xff] }
  0x23   :  { %288 = vmatprep.mubr.bf16.mxu0 %v707_v1  ;;  %328 = vmatprep.mubr.bf16.mxu1 %v707_v1 }
  0x2a   :  { %289 = vmatmul.mubr.bf16.gmra.mxu0 %v701_v19  ;;  %329 = vmatmul.mubr.bf16.gmra.mxu1 %v702_v20  ;;  %v523_v19 = vld [vmem:[%s1047_s3 + $0xa8] sm:$0xff] }
  0x2b   :  { %298 = vmatprep.mubr.bf16.mxu0 %v707_v1  ;;  %338 = vmatprep.mubr.bf16.mxu1 %v707_v1 }
  0x32   :  { %299 = vmatmul.mubr.bf16.gmra.mxu0 %v703_v21  ;;  %339 = vmatmul.mubr.bf16.gmra.mxu1 %v704_v22 }
  0x33   :  { %308 = vmatprep.mubr.bf16.mxu0 %v707_v1  ;;  %348 = vmatprep.mubr.bf16.mxu1 %v707_v1 }
  0x3a   :  { %309 = vmatmul.mubr.bf16.gmra.mxu0 %v705_v23  ;;  %349 = vmatmul.mubr.bf16.gmra.mxu1 %v706_v24  ;;  %v508_v23 = vld [vmem:[%s1047_s3 + $0x30] sm:$0xff] }
  0xe2   :  { %v280_v32 = vpop.f32.mrf.mxu0  ;;  %v320_v34 = vpop.f32.mrf.mxu1 }
  0xe3   :  { %v470_v36 = vadd.f32 %v816_v30, %v280_v32  ;;  %v486_v37 = vadd.f32 %v816_v30, %v320_v34 }
  0xe4   :  { %v282_v38 = vpop.f32.mrf.mxu0  ;;  %v322_v40 = vpop.f32.mrf.mxu1 }
  0xe5   :  { %v534_v42 = vadd.f32 %v502_v33, %v470_v36  ;;  %v550_v43 = vadd.f32 %v518_v35, %v486_v37  ;;  %v471_v44 = vadd.f32 %v818_v31, %v282_v38  ;;  %v487_v45 = vadd.f32 %v818_v31, %v322_v40  ;;  %v509_v35 = vld [vmem:[%s1047_s3 + $0x38] sm:$0xff] }
  0xe6   :  { %v284_v46 = vpop.f32.mrf.mxu0  ;;  %v324_v47 = vpop.f32.mrf.mxu1  ;;  %v525_v37 = vld [vmem:[%s1047_s3 + $0xb8] sm:$0xff] }
  0xe7   :  { %v566_v48 = vmax.f32 %v534_v42, 0.0  ;;  %v582_v49 = vmax.f32 %v550_v43, 0.0  ;;  %v535_v50 = vadd.f32 %v503_v39, %v471_v44  ;;  %v551_v51 = vadd.f32 %v519_v41, %v487_v45 }
  0xe8   :  { %v472_v54 = vadd.f32 %v816_v30, %v284_v46  ;;  %v488_v55 = vadd.f32 %v816_v30, %v324_v47  ;;  %v286_v56 = vpop.f32.mrf.mxu0  ;;  %v326_v58 = vpop.f32.mrf.mxu1 }
  0xe9   :  { %598 = vst [vmem:[%s1048_s4] sm:$0xff] %v566_v48  ;;  %614 = vst [vmem:[%s1048_s4 + $0x80] sm:$0xff] %v582_v49  ;;  %v567_v60 = vmax.f32 %v535_v50, 0.0  ;;  %v583_v61 = vmax.f32 %v551_v51, 0.0  ;;  %v473_v62 = vadd.f32 %v818_v31, %v286_v56  ;;  %v489_v63 = vadd.f32 %v818_v31, %v326_v58  ;;  %v510_v50 = vld [vmem:[%s1047_s3 + $0x40] sm:$0xff] }
  0xea   :  { %v536_v0 = vadd.f32 %v504_v52, %v472_v54  ;;  %v552_v1 = vadd.f32 %v520_v53, %v488_v55  ;;  %v290_v2 = vpop.f32.mrf.mxu0  ;;  %v330_v4 = vpop.f32.mrf.mxu1  ;;  %v526_v51 = vld [vmem:[%s1047_s3 + $0xc0] sm:$0xff]  ;;  %v511_v55 = vld [vmem:[%s1047_s3 + $0x48] sm:$0xff] }
  0xeb   :  { %599 = vst [vmem:[%s1048_s4 + $0x8] sm:$0xff] %v567_v60  ;;  %615 = vst [vmem:[%s1048_s4 + $0x88] sm:$0xff] %v583_v61  ;;  %v537_v6 = vadd.f32 %v505_v57, %v473_v62  ;;  %v553_v7 = vadd.f32 %v521_v59, %v489_v63  ;;  %v474_v8 = vadd.f32 %v816_v30, %v290_v2  ;;  %v527_v57 = vld [vmem:[%s1047_s3 + $0xc8] sm:$0xff] }
  0xec   :  { %v490_v9 = vadd.f32 %v816_v30, %v330_v4  ;;  %v568_v10 = vmax.f32 %v536_v0, 0.0  ;;  %v584_v11 = vmax.f32 %v552_v1, 0.0  ;;  %v292_v12 = vpop.f32.mrf.mxu0  ;;  %v332_v13 = vpop.f32.mrf.mxu1  ;;  %v512_v1 = vld [vmem:[%s1047_s3 + $0x50] sm:$0xff] }
  0xed   :  { %v569_v14 = vmax.f32 %v537_v6, 0.0  ;;  %v585_v15 = vmax.f32 %v553_v7, 0.0  ;;  %v538_v16 = vadd.f32 %v506_v3, %v474_v8  ;;  %v475_v20 = vadd.f32 %v818_v31, %v292_v12  ;;  %v528_v3 = vld [vmem:[%s1047_s3 + $0xd0] sm:$0xff] }
  0xee   :  { %v554_v17 = vadd.f32 %v522_v5, %v490_v9  ;;  %600 = vst [vmem:[%s1048_s4 + $0x10] sm:$0xff] %v568_v10  ;;  %616 = vst [vmem:[%s1048_s4 + $0x90] sm:$0xff] %v584_v11  ;;  %v491_v21 = vadd.f32 %v818_v31, %v332_v13  ;;  %v294_v22 = vpop.f32.mrf.mxu0  ;;  %v334_v24 = vpop.f32.mrf.mxu1 }
  0xef   :  { %601 = vst [vmem:[%s1048_s4 + $0x18] sm:$0xff] %v569_v14  ;;  %617 = vst [vmem:[%s1048_s4 + $0x98] sm:$0xff] %v585_v15  ;;  %v570_v26 = vmax.f32 %v538_v16, 0.0  ;;  %v476_v28 = vadd.f32 %v816_v30, %v294_v22  ;;  %v492_v29 = vadd.f32 %v816_v30, %v334_v24  ;;  %v539_v32 = vadd.f32 %v507_v18, %v475_v20  ;;  %v513_v16 = vld [vmem:[%s1047_s3 + $0x58] sm:$0xff] }
  0xf0   :  { %v586_v27 = vmax.f32 %v554_v17, 0.0  ;;  %v555_v33 = vadd.f32 %v523_v19, %v491_v21  ;;  %v296_v34 = vpop.f32.mrf.mxu0  ;;  %v336_v36 = vpop.f32.mrf.mxu1  ;;  %v529_v17 = vld [vmem:[%s1047_s3 + $0xd8] sm:$0xff]  ;;  %v514_v21 = vld [vmem:[%s1047_s3 + $0x60] sm:$0xff] }
  0xf1   :  { %602 = vst [vmem:[%s1048_s4 + $0x20] sm:$0xff] %v570_v26  ;;  %v540_v38 = vadd.f32 %v508_v23, %v476_v28  ;;  %v556_v39 = vadd.f32 %v524_v25, %v492_v29  ;;  %v477_v40 = vadd.f32 %v818_v31, %v296_v34  ;;  %v493_v41 = vadd.f32 %v818_v31, %v336_v36  ;;  %v530_v23 = vld [vmem:[%s1047_s3 + $0xe0] sm:$0xff] }
  0xf2   :  { %618 = vst [vmem:[%s1048_s4 + $0xa0] sm:$0xff] %v586_v27  ;;  %v571_v42 = vmax.f32 %v539_v32, 0.0  ;;  %v587_v43 = vmax.f32 %v555_v33, 0.0  ;;  %v300_v44 = vpop.f32.mrf.mxu0  ;;  %v340_v45 = vpop.f32.mrf.mxu1  ;;  %v515_v33 = vld [vmem:[%s1047_s3 + $0x68] sm:$0xff] }
  0xf3   :  { %v572_v46 = vmax.f32 %v540_v38, 0.0  ;;  %v588_v47 = vmax.f32 %v556_v39, 0.0  ;;  %v541_v48 = vadd.f32 %v509_v35, %v477_v40  ;;  %v557_v49 = vadd.f32 %v525_v37, %v493_v41  ;;  %v531_v35 = vld [vmem:[%s1047_s3 + $0xe8] sm:$0xff] }
  0xf4   :  { %603 = vst [vmem:[%s1048_s4 + $0x28] sm:$0xff] %v571_v42  ;;  %619 = vst [vmem:[%s1048_s4 + $0xa8] sm:$0xff] %v587_v43  ;;  %v478_v52 = vadd.f32 %v816_v30, %v300_v44  ;;  %v494_v53 = vadd.f32 %v816_v30, %v340_v45  ;;  %v302_v54 = vpop.f32.mrf.mxu0  ;;  %v342_v56 = vpop.f32.mrf.mxu1 }
  0xf5   :  { %604 = vst [vmem:[%s1048_s4 + $0x30] sm:$0xff] %v572_v46  ;;  %620 = vst [vmem:[%s1048_s4 + $0xb0] sm:$0xff] %v588_v47  ;;  %v573_v58 = vmax.f32 %v541_v48, 0.0  ;;  %v589_v59 = vmax.f32 %v557_v49, 0.0  ;;  %v479_v60 = vadd.f32 %v818_v31, %v302_v54  ;;  %v495_v61 = vadd.f32 %v818_v31, %v342_v56  ;;  %v516_v48 = vld [vmem:[%s1047_s3 + $0x70] sm:$0xff] }
  0xf6   :  { %v542_v62 = vadd.f32 %v510_v50, %v478_v52  ;;  %v558_v63 = vadd.f32 %v526_v51, %v494_v53  ;;  %v304_v0 = vpop.f32.mrf.mxu0  ;;  %v344_v2 = vpop.f32.mrf.mxu1  ;;  %v532_v49 = vld [vmem:[%s1047_s3 + $0xf0] sm:$0xff]  ;;  %v517_v53 = vld [vmem:[%s1047_s3 + $0x78] sm:$0xff] }
  0xf7   :  { %605 = vst [vmem:[%s1048_s4 + $0x38] sm:$0xff] %v573_v58  ;;  %621 = vst [vmem:[%s1048_s4 + $0xb8] sm:$0xff] %v589_v59  ;;  %v543_v4 = vadd.f32 %v511_v55, %v479_v60  ;;  %v559_v5 = vadd.f32 %v527_v57, %v495_v61  ;;  %v480_v6 = vadd.f32 %v816_v30, %v304_v0  ;;  %v533_v55 = vld [vmem:[%s1047_s3 + $0xf8] sm:$0xff] }
  0xf8   :  { %v496_v7 = vadd.f32 %v816_v30, %v344_v2  ;;  %v574_v8 = vmax.f32 %v542_v62, 0.0  ;;  %v590_v9 = vmax.f32 %v558_v63, 0.0  ;;  %v306_v10 = vpop.f32.mrf.mxu0  ;;  %v346_v11 = vpop.f32.mrf.mxu1 }
  0xf9   :  { %v575_v12 = vmax.f32 %v543_v4, 0.0  ;;  %v591_v13 = vmax.f32 %v559_v5, 0.0  ;;  %v544_v14 = vadd.f32 %v512_v1, %v480_v6  ;;  %v481_v18 = vadd.f32 %v818_v31, %v306_v10 }
  0xfa   :  { %v560_v15 = vadd.f32 %v528_v3, %v496_v7  ;;  %606 = vst [vmem:[%s1048_s4 + $0x40] sm:$0xff] %v574_v8  ;;  %622 = vst [vmem:[%s1048_s4 + $0xc0] sm:$0xff] %v590_v9  ;;  %v497_v19 = vadd.f32 %v818_v31, %v346_v11  ;;  %v310_v20 = vpop.f32.mrf.mxu0  ;;  %v350_v22 = vpop.f32.mrf.mxu1 }
  0xfb   :  { %607 = vst [vmem:[%s1048_s4 + $0x48] sm:$0xff] %v575_v12  ;;  %623 = vst [vmem:[%s1048_s4 + $0xc8] sm:$0xff] %v591_v13  ;;  %v576_v24 = vmax.f32 %v544_v14, 0.0  ;;  %v482_v26 = vadd.f32 %v816_v30, %v310_v20  ;;  %v498_v27 = vadd.f32 %v816_v30, %v350_v22  ;;  %v545_v28 = vadd.f32 %v513_v16, %v481_v18 }
  0xfc   :  { %v592_v25 = vmax.f32 %v560_v15, 0.0  ;;  %v561_v29 = vadd.f32 %v529_v17, %v497_v19  ;;  %v312_v32 = vpop.f32.mrf.mxu0  ;;  %v352_v34 = vpop.f32.mrf.mxu1 }
  0xfd   :  { %608 = vst [vmem:[%s1048_s4 + $0x50] sm:$0xff] %v576_v24  ;;  %v546_v36 = vadd.f32 %v514_v21, %v482_v26  ;;  %v562_v37 = vadd.f32 %v530_v23, %v498_v27  ;;  %v483_v38 = vadd.f32 %v818_v31, %v312_v32  ;;  %v499_v39 = vadd.f32 %v818_v31, %v352_v34 }
  0xfe   :  { %624 = vst [vmem:[%s1048_s4 + $0xd0] sm:$0xff] %v592_v25  ;;  %v577_v40 = vmax.f32 %v545_v28, 0.0  ;;  %v593_v41 = vmax.f32 %v561_v29, 0.0  ;;  %v314_v42 = vpop.f32.mrf.mxu0  ;;  %v354_v43 = vpop.f32.mrf.mxu1 }
  0xff   :  { %v578_v44 = vmax.f32 %v546_v36, 0.0  ;;  %v594_v45 = vmax.f32 %v562_v37, 0.0  ;;  %v547_v46 = vadd.f32 %v515_v33, %v483_v38  ;;  %v563_v47 = vadd.f32 %v531_v35, %v499_v39 }
 0x100   :  { %609 = vst [vmem:[%s1048_s4 + $0x58] sm:$0xff] %v577_v40  ;;  %625 = vst [vmem:[%s1048_s4 + $0xd8] sm:$0xff] %v593_v41  ;;  %v484_v50 = vadd.f32 %v816_v30, %v314_v42  ;;  %v500_v51 = vadd.f32 %v816_v30, %v354_v43  ;;  %v316_v52 = vpop.f32.mrf.mxu0  ;;  %v356_v54 = vpop.f32.mrf.mxu1 }
 0x101   :  { %610 = vst [vmem:[%s1048_s4 + $0x60] sm:$0xff] %v578_v44  ;;  %626 = vst [vmem:[%s1048_s4 + $0xe0] sm:$0xff] %v594_v45  ;;  %v579_v56 = vmax.f32 %v547_v46, 0.0  ;;  %v595_v30 = vmax.f32 %v563_v47, 0.0  ;;  %v485_v57 = vadd.f32 %v818_v31, %v316_v52  ;;  %v501_v58 = vadd.f32 %v818_v31, %v356_v54 }
 0x102   :  { %v548_v59 = vadd.f32 %v516_v48, %v484_v50  ;;  %v564_v60 = vadd.f32 %v532_v49, %v500_v51 }
 0x103   :  { %611 = vst [vmem:[%s1048_s4 + $0x68] sm:$0xff] %v579_v56  ;;  %627 = vst [vmem:[%s1048_s4 + $0xe8] sm:$0xff] %v595_v30  ;;  %v549_v61 = vadd.f32 %v517_v53, %v485_v57  ;;  %v565_v62 = vadd.f32 %v533_v55, %v501_v58 }
 0x104   :  { %v580_v63 = vmax.f32 %v548_v59, 0.0  ;;  %v596_v0 = vmax.f32 %v564_v60, 0.0 }
 0x105   :  { %v581_v1 = vmax.f32 %v549_v61, 0.0  ;;  %v597_v2 = vmax.f32 %v565_v62, 0.0 }
 0x106   :  { %612 = vst [vmem:[%s1048_s4 + $0x70] sm:$0xff] %v580_v63  ;;  %628 = vst [vmem:[%s1048_s4 + $0xf0] sm:$0xff] %v596_v0 }
 0x107   :  { %613 = vst [vmem:[%s1048_s4 + $0x78] sm:$0xff] %v581_v1  ;;  %629 = vst [vmem:[%s1048_s4 + $0xf8] sm:$0xff] %v597_v2 }

// kernel: mammography_forward.56
= control target key start
LH: loop header
LB: loop body
LE: loop exit
PB: predicated region body
PF: predicated region fallthrough
CT: control target
= control target key end

     0   :  { %v608_v1 = vmov 0   ;;  %v457_v25 = vlaneseq  ;;  %s844_s1 = inlined_call_operand.vmem [shape: bf16[128,256], index: 1, kind: input, shape index: {}]   ;;  %s845_s0 = inlined_call_operand.vmem [shape: bf16[128,128], index: 0, kind: input, shape index: {}]   ;;  %s846_s2 = inlined_call_operand.vmem [shape: f32[1,256], index: 2, kind: input, shape index: {}]   ;;  %s847_s3 = inlined_call_operand.vmem [shape: f32[128,256], index: 3, kind: output, shape index: {}]  }
   0x1   :  { %v576_v0 = vld [vmem:[%s844_s1 + $0x74] ss:$8 sps:$4 sm:$0xff]   ;;  %275 = vmatprep.mubr.bf16.mxu0 %v608_v1  ;;  %315 = vmatprep.mubr.bf16.mxu1 %v608_v1  ;;  %v578_v2 = vld [vmem:[%s844_s1 + $0x70] ss:$8 sps:$4 sm:$0xff]   ;;  %v579_v3 = vld [vmem:[%s844_s1 + $0x64] ss:$8 sps:$4 sm:$0xff]  }
   0x2   :  { %243 = vmatprep.subr.bf16.mxu0 %v576_v0  ;;  %559 = vmatprep.subr.bf16.mxu1 %v576_v0  ;;  %v581_v4 = vld [vmem:[%s844_s1 + $0x60] ss:$8 sps:$4 sm:$0xff]   ;;  %v582_v5 = vld [vmem:[%s844_s1 + $0x54] ss:$8 sps:$4 sm:$0xff]   ;;  %v584_v6 = vld [vmem:[%s844_s1 + $0x50] ss:$8 sps:$4 sm:$0xff]  }
   0x3   :  { %244 = vmatpush1.bf16.msra.mxu0 %v578_v2  ;;  %567 = vmatpush1.bf16.msra.mxu1 %v578_v2  ;;  %v585_v7 = vld [vmem:[%s844_s1 + $0x44] ss:$8 sps:$4 sm:$0xff]   ;;  %v587_v8 = vld [vmem:[%s844_s1 + $0x40] ss:$8 sps:$4 sm:$0xff]   ;;  %v588_v9 = vld [vmem:[%s844_s1 + $0x34] ss:$8 sps:$4 sm:$0xff]  }
   0x4   :  { %245 = vmatprep.subr.bf16.mxu0 %v579_v3  ;;  %560 = vmatprep.subr.bf16.mxu1 %v579_v3  ;;  %v590_v10 = vld [vmem:[%s844_s1 + $0x30] ss:$8 sps:$4 sm:$0xff]   ;;  %v591_v11 = vld [vmem:[%s844_s1 + $0x24] ss:$8 sps:$4 sm:$0xff]   ;;  %v593_v12 = vld [vmem:[%s844_s1 + $0x20] ss:$8 sps:$4 sm:$0xff]  }
   0x5   :  { %v594_v13 = vld [vmem:[%s844_s1 + $0x14] ss:$8 sps:$4 sm:$0xff]   ;;  %v596_v14 = vld [vmem:[%s844_s1 + $0x10] ss:$8 sps:$4 sm:$0xff]   ;;  %v597_v15 = vld [vmem:[%s844_s1 + $0x4] ss:$8 sps:$4 sm:$0xff]  }
   0x6   :  { %v599_v16 = vld [vmem:[%s844_s1] ss:$8 sps:$4 sm:$0xff]   ;;  %v604_v21 = vld [vmem:[%s845_s0 + $0x10] sm:$0xff]   ;;  %v606_v23 = vld [vmem:[%s845_s0 + $0x18] sm:$0xff]   ;;  %v458_v26 = vshrl.u32 %v457_v25, 7 }
   0x7   :  { %246 = vmatpush1.bf16.msra.mxu0 %v581_v4  ;;  %568 = vmatpush1.bf16.msra.mxu1 %v581_v4  ;;  %v600_v17 = vld [vmem:[%s845_s0] sm:$0xff]   ;;  %v602_v19 = vld [vmem:[%s845_s0 + $0x8] sm:$0xff]   ;;  %v605_v22 = vld [vmem:[%s845_s0 + $0x30] sm:$0xff]  }
   0x8   :  { %247 = vmatprep.subr.bf16.mxu0 %v582_v5  ;;  %561 = vmatprep.subr.bf16.mxu1 %v582_v5  ;;  %v601_v18 = vld [vmem:[%s845_s0 + $0x20] sm:$0xff]   ;;  %v603_v20 = vld [vmem:[%s845_s0 + $0x28] sm:$0xff]   ;;  %v607_v24 = vld [vmem:[%s845_s0 + $0x38] sm:$0xff]   ;;  %v459_v27 = vsub.s32 0, %v458_v26  ;;  %v463_v29 = vsub.s32 1, %v458_v26 }
   0x9   :  { %v455_v28 = vld [vmem:[%s846_s2] sm:$0x3] }
   0xa   :  { %v712_v30 = vrot.slane %v455_v28, %v459_v27  ;;  %v714_v31 = vrot.slane %v455_v28, %v463_v29 }
   0xb   :  { %248 = vmatpush1.bf16.msra.mxu0 %v584_v6  ;;  %569 = vmatpush1.bf16.msra.mxu1 %v584_v6 }
   0xc   :  { %249 = vmatprep.subr.bf16.mxu0 %v585_v7  ;;  %562 = vmatprep.subr.bf16.mxu1 %v585_v7 }
   0xf   :  { %250 = vmatpush1.bf16.msra.mxu0 %v587_v8  ;;  %570 = vmatpush1.bf16.msra.mxu1 %v587_v8 }
  0x10   :  { %251 = vmatprep.subr.bf16.mxu0 %v588_v9  ;;  %563 = vmatprep.subr.bf16.mxu1 %v588_v9 }
  0x13   :  { %252 = vmatpush1.bf16.msra.mxu0 %v590_v10  ;;  %571 = vmatpush1.bf16.msra.mxu1 %v590_v10 }
  0x14   :  { %253 = vmatprep.subr.bf16.mxu0 %v591_v11  ;;  %564 = vmatprep.subr.bf16.mxu1 %v591_v11 }
  0x17   :  { %254 = vmatpush1.bf16.msra.mxu0 %v593_v12  ;;  %572 = vmatpush1.bf16.msra.mxu1 %v593_v12 }
  0x18   :  { %255 = vmatprep.subr.bf16.mxu0 %v594_v13  ;;  %565 = vmatprep.subr.bf16.mxu1 %v594_v13 }
  0x1b   :  { %256 = vmatpush1.bf16.msra.mxu0 %v596_v14  ;;  %573 = vmatpush1.bf16.msra.mxu1 %v596_v14 }
  0x1c   :  { %257 = vmatprep.subr.bf16.mxu0 %v597_v15  ;;  %566 = vmatprep.subr.bf16.mxu1 %v597_v15 }
  0x1f   :  { %258 = vmatpush1.bf16.msra.mxu0 %v599_v16  ;;  %574 = vmatpush1.bf16.msra.mxu1 %v599_v16 }
  0x22   :  { %276 = vmatmul.mubr.bf16.vlgmr.msra.gmra.mxu0 %v600_v17  ;;  %316 = vmatmul.mubr.bf16.vlgmr.msra.gmra.mxu1 %v601_v18 }
  0x23   :  { %285 = vmatprep.mubr.bf16.mxu0 %v608_v1  ;;  %325 = vmatprep.mubr.bf16.mxu1 %v608_v1 }
  0x2a   :  { %286 = vmatmul.mubr.bf16.gmra.mxu0 %v602_v19  ;;  %326 = vmatmul.mubr.bf16.gmra.mxu1 %v603_v20 }
  0x2b   :  { %295 = vmatprep.mubr.bf16.mxu0 %v608_v1  ;;  %335 = vmatprep.mubr.bf16.mxu1 %v608_v1 }
  0x32   :  { %296 = vmatmul.mubr.bf16.gmra.mxu0 %v604_v21  ;;  %336 = vmatmul.mubr.bf16.gmra.mxu1 %v605_v22 }
  0x33   :  { %305 = vmatprep.mubr.bf16.mxu0 %v608_v1  ;;  %345 = vmatprep.mubr.bf16.mxu1 %v608_v1 }
  0x3a   :  { %306 = vmatmul.mubr.bf16.gmra.mxu0 %v606_v23  ;;  %346 = vmatmul.mubr.bf16.gmra.mxu1 %v607_v24 }
  0xe2   :  { %v277_v32 = vpop.f32.mrf.mxu0  ;;  %v317_v33 = vpop.f32.mrf.mxu1 }
  0xe3   :  { %v467_v34 = vadd.f32 %v712_v30, %v277_v32  ;;  %v483_v35 = vadd.f32 %v712_v30, %v317_v33 }
  0xe4   :  { %v279_v36 = vpop.f32.mrf.mxu0  ;;  %v319_v37 = vpop.f32.mrf.mxu1 }
  0xe5   :  { %499 = vst [vmem:[%s847_s3] sm:$0xff] %v467_v34  ;;  %515 = vst [vmem:[%s847_s3 + $0x80] sm:$0xff] %v483_v35  ;;  %v468_v38 = vadd.f32 %v714_v31, %v279_v36  ;;  %v484_v39 = vadd.f32 %v714_v31, %v319_v37 }
  0xe6   :  { %v281_v40 = vpop.f32.mrf.mxu0  ;;  %v321_v41 = vpop.f32.mrf.mxu1 }
  0xe7   :  { %500 = vst [vmem:[%s847_s3 + $0x8] sm:$0xff] %v468_v38  ;;  %516 = vst [vmem:[%s847_s3 + $0x88] sm:$0xff] %v484_v39  ;;  %v469_v42 = vadd.f32 %v712_v30, %v281_v40  ;;  %v485_v43 = vadd.f32 %v712_v30, %v321_v41 }
  0xe8   :  { %v283_v44 = vpop.f32.mrf.mxu0  ;;  %v323_v45 = vpop.f32.mrf.mxu1 }
  0xe9   :  { %501 = vst [vmem:[%s847_s3 + $0x10] sm:$0xff] %v469_v42  ;;  %517 = vst [vmem:[%s847_s3 + $0x90] sm:$0xff] %v485_v43  ;;  %v470_v46 = vadd.f32 %v714_v31, %v283_v44  ;;  %v486_v47 = vadd.f32 %v714_v31, %v323_v45 }
  0xea   :  { %v287_v48 = vpop.f32.mrf.mxu0  ;;  %v327_v49 = vpop.f32.mrf.mxu1 }
  0xeb   :  { %502 = vst [vmem:[%s847_s3 + $0x18] sm:$0xff] %v470_v46  ;;  %518 = vst [vmem:[%s847_s3 + $0x98] sm:$0xff] %v486_v47  ;;  %v471_v50 = vadd.f32 %v712_v30, %v287_v48  ;;  %v487_v51 = vadd.f32 %v712_v30, %v327_v49 }
  0xec   :  { %v289_v52 = vpop.f32.mrf.mxu0  ;;  %v329_v53 = vpop.f32.mrf.mxu1 }
  0xed   :  { %503 = vst [vmem:[%s847_s3 + $0x20] sm:$0xff] %v471_v50  ;;  %519 = vst [vmem:[%s847_s3 + $0xa0] sm:$0xff] %v487_v51  ;;  %v472_v54 = vadd.f32 %v714_v31, %v289_v52  ;;  %v488_v55 = vadd.f32 %v714_v31, %v329_v53 }
  0xee   :  { %v291_v56 = vpop.f32.mrf.mxu0  ;;  %v331_v57 = vpop.f32.mrf.mxu1 }
  0xef   :  { %504 = vst [vmem:[%s847_s3 + $0x28] sm:$0xff] %v472_v54  ;;  %520 = vst [vmem:[%s847_s3 + $0xa8] sm:$0xff] %v488_v55  ;;  %v473_v58 = vadd.f32 %v712_v30, %v291_v56  ;;  %v489_v59 = vadd.f32 %v712_v30, %v331_v57 }
  0xf0   :  { %v293_v60 = vpop.f32.mrf.mxu0  ;;  %v333_v61 = vpop.f32.mrf.mxu1 }
  0xf1   :  { %505 = vst [vmem:[%s847_s3 + $0x30] sm:$0xff] %v473_v58  ;;  %521 = vst [vmem:[%s847_s3 + $0xb0] sm:$0xff] %v489_v59  ;;  %v474_v62 = vadd.f32 %v714_v31, %v293_v60  ;;  %v490_v63 = vadd.f32 %v714_v31, %v333_v61 }
  0xf2   :  { %v297_v0 = vpop.f32.mrf.mxu0  ;;  %v337_v1 = vpop.f32.mrf.mxu1 }
  0xf3   :  { %506 = vst [vmem:[%s847_s3 + $0x38] sm:$0xff] %v474_v62  ;;  %522 = vst [vmem:[%s847_s3 + $0xb8] sm:$0xff] %v490_v63  ;;  %v475_v2 = vadd.f32 %v712_v30, %v297_v0  ;;  %v491_v3 = vadd.f32 %v712_v30, %v337_v1 }
  0xf4   :  { %v299_v4 = vpop.f32.mrf.mxu0  ;;  %v339_v5 = vpop.f32.mrf.mxu1 }
  0xf5   :  { %507 = vst [vmem:[%s847_s3 + $0x40] sm:$0xff] %v475_v2  ;;  %523 = vst [vmem:[%s847_s3 + $0xc0] sm:$0xff] %v491_v3  ;;  %v476_v6 = vadd.f32 %v714_v31, %v299_v4  ;;  %v492_v7 = vadd.f32 %v714_v31, %v339_v5 }
  0xf6   :  { %v301_v8 = vpop.f32.mrf.mxu0  ;;  %v341_v9 = vpop.f32.mrf.mxu1 }
  0xf7   :  { %508 = vst [vmem:[%s847_s3 + $0x48] sm:$0xff] %v476_v6  ;;  %524 = vst [vmem:[%s847_s3 + $0xc8] sm:$0xff] %v492_v7  ;;  %v477_v10 = vadd.f32 %v712_v30, %v301_v8  ;;  %v493_v11 = vadd.f32 %v712_v30, %v341_v9 }
  0xf8   :  { %v303_v12 = vpop.f32.mrf.mxu0  ;;  %v343_v13 = vpop.f32.mrf.mxu1 }
  0xf9   :  { %509 = vst [vmem:[%s847_s3 + $0x50] sm:$0xff] %v477_v10  ;;  %525 = vst [vmem:[%s847_s3 + $0xd0] sm:$0xff] %v493_v11  ;;  %v478_v14 = vadd.f32 %v714_v31, %v303_v12  ;;  %v494_v15 = vadd.f32 %v714_v31, %v343_v13 }
  0xfa   :  { %v307_v16 = vpop.f32.mrf.mxu0  ;;  %v347_v17 = vpop.f32.mrf.mxu1 }
  0xfb   :  { %510 = vst [vmem:[%s847_s3 + $0x58] sm:$0xff] %v478_v14  ;;  %526 = vst [vmem:[%s847_s3 + $0xd8] sm:$0xff] %v494_v15  ;;  %v479_v18 = vadd.f32 %v712_v30, %v307_v16  ;;  %v495_v19 = vadd.f32 %v712_v30, %v347_v17 }
  0xfc   :  { %v309_v20 = vpop.f32.mrf.mxu0  ;;  %v349_v21 = vpop.f32.mrf.mxu1 }
  0xfd   :  { %511 = vst [vmem:[%s847_s3 + $0x60] sm:$0xff] %v479_v18  ;;  %527 = vst [vmem:[%s847_s3 + $0xe0] sm:$0xff] %v495_v19  ;;  %v480_v22 = vadd.f32 %v714_v31, %v309_v20  ;;  %v496_v23 = vadd.f32 %v714_v31, %v349_v21 }
  0xfe   :  { %v311_v24 = vpop.f32.mrf.mxu0  ;;  %v351_v25 = vpop.f32.mrf.mxu1 }
  0xff   :  { %512 = vst [vmem:[%s847_s3 + $0x68] sm:$0xff] %v480_v22  ;;  %528 = vst [vmem:[%s847_s3 + $0xe8] sm:$0xff] %v496_v23  ;;  %v481_v26 = vadd.f32 %v712_v30, %v311_v24  ;;  %v497_v27 = vadd.f32 %v712_v30, %v351_v25 }
 0x100   :  { %v313_v28 = vpop.f32.mrf.mxu0  ;;  %v353_v29 = vpop.f32.mrf.mxu1 }
 0x101   :  { %513 = vst [vmem:[%s847_s3 + $0x70] sm:$0xff] %v481_v26  ;;  %529 = vst [vmem:[%s847_s3 + $0xf0] sm:$0xff] %v497_v27  ;;  %v482_v32 = vadd.f32 %v714_v31, %v313_v28  ;;  %v498_v33 = vadd.f32 %v714_v31, %v353_v29 }
 0x103   :  { %514 = vst [vmem:[%s847_s3 + $0x78] sm:$0xff] %v482_v32  ;;  %530 = vst [vmem:[%s847_s3 + $0xf8] sm:$0xff] %v498_v33 }

// kernel: mammography_forward.68
= control target key start
LH: loop header
LB: loop body
LE: loop exit
PB: predicated region body
PF: predicated region fallthrough
CT: control target
= control target key end

     0   :  { %s763_s12 = smov 0   ;;  %s765_s13 = smov 0   ;;  %s862_s0 = inlined_call_operand.vmem [shape: bf16[32,1152], index: 0, kind: input, shape index: {}]   ;;  %s863_s1 = inlined_call_operand.vmem [shape: bf16[1152,128], index: 1, kind: input, shape index: {}]   ;;  %s864_s2 = inlined_call_operand.vmem [shape: f32[1,128], index: 2, kind: input, shape index: {}]   ;;  %s865_s3 = inlined_call_operand.vmem [shape: f32[32,128], index: 3, kind: output, shape index: {}]  }
   0x1   :  { %s767_s14 = smov 0   ;;  %s769_s15 = smov 0  }
   0x2   :  { %s771_s16 = smov 0  }
   0x3 LB: > { %s25_s17 = sadd.s32 1, %s736_s15  ;;  %p48_p1 = scmp.ne.s32.totalorder %s728_s13, %s724_s12  ;;  %s740_s16 = sphi %s771_s16, %s13_s16   ;;  %s736_s15 = sphi %s769_s15, %s869_s15   ;;  %s732_s14 = sphi %s767_s14, %s868_s14   ;;  %s728_s13 = sphi %s765_s13, %s867_s13   ;;  %s724_s12 = sphi %s763_s12, %s866_s12  }
   0x4   : > { %p26_p0 = scmp.ge.s32.totalorder %s25_s17, 9  ;;  %p49_p2 = scmp.eq.s32.totalorder %s740_s16, 0 }
   0x5   : > { %s41_s19 = sadd.s32 1, %s728_s13  ;;  %p597_p5 = scmp.ge.s32.totalorder %s740_s16, 9 }
   0x6   : > { %s871_s17 = smov (%p26_p0, %s25_s17), 0  ;;  %p50_p3 = por %p49_p2, %p48_p1 }
   0x7   : > { %s37_s18 = ssub.s32 %s736_s15, %s871_s17  ;;  %162 = sbr.rel (%p597_p5) target bundleno = 18 (0x12), region = 20 }
   0x8   : > { %p39_p4 = scmp.eq.s32.totalorder %s37_s18, 0 }
   0xa   : > { %s798_s20 = scalar_select %p39_p4, %s728_s13, %s41_s19  }
   0xc   : > { %165 = sbr.rel (!%p50_p3) target bundleno = 18 (0x12), region = 24  ;;  %s167_s21 = sand.u32 (%p50_p3), 1, %s728_s13  }
   0xd   : > { %s599_s22 = sshll.u32 (%p50_p3), %s736_s15, 2  ;;  %s598_s23 = sshll.u32 (%p50_p3), %s167_s21, 4 }
   0xe   : > { %s174_s26 = scalar_lea.vmem (%p50_p3), %s862_s0, %s599_s22  ;;  %s169_s27 = scalar_lea.vmem (%p50_p3), [#allocation3], %s598_s23 }
   0xf   : > { %v191_v0 = vld [vmem:[%s174_s26] sm:$0xf] (%p50_p3)  ;;  %v193_v1 = vld [vmem:[%s174_s26 + $0x24] sm:$0xf] (%p50_p3)  ;;  %v195_v2 = vld [vmem:[%s174_s26 + $0x48] sm:$0xf] (%p50_p3) }
  0x10   : > { %192 = vst [vmem:[%s169_s27] sm:$0xf] (%p50_p3), %v191_v0  ;;  %194 = vst [vmem:[%s169_s27 + $0x4] sm:$0xf] (%p50_p3), %v193_v1  ;;  %v197_v3 = vld [vmem:[%s174_s26 + $0x6c] sm:$0xf] (%p50_p3) }
  0x11   : > { %196 = vst [vmem:[%s169_s27 + $0x8] sm:$0xf] %v195_v2  ;;  %198 = vst [vmem:[%s169_s27 + $0xc] sm:$0xf] %v197_v3 }
  0x12 PF: > { %p600_p6 = scmp.ge.s32.totalorder %s740_s16, 1  ;;  %p241_p7 = scmp.lt.s32.totalorder %s740_s16, 10 }
  0x14   : > { %p242_p8 = pnand %p600_p6, %p241_p7 }
  0x15   : > { %s248_s28 = sand.u32 (!%p242_p8), 1, %s724_s12   ;;  %s602_s29 = sshll.u32 (!%p242_p8), %s732_s14, 4 }
  0x16   : > { %245 = sbr.rel (%p242_p8) target bundleno = 282 (0x11a), region = 69  ;;  %s810_s30 = sshll.u32 (!%p242_p8), %s248_s28, 4 }
  0x17   : > { %p287_p9 = scmp.lt.s32.totalorder (!%p242_p8), %s602_s29, 143  ;;  %s250_s8 = scalar_lea.vmem (!%p242_p8), [#allocation3], %s810_s30 }
  0x18   : > { %p604_p10 = scmp.ne.s32.totalorder (!%p242_p8), %s732_s14, 0 }
  0x1b   : > { %s873_s29 = smov (!%p287_p9, %s602_s29), 143  ;;  %311 = sbr.rel (%p604_p10) target bundleno = 35 (0x23), region = 77 }
  0x1c   : > { %s603_s4 = sshll.u32 %s873_s29, 2 }
  0x1d   : > { %s815_s7 = scalar_lea.vmem %s863_s1, %s603_s4 }
  0x20   : > { %v742_v4 = vmov 0.0  }
  0x21   : > { %312 = vst [vmem:[#allocation2 + $0x10] sm:$0xff] %v742_v4  ;;  %313 = vst [vmem:[#allocation2] sm:$0xff] %v742_v4 }
  0x22   : > { %314 = vst [vmem:[#allocation2 + $0x18] sm:$0xff] %v742_v4  ;;  %315 = vst [vmem:[#allocation2 + $0x8] sm:$0xff] %v742_v4 }
  0x23 PF: > { %v692_v5 = vld [vmem:[%s815_s7 + $0x38] sm:$0xff]   ;;  %v693_v6 = vld [vmem:[%s815_s7 + $0x30] sm:$0xff]   ;;  %v694_v7 = vld [vmem:[%s815_s7 + $0x28] sm:$0xff]   ;;  %p615_p11 = scmp.ne.s32.totalorder %s732_s14, 8 }
  0x24   : > { %631 = vmatprep.subr.bf16.mxu0 %v692_v5  ;;  %v695_v8 = vld [vmem:[%s815_s7 + $0x20] sm:$0xff]   ;;  %v696_v10 = vld [vmem:[%s815_s7 + $0x18] sm:$0xff]   ;;  %v697_v11 = vld [vmem:[%s815_s7 + $0x10] sm:$0xff]  }
  0x25   : > { %632 = vmatpush3.bf16.msra.mxu0 %v692_v5  ;;  %v700_v9 = vld [vmem:[%s250_s8] sm:$0xff]   ;;  %v698_v12 = vld [vmem:[%s815_s7 + $0x8] sm:$0xff]  }
  0x26   : > { %633 = vmatprep.subr.bf16.mxu0 %v693_v6  ;;  %647 = vmatprep.mubr.bf16.mxu0 %v700_v9  ;;  %v699_v13 = vld [vmem:[%s815_s7] sm:$0xff]   ;;  %v701_v14 = vld [vmem:[%s250_s8 + $0x8] sm:$0xff]  }
  0x28   : > { %v316_v17 = vld [vmem:[#allocation2 + $0x10] sm:$0xff]  ;;  %v317_v23 = vld [vmem:[#allocation2] sm:$0xff] }
  0x29   : > { %634 = vmatpush3.bf16.msra.mxu0 %v693_v6  ;;  %v318_v15 = vld [vmem:[#allocation2 + $0x18] sm:$0xff]  ;;  %v319_v20 = vld [vmem:[#allocation2 + $0x8] sm:$0xff] }
  0x2a   : > { %635 = vmatprep.subr.bf16.mxu0 %v694_v7 }
  0x2d   : > { %636 = vmatpush3.bf16.msra.mxu0 %v694_v7 }
  0x2e   : > { %637 = vmatprep.subr.bf16.mxu0 %v695_v8 }
  0x31   : > { %638 = vmatpush3.bf16.msra.mxu0 %v695_v8 }
  0x32   : > { %639 = vmatprep.subr.bf16.mxu0 %v696_v10 }
  0x35   : > { %640 = vmatpush3.bf16.msra.mxu0 %v696_v10 }
  0x36   : > { %641 = vmatprep.subr.bf16.mxu0 %v697_v11 }
  0x39   : > { %642 = vmatpush3.bf16.msra.mxu0 %v697_v11 }
  0x3a   : > { %643 = vmatprep.subr.bf16.mxu0 %v698_v12 }
  0x3d   : > { %644 = vmatpush3.bf16.msra.mxu0 %v698_v12 }
  0x3e   : > { %645 = vmatprep.subr.bf16.mxu0 %v699_v13 }
  0x41   : > { %646 = vmatpush3.bf16.msra.mxu0 %v699_v13 }
  0x44   : > { %648 = vmatmul.mubr.bf16.vlgmr.msra.gmra.mxu0 %v701_v14 }
 0x104   : > { %v649_v16 = vpop.f32.mrf.mxu0 }
 0x105   : > { %v451_v18 = vadd.f32 %v649_v16, %v318_v15 }
 0x106   : > { %v434_v19 = vpop.f32.mrf.mxu0 }
 0x107   : > { %455 = vst [vmem:[#allocation2 + $0x18] sm:$0xff] %v451_v18  ;;  %v449_v21 = vadd.f32 %v434_v19, %v316_v17 }
 0x108   : > { %v650_v22 = vpop.f32.mrf.mxu0 }
 0x109   : > { %453 = vst [vmem:[#allocation2 + $0x10] sm:$0xff] %v449_v21  ;;  %v452_v24 = vadd.f32 %v650_v22, %v319_v20  ;;  %460 = sbr.rel (%p615_p11) target bundleno = 282 (0x11a), region = 81 }
 0x10a   : > { %v437_v25 = vpop.f32.mrf.mxu0 }
 0x10b   : > { %456 = vst [vmem:[#allocation2 + $0x8] sm:$0xff] %v452_v24  ;;  %v450_v26 = vadd.f32 %v437_v25, %v317_v23 }
 0x10d   : > { %454 = vst [vmem:[#allocation2] sm:$0xff] %v450_v26 }
 0x10e   : > { %v616_v28 = vld [vmem:[%s864_s2] ss:$0 sm:$0xff]  ;;  %v463_v32 = vld [vmem:[#allocation2 + $0x18] sm:$0xff] }
 0x10f   : > { %v474_v34 = vadd.f32 %v616_v28, %v463_v32 }
 0x110   : > { %v461_v27 = vld [vmem:[#allocation2 + $0x10] sm:$0xff] }
 0x111   : > { %v472_v30 = vadd.f32 %v616_v28, %v461_v27  ;;  %v478_v38 = vmax.f32 %v474_v34, 0.0 }
 0x112   : > { %v464_v33 = vld [vmem:[#allocation2 + $0x8] sm:$0xff] }
 0x113   : > { %v475_v35 = vadd.f32 %v616_v28, %v464_v33  ;;  %v476_v36 = vmax.f32 %v472_v30, 0.0  ;;  %482 = vst [vmem:[%s865_s3 + $0x10] sm:$0xff] %v478_v38 }
 0x114   : > { %v462_v29 = vld [vmem:[#allocation2] sm:$0xff] }
 0x115   : > { %v473_v31 = vadd.f32 %v616_v28, %v462_v29  ;;  %v479_v39 = vmax.f32 %v475_v35, 0.0  ;;  %480 = vst [vmem:[%s865_s3] sm:$0xff] %v476_v36 }
 0x117   : > { %v477_v37 = vmax.f32 %v473_v31, 0.0  ;;  %483 = vst [vmem:[%s865_s3 + $0x18] sm:$0xff] %v479_v39 }
 0x119   : > { %481 = vst [vmem:[%s865_s3 + $0x8] sm:$0xff] %v477_v37 }
 0x11a PF: > { %s13_s16 = sadd.s32 1, %s740_s16   ;;  %s866_s12 = smov %s728_s13 }
 0x11b   : > { %p10_p12 = scmp.ge.s32.totalorder %s13_s16, 11   ;;  %s867_s13 = smov %s798_s20 }
 0x11c   : > { %s868_s14 = smov %s736_s15  ;;  %s869_s15 = smov %s871_s17 }
 0x11d   :  { %12 = sbr.rel (!%p10_p12) target bundleno = 3 (0x3), region = 122 }

// kernel: mammography_forward.66
= control target key start
LH: loop header
LB: loop body
LE: loop exit
PB: predicated region body
PF: predicated region fallthrough
CT: control target
= control target key end

     0   :  { %s1148_s12 = smov 0   ;;  %s1150_s13 = smov 0   ;;  %s1360_s0 = inlined_call_operand.vmem [shape: bf16[32,256], index: 0, kind: input, shape index: {}]   ;;  %s1361_s1 = inlined_call_operand.vmem [shape: bf16[256,512], index: 1, kind: input, shape index: {}]   ;;  %s1362_s2 = inlined_call_operand.vmem [shape: f32[1,512], index: 2, kind: input, shape index: {}]   ;;  %s1363_s3 = inlined_call_operand.vmem [shape: f32[32,512], index: 3, kind: output, shape index: {}]  }
   0x1   :  { %s1152_s14 = smov 0   ;;  %s1154_s15 = smov 0  }
   0x2   :  { %s1156_s16 = smov 0  }
   0x3 LB: > { %s28_s17 = sadd.s32 1, %s1122_s15  ;;  %s907_s18 = sadd.s32 4294967295, %s1126_s16   ;;  %s1126_s16 = sphi %s1156_s16, %s13_s16   ;;  %s1122_s15 = sphi %s1154_s15, %s1368_s15   ;;  %s1118_s14 = sphi %s1152_s14, %s1367_s14   ;;  %s1114_s13 = sphi %s1150_s13, %s1366_s13   ;;  %s1110_s12 = sphi %s1148_s12, %s1365_s12  }
   0x4   : > { %p30_p0 = scmp.ge.s32.totalorder %s28_s17, 2  ;;  %p76_p1 = scmp.ne.s32.totalorder %s1114_s13, %s1110_s12 }
   0x5   : > { %p77_p2 = scmp.eq.s32.totalorder %s1126_s16, 0  ;;  %p134_p4 = scmp.eq.s32.totalorder %s907_s18, 1 }
   0x6   : > { %s1370_s17 = smov (%p30_p0, %s28_s17), 0  ;;  %s69_s20 = sadd.s32 1, %s1114_s13 }
   0x7   : > { %p78_p3 = por %p77_p2, %p76_p1  ;;  %s65_s19 = ssub.s32 %s1122_s15, %s1370_s17 }
   0x8   : > { %p67_p5 = scmp.eq.s32.totalorder %s65_s19, 0  ;;  %p1183_p6 = por %p134_p4, %p76_p1 }
   0x9   : > { %p911_p7 = scmp.ge.s32.totalorder %s1126_s16, 2 }
   0xa   : > { %s1188_s22 = scalar_select %p67_p5, %s1114_s13, %s69_s20  }
   0xb   : > { %171 = sbr.rel (%p911_p7) target bundleno = 36 (0x24), region = 20 }
  0x10   : > { %174 = sbr.rel (!%p78_p3) target bundleno = 36 (0x24), region = 24  ;;  %s176_s23 = sand.u32 (%p78_p3), 1, %s1114_s13  }
  0x11   : > { %s960_s24 = sshll.u32 (%p78_p3), %s1122_s15, 3  ;;  %s912_s25 = sshll.u32 (%p78_p3), %s176_s23, 8 }
  0x12   : > { %s1196_s28 = scalar_lea.vmem (%p78_p3), %s1361_s1, %s960_s24  ;;  %s1201_s29 = scalar_lea.vmem (%p78_p3), [#allocation3], %s912_s25 }
  0x13   : > { %v275_v0 = vld [vmem:[%s1196_s28] sm:$0xff] (%p78_p3)  ;;  %v277_v1 = vld [vmem:[%s1196_s28 + $0x10] sm:$0xff] (%p78_p3) }
  0x14   : > { %v279_v2 = vld [vmem:[%s1196_s28 + $0x20] sm:$0xff] (%p78_p3)  ;;  %276 = vst [vmem:[%s1201_s29] sm:$0xff] (%p78_p3), %v275_v0  ;;  %278 = vst [vmem:[%s1201_s29 + $0x8] sm:$0xff] (%p78_p3), %v277_v1  ;;  %v281_v3 = vld [vmem:[%s1196_s28 + $0x30] sm:$0xff] (%p78_p3) }
  0x15   : > { %280 = vst [vmem:[%s1201_s29 + $0x10] sm:$0xff] %v279_v2  ;;  %v283_v4 = vld [vmem:[%s1196_s28 + $0x40] sm:$0xff]  ;;  %v285_v5 = vld [vmem:[%s1196_s28 + $0x50] sm:$0xff]  ;;  %282 = vst [vmem:[%s1201_s29 + $0x18] sm:$0xff] %v281_v3 }
  0x16   : > { %284 = vst [vmem:[%s1201_s29 + $0x20] sm:$0xff] %v283_v4  ;;  %286 = vst [vmem:[%s1201_s29 + $0x28] sm:$0xff] %v285_v5  ;;  %v287_v6 = vld [vmem:[%s1196_s28 + $0x60] sm:$0xff]  ;;  %v289_v7 = vld [vmem:[%s1196_s28 + $0x70] sm:$0xff] }
  0x17   : > { %v291_v8 = vld [vmem:[%s1196_s28 + $0x80] sm:$0xff]  ;;  %288 = vst [vmem:[%s1201_s29 + $0x30] sm:$0xff] %v287_v6  ;;  %290 = vst [vmem:[%s1201_s29 + $0x38] sm:$0xff] %v289_v7  ;;  %v293_v9 = vld [vmem:[%s1196_s28 + $0x90] sm:$0xff] }
  0x18   : > { %292 = vst [vmem:[%s1201_s29 + $0x40] sm:$0xff] %v291_v8  ;;  %v295_v10 = vld [vmem:[%s1196_s28 + $0xa0] sm:$0xff]  ;;  %v297_v11 = vld [vmem:[%s1196_s28 + $0xb0] sm:$0xff]  ;;  %294 = vst [vmem:[%s1201_s29 + $0x48] sm:$0xff] %v293_v9 }
  0x19   : > { %296 = vst [vmem:[%s1201_s29 + $0x50] sm:$0xff] %v295_v10  ;;  %298 = vst [vmem:[%s1201_s29 + $0x58] sm:$0xff] %v297_v11  ;;  %v299_v12 = vld [vmem:[%s1196_s28 + $0xc0] sm:$0xff]  ;;  %v301_v13 = vld [vmem:[%s1196_s28 + $0xd0] sm:$0xff] }
  0x1a   : > { %v303_v14 = vld [vmem:[%s1196_s28 + $0xe0] sm:$0xff]  ;;  %300 = vst [vmem:[%s1201_s29 + $0x60] sm:$0xff] %v299_v12  ;;  %302 = vst [vmem:[%s1201_s29 + $0x68] sm:$0xff] %v301_v13  ;;  %v305_v15 = vld [vmem:[%s1196_s28 + $0xf0] sm:$0xff] }
  0x1b   : > { %304 = vst [vmem:[%s1201_s29 + $0x70] sm:$0xff] %v303_v14  ;;  %v307_v16 = vld [vmem:[%s1196_s28 + $0x100] sm:$0xff]  ;;  %v309_v17 = vld [vmem:[%s1196_s28 + $0x110] sm:$0xff]  ;;  %306 = vst [vmem:[%s1201_s29 + $0x78] sm:$0xff] %v305_v15 }
  0x1c   : > { %308 = vst [vmem:[%s1201_s29 + $0x80] sm:$0xff] %v307_v16  ;;  %310 = vst [vmem:[%s1201_s29 + $0x88] sm:$0xff] %v309_v17  ;;  %v311_v18 = vld [vmem:[%s1196_s28 + $0x120] sm:$0xff]  ;;  %v313_v19 = vld [vmem:[%s1196_s28 + $0x130] sm:$0xff] }
  0x1d   : > { %v315_v20 = vld [vmem:[%s1196_s28 + $0x140] sm:$0xff]  ;;  %312 = vst [vmem:[%s1201_s29 + $0x90] sm:$0xff] %v311_v18  ;;  %314 = vst [vmem:[%s1201_s29 + $0x98] sm:$0xff] %v313_v19  ;;  %v317_v21 = vld [vmem:[%s1196_s28 + $0x150] sm:$0xff] }
  0x1e   : > { %316 = vst [vmem:[%s1201_s29 + $0xa0] sm:$0xff] %v315_v20  ;;  %v319_v22 = vld [vmem:[%s1196_s28 + $0x160] sm:$0xff]  ;;  %v321_v23 = vld [vmem:[%s1196_s28 + $0x170] sm:$0xff]  ;;  %318 = vst [vmem:[%s1201_s29 + $0xa8] sm:$0xff] %v317_v21 }
  0x1f   : > { %320 = vst [vmem:[%s1201_s29 + $0xb0] sm:$0xff] %v319_v22  ;;  %322 = vst [vmem:[%s1201_s29 + $0xb8] sm:$0xff] %v321_v23  ;;  %v323_v24 = vld [vmem:[%s1196_s28 + $0x180] sm:$0xff]  ;;  %v325_v25 = vld [vmem:[%s1196_s28 + $0x190] sm:$0xff] }
  0x20   : > { %v327_v26 = vld [vmem:[%s1196_s28 + $0x1a0] sm:$0xff]  ;;  %324 = vst [vmem:[%s1201_s29 + $0xc0] sm:$0xff] %v323_v24  ;;  %326 = vst [vmem:[%s1201_s29 + $0xc8] sm:$0xff] %v325_v25  ;;  %v329_v27 = vld [vmem:[%s1196_s28 + $0x1b0] sm:$0xff] }
  0x21   : > { %328 = vst [vmem:[%s1201_s29 + $0xd0] sm:$0xff] %v327_v26  ;;  %v331_v28 = vld [vmem:[%s1196_s28 + $0x1c0] sm:$0xff]  ;;  %v333_v29 = vld [vmem:[%s1196_s28 + $0x1d0] sm:$0xff]  ;;  %330 = vst [vmem:[%s1201_s29 + $0xd8] sm:$0xff] %v329_v27 }
  0x22   : > { %332 = vst [vmem:[%s1201_s29 + $0xe0] sm:$0xff] %v331_v28  ;;  %334 = vst [vmem:[%s1201_s29 + $0xe8] sm:$0xff] %v333_v29  ;;  %v335_v30 = vld [vmem:[%s1196_s28 + $0x1e0] sm:$0xff]  ;;  %v337_v31 = vld [vmem:[%s1196_s28 + $0x1f0] sm:$0xff] }
  0x23   : > { %336 = vst [vmem:[%s1201_s29 + $0xf0] sm:$0xff] %v335_v30  ;;  %338 = vst [vmem:[%s1201_s29 + $0xf8] sm:$0xff] %v337_v31 }
  0x24 PF: > { %p915_p8 = scmp.ge.s32.totalorder %s1126_s16, 1  ;;  %p351_p9 = scmp.lt.s32.totalorder %s1126_s16, 3 }
  0x26   : > { %p352_p10 = pnand %p915_p8, %p351_p9 }
  0x27   : > { %s358_s30 = sand.u32 (!%p352_p10), 1, %s1110_s12   ;;  %s918_s20 = sshll.u32 (!%p352_p10), %s1118_s14, 1 }
  0x28   : > { %355 = sbr.rel (%p352_p10) target bundleno = 322 (0x142), region = 66  ;;  %s916_s4 = sshll.u32 (!%p352_p10), %s358_s30, 8 }
  0x29   : > { %s1275_s9 = scalar_lea.vmem (!%p352_p10), [#allocation3], %s916_s4  ;;  %p409_p11 = scmp.lt.s32.totalorder (!%p352_p10), %s918_s20, 3 }
  0x2a   : > { %s917_s26 = sshll.u32 (!%p352_p10), %s358_s30, 6 }
  0x2b   : > { %s1321_s27 = scalar_lea.vmem (!%p352_p10), [#allocation4], %s917_s26 }
  0x2d   : > { %v1084_v32 = vld [vmem:[%s1360_s0 + $0x4] ss:$8 sps:$4 sm:$0xff]   ;;  %v1087_v33 = vld [vmem:[%s1360_s0 + $0x14] ss:$8 sps:$4 sm:$0xff]   ;;  %v1036_v35 = vld [vmem:[%s1275_s9 + $0x70] ss:$8 sps:$4 sm:$0xff]   ;;  %v733_v4 = vlaneseq }
  0x2e   : > { %v1034_v34 = vld [vmem:[%s1275_s9 + $0x74] ss:$8 sps:$4 sm:$0xff]   ;;  %683 = vmatprep.mubr.bf16.mxu0 %v1084_v32  ;;  %693 = vmatprep.mubr.bf16.mxu1 %v1087_v33  ;;  %v1037_v36 = vld [vmem:[%s1275_s9 + $0x64] ss:$8 sps:$4 sm:$0xff]   ;;  %v1039_v37 = vld [vmem:[%s1275_s9 + $0x60] ss:$8 sps:$4 sm:$0xff]  }
  0x2f   : > { %651 = vmatprep.subr.bf16.mxu0 %v1034_v34  ;;  %962 = vmatprep.subr.bf16.mxu1 %v1034_v34  ;;  %v1040_v38 = vld [vmem:[%s1275_s9 + $0x54] ss:$8 sps:$4 sm:$0xff]   ;;  %v1042_v39 = vld [vmem:[%s1275_s9 + $0x50] ss:$8 sps:$4 sm:$0xff]   ;;  %v1043_v40 = vld [vmem:[%s1275_s9 + $0x44] ss:$8 sps:$4 sm:$0xff]  }
  0x30   : > { %652 = vmatpush1.bf16.msra.mxu0 %v1036_v35  ;;  %978 = vmatpush1.bf16.msra.mxu1 %v1036_v35  ;;  %v1045_v41 = vld [vmem:[%s1275_s9 + $0x40] ss:$8 sps:$4 sm:$0xff]   ;;  %v1046_v42 = vld [vmem:[%s1275_s9 + $0x34] ss:$8 sps:$4 sm:$0xff]   ;;  %v1048_v43 = vld [vmem:[%s1275_s9 + $0x30] ss:$8 sps:$4 sm:$0xff]  }
  0x31   : > { %653 = vmatprep.subr.bf16.mxu0 %v1037_v36  ;;  %963 = vmatprep.subr.bf16.mxu1 %v1037_v36  ;;  %v1049_v44 = vld [vmem:[%s1275_s9 + $0x24] ss:$8 sps:$4 sm:$0xff]   ;;  %v1051_v45 = vld [vmem:[%s1275_s9 + $0x20] ss:$8 sps:$4 sm:$0xff]   ;;  %v1052_v46 = vld [vmem:[%s1275_s9 + $0x14] ss:$8 sps:$4 sm:$0xff]  }
  0x32   : > { %v1054_v47 = vld [vmem:[%s1275_s9 + $0x10] ss:$8 sps:$4 sm:$0xff]   ;;  %v1055_v48 = vld [vmem:[%s1275_s9 + $0x4] ss:$8 sps:$4 sm:$0xff]   ;;  %v1057_v49 = vld [vmem:[%s1275_s9] ss:$8 sps:$4 sm:$0xff]  }
  0x33   : > { %v1058_v50 = vld [vmem:[%s1275_s9 + $0xf4] ss:$8 sps:$4 sm:$0xff]   ;;  %v1060_v51 = vld [vmem:[%s1275_s9 + $0xf0] ss:$8 sps:$4 sm:$0xff]   ;;  %v1061_v52 = vld [vmem:[%s1275_s9 + $0xe4] ss:$8 sps:$4 sm:$0xff]  }
  0x34   : > { %654 = vmatpush1.bf16.msra.mxu0 %v1039_v37  ;;  %979 = vmatpush1.bf16.msra.mxu1 %v1039_v37  ;;  %v1063_v53 = vld [vmem:[%s1275_s9 + $0xe0] ss:$8 sps:$4 sm:$0xff]   ;;  %v1064_v54 = vld [vmem:[%s1275_s9 + $0xd4] ss:$8 sps:$4 sm:$0xff]   ;;  %v1066_v55 = vld [vmem:[%s1275_s9 + $0xd0] ss:$8 sps:$4 sm:$0xff]  }
  0x35   : > { %655 = vmatprep.subr.bf16.mxu0 %v1040_v38  ;;  %964 = vmatprep.subr.bf16.mxu1 %v1040_v38  ;;  %v1067_v56 = vld [vmem:[%s1275_s9 + $0xc4] ss:$8 sps:$4 sm:$0xff]   ;;  %v1069_v57 = vld [vmem:[%s1275_s9 + $0xc0] ss:$8 sps:$4 sm:$0xff]   ;;  %v1070_v58 = vld [vmem:[%s1275_s9 + $0xb4] ss:$8 sps:$4 sm:$0xff]  }
  0x36   : > { %v1072_v59 = vld [vmem:[%s1275_s9 + $0xb0] ss:$8 sps:$4 sm:$0xff]   ;;  %v1073_v60 = vld [vmem:[%s1275_s9 + $0xa4] ss:$8 sps:$4 sm:$0xff]   ;;  %v1075_v61 = vld [vmem:[%s1275_s9 + $0xa0] ss:$8 sps:$4 sm:$0xff]  }
  0x37   : > { %v1076_v62 = vld [vmem:[%s1275_s9 + $0x94] ss:$8 sps:$4 sm:$0xff]   ;;  %v1078_v63 = vld [vmem:[%s1275_s9 + $0x90] ss:$8 sps:$4 sm:$0xff]   ;;  %v1079_v0 = vld [vmem:[%s1275_s9 + $0x84] ss:$8 sps:$4 sm:$0xff]  }
  0x38   : > { %656 = vmatpush1.bf16.msra.mxu0 %v1042_v39  ;;  %980 = vmatpush1.bf16.msra.mxu1 %v1042_v39  ;;  %v1081_v1 = vld [vmem:[%s1275_s9 + $0x80] ss:$8 sps:$4 sm:$0xff]   ;;  %v1085_v3 = vld [vmem:[%s1360_s0 + $0x10] ss:$8 sps:$4 sm:$0xff]   ;;  %s1372_s20 = smov (!%p409_p11, %s918_s20), 3  ;;  %v734_v5 = vshrl.u32 %v733_v4, 7 }
  0x39   : > { %657 = vmatprep.subr.bf16.mxu0 %v1043_v40  ;;  %965 = vmatprep.subr.bf16.mxu1 %v1043_v40  ;;  %v1082_v2 = vld [vmem:[%s1360_s0] ss:$8 sps:$4 sm:$0xff]   ;;  %s411_s25 = scalar_lea.vmem %s1362_s2, %s1372_s20  ;;  %s961_s12 = sshll.u32 (%p1183_p6), %s1118_s14, 4 }
  0x3a   : > { %v735_v6 = vsub.s32 0, %v734_v5  ;;  %v731_v7 = vld [vmem:[%s411_s25] sm:$0x3]  ;;  %v739_v8 = vsub.s32 1, %v734_v5  ;;  %s771_s30 = scalar_lea.vmem (%p1183_p6), %s1363_s3, %s961_s12 }
  0x3c   : > { %658 = vmatpush1.bf16.msra.mxu0 %v1045_v41  ;;  %981 = vmatpush1.bf16.msra.mxu1 %v1045_v41  ;;  %v736_v9 = vrot.slane %v731_v7, %v735_v6  ;;  %v740_v10 = vrot.slane %v731_v7, %v739_v8 }
  0x3d   : > { %659 = vmatprep.subr.bf16.mxu0 %v1046_v42  ;;  %966 = vmatprep.subr.bf16.mxu1 %v1046_v42 }
  0x40   : > { %660 = vmatpush1.bf16.msra.mxu0 %v1048_v43  ;;  %982 = vmatpush1.bf16.msra.mxu1 %v1048_v43 }
  0x41   : > { %661 = vmatprep.subr.bf16.mxu0 %v1049_v44  ;;  %967 = vmatprep.subr.bf16.mxu1 %v1049_v44 }
  0x44   : > { %662 = vmatpush1.bf16.msra.mxu0 %v1051_v45  ;;  %983 = vmatpush1.bf16.msra.mxu1 %v1051_v45 }
  0x45   : > { %663 = vmatprep.subr.bf16.mxu0 %v1052_v46  ;;  %968 = vmatprep.subr.bf16.mxu1 %v1052_v46 }
  0x48   : > { %664 = vmatpush1.bf16.msra.mxu0 %v1054_v47  ;;  %984 = vmatpush1.bf16.msra.mxu1 %v1054_v47 }
  0x49   : > { %665 = vmatprep.subr.bf16.mxu0 %v1055_v48  ;;  %969 = vmatprep.subr.bf16.mxu1 %v1055_v48 }
  0x4c   : > { %666 = vmatpush1.bf16.msra.mxu0 %v1057_v49  ;;  %985 = vmatpush1.bf16.msra.mxu1 %v1057_v49 }
  0x4d   : > { %667 = vmatprep.subr.bf16.mxu0 %v1058_v50  ;;  %970 = vmatprep.subr.bf16.mxu1 %v1058_v50 }
  0x50   : > { %668 = vmatpush2.bf16.msra.mxu0 %v1060_v51  ;;  %986 = vmatpush2.bf16.msra.mxu1 %v1060_v51 }
  0x51   : > { %669 = vmatprep.subr.bf16.mxu0 %v1061_v52  ;;  %971 = vmatprep.subr.bf16.mxu1 %v1061_v52 }
  0x54   : > { %670 = vmatpush2.bf16.msra.mxu0 %v1063_v53  ;;  %987 = vmatpush2.bf16.msra.mxu1 %v1063_v53 }
  0x55   : > { %671 = vmatprep.subr.bf16.mxu0 %v1064_v54  ;;  %972 = vmatprep.subr.bf16.mxu1 %v1064_v54 }
  0x58   : > { %672 = vmatpush2.bf16.msra.mxu0 %v1066_v55  ;;  %988 = vmatpush2.bf16.msra.mxu1 %v1066_v55 }
  0x59   : > { %673 = vmatprep.subr.bf16.mxu0 %v1067_v56  ;;  %973 = vmatprep.subr.bf16.mxu1 %v1067_v56 }
  0x5c   : > { %674 = vmatpush2.bf16.msra.mxu0 %v1069_v57  ;;  %989 = vmatpush2.bf16.msra.mxu1 %v1069_v57 }
  0x5d   : > { %675 = vmatprep.subr.bf16.mxu0 %v1070_v58  ;;  %974 = vmatprep.subr.bf16.mxu1 %v1070_v58 }
  0x60   : > { %676 = vmatpush2.bf16.msra.mxu0 %v1072_v59  ;;  %990 = vmatpush2.bf16.msra.mxu1 %v1072_v59 }
  0x61   : > { %677 = vmatprep.subr.bf16.mxu0 %v1073_v60  ;;  %975 = vmatprep.subr.bf16.mxu1 %v1073_v60 }
  0x64   : > { %678 = vmatpush2.bf16.msra.mxu0 %v1075_v61  ;;  %991 = vmatpush2.bf16.msra.mxu1 %v1075_v61 }
  0x65   : > { %679 = vmatprep.subr.bf16.mxu0 %v1076_v62  ;;  %976 = vmatprep.subr.bf16.mxu1 %v1076_v62 }
  0x68   : > { %680 = vmatpush2.bf16.msra.mxu0 %v1078_v63  ;;  %992 = vmatpush2.bf16.msra.mxu1 %v1078_v63 }
  0x69   : > { %681 = vmatprep.subr.bf16.mxu0 %v1079_v0  ;;  %977 = vmatprep.subr.bf16.mxu1 %v1079_v0 }
  0x6c   : > { %682 = vmatpush2.bf16.msra.mxu0 %v1081_v1  ;;  %993 = vmatpush2.bf16.msra.mxu1 %v1081_v1 }
  0x6f   : > { %684 = vmatmul.mubr.bf16.vlgmr.msra.gmra.mxu0 %v1082_v2  ;;  %694 = vmatmul.mubr.bf16.vlgmr.msra.gmra.mxu1 %v1085_v3 }
 0x12f   : > { %v685_v11 = vpop.f32.mrf.mxu0  ;;  %v695_v12 = vpop.f32.mrf.mxu1 }
 0x130   : > { %v743_v13 = vadd.f32 %v736_v9, %v685_v11  ;;  %v747_v14 = vadd.f32 %v736_v9, %v695_v12 }
 0x131   : > { %v687_v15 = vpop.f32.mrf.mxu0  ;;  %v697_v16 = vpop.f32.mrf.mxu1 }
 0x132   : > { %751 = vst [vmem:[%s1321_s27] sm:$0xff] %v743_v13  ;;  %755 = vst [vmem:[%s1321_s27 + $0x20] sm:$0xff] %v747_v14  ;;  %v744_v17 = vadd.f32 %v740_v10, %v687_v15  ;;  %v748_v18 = vadd.f32 %v740_v10, %v697_v16 }
 0x133   : > { %v689_v19 = vpop.f32.mrf.mxu0  ;;  %v699_v20 = vpop.f32.mrf.mxu1 }
 0x134   : > { %752 = vst [vmem:[%s1321_s27 + $0x8] sm:$0xff] %v744_v17  ;;  %756 = vst [vmem:[%s1321_s27 + $0x28] sm:$0xff] %v748_v18  ;;  %v745_v21 = vadd.f32 %v736_v9, %v689_v19  ;;  %v749_v22 = vadd.f32 %v736_v9, %v699_v20  ;;  %765 = sbr.rel (!%p1183_p6) target bundleno = 322 (0x142), region = 82 }
 0x135   : > { %v691_v23 = vpop.f32.mrf.mxu0  ;;  %v701_v24 = vpop.f32.mrf.mxu1 }
 0x136   : > { %753 = vst [vmem:[%s1321_s27 + $0x10] sm:$0xff] %v745_v21  ;;  %757 = vst [vmem:[%s1321_s27 + $0x30] sm:$0xff] %v749_v22  ;;  %v746_v25 = vadd.f32 %v740_v10, %v691_v23  ;;  %v750_v26 = vadd.f32 %v740_v10, %v701_v24 }
 0x138   : > { %754 = vst [vmem:[%s1321_s27 + $0x18] sm:$0xff] %v746_v25  ;;  %758 = vst [vmem:[%s1321_s27 + $0x38] sm:$0xff] %v750_v26 }
 0x139   : > { %v784_v27 = vld [vmem:[%s1321_s27] sm:$0xff] }
 0x13a   : > { %v792_v31 = vld [vmem:[%s1321_s27 + $0x20] sm:$0xff]  ;;  %785 = vst [vmem:[%s771_s30] sm:$0xff] %v784_v27 }
 0x13b   : > { %v786_v28 = vld [vmem:[%s1321_s27 + $0x8] sm:$0xff]  ;;  %793 = vst [vmem:[%s771_s30 + $0x40] sm:$0xff] %v792_v31 }
 0x13c   : > { %v794_v32 = vld [vmem:[%s1321_s27 + $0x28] sm:$0xff]  ;;  %787 = vst [vmem:[%s771_s30 + $0x8] sm:$0xff] %v786_v28 }
 0x13d   : > { %v788_v29 = vld [vmem:[%s1321_s27 + $0x10] sm:$0xff]  ;;  %795 = vst [vmem:[%s771_s30 + $0x48] sm:$0xff] %v794_v32 }
 0x13e   : > { %789 = vst [vmem:[%s771_s30 + $0x20] sm:$0xff] %v788_v29  ;;  %v796_v33 = vld [vmem:[%s1321_s27 + $0x30] sm:$0xff] }
 0x13f   : > { %v790_v30 = vld [vmem:[%s1321_s27 + $0x18] sm:$0xff]  ;;  %797 = vst [vmem:[%s771_s30 + $0x60] sm:$0xff] %v796_v33 }
 0x140   : > { %791 = vst [vmem:[%s771_s30 + $0x28] sm:$0xff] %v790_v30  ;;  %v798_v34 = vld [vmem:[%s1321_s27 + $0x38] sm:$0xff] }
 0x141   : > { %799 = vst [vmem:[%s771_s30 + $0x68] sm:$0xff] %v798_v34 }
 0x142 PF: > { %s13_s16 = sadd.s32 1, %s1126_s16   ;;  %s1365_s12 = smov %s1114_s13 }
 0x143   : > { %p10_p12 = scmp.ge.s32.totalorder %s13_s16, 4   ;;  %s1366_s13 = smov %s1188_s22 }
 0x144   : > { %s1367_s14 = smov %s1122_s15  ;;  %s1368_s15 = smov %s1370_s17 }
 0x145   :  { %12 = sbr.rel (!%p10_p12) target bundleno = 3 (0x3), region = 142 }

// kernel: mammography_forward.69
= control target key start
LH: loop header
LB: loop body
LE: loop exit
PB: predicated region body
PF: predicated region fallthrough
CT: control target
= control target key end

     0   :  { %s1053_s15 = smov 0   ;;  %s1055_s16 = smov 0   ;;  %s1210_s0 = inlined_call_operand.vmem [shape: bf16[32,128], index: 0, kind: input, shape index: {}]   ;;  %s1211_s1 = inlined_call_operand.vmem [shape: bf16[128,512], index: 1, kind: input, shape index: {}]   ;;  %s1212_s2 = inlined_call_operand.vmem [shape: f32[1,512], index: 2, kind: input, shape index: {}]   ;;  %s1213_s3 = inlined_call_operand.vmem [shape: f32[32,512], index: 3, kind: input, shape index: {}]   ;;  %s1214_s4 = inlined_call_operand.vmem [shape: f32[32,512], index: 4, kind: output, shape index: {}]  }
   0x1   :  { %s1057_s17 = smov 0   ;;  %s1059_s18 = smov 0  }
   0x2   :  { %s1061_s19 = smov 0  }
   0x3 LB: > { %s29_s20 = sadd.s32 1, %s1021_s18  ;;  %s862_s21 = sadd.s32 4294967295, %s1025_s19   ;;  %s1025_s19 = sphi %s1061_s19, %s14_s19   ;;  %s1021_s18 = sphi %s1059_s18, %s1220_s18   ;;  %s1017_s17 = sphi %s1057_s17, %s1219_s17   ;;  %s1013_s16 = sphi %s1055_s16, %s1218_s16   ;;  %s1009_s15 = sphi %s1053_s15, %s1217_s15  }
   0x4   : > { %p31_p0 = scmp.ge.s32.totalorder %s29_s20, 2  ;;  %p77_p1 = scmp.ne.s32.totalorder %s1013_s16, %s1009_s15 }
   0x5   : > { %p78_p2 = scmp.eq.s32.totalorder %s1025_s19, 0  ;;  %p163_p4 = scmp.eq.s32.totalorder %s862_s21, 1 }
   0x6   : > { %s1222_s20 = smov (%p31_p0, %s29_s20), 0  ;;  %s70_s24 = sadd.s32 1, %s1013_s16 }
   0x7   : > { %p1085_p3 = por %p78_p2, %p77_p1  ;;  %s66_s23 = ssub.s32 %s1021_s18, %s1222_s20 }
   0x8   : > { %p68_p5 = scmp.eq.s32.totalorder %s66_s23, 0  ;;  %p1092_p6 = por %p163_p4, %p77_p1 }
   0x9   : > { %p866_p7 = scmp.ge.s32.totalorder %s1025_s19, 2 }
   0xa   : > { %s1097_s26 = scalar_select %p68_p5, %s1013_s16, %s70_s24  }
   0xb   : > { %197 = sbr.rel (%p866_p7) target bundleno = 36 (0x24), region = 20 }
  0x10   : > { %200 = sbr.rel (!%p1085_p3) target bundleno = 28 (0x1c), region = 24  ;;  %s202_s27 = sand.u32 (%p1085_p3), 1, %s1013_s16  }
  0x11   : > { %s901_s28 = sshll.u32 (%p1085_p3), %s1021_s18, 3  ;;  %s867_s29 = sshll.u32 (%p1085_p3), %s202_s27, 7 }
  0x12   : > { %s1107_s6 = scalar_lea.vmem (%p1085_p3), %s1211_s1, %s901_s28  ;;  %s204_s7 = scalar_lea.vmem (%p1085_p3), [#allocation3], %s867_s29 }
  0x13   : > { %v269_v0 = vld [vmem:[%s1107_s6] sm:$0xff] (%p1085_p3)  ;;  %v271_v1 = vld [vmem:[%s1107_s6 + $0x10] sm:$0xff] (%p1085_p3) }
  0x14   : > { %v273_v2 = vld [vmem:[%s1107_s6 + $0x20] sm:$0xff] (%p1085_p3)  ;;  %270 = vst [vmem:[%s204_s7] sm:$0xff] (%p1085_p3), %v269_v0  ;;  %272 = vst [vmem:[%s204_s7 + $0x8] sm:$0xff] (%p1085_p3), %v271_v1  ;;  %v275_v3 = vld [vmem:[%s1107_s6 + $0x30] sm:$0xff] (%p1085_p3) }
  0x15   : > { %274 = vst [vmem:[%s204_s7 + $0x10] sm:$0xff] %v273_v2  ;;  %v277_v4 = vld [vmem:[%s1107_s6 + $0x40] sm:$0xff]  ;;  %v279_v5 = vld [vmem:[%s1107_s6 + $0x50] sm:$0xff]  ;;  %276 = vst [vmem:[%s204_s7 + $0x18] sm:$0xff] %v275_v3 }
  0x16   : > { %278 = vst [vmem:[%s204_s7 + $0x20] sm:$0xff] %v277_v4  ;;  %280 = vst [vmem:[%s204_s7 + $0x28] sm:$0xff] %v279_v5  ;;  %v281_v6 = vld [vmem:[%s1107_s6 + $0x60] sm:$0xff]  ;;  %v283_v7 = vld [vmem:[%s1107_s6 + $0x70] sm:$0xff] }
  0x17   : > { %v285_v8 = vld [vmem:[%s1107_s6 + $0x80] sm:$0xff]  ;;  %282 = vst [vmem:[%s204_s7 + $0x30] sm:$0xff] %v281_v6  ;;  %284 = vst [vmem:[%s204_s7 + $0x38] sm:$0xff] %v283_v7  ;;  %v287_v9 = vld [vmem:[%s1107_s6 + $0x90] sm:$0xff] }
  0x18   : > { %286 = vst [vmem:[%s204_s7 + $0x40] sm:$0xff] %v285_v8  ;;  %v289_v10 = vld [vmem:[%s1107_s6 + $0xa0] sm:$0xff]  ;;  %v291_v11 = vld [vmem:[%s1107_s6 + $0xb0] sm:$0xff]  ;;  %288 = vst [vmem:[%s204_s7 + $0x48] sm:$0xff] %v287_v9 }
  0x19   : > { %290 = vst [vmem:[%s204_s7 + $0x50] sm:$0xff] %v289_v10  ;;  %292 = vst [vmem:[%s204_s7 + $0x58] sm:$0xff] %v291_v11  ;;  %v293_v12 = vld [vmem:[%s1107_s6 + $0xc0] sm:$0xff]  ;;  %v295_v13 = vld [vmem:[%s1107_s6 + $0xd0] sm:$0xff] }
  0x1a   : > { %v297_v14 = vld [vmem:[%s1107_s6 + $0xe0] sm:$0xff]  ;;  %294 = vst [vmem:[%s204_s7 + $0x60] sm:$0xff] %v293_v12  ;;  %296 = vst [vmem:[%s204_s7 + $0x68] sm:$0xff] %v295_v13  ;;  %v299_v15 = vld [vmem:[%s1107_s6 + $0xf0] sm:$0xff] }
  0x1b   : > { %298 = vst [vmem:[%s204_s7 + $0x70] sm:$0xff] %v297_v14  ;;  %300 = vst [vmem:[%s204_s7 + $0x78] sm:$0xff] %v299_v15 }
  0x1c PF: > { %314 = sbr.rel (!%p1085_p3) target bundleno = 36 (0x24), region = 66  ;;  %s316_s8 = sand.u32 (%p1085_p3), 1, %s1013_s16  }
  0x1d   : > { %s902_s9 = sshll.u32 (%p1085_p3), %s1021_s18, 4  ;;  %s870_s10 = sshll.u32 (%p1085_p3), %s316_s8, 6 }
  0x1e   : > { %s324_s13 = scalar_lea.vmem (%p1085_p3), %s1213_s3, %s902_s9  ;;  %s318_s14 = scalar_lea.vmem (%p1085_p3), [#allocation4], %s870_s10 }
  0x1f   : > { %v337_v16 = vld [vmem:[%s324_s13] sm:$0xff] (%p1085_p3)  ;;  %v339_v17 = vld [vmem:[%s324_s13 + $0x8] sm:$0xff] (%p1085_p3) }
  0x20   : > { %v341_v18 = vld [vmem:[%s324_s13 + $0x20] sm:$0xff] (%p1085_p3)  ;;  %338 = vst [vmem:[%s318_s14] sm:$0xff] (%p1085_p3), %v337_v16  ;;  %340 = vst [vmem:[%s318_s14 + $0x8] sm:$0xff] (%p1085_p3), %v339_v17  ;;  %v343_v19 = vld [vmem:[%s324_s13 + $0x28] sm:$0xff] (%p1085_p3) }
  0x21   : > { %342 = vst [vmem:[%s318_s14 + $0x10] sm:$0xff] %v341_v18  ;;  %v345_v20 = vld [vmem:[%s324_s13 + $0x40] sm:$0xff]  ;;  %v347_v21 = vld [vmem:[%s324_s13 + $0x48] sm:$0xff]  ;;  %344 = vst [vmem:[%s318_s14 + $0x18] sm:$0xff] %v343_v19 }
  0x22   : > { %346 = vst [vmem:[%s318_s14 + $0x20] sm:$0xff] %v345_v20  ;;  %348 = vst [vmem:[%s318_s14 + $0x28] sm:$0xff] %v347_v21  ;;  %v349_v22 = vld [vmem:[%s324_s13 + $0x60] sm:$0xff]  ;;  %v351_v23 = vld [vmem:[%s324_s13 + $0x68] sm:$0xff] }
  0x23   : > { %350 = vst [vmem:[%s318_s14 + $0x30] sm:$0xff] %v349_v22  ;;  %352 = vst [vmem:[%s318_s14 + $0x38] sm:$0xff] %v351_v23 }
  0x24 PF: > { %p873_p8 = scmp.ge.s32.totalorder %s1025_s19, 1  ;;  %p357_p9 = scmp.lt.s32.totalorder %s1025_s19, 3 }
  0x26   : > { %p358_p10 = pnand %p873_p8, %p357_p9 }
  0x27   : > { %s364_s21 = sand.u32 (!%p358_p10), 1, %s1009_s15   ;;  %s877_s30 = sshll.u32 (!%p358_p10), %s1017_s17, 1 }
  0x28   : > { %361 = sbr.rel (%p358_p10) target bundleno = 294 (0x126), region = 89  ;;  %s874_s22 = sshll.u32 (!%p358_p10), %s364_s21, 7 }
  0x29   : > { %s1137_s23 = scalar_lea.vmem (!%p358_p10), [#allocation3], %s874_s22  ;;  %p423_p11 = scmp.lt.s32.totalorder (!%p358_p10), %s877_s30, 3 }
  0x2a   : > { %s1167_s8 = sshll.u32 (!%p358_p10), %s364_s21, 6 }
  0x2b   : > { %s373_s9 = scalar_lea.vmem (!%p358_p10), [#allocation4], %s1167_s8  ;;  %s1171_s15 = scalar_lea.vmem (!%p358_p10), [#allocation5], %s1167_s8 }
  0x2d   : > { %v1027_v24 = vmov 0   ;;  %v961_v25 = vld [vmem:[%s1137_s23 + $0x74] ss:$8 sps:$4 sm:$0xff]   ;;  %v963_v26 = vld [vmem:[%s1137_s23 + $0x70] ss:$8 sps:$4 sm:$0xff]   ;;  %v985_v41 = vld [vmem:[%s1210_s0] sm:$0xff]   ;;  %v646_v43 = vlaneseq }
  0x2e   : > { %596 = vmatprep.mubr.bf16.mxu0 %v1027_v24  ;;  %606 = vmatprep.mubr.bf16.mxu1 %v1027_v24  ;;  %v964_v27 = vld [vmem:[%s1137_s23 + $0x64] ss:$8 sps:$4 sm:$0xff]   ;;  %v966_v28 = vld [vmem:[%s1137_s23 + $0x60] ss:$8 sps:$4 sm:$0xff]   ;;  %v967_v29 = vld [vmem:[%s1137_s23 + $0x54] ss:$8 sps:$4 sm:$0xff]  }
  0x2f   : > { %564 = vmatprep.subr.bf16.mxu0 %v961_v25  ;;  %904 = vmatprep.subr.bf16.mxu1 %v961_v25  ;;  %v969_v30 = vld [vmem:[%s1137_s23 + $0x50] ss:$8 sps:$4 sm:$0xff]   ;;  %v970_v31 = vld [vmem:[%s1137_s23 + $0x44] ss:$8 sps:$4 sm:$0xff]   ;;  %v972_v32 = vld [vmem:[%s1137_s23 + $0x40] ss:$8 sps:$4 sm:$0xff]  }
  0x30   : > { %565 = vmatpush1.bf16.msra.mxu0 %v963_v26  ;;  %912 = vmatpush1.bf16.msra.mxu1 %v963_v26  ;;  %v973_v33 = vld [vmem:[%s1137_s23 + $0x34] ss:$8 sps:$4 sm:$0xff]   ;;  %v975_v34 = vld [vmem:[%s1137_s23 + $0x30] ss:$8 sps:$4 sm:$0xff]   ;;  %v976_v35 = vld [vmem:[%s1137_s23 + $0x24] ss:$8 sps:$4 sm:$0xff]  }
  0x31   : > { %566 = vmatprep.subr.bf16.mxu0 %v964_v27  ;;  %905 = vmatprep.subr.bf16.mxu1 %v964_v27  ;;  %v978_v36 = vld [vmem:[%s1137_s23 + $0x20] ss:$8 sps:$4 sm:$0xff]   ;;  %v979_v37 = vld [vmem:[%s1137_s23 + $0x14] ss:$8 sps:$4 sm:$0xff]   ;;  %v981_v38 = vld [vmem:[%s1137_s23 + $0x10] ss:$8 sps:$4 sm:$0xff]  }
  0x32   : > { %v982_v39 = vld [vmem:[%s1137_s23 + $0x4] ss:$8 sps:$4 sm:$0xff]   ;;  %v984_v40 = vld [vmem:[%s1137_s23] ss:$8 sps:$4 sm:$0xff]   ;;  %s1224_s30 = smov (!%p423_p11, %s877_s30), 3  ;;  %v647_v44 = vshrl.u32 %v646_v43, 7 }
  0x33   : > { %v986_v42 = vld [vmem:[%s1210_s0 + $0x8] sm:$0xff]   ;;  %s425_s7 = scalar_lea.vmem %s1212_s2, %s1224_s30  ;;  %v664_v51 = vld [vmem:[%s373_s9] sm:$0xff]  ;;  %v666_v6 = vld [vmem:[%s373_s9 + $0x10] sm:$0xff]  ;;  %s903_s10 = sshll.u32 (%p1092_p6), %s1017_s17, 4 }
  0x34   : > { %567 = vmatpush1.bf16.msra.mxu0 %v966_v28  ;;  %913 = vmatpush1.bf16.msra.mxu1 %v966_v28  ;;  %v648_v45 = vsub.s32 0, %v647_v44  ;;  %v644_v46 = vld [vmem:[%s425_s7] sm:$0x3]  ;;  %v652_v47 = vsub.s32 1, %v647_v44  ;;  %v665_v57 = vld [vmem:[%s373_s9 + $0x8] sm:$0xff]  ;;  %v670_v7 = vld [vmem:[%s373_s9 + $0x30] sm:$0xff]  ;;  %s708_s13 = scalar_lea.vmem (%p1092_p6), %s1214_s4, %s903_s10 }
  0x35   : > { %568 = vmatprep.subr.bf16.mxu0 %v967_v29  ;;  %906 = vmatprep.subr.bf16.mxu1 %v967_v29  ;;  %v668_v53 = vld [vmem:[%s373_s9 + $0x20] sm:$0xff]  ;;  %v669_v59 = vld [vmem:[%s373_s9 + $0x28] sm:$0xff]  ;;  %v667_v11 = vld [vmem:[%s373_s9 + $0x18] sm:$0xff] }
  0x36   : > { %v649_v48 = vrot.slane %v644_v46, %v648_v45  ;;  %v653_v49 = vrot.slane %v644_v46, %v652_v47  ;;  %v671_v13 = vld [vmem:[%s373_s9 + $0x38] sm:$0xff] }
  0x38   : > { %569 = vmatpush1.bf16.msra.mxu0 %v969_v30  ;;  %914 = vmatpush1.bf16.msra.mxu1 %v969_v30 }
  0x39   : > { %570 = vmatprep.subr.bf16.mxu0 %v970_v31  ;;  %907 = vmatprep.subr.bf16.mxu1 %v970_v31 }
  0x3c   : > { %571 = vmatpush1.bf16.msra.mxu0 %v972_v32  ;;  %915 = vmatpush1.bf16.msra.mxu1 %v972_v32 }
  0x3d   : > { %572 = vmatprep.subr.bf16.mxu0 %v973_v33  ;;  %908 = vmatprep.subr.bf16.mxu1 %v973_v33 }
  0x40   : > { %573 = vmatpush1.bf16.msra.mxu0 %v975_v34  ;;  %916 = vmatpush1.bf16.msra.mxu1 %v975_v34 }
  0x41   : > { %574 = vmatprep.subr.bf16.mxu0 %v976_v35  ;;  %909 = vmatprep.subr.bf16.mxu1 %v976_v35 }
  0x44   : > { %575 = vmatpush1.bf16.msra.mxu0 %v978_v36  ;;  %917 = vmatpush1.bf16.msra.mxu1 %v978_v36 }
  0x45   : > { %576 = vmatprep.subr.bf16.mxu0 %v979_v37  ;;  %910 = vmatprep.subr.bf16.mxu1 %v979_v37 }
  0x48   : > { %577 = vmatpush1.bf16.msra.mxu0 %v981_v38  ;;  %918 = vmatpush1.bf16.msra.mxu1 %v981_v38 }
  0x49   : > { %578 = vmatprep.subr.bf16.mxu0 %v982_v39  ;;  %911 = vmatprep.subr.bf16.mxu1 %v982_v39 }
  0x4c   : > { %579 = vmatpush1.bf16.msra.mxu0 %v984_v40  ;;  %919 = vmatpush1.bf16.msra.mxu1 %v984_v40 }
  0x4f   : > { %597 = vmatmul.mubr.bf16.vlgmr.msra.gmra.mxu0 %v985_v41  ;;  %607 = vmatmul.mubr.bf16.vlgmr.msra.gmra.mxu1 %v986_v42 }
 0x10f   : > { %v598_v50 = vpop.f32.mrf.mxu0  ;;  %v608_v52 = vpop.f32.mrf.mxu1 }
 0x110   : > { %v656_v54 = vadd.f32 %v649_v48, %v598_v50  ;;  %v660_v55 = vadd.f32 %v649_v48, %v608_v52 }
 0x111   : > { %v600_v56 = vpop.f32.mrf.mxu0  ;;  %v610_v58 = vpop.f32.mrf.mxu1 }
 0x112   : > { %v672_v60 = vadd.f32 %v664_v51, %v656_v54  ;;  %v676_v61 = vadd.f32 %v668_v53, %v660_v55  ;;  %v657_v62 = vadd.f32 %v653_v49, %v600_v56  ;;  %v661_v63 = vadd.f32 %v653_v49, %v610_v58 }
 0x113   : > { %v602_v0 = vpop.f32.mrf.mxu0  ;;  %v612_v1 = vpop.f32.mrf.mxu1 }
 0x114   : > { %v680_v2 = vmax.f32 %v672_v60, 0.0  ;;  %v684_v3 = vmax.f32 %v676_v61, 0.0  ;;  %v673_v4 = vadd.f32 %v665_v57, %v657_v62  ;;  %v677_v5 = vadd.f32 %v669_v59, %v661_v63 }
 0x115   : > { %v658_v8 = vadd.f32 %v649_v48, %v602_v0  ;;  %v662_v9 = vadd.f32 %v649_v48, %v612_v1  ;;  %v604_v10 = vpop.f32.mrf.mxu0  ;;  %v614_v12 = vpop.f32.mrf.mxu1 }
 0x116   : > { %688 = vst [vmem:[%s1171_s15] sm:$0xff] %v680_v2  ;;  %692 = vst [vmem:[%s1171_s15 + $0x20] sm:$0xff] %v684_v3  ;;  %v681_v14 = vmax.f32 %v673_v4, 0.0  ;;  %v685_v15 = vmax.f32 %v677_v5, 0.0  ;;  %v659_v16 = vadd.f32 %v653_v49, %v604_v10  ;;  %v663_v17 = vadd.f32 %v653_v49, %v614_v12 }
 0x117   : > { %v674_v18 = vadd.f32 %v666_v6, %v658_v8  ;;  %v678_v19 = vadd.f32 %v670_v7, %v662_v9 }
 0x118   : > { %689 = vst [vmem:[%s1171_s15 + $0x8] sm:$0xff] %v681_v14  ;;  %693 = vst [vmem:[%s1171_s15 + $0x28] sm:$0xff] %v685_v15  ;;  %v675_v20 = vadd.f32 %v667_v11, %v659_v16  ;;  %v679_v21 = vadd.f32 %v671_v13, %v663_v17  ;;  %702 = sbr.rel (!%p1092_p6) target bundleno = 294 (0x126), region = 109 }
 0x119   : > { %v682_v22 = vmax.f32 %v674_v18, 0.0  ;;  %v686_v23 = vmax.f32 %v678_v19, 0.0 }
 0x11a   : > { %v683_v24 = vmax.f32 %v675_v20, 0.0  ;;  %v687_v25 = vmax.f32 %v679_v21, 0.0 }
 0x11b   : > { %690 = vst [vmem:[%s1171_s15 + $0x10] sm:$0xff] %v682_v22  ;;  %694 = vst [vmem:[%s1171_s15 + $0x30] sm:$0xff] %v686_v23 }
 0x11c   : > { %691 = vst [vmem:[%s1171_s15 + $0x18] sm:$0xff] %v683_v24  ;;  %695 = vst [vmem:[%s1171_s15 + $0x38] sm:$0xff] %v687_v25 }
 0x11d   : > { %v721_v26 = vld [vmem:[%s1171_s15] sm:$0xff] }
 0x11e   : > { %v729_v30 = vld [vmem:[%s1171_s15 + $0x20] sm:$0xff]  ;;  %722 = vst [vmem:[%s708_s13] sm:$0xff] %v721_v26 }
 0x11f   : > { %v723_v27 = vld [vmem:[%s1171_s15 + $0x8] sm:$0xff]  ;;  %730 = vst [vmem:[%s708_s13 + $0x40] sm:$0xff] %v729_v30 }
 0x120   : > { %v731_v31 = vld [vmem:[%s1171_s15 + $0x28] sm:$0xff]  ;;  %724 = vst [vmem:[%s708_s13 + $0x8] sm:$0xff] %v723_v27 }
 0x121   : > { %732 = vst [vmem:[%s708_s13 + $0x48] sm:$0xff] %v731_v31 }
 0x122   : > { %v725_v28 = vld [vmem:[%s1171_s15 + $0x10] sm:$0xff] }
 0x123   : > { %v727_v29 = vld [vmem:[%s1171_s15 + $0x18] sm:$0xff]  ;;  %726 = vst [vmem:[%s708_s13 + $0x20] sm:$0xff] %v725_v28  ;;  %v733_v32 = vld [vmem:[%s1171_s15 + $0x30] sm:$0xff] }
 0x124   : > { %728 = vst [vmem:[%s708_s13 + $0x28] sm:$0xff] %v727_v29  ;;  %v735_v33 = vld [vmem:[%s1171_s15 + $0x38] sm:$0xff]  ;;  %734 = vst [vmem:[%s708_s13 + $0x60] sm:$0xff] %v733_v32 }
 0x125   : > { %736 = vst [vmem:[%s708_s13 + $0x68] sm:$0xff] %v735_v33 }
 0x126 PF: > { %s14_s19 = sadd.s32 1, %s1025_s19   ;;  %s1217_s15 = smov %s1013_s16 }
 0x127   : > { %p11_p12 = scmp.ge.s32.totalorder %s14_s19, 4   ;;  %s1218_s16 = smov %s1097_s26 }
 0x128   : > { %s1219_s17 = smov %s1021_s18  ;;  %s1220_s18 = smov %s1222_s20 }
 0x129   :  { %13 = sbr.rel (!%p11_p12) target bundleno = 3 (0x3), region = 177 }

// kernel: mammography_forward.70
= control target key start
LH: loop header
LB: loop body
LE: loop exit
PB: predicated region body
PF: predicated region fallthrough
CT: control target
= control target key end

     0   :  { %s763_s1 = inlined_call_operand.vmem [shape: bf16[512,128], index: 1, kind: input, shape index: {}]   ;;  %s764_s0 = inlined_call_operand.vmem [shape: bf16[32,512], index: 0, kind: input, shape index: {}]   ;;  %s765_s2 = inlined_call_operand.vmem [shape: f32[1,128], index: 2, kind: input, shape index: {}]   ;;  %s766_s3 = inlined_call_operand.vmem [shape: f32[32,128], index: 3, kind: output, shape index: {}]  }
   0x1   :  { %v564_v0 = vld [vmem:[%s763_s1 + $0x78] sm:$0xff]   ;;  %v568_v4 = vld [vmem:[%s763_s1 + $0x70] sm:$0xff]   ;;  %v572_v8 = vld [vmem:[%s763_s1 + $0x68] sm:$0xff]  }
   0x2   :  { %v565_v1 = vld [vmem:[%s763_s1 + $0xf8] sm:$0xff]   ;;  %508 = vmatprep.subr.bf16.mxu0 %v564_v0  ;;  %v569_v5 = vld [vmem:[%s763_s1 + $0xf0] sm:$0xff]   ;;  %v573_v9 = vld [vmem:[%s763_s1 + $0xe8] sm:$0xff]  }
   0x3   :  { %v566_v2 = vld [vmem:[%s763_s1 + $0x38] sm:$0xff]   ;;  %536 = vmatprep.subr.bf16.mxu1 %v565_v1  ;;  %v570_v6 = vld [vmem:[%s763_s1 + $0x30] sm:$0xff]   ;;  %v574_v10 = vld [vmem:[%s763_s1 + $0x28] sm:$0xff]  }
   0x4   :  { %v567_v3 = vld [vmem:[%s763_s1 + $0xb8] sm:$0xff]   ;;  %509 = vmatpush3.bf16.msra.mxu0 %v566_v2  ;;  %v571_v7 = vld [vmem:[%s763_s1 + $0xb0] sm:$0xff]   ;;  %v575_v11 = vld [vmem:[%s763_s1 + $0xa8] sm:$0xff]  }
   0x5   :  { %537 = vmatpush3.bf16.msra.mxu1 %v567_v3  ;;  %510 = vmatprep.subr.bf16.mxu0 %v568_v4  ;;  %v576_v12 = vld [vmem:[%s763_s1 + $0x60] sm:$0xff]   ;;  %v580_v16 = vld [vmem:[%s763_s1 + $0x58] sm:$0xff]   ;;  %v584_v20 = vld [vmem:[%s763_s1 + $0x50] sm:$0xff]  }
   0x6   :  { %538 = vmatprep.subr.bf16.mxu1 %v569_v5  ;;  %v577_v13 = vld [vmem:[%s763_s1 + $0xe0] sm:$0xff]   ;;  %v581_v17 = vld [vmem:[%s763_s1 + $0xd8] sm:$0xff]   ;;  %v585_v21 = vld [vmem:[%s763_s1 + $0xd0] sm:$0xff]  }
   0x7   :  { %v578_v14 = vld [vmem:[%s763_s1 + $0x20] sm:$0xff]   ;;  %v582_v18 = vld [vmem:[%s763_s1 + $0x18] sm:$0xff]   ;;  %v586_v22 = vld [vmem:[%s763_s1 + $0x10] sm:$0xff]  }
   0x8   :  { %511 = vmatpush3.bf16.msra.mxu0 %v570_v6  ;;  %v579_v15 = vld [vmem:[%s763_s1 + $0xa0] sm:$0xff]   ;;  %v583_v19 = vld [vmem:[%s763_s1 + $0x98] sm:$0xff]   ;;  %v587_v23 = vld [vmem:[%s763_s1 + $0x90] sm:$0xff]  }
   0x9   :  { %539 = vmatpush3.bf16.msra.mxu1 %v571_v7  ;;  %512 = vmatprep.subr.bf16.mxu0 %v572_v8  ;;  %v588_v24 = vld [vmem:[%s763_s1 + $0x48] sm:$0xff]   ;;  %v592_v28 = vld [vmem:[%s763_s1 + $0x40] sm:$0xff]  }
   0xa   :  { %540 = vmatprep.subr.bf16.mxu1 %v573_v9  ;;  %v589_v25 = vld [vmem:[%s763_s1 + $0xc8] sm:$0xff]   ;;  %v593_v29 = vld [vmem:[%s763_s1 + $0xc0] sm:$0xff]  }
   0xb   :  { %v590_v26 = vld [vmem:[%s763_s1 + $0x8] sm:$0xff]   ;;  %v594_v30 = vld [vmem:[%s763_s1] sm:$0xff]  }
   0xc   :  { %513 = vmatpush3.bf16.msra.mxu0 %v574_v10  ;;  %v591_v27 = vld [vmem:[%s763_s1 + $0x88] sm:$0xff]   ;;  %v595_v31 = vld [vmem:[%s763_s1 + $0x80] sm:$0xff]  }
   0xd   :  { %541 = vmatpush3.bf16.msra.mxu1 %v575_v11  ;;  %514 = vmatprep.subr.bf16.mxu0 %v576_v12  ;;  %v596_v32 = vld [vmem:[%s764_s0] ss:$16 sps:$4 sm:$0xff]   ;;  %v598_v33 = vld [vmem:[%s764_s0 + $0x4] ss:$16 sps:$4 sm:$0xff]   ;;  %v599_v34 = vld [vmem:[%s764_s0 + $0x8] ss:$16 sps:$4 sm:$0xff]  }
   0xe   :  { %542 = vmatprep.subr.bf16.mxu1 %v577_v13  ;;  %v601_v35 = vld [vmem:[%s764_s0 + $0xc] ss:$16 sps:$4 sm:$0xff]   ;;  %363 = vmatprep.mubr.bf16.mxu0 %v598_v33  ;;  %v602_v36 = vld [vmem:[%s764_s0 + $0x24] ss:$16 sps:$4 sm:$0xff]   ;;  %v606_v38 = vld [vmem:[%s764_s0 + $0x20] ss:$16 sps:$4 sm:$0xff]  }
   0xf   :  { %412 = vmatprep.mubr.bf16.mxu1 %v601_v35  ;;  %v604_v37 = vld [vmem:[%s764_s0 + $0x2c] ss:$16 sps:$4 sm:$0xff]   ;;  %v607_v39 = vld [vmem:[%s764_s0 + $0x28] ss:$16 sps:$4 sm:$0xff]   ;;  %v507_v47 = vld [vmem:[%s765_s2] ss:$0 sm:$0xff] }
  0x10   :  { %515 = vmatpush3.bf16.msra.mxu0 %v578_v14 }
  0x11   :  { %543 = vmatpush3.bf16.msra.mxu1 %v579_v15  ;;  %516 = vmatprep.subr.bf16.mxu0 %v580_v16 }
  0x12   :  { %544 = vmatprep.subr.bf16.mxu1 %v581_v17 }
  0x14   :  { %517 = vmatpush3.bf16.msra.mxu0 %v582_v18 }
  0x15   :  { %545 = vmatpush3.bf16.msra.mxu1 %v583_v19  ;;  %518 = vmatprep.subr.bf16.mxu0 %v584_v20 }
  0x16   :  { %546 = vmatprep.subr.bf16.mxu1 %v585_v21 }
  0x18   :  { %519 = vmatpush3.bf16.msra.mxu0 %v586_v22 }
  0x19   :  { %547 = vmatpush3.bf16.msra.mxu1 %v587_v23  ;;  %520 = vmatprep.subr.bf16.mxu0 %v588_v24 }
  0x1a   :  { %548 = vmatprep.subr.bf16.mxu1 %v589_v25 }
  0x1c   :  { %521 = vmatpush3.bf16.msra.mxu0 %v590_v26 }
  0x1d   :  { %549 = vmatpush3.bf16.msra.mxu1 %v591_v27  ;;  %522 = vmatprep.subr.bf16.mxu0 %v592_v28 }
  0x1e   :  { %550 = vmatprep.subr.bf16.mxu1 %v593_v29 }
  0x20   :  { %523 = vmatpush3.bf16.msra.mxu0 %v594_v30 }
  0x21   :  { %551 = vmatpush3.bf16.msra.mxu1 %v595_v31 }
  0x23   :  { %364 = vmatmul.mubr.bf16.vlgmr.msra.gmra.mxu0 %v596_v32 }
  0x24   :  { %413 = vmatmul.mubr.bf16.vlgmr.msra.gmra.mxu1 %v599_v34  ;;  %371 = vmatprep.mubr.bf16.mxu0 %v602_v36 }
  0x25   :  { %420 = vmatprep.mubr.bf16.mxu1 %v604_v37 }
  0x2b   :  { %372 = vmatmul.mubr.bf16.gmra.mxu0 %v606_v38 }
  0x2c   :  { %421 = vmatmul.mubr.bf16.gmra.mxu1 %v607_v39 }
  0xe3   :  { %v524_v40 = vpop.f32.mrf.mxu0 }
  0xe4   :  { %v552_v41 = vpop.f32.mrf.mxu1 }
  0xe5   :  { %v525_v42 = vpop.f32.mrf.mxu0 }
  0xe6   :  { %v526_v43 = vadd.f32 %v525_v42, %v524_v40  ;;  %v553_v44 = vpop.f32.mrf.mxu1 }
  0xe7   :  { %v554_v45 = vadd.f32 %v553_v44, %v552_v41  ;;  %v527_v46 = vpop.f32.mrf.mxu0 }
  0xe8   :  { %v555_v48 = vpop.f32.mrf.mxu1 }
  0xe9   :  { %v415_v49 = vadd.f32 %v554_v45, %v526_v43  ;;  %v528_v50 = vpop.f32.mrf.mxu0 }
  0xea   :  { %v529_v51 = vadd.f32 %v528_v50, %v527_v46  ;;  %v556_v52 = vpop.f32.mrf.mxu1 }
  0xeb   :  { %v451_v53 = vadd.f32 %v507_v47, %v415_v49  ;;  %v557_v54 = vadd.f32 %v556_v52, %v555_v48  ;;  %v530_v55 = vpop.f32.mrf.mxu0 }
  0xec   :  { %v558_v56 = vpop.f32.mrf.mxu1 }
  0xed   :  { %v455_v57 = vmax.f32 %v451_v53, 0.0  ;;  %v418_v58 = vadd.f32 %v557_v54, %v529_v51  ;;  %v531_v59 = vpop.f32.mrf.mxu0 }
  0xee   :  { %v532_v60 = vadd.f32 %v531_v59, %v530_v55  ;;  %v559_v61 = vpop.f32.mrf.mxu1 }
  0xef   :  { %459 = vst [vmem:[%s766_s3] sm:$0xff] %v455_v57  ;;  %v452_v62 = vadd.f32 %v507_v47, %v418_v58  ;;  %v560_v63 = vadd.f32 %v559_v61, %v558_v56  ;;  %v533_v0 = vpop.f32.mrf.mxu0 }
  0xf0   :  { %v561_v1 = vpop.f32.mrf.mxu1 }
  0xf1   :  { %v456_v2 = vmax.f32 %v452_v62, 0.0  ;;  %v423_v3 = vadd.f32 %v560_v63, %v532_v60  ;;  %v534_v4 = vpop.f32.mrf.mxu0 }
  0xf2   :  { %v535_v5 = vadd.f32 %v534_v4, %v533_v0  ;;  %v562_v6 = vpop.f32.mrf.mxu1 }
  0xf3   :  { %460 = vst [vmem:[%s766_s3 + $0x8] sm:$0xff] %v456_v2  ;;  %v453_v7 = vadd.f32 %v507_v47, %v423_v3  ;;  %v563_v8 = vadd.f32 %v562_v6, %v561_v1 }
  0xf5   :  { %v457_v9 = vmax.f32 %v453_v7, 0.0  ;;  %v426_v10 = vadd.f32 %v563_v8, %v535_v5 }
  0xf7   :  { %461 = vst [vmem:[%s766_s3 + $0x10] sm:$0xff] %v457_v9  ;;  %v454_v11 = vadd.f32 %v507_v47, %v426_v10 }
  0xf9   :  { %v458_v12 = vmax.f32 %v454_v11, 0.0 }
  0xfb   :  { %462 = vst [vmem:[%s766_s3 + $0x18] sm:$0xff] %v458_v12 }

// kernel: mammography_forward.80
= control target key start
LH: loop header
LB: loop body
LE: loop exit
PB: predicated region body
PF: predicated region fallthrough
CT: control target
= control target key end

     0   :  { %s1082_s1 = inlined_call_operand.vmem [shape: bf16[512,256], index: 1, kind: input, shape index: {}]   ;;  %s1083_s0 = inlined_call_operand.vmem [shape: bf16[32,512], index: 0, kind: input, shape index: {}]   ;;  %s1084_s2 = inlined_call_operand.vmem [shape: f32[1,256], index: 2, kind: input, shape index: {}]   ;;  %s1085_s3 = inlined_call_operand.vmem [shape: f32[32,256], index: 3, kind: output, shape index: {}]  }
   0x1   :  { %v711_v0 = vld [vmem:[%s1082_s1 + $0x74] ss:$8 sps:$4 sm:$0xff]   ;;  %v715_v2 = vld [vmem:[%s1082_s1 + $0x70] ss:$8 sps:$4 sm:$0xff]   ;;  %v717_v4 = vld [vmem:[%s1082_s1 + $0x64] ss:$8 sps:$4 sm:$0xff]  }
   0x2   :  { %v713_v1 = vld [vmem:[%s1082_s1 + $0x174] ss:$8 sps:$4 sm:$0xff]   ;;  %466 = vmatprep.subr.bf16.mxu0 %v711_v0  ;;  %v716_v3 = vld [vmem:[%s1082_s1 + $0x170] ss:$8 sps:$4 sm:$0xff]   ;;  %v719_v5 = vld [vmem:[%s1082_s1 + $0x164] ss:$8 sps:$4 sm:$0xff]  }
   0x3   :  { %519 = vmatprep.subr.bf16.mxu1 %v713_v1  ;;  %467 = vmatpush1.bf16.msra.mxu0 %v715_v2  ;;  %v721_v6 = vld [vmem:[%s1082_s1 + $0x60] ss:$8 sps:$4 sm:$0xff]   ;;  %v723_v8 = vld [vmem:[%s1082_s1 + $0x54] ss:$8 sps:$4 sm:$0xff]   ;;  %v727_v10 = vld [vmem:[%s1082_s1 + $0x50] ss:$8 sps:$4 sm:$0xff]  }
   0x4   :  { %520 = vmatpush1.bf16.msra.mxu1 %v716_v3  ;;  %468 = vmatprep.subr.bf16.mxu0 %v717_v4  ;;  %v722_v7 = vld [vmem:[%s1082_s1 + $0x160] ss:$8 sps:$4 sm:$0xff]   ;;  %v725_v9 = vld [vmem:[%s1082_s1 + $0x154] ss:$8 sps:$4 sm:$0xff]   ;;  %v728_v11 = vld [vmem:[%s1082_s1 + $0x150] ss:$8 sps:$4 sm:$0xff]  }
   0x5   :  { %521 = vmatprep.subr.bf16.mxu1 %v719_v5  ;;  %v729_v12 = vld [vmem:[%s1082_s1 + $0x44] ss:$8 sps:$4 sm:$0xff]   ;;  %v733_v14 = vld [vmem:[%s1082_s1 + $0x40] ss:$8 sps:$4 sm:$0xff]   ;;  %v735_v16 = vld [vmem:[%s1082_s1 + $0x34] ss:$8 sps:$4 sm:$0xff]  }
   0x6   :  { %v731_v13 = vld [vmem:[%s1082_s1 + $0x144] ss:$8 sps:$4 sm:$0xff]   ;;  %v734_v15 = vld [vmem:[%s1082_s1 + $0x140] ss:$8 sps:$4 sm:$0xff]   ;;  %v737_v17 = vld [vmem:[%s1082_s1 + $0x134] ss:$8 sps:$4 sm:$0xff]  }
   0x7   :  { %469 = vmatpush1.bf16.msra.mxu0 %v721_v6  ;;  %v739_v18 = vld [vmem:[%s1082_s1 + $0x30] ss:$8 sps:$4 sm:$0xff]   ;;  %v741_v20 = vld [vmem:[%s1082_s1 + $0x24] ss:$8 sps:$4 sm:$0xff]   ;;  %v745_v22 = vld [vmem:[%s1082_s1 + $0x20] ss:$8 sps:$4 sm:$0xff]  }
   0x8   :  { %522 = vmatpush1.bf16.msra.mxu1 %v722_v7  ;;  %470 = vmatprep.subr.bf16.mxu0 %v723_v8  ;;  %v740_v19 = vld [vmem:[%s1082_s1 + $0x130] ss:$8 sps:$4 sm:$0xff]   ;;  %v743_v21 = vld [vmem:[%s1082_s1 + $0x124] ss:$8 sps:$4 sm:$0xff]   ;;  %v746_v23 = vld [vmem:[%s1082_s1 + $0x120] ss:$8 sps:$4 sm:$0xff]   ;;  %v601_v8 = vlaneseq }
   0x9   :  { %523 = vmatprep.subr.bf16.mxu1 %v725_v9  ;;  %v747_v24 = vld [vmem:[%s1082_s1 + $0x14] ss:$8 sps:$4 sm:$0xff]   ;;  %v751_v26 = vld [vmem:[%s1082_s1 + $0x10] ss:$8 sps:$4 sm:$0xff]   ;;  %v753_v28 = vld [vmem:[%s1082_s1 + $0x4] ss:$8 sps:$4 sm:$0xff]  }
   0xa   :  { %v749_v25 = vld [vmem:[%s1082_s1 + $0x114] ss:$8 sps:$4 sm:$0xff]   ;;  %v752_v27 = vld [vmem:[%s1082_s1 + $0x110] ss:$8 sps:$4 sm:$0xff]   ;;  %v755_v29 = vld [vmem:[%s1082_s1 + $0x104] ss:$8 sps:$4 sm:$0xff]  }
   0xb   :  { %471 = vmatpush1.bf16.msra.mxu0 %v727_v10  ;;  %v757_v30 = vld [vmem:[%s1082_s1] ss:$8 sps:$4 sm:$0xff]   ;;  %v759_v32 = vld [vmem:[%s1082_s1 + $0xf4] ss:$8 sps:$4 sm:$0xff]   ;;  %v763_v34 = vld [vmem:[%s1082_s1 + $0xf0] ss:$8 sps:$4 sm:$0xff]  }
   0xc   :  { %524 = vmatpush1.bf16.msra.mxu1 %v728_v11  ;;  %472 = vmatprep.subr.bf16.mxu0 %v729_v12  ;;  %v758_v31 = vld [vmem:[%s1082_s1 + $0x100] ss:$8 sps:$4 sm:$0xff]   ;;  %v761_v33 = vld [vmem:[%s1082_s1 + $0x1f4] ss:$8 sps:$4 sm:$0xff]   ;;  %v764_v35 = vld [vmem:[%s1082_s1 + $0x1f0] ss:$8 sps:$4 sm:$0xff]  }
   0xd   :  { %525 = vmatprep.subr.bf16.mxu1 %v731_v13  ;;  %v765_v36 = vld [vmem:[%s1082_s1 + $0xe4] ss:$8 sps:$4 sm:$0xff]   ;;  %v769_v38 = vld [vmem:[%s1082_s1 + $0xe0] ss:$8 sps:$4 sm:$0xff]   ;;  %v771_v40 = vld [vmem:[%s1082_s1 + $0xd4] ss:$8 sps:$4 sm:$0xff]  }
   0xe   :  { %v767_v37 = vld [vmem:[%s1082_s1 + $0x1e4] ss:$8 sps:$4 sm:$0xff]   ;;  %v770_v39 = vld [vmem:[%s1082_s1 + $0x1e0] ss:$8 sps:$4 sm:$0xff]   ;;  %v773_v41 = vld [vmem:[%s1082_s1 + $0x1d4] ss:$8 sps:$4 sm:$0xff]  }
   0xf   :  { %473 = vmatpush1.bf16.msra.mxu0 %v733_v14  ;;  %v775_v42 = vld [vmem:[%s1082_s1 + $0xd0] ss:$8 sps:$4 sm:$0xff]   ;;  %v777_v44 = vld [vmem:[%s1082_s1 + $0xc4] ss:$8 sps:$4 sm:$0xff]   ;;  %v781_v46 = vld [vmem:[%s1082_s1 + $0xc0] ss:$8 sps:$4 sm:$0xff]  }
  0x10   :  { %526 = vmatpush1.bf16.msra.mxu1 %v734_v15  ;;  %474 = vmatprep.subr.bf16.mxu0 %v735_v16  ;;  %v776_v43 = vld [vmem:[%s1082_s1 + $0x1d0] ss:$8 sps:$4 sm:$0xff]   ;;  %v779_v45 = vld [vmem:[%s1082_s1 + $0x1c4] ss:$8 sps:$4 sm:$0xff]   ;;  %v782_v47 = vld [vmem:[%s1082_s1 + $0x1c0] ss:$8 sps:$4 sm:$0xff]  }
  0x11   :  { %527 = vmatprep.subr.bf16.mxu1 %v737_v17  ;;  %v783_v48 = vld [vmem:[%s1082_s1 + $0xb4] ss:$8 sps:$4 sm:$0xff]   ;;  %v787_v52 = vld [vmem:[%s1082_s1 + $0xb0] ss:$8 sps:$4 sm:$0xff]   ;;  %v789_v54 = vld [vmem:[%s1082_s1 + $0xa4] ss:$8 sps:$4 sm:$0xff]  }
  0x12   :  { %v809_v49 = vld [vmem:[%s1083_s0 + $0x4] ss:$16 sps:$4 sm:$0xff]   ;;  %v812_v51 = vld [vmem:[%s1083_s0 + $0xc] ss:$16 sps:$4 sm:$0xff]   ;;  %v788_v53 = vld [vmem:[%s1082_s1 + $0x1b0] ss:$8 sps:$4 sm:$0xff]  }
  0x13   :  { %475 = vmatpush1.bf16.msra.mxu0 %v739_v18  ;;  %v785_v50 = vld [vmem:[%s1082_s1 + $0x1b4] ss:$8 sps:$4 sm:$0xff]   ;;  %498 = vmatprep.mubr.bf16.mxu0 %v809_v49  ;;  %v791_v55 = vld [vmem:[%s1082_s1 + $0x1a4] ss:$8 sps:$4 sm:$0xff]   ;;  %v793_v56 = vld [vmem:[%s1082_s1 + $0xa0] ss:$8 sps:$4 sm:$0xff]  }
  0x14   :  { %528 = vmatpush1.bf16.msra.mxu1 %v740_v19  ;;  %476 = vmatprep.subr.bf16.mxu0 %v741_v20  ;;  %v794_v57 = vld [vmem:[%s1082_s1 + $0x1a0] ss:$8 sps:$4 sm:$0xff]   ;;  %v795_v58 = vld [vmem:[%s1082_s1 + $0x94] ss:$8 sps:$4 sm:$0xff]   ;;  %v799_v60 = vld [vmem:[%s1082_s1 + $0x90] ss:$8 sps:$4 sm:$0xff]  }
  0x15   :  { %529 = vmatprep.subr.bf16.mxu1 %v743_v21  ;;  %551 = vmatprep.mubr.bf16.mxu1 %v812_v51  ;;  %v797_v59 = vld [vmem:[%s1082_s1 + $0x194] ss:$8 sps:$4 sm:$0xff]   ;;  %v800_v61 = vld [vmem:[%s1082_s1 + $0x190] ss:$8 sps:$4 sm:$0xff]   ;;  %v801_v62 = vld [vmem:[%s1082_s1 + $0x84] ss:$8 sps:$4 sm:$0xff]  }
  0x16   :  { %v803_v63 = vld [vmem:[%s1082_s1 + $0x184] ss:$8 sps:$4 sm:$0xff]   ;;  %v805_v0 = vld [vmem:[%s1082_s1 + $0x80] ss:$8 sps:$4 sm:$0xff]   ;;  %v602_v9 = vshrl.u32 %v601_v8, 7 }
  0x17   :  { %477 = vmatpush1.bf16.msra.mxu0 %v745_v22  ;;  %v806_v1 = vld [vmem:[%s1082_s1 + $0x180] ss:$8 sps:$4 sm:$0xff]   ;;  %v813_v4 = vld [vmem:[%s1083_s0 + $0x24] ss:$16 sps:$4 sm:$0xff]   ;;  %v815_v5 = vld [vmem:[%s1083_s0 + $0x2c] ss:$16 sps:$4 sm:$0xff]  }
  0x18   :  { %530 = vmatpush1.bf16.msra.mxu1 %v746_v23  ;;  %478 = vmatprep.subr.bf16.mxu0 %v747_v24  ;;  %v807_v2 = vld [vmem:[%s1083_s0] ss:$16 sps:$4 sm:$0xff]   ;;  %v810_v3 = vld [vmem:[%s1083_s0 + $0x8] ss:$16 sps:$4 sm:$0xff]   ;;  %v603_v10 = vsub.s32 0, %v602_v9  ;;  %v607_v12 = vsub.s32 1, %v602_v9 }
  0x19   :  { %531 = vmatprep.subr.bf16.mxu1 %v749_v25  ;;  %v817_v6 = vld [vmem:[%s1083_s0 + $0x20] ss:$16 sps:$4 sm:$0xff]   ;;  %v818_v7 = vld [vmem:[%s1083_s0 + $0x28] ss:$16 sps:$4 sm:$0xff]  }
  0x1a   :  { %v599_v11 = vld [vmem:[%s1084_s2] sm:$0x3] }
  0x1b   :  { %479 = vmatpush1.bf16.msra.mxu0 %v751_v26  ;;  %v604_v13 = vrot.slane %v599_v11, %v603_v10  ;;  %v608_v17 = vrot.slane %v599_v11, %v607_v12 }
  0x1c   :  { %532 = vmatpush1.bf16.msra.mxu1 %v752_v27  ;;  %480 = vmatprep.subr.bf16.mxu0 %v753_v28 }
  0x1d   :  { %533 = vmatprep.subr.bf16.mxu1 %v755_v29 }
  0x1f   :  { %481 = vmatpush1.bf16.msra.mxu0 %v757_v30 }
  0x20   :  { %534 = vmatpush1.bf16.msra.mxu1 %v758_v31  ;;  %482 = vmatprep.subr.bf16.mxu0 %v759_v32 }
  0x21   :  { %535 = vmatprep.subr.bf16.mxu1 %v761_v33 }
  0x23   :  { %483 = vmatpush2.bf16.msra.mxu0 %v763_v34 }
  0x24   :  { %536 = vmatpush2.bf16.msra.mxu1 %v764_v35  ;;  %484 = vmatprep.subr.bf16.mxu0 %v765_v36 }
  0x25   :  { %537 = vmatprep.subr.bf16.mxu1 %v767_v37 }
  0x27   :  { %485 = vmatpush2.bf16.msra.mxu0 %v769_v38 }
  0x28   :  { %538 = vmatpush2.bf16.msra.mxu1 %v770_v39  ;;  %486 = vmatprep.subr.bf16.mxu0 %v771_v40 }
  0x29   :  { %539 = vmatprep.subr.bf16.mxu1 %v773_v41 }
  0x2b   :  { %487 = vmatpush2.bf16.msra.mxu0 %v775_v42 }
  0x2c   :  { %540 = vmatpush2.bf16.msra.mxu1 %v776_v43  ;;  %488 = vmatprep.subr.bf16.mxu0 %v777_v44 }
  0x2d   :  { %541 = vmatprep.subr.bf16.mxu1 %v779_v45 }
  0x2f   :  { %489 = vmatpush2.bf16.msra.mxu0 %v781_v46 }
  0x30   :  { %542 = vmatpush2.bf16.msra.mxu1 %v782_v47  ;;  %490 = vmatprep.subr.bf16.mxu0 %v783_v48 }
  0x31   :  { %543 = vmatprep.subr.bf16.mxu1 %v785_v50 }
  0x33   :  { %491 = vmatpush2.bf16.msra.mxu0 %v787_v52 }
  0x34   :  { %544 = vmatpush2.bf16.msra.mxu1 %v788_v53  ;;  %492 = vmatprep.subr.bf16.mxu0 %v789_v54 }
  0x35   :  { %545 = vmatprep.subr.bf16.mxu1 %v791_v55 }
  0x37   :  { %493 = vmatpush2.bf16.msra.mxu0 %v793_v56 }
  0x38   :  { %546 = vmatpush2.bf16.msra.mxu1 %v794_v57  ;;  %494 = vmatprep.subr.bf16.mxu0 %v795_v58 }
  0x39   :  { %547 = vmatprep.subr.bf16.mxu1 %v797_v59 }
  0x3b   :  { %495 = vmatpush2.bf16.msra.mxu0 %v799_v60 }
  0x3c   :  { %548 = vmatpush2.bf16.msra.mxu1 %v800_v61  ;;  %496 = vmatprep.subr.bf16.mxu0 %v801_v62 }
  0x3d   :  { %549 = vmatprep.subr.bf16.mxu1 %v803_v63 }
  0x3f   :  { %497 = vmatpush2.bf16.msra.mxu0 %v805_v0 }
  0x40   :  { %550 = vmatpush2.bf16.msra.mxu1 %v806_v1 }
  0x42   :  { %499 = vmatmul.mubr.bf16.vlgmr.msra.gmra.mxu0 %v807_v2 }
  0x43   :  { %552 = vmatmul.mubr.bf16.vlgmr.msra.gmra.mxu1 %v810_v3  ;;  %508 = vmatprep.mubr.bf16.mxu0 %v813_v4 }
  0x44   :  { %561 = vmatprep.mubr.bf16.mxu1 %v815_v5 }
  0x4a   :  { %509 = vmatmul.mubr.bf16.gmra.mxu0 %v817_v6 }
  0x4b   :  { %562 = vmatmul.mubr.bf16.gmra.mxu1 %v818_v7 }
 0x102   :  { %v500_v14 = vpop.f32.mrf.mxu0 }
 0x103   :  { %v553_v15 = vpop.f32.mrf.mxu1 }
 0x104   :  { %v554_v16 = vadd.f32 %v553_v15, %v500_v14  ;;  %v502_v18 = vpop.f32.mrf.mxu0 }
 0x105   :  { %v555_v19 = vpop.f32.mrf.mxu1 }
 0x106   :  { %v611_v20 = vadd.f32 %v604_v13, %v554_v16  ;;  %v556_v21 = vadd.f32 %v555_v19, %v502_v18  ;;  %v504_v22 = vpop.f32.mrf.mxu0 }
 0x107   :  { %v557_v23 = vpop.f32.mrf.mxu1 }
 0x108   :  { %v619_v24 = vmax.f32 %v611_v20, 0.0  ;;  %v612_v25 = vadd.f32 %v608_v17, %v556_v21  ;;  %v558_v26 = vadd.f32 %v557_v23, %v504_v22  ;;  %v506_v27 = vpop.f32.mrf.mxu0 }
 0x109   :  { %v559_v28 = vpop.f32.mrf.mxu1 }
 0x10a   :  { %627 = vst [vmem:[%s1085_s3] sm:$0xff] %v619_v24  ;;  %v620_v29 = vmax.f32 %v612_v25, 0.0  ;;  %v613_v30 = vadd.f32 %v604_v13, %v558_v26  ;;  %v560_v31 = vadd.f32 %v559_v28, %v506_v27  ;;  %v510_v32 = vpop.f32.mrf.mxu0 }
 0x10b   :  { %v563_v33 = vpop.f32.mrf.mxu1 }
 0x10c   :  { %628 = vst [vmem:[%s1085_s3 + $0x8] sm:$0xff] %v620_v29  ;;  %v621_v34 = vmax.f32 %v613_v30, 0.0  ;;  %v614_v35 = vadd.f32 %v608_v17, %v560_v31  ;;  %v564_v36 = vadd.f32 %v563_v33, %v510_v32  ;;  %v512_v37 = vpop.f32.mrf.mxu0 }
 0x10d   :  { %v565_v38 = vpop.f32.mrf.mxu1 }
 0x10e   :  { %629 = vst [vmem:[%s1085_s3 + $0x10] sm:$0xff] %v621_v34  ;;  %v622_v39 = vmax.f32 %v614_v35, 0.0  ;;  %v615_v40 = vadd.f32 %v604_v13, %v564_v36  ;;  %v566_v41 = vadd.f32 %v565_v38, %v512_v37  ;;  %v514_v42 = vpop.f32.mrf.mxu0 }
 0x10f   :  { %v567_v43 = vpop.f32.mrf.mxu1 }
 0x110   :  { %630 = vst [vmem:[%s1085_s3 + $0x18] sm:$0xff] %v622_v39  ;;  %v623_v44 = vmax.f32 %v615_v40, 0.0  ;;  %v616_v45 = vadd.f32 %v608_v17, %v566_v41  ;;  %v568_v46 = vadd.f32 %v567_v43, %v514_v42  ;;  %v516_v47 = vpop.f32.mrf.mxu0 }
 0x111   :  { %v569_v48 = vpop.f32.mrf.mxu1 }
 0x112   :  { %631 = vst [vmem:[%s1085_s3 + $0x20] sm:$0xff] %v623_v44  ;;  %v624_v49 = vmax.f32 %v616_v45, 0.0  ;;  %v617_v50 = vadd.f32 %v604_v13, %v568_v46  ;;  %v570_v51 = vadd.f32 %v569_v48, %v516_v47 }
 0x114   :  { %632 = vst [vmem:[%s1085_s3 + $0x28] sm:$0xff] %v624_v49  ;;  %v625_v52 = vmax.f32 %v617_v50, 0.0  ;;  %v618_v53 = vadd.f32 %v608_v17, %v570_v51 }
 0x116   :  { %633 = vst [vmem:[%s1085_s3 + $0x30] sm:$0xff] %v625_v52  ;;  %v626_v54 = vmax.f32 %v618_v53, 0.0 }
 0x118   :  { %634 = vst [vmem:[%s1085_s3 + $0x38] sm:$0xff] %v626_v54 }

// kernel: mammography_forward.82
= control target key start
LH: loop header
LB: loop body
LE: loop exit
PB: predicated region body
PF: predicated region fallthrough
CT: control target
= control target key end

     0   :  { %s1114_s15 = smov 0   ;;  %s1116_s16 = smov 0   ;;  %s1296_s0 = inlined_call_operand.vmem [shape: bf16[8,256], index: 0, kind: input, shape index: {}]   ;;  %s1297_s1 = inlined_call_operand.vmem [shape: bf16[256,1024], index: 1, kind: input, shape index: {}]   ;;  %s1298_s2 = inlined_call_operand.vmem [shape: f32[1,1024], index: 2, kind: input, shape index: {}]   ;;  %s1299_s3 = inlined_call_operand.vmem [shape: f32[8,1024], index: 3, kind: input, shape index: {}]   ;;  %s1300_s4 = inlined_call_operand.vmem [shape: f32[8,1024], index: 4, kind: output, shape index: {}]  }
   0x1   :  { %s1118_s17 = smov 0   ;;  %s1120_s18 = smov 0  }
   0x2   :  { %s1122_s19 = smov 0  }
   0x3 LB: > { %s29_s20 = sadd.s32 1, %s1083_s18  ;;  %p77_p1 = scmp.ne.s32.totalorder %s1075_s16, %s1071_s15  ;;  %s1087_s19 = sphi %s1122_s19, %s14_s19   ;;  %s1083_s18 = sphi %s1120_s18, %s1304_s18   ;;  %s1079_s17 = sphi %s1118_s17, %s1303_s17   ;;  %s1075_s16 = sphi %s1116_s16, %s1302_s16   ;;  %s1071_s15 = sphi %s1114_s15, %s1301_s15  }
   0x4   : > { %p31_p0 = scmp.ge.s32.totalorder %s29_s20, 4  ;;  %p78_p2 = scmp.eq.s32.totalorder %s1087_s19, 0 }
   0x5   : > { %s70_s22 = sadd.s32 1, %s1075_s16  ;;  %p911_p5 = scmp.ge.s32.totalorder %s1087_s19, 4 }
   0x6   : > { %s1306_s20 = smov (%p31_p0, %s29_s20), 0  ;;  %p79_p3 = por %p78_p2, %p77_p1 }
   0x7   : > { %s66_s21 = ssub.s32 %s1083_s18, %s1306_s20  ;;  %198 = sbr.rel (%p911_p5) target bundleno = 48 (0x30), region = 20 }
   0x8   : > { %p68_p4 = scmp.eq.s32.totalorder %s66_s21, 0 }
   0xa   : > { %s1149_s23 = scalar_select %p68_p4, %s1075_s16, %s70_s22  }
   0xc   : > { %201 = sbr.rel (!%p79_p3) target bundleno = 48 (0x30), region = 24  ;;  %s203_s24 = sand.u32 (%p79_p3), 1, %s1075_s16  }
   0xd   : > { %s958_s25 = sshll.u32 (%p79_p3), %s1083_s18, 3  ;;  %s912_s26 = sshll.u32 (%p79_p3), %s203_s24, 8 }
   0xe   : > { %s1157_s29 = scalar_lea.vmem (%p79_p3), %s1297_s1, %s958_s25  ;;  %s1162_s30 = scalar_lea.vmem (%p79_p3), [#allocation3], %s912_s26 }
   0xf   : > { %v302_v0 = vld [vmem:[%s1157_s29] sm:$0xff] (%p79_p3) }
  0x10   : > { %v304_v1 = vld [vmem:[%s1157_s29 + $0x20] sm:$0xff] (%p79_p3)  ;;  %303 = vst [vmem:[%s1162_s30] sm:$0xff] (%p79_p3), %v302_v0 }
  0x11   : > { %v306_v2 = vld [vmem:[%s1157_s29 + $0x40] sm:$0xff]  ;;  %305 = vst [vmem:[%s1162_s30 + $0x8] sm:$0xff] %v304_v1 }
  0x12   : > { %307 = vst [vmem:[%s1162_s30 + $0x10] sm:$0xff] %v306_v2  ;;  %v308_v3 = vld [vmem:[%s1157_s29 + $0x60] sm:$0xff] }
  0x13   : > { %v310_v4 = vld [vmem:[%s1157_s29 + $0x80] sm:$0xff]  ;;  %309 = vst [vmem:[%s1162_s30 + $0x18] sm:$0xff] %v308_v3 }
  0x14   : > { %v312_v5 = vld [vmem:[%s1157_s29 + $0xa0] sm:$0xff]  ;;  %311 = vst [vmem:[%s1162_s30 + $0x20] sm:$0xff] %v310_v4 }
  0x15   : > { %313 = vst [vmem:[%s1162_s30 + $0x28] sm:$0xff] %v312_v5  ;;  %v314_v6 = vld [vmem:[%s1157_s29 + $0xc0] sm:$0xff] }
  0x16   : > { %v316_v7 = vld [vmem:[%s1157_s29 + $0xe0] sm:$0xff]  ;;  %315 = vst [vmem:[%s1162_s30 + $0x30] sm:$0xff] %v314_v6 }
  0x17   : > { %v318_v8 = vld [vmem:[%s1157_s29 + $0x100] sm:$0xff]  ;;  %317 = vst [vmem:[%s1162_s30 + $0x38] sm:$0xff] %v316_v7 }
  0x18   : > { %319 = vst [vmem:[%s1162_s30 + $0x40] sm:$0xff] %v318_v8  ;;  %v320_v9 = vld [vmem:[%s1157_s29 + $0x120] sm:$0xff] }
  0x19   : > { %v322_v10 = vld [vmem:[%s1157_s29 + $0x140] sm:$0xff]  ;;  %321 = vst [vmem:[%s1162_s30 + $0x48] sm:$0xff] %v320_v9 }
  0x1a   : > { %v324_v11 = vld [vmem:[%s1157_s29 + $0x160] sm:$0xff]  ;;  %323 = vst [vmem:[%s1162_s30 + $0x50] sm:$0xff] %v322_v10 }
  0x1b   : > { %325 = vst [vmem:[%s1162_s30 + $0x58] sm:$0xff] %v324_v11  ;;  %v326_v12 = vld [vmem:[%s1157_s29 + $0x180] sm:$0xff] }
  0x1c   : > { %v328_v13 = vld [vmem:[%s1157_s29 + $0x1a0] sm:$0xff]  ;;  %327 = vst [vmem:[%s1162_s30 + $0x60] sm:$0xff] %v326_v12 }
  0x1d   : > { %v330_v14 = vld [vmem:[%s1157_s29 + $0x1c0] sm:$0xff]  ;;  %329 = vst [vmem:[%s1162_s30 + $0x68] sm:$0xff] %v328_v13 }
  0x1e   : > { %331 = vst [vmem:[%s1162_s30 + $0x70] sm:$0xff] %v330_v14  ;;  %v332_v15 = vld [vmem:[%s1157_s29 + $0x1e0] sm:$0xff] }
  0x1f   : > { %v334_v16 = vld [vmem:[%s1157_s29 + $0x200] sm:$0xff]  ;;  %333 = vst [vmem:[%s1162_s30 + $0x78] sm:$0xff] %v332_v15 }
  0x20   : > { %v336_v17 = vld [vmem:[%s1157_s29 + $0x220] sm:$0xff]  ;;  %335 = vst [vmem:[%s1162_s30 + $0x80] sm:$0xff] %v334_v16 }
  0x21   : > { %337 = vst [vmem:[%s1162_s30 + $0x88] sm:$0xff] %v336_v17  ;;  %v338_v18 = vld [vmem:[%s1157_s29 + $0x240] sm:$0xff] }
  0x22   : > { %v340_v19 = vld [vmem:[%s1157_s29 + $0x260] sm:$0xff]  ;;  %339 = vst [vmem:[%s1162_s30 + $0x90] sm:$0xff] %v338_v18 }
  0x23   : > { %v342_v20 = vld [vmem:[%s1157_s29 + $0x280] sm:$0xff]  ;;  %341 = vst [vmem:[%s1162_s30 + $0x98] sm:$0xff] %v340_v19 }
  0x24   : > { %343 = vst [vmem:[%s1162_s30 + $0xa0] sm:$0xff] %v342_v20  ;;  %v344_v21 = vld [vmem:[%s1157_s29 + $0x2a0] sm:$0xff] }
  0x25   : > { %v346_v22 = vld [vmem:[%s1157_s29 + $0x2c0] sm:$0xff]  ;;  %345 = vst [vmem:[%s1162_s30 + $0xa8] sm:$0xff] %v344_v21 }
  0x26   : > { %v348_v23 = vld [vmem:[%s1157_s29 + $0x2e0] sm:$0xff]  ;;  %347 = vst [vmem:[%s1162_s30 + $0xb0] sm:$0xff] %v346_v22 }
  0x27   : > { %349 = vst [vmem:[%s1162_s30 + $0xb8] sm:$0xff] %v348_v23  ;;  %v350_v24 = vld [vmem:[%s1157_s29 + $0x300] sm:$0xff] }
  0x28   : > { %v352_v25 = vld [vmem:[%s1157_s29 + $0x320] sm:$0xff]  ;;  %351 = vst [vmem:[%s1162_s30 + $0xc0] sm:$0xff] %v350_v24 }
  0x29   : > { %v354_v26 = vld [vmem:[%s1157_s29 + $0x340] sm:$0xff]  ;;  %353 = vst [vmem:[%s1162_s30 + $0xc8] sm:$0xff] %v352_v25 }
  0x2a   : > { %355 = vst [vmem:[%s1162_s30 + $0xd0] sm:$0xff] %v354_v26  ;;  %v356_v27 = vld [vmem:[%s1157_s29 + $0x360] sm:$0xff] }
  0x2b   : > { %v358_v28 = vld [vmem:[%s1157_s29 + $0x380] sm:$0xff]  ;;  %357 = vst [vmem:[%s1162_s30 + $0xd8] sm:$0xff] %v356_v27 }
  0x2c   : > { %v360_v29 = vld [vmem:[%s1157_s29 + $0x3a0] sm:$0xff]  ;;  %359 = vst [vmem:[%s1162_s30 + $0xe0] sm:$0xff] %v358_v28 }
  0x2d   : > { %361 = vst [vmem:[%s1162_s30 + $0xe8] sm:$0xff] %v360_v29  ;;  %v362_v30 = vld [vmem:[%s1157_s29 + $0x3c0] sm:$0xff] }
  0x2e   : > { %v364_v31 = vld [vmem:[%s1157_s29 + $0x3e0] sm:$0xff]  ;;  %363 = vst [vmem:[%s1162_s30 + $0xf0] sm:$0xff] %v362_v30 }
  0x2f   : > { %365 = vst [vmem:[%s1162_s30 + $0xf8] sm:$0xff] %v364_v31 }
  0x30 PF: > { %p915_p6 = scmp.ge.s32.totalorder %s1087_s19, 1  ;;  %p391_p7 = scmp.lt.s32.totalorder %s1087_s19, 5 }
  0x32   : > { %p392_p8 = pnand %p915_p6, %p391_p7 }
  0x33   : > { %s398_s5 = sand.u32 (!%p392_p8), 1, %s1071_s15   ;;  %s917_s10 = sshll.u32 (!%p392_p8), %s1079_s17, 1 }
  0x34   : > { %395 = sbr.rel (%p392_p8) target bundleno = 324 (0x144), region = 70  ;;  %s916_s8 = sshll.u32 (!%p392_p8), %s398_s5, 8 }
  0x35   : > { %s1235_s9 = scalar_lea.vmem (!%p392_p8), [#allocation3], %s916_s8  ;;  %p462_p9 = scmp.lt.s32.totalorder (!%p392_p8), %s917_s10, 7 }
  0x39   : > { %v1231_v32 = vld [vmem:[%s1296_s0] sm:$0xff]  ;;  %v999_v34 = vld [vmem:[%s1235_s9 + $0x74] ss:$8 sps:$4 sm:$0xff]   ;;  %v1001_v35 = vld [vmem:[%s1235_s9 + $0x70] ss:$8 sps:$4 sm:$0xff]   ;;  %v746_v3 = vlaneseq  ;;  %s1308_s10 = smov (!%p462_p9, %s917_s10), 7 }
  0x3a   : > { %v923_v33 = vcombine.high %v1231_v32, %v1231_v32  ;;  %694 = vmatprep.subr.bf16.mxu0 %v999_v34  ;;  %v1002_v36 = vld [vmem:[%s1235_s9 + $0x64] ss:$8 sps:$4 sm:$0xff]   ;;  %v1004_v37 = vld [vmem:[%s1235_s9 + $0x60] ss:$8 sps:$4 sm:$0xff]   ;;  %v1005_v38 = vld [vmem:[%s1235_s9 + $0x54] ss:$8 sps:$4 sm:$0xff]   ;;  %v922_v2 = vcombine.low %v1231_v32, %v1231_v32  ;;  %s464_s13 = scalar_lea.vmem %s1298_s2, %s1308_s10 }
  0x3b   : > { %695 = vmatpush1.bf16.msra.mxu0 %v1001_v35  ;;  %v1007_v39 = vld [vmem:[%s1235_s9 + $0x50] ss:$8 sps:$4 sm:$0xff]   ;;  %v1008_v40 = vld [vmem:[%s1235_s9 + $0x44] ss:$8 sps:$4 sm:$0xff]   ;;  %v1010_v41 = vld [vmem:[%s1235_s9 + $0x40] ss:$8 sps:$4 sm:$0xff]  }
  0x3c   : > { %726 = vmatprep.mubr.bf16.mxu0 %v923_v33  ;;  %696 = vmatprep.subr.bf16.mxu0 %v1002_v36  ;;  %v1011_v42 = vld [vmem:[%s1235_s9 + $0x34] ss:$8 sps:$4 sm:$0xff]   ;;  %v1013_v43 = vld [vmem:[%s1235_s9 + $0x30] ss:$8 sps:$4 sm:$0xff]   ;;  %v1014_v44 = vld [vmem:[%s1235_s9 + $0x24] ss:$8 sps:$4 sm:$0xff]  }
  0x3d   : > { %v1016_v45 = vld [vmem:[%s1235_s9 + $0x20] ss:$8 sps:$4 sm:$0xff]   ;;  %v1017_v46 = vld [vmem:[%s1235_s9 + $0x14] ss:$8 sps:$4 sm:$0xff]   ;;  %v1019_v47 = vld [vmem:[%s1235_s9 + $0x10] ss:$8 sps:$4 sm:$0xff]  }
  0x3e   : > { %v1020_v48 = vld [vmem:[%s1235_s9 + $0x4] ss:$8 sps:$4 sm:$0xff]   ;;  %v1022_v49 = vld [vmem:[%s1235_s9] ss:$8 sps:$4 sm:$0xff]   ;;  %v1023_v50 = vld [vmem:[%s1235_s9 + $0xf4] ss:$8 sps:$4 sm:$0xff]  }
  0x3f   : > { %697 = vmatpush1.bf16.msra.mxu0 %v1004_v37  ;;  %v1025_v51 = vld [vmem:[%s1235_s9 + $0xf0] ss:$8 sps:$4 sm:$0xff]   ;;  %v1026_v52 = vld [vmem:[%s1235_s9 + $0xe4] ss:$8 sps:$4 sm:$0xff]   ;;  %v1028_v53 = vld [vmem:[%s1235_s9 + $0xe0] ss:$8 sps:$4 sm:$0xff]  }
  0x40   : > { %698 = vmatprep.subr.bf16.mxu0 %v1005_v38  ;;  %v1029_v54 = vld [vmem:[%s1235_s9 + $0xd4] ss:$8 sps:$4 sm:$0xff]   ;;  %v1031_v55 = vld [vmem:[%s1235_s9 + $0xd0] ss:$8 sps:$4 sm:$0xff]   ;;  %v1032_v56 = vld [vmem:[%s1235_s9 + $0xc4] ss:$8 sps:$4 sm:$0xff]  }
  0x41   : > { %v1034_v57 = vld [vmem:[%s1235_s9 + $0xc0] ss:$8 sps:$4 sm:$0xff]   ;;  %v1035_v58 = vld [vmem:[%s1235_s9 + $0xb4] ss:$8 sps:$4 sm:$0xff]   ;;  %v1037_v59 = vld [vmem:[%s1235_s9 + $0xb0] ss:$8 sps:$4 sm:$0xff]  }
  0x42   : > { %v1038_v60 = vld [vmem:[%s1235_s9 + $0xa4] ss:$8 sps:$4 sm:$0xff]   ;;  %v1040_v61 = vld [vmem:[%s1235_s9 + $0xa0] ss:$8 sps:$4 sm:$0xff]   ;;  %v1041_v62 = vld [vmem:[%s1235_s9 + $0x94] ss:$8 sps:$4 sm:$0xff]  }
  0x43   : > { %699 = vmatpush1.bf16.msra.mxu0 %v1007_v39  ;;  %v1043_v63 = vld [vmem:[%s1235_s9 + $0x90] ss:$8 sps:$4 sm:$0xff]   ;;  %v1044_v0 = vld [vmem:[%s1235_s9 + $0x84] ss:$8 sps:$4 sm:$0xff]   ;;  %v1046_v1 = vld [vmem:[%s1235_s9 + $0x80] ss:$8 sps:$4 sm:$0xff]  }
  0x44   : > { %700 = vmatprep.subr.bf16.mxu0 %v1008_v40  ;;  %v747_v4 = vshrl.u32 %v746_v3, 7  ;;  %s919_s14 = sshll.u32 %s1308_s10, 3  ;;  %v744_v6 = vld [vmem:[%s464_s13] sm:$0x3] }
  0x45   : > { %s474_s22 = scalar_lea.vmem %s1299_s3, %s919_s14  ;;  %s484_s25 = scalar_lea.vmem %s1300_s4, %s919_s14 }
  0x46   : > { %v748_v5 = vsub.s32 0, %v747_v4  ;;  %v752_v7 = vsub.s32 1, %v747_v4  ;;  %v758_v11 = vld [vmem:[%s474_s22] sm:$0xff]  ;;  %v759_v14 = vld [vmem:[%s474_s22 + $0x8] sm:$0xff] }
  0x47   : > { %701 = vmatpush1.bf16.msra.mxu0 %v1010_v41 }
  0x48   : > { %702 = vmatprep.subr.bf16.mxu0 %v1011_v42  ;;  %v749_v8 = vrot.slane %v744_v6, %v748_v5  ;;  %v753_v9 = vrot.slane %v744_v6, %v752_v7 }
  0x4b   : > { %703 = vmatpush1.bf16.msra.mxu0 %v1013_v43 }
  0x4c   : > { %704 = vmatprep.subr.bf16.mxu0 %v1014_v44 }
  0x4f   : > { %705 = vmatpush1.bf16.msra.mxu0 %v1016_v45 }
  0x50   : > { %706 = vmatprep.subr.bf16.mxu0 %v1017_v46 }
  0x53   : > { %707 = vmatpush1.bf16.msra.mxu0 %v1019_v47 }
  0x54   : > { %708 = vmatprep.subr.bf16.mxu0 %v1020_v48 }
  0x57   : > { %709 = vmatpush1.bf16.msra.mxu0 %v1022_v49 }
  0x58   : > { %710 = vmatprep.subr.bf16.mxu0 %v1023_v50 }
  0x5b   : > { %711 = vmatpush2.bf16.msra.mxu0 %v1025_v51 }
  0x5c   : > { %712 = vmatprep.subr.bf16.mxu0 %v1026_v52 }
  0x5f   : > { %713 = vmatpush2.bf16.msra.mxu0 %v1028_v53 }
  0x60   : > { %714 = vmatprep.subr.bf16.mxu0 %v1029_v54 }
  0x63   : > { %715 = vmatpush2.bf16.msra.mxu0 %v1031_v55 }
  0x64   : > { %716 = vmatprep.subr.bf16.mxu0 %v1032_v56 }
  0x67   : > { %717 = vmatpush2.bf16.msra.mxu0 %v1034_v57 }
  0x68   : > { %718 = vmatprep.subr.bf16.mxu0 %v1035_v58 }
  0x6b   : > { %719 = vmatpush2.bf16.msra.mxu0 %v1037_v59 }
  0x6c   : > { %720 = vmatprep.subr.bf16.mxu0 %v1038_v60 }
  0x6f   : > { %721 = vmatpush2.bf16.msra.mxu0 %v1040_v61 }
  0x70   : > { %722 = vmatprep.subr.bf16.mxu0 %v1041_v62 }
  0x73   : > { %723 = vmatpush2.bf16.msra.mxu0 %v1043_v63 }
  0x74   : > { %724 = vmatprep.subr.bf16.mxu0 %v1044_v0 }
  0x77   : > { %725 = vmatpush2.bf16.msra.mxu0 %v1046_v1 }
  0x7a   : > { %727 = vmatmul.mubr.bf16.vlgmr.msra.gmra.mxu0 %v922_v2 }
 0x13a   : > { %v728_v10 = vpop.f32.mrf.mxu0 }
 0x13b   : > { %v756_v12 = vadd.f32 %v749_v8, %v728_v10 }
 0x13c   : > { %v730_v13 = vpop.f32.mrf.mxu0 }
 0x13d   : > { %v760_v15 = vadd.f32 %v758_v11, %v756_v12  ;;  %v757_v16 = vadd.f32 %v753_v9, %v730_v13 }
 0x13e   : > { %v732_v17 = vpop.f32.mrf.mxu0 }
 0x13f   : > { %v762_v18 = vmax.f32 %v760_v15, 0.0  ;;  %v761_v19 = vadd.f32 %v759_v14, %v757_v16 }
 0x140   : > { %v733_v20 = vpop.f32.mrf.mxu0 }
 0x141   : > { %764 = vst [vmem:[%s484_s25] sm:$0xff] %v762_v18  ;;  %v763_v21 = vmax.f32 %v761_v19, 0.0 }
 0x143   : > { %765 = vst [vmem:[%s484_s25 + $0x8] sm:$0xff] %v763_v21 }
 0x144 PF: > { %s14_s19 = sadd.s32 1, %s1087_s19   ;;  %s1301_s15 = smov %s1075_s16 }
 0x145   : > { %p11_p10 = scmp.ge.s32.totalorder %s14_s19, 6   ;;  %s1302_s16 = smov %s1149_s23 }
 0x146   : > { %s1303_s17 = smov %s1083_s18  ;;  %s1304_s18 = smov %s1306_s20 }
 0x147   :  { %13 = sbr.rel (!%p11_p10) target bundleno = 3 (0x3), region = 126 }

// kernel: mammography_forward.79
= control target key start
LH: loop header
LB: loop body
LE: loop exit
PB: predicated region body
PF: predicated region fallthrough
CT: control target
= control target key end

     0   :  { %s1473_s12 = smov 0   ;;  %s1475_s13 = smov 0   ;;  %s1757_s0 = inlined_call_operand.vmem [shape: bf16[8,512], index: 0, kind: input, shape index: {}]   ;;  %s1758_s1 = inlined_call_operand.vmem [shape: bf16[512,1024], index: 1, kind: input, shape index: {}]   ;;  %s1759_s2 = inlined_call_operand.vmem [shape: f32[1,1024], index: 2, kind: input, shape index: {}]   ;;  %s1760_s3 = inlined_call_operand.vmem [shape: f32[8,1024], index: 3, kind: output, shape index: {}]  }
   0x1   :  { %s1477_s14 = smov 0   ;;  %s1479_s15 = smov 0  }
   0x2   :  { %s1481_s16 = smov 0  }
   0x3 LB: > { %s28_s17 = sadd.s32 1, %s1447_s15  ;;  %p76_p1 = scmp.ne.s32.totalorder %s1439_s13, %s1435_s12  ;;  %s1451_s16 = sphi %s1481_s16, %s13_s16   ;;  %s1447_s15 = sphi %s1479_s15, %s1764_s15   ;;  %s1443_s14 = sphi %s1477_s14, %s1763_s14   ;;  %s1439_s13 = sphi %s1475_s13, %s1762_s13   ;;  %s1435_s12 = sphi %s1473_s12, %s1761_s12  }
   0x4   : > { %p30_p0 = scmp.ge.s32.totalorder %s28_s17, 4  ;;  %p77_p2 = scmp.eq.s32.totalorder %s1451_s16, 0 }
   0x5   : > { %s69_s19 = sadd.s32 1, %s1439_s13  ;;  %p1193_p5 = scmp.ge.s32.totalorder %s1451_s16, 4 }
   0x6   : > { %s1766_s17 = smov (%p30_p0, %s28_s17), 0  ;;  %p78_p3 = por %p77_p2, %p76_p1 }
   0x7   : > { %s65_s18 = ssub.s32 %s1447_s15, %s1766_s17  ;;  %169 = sbr.rel (%p1193_p5) target bundleno = 80 (0x50), region = 20 }
   0x8   : > { %p67_p4 = scmp.eq.s32.totalorder %s65_s18, 0 }
   0xa   : > { %s1508_s20 = scalar_select %p67_p4, %s1439_s13, %s69_s19  }
   0xc   : > { %172 = sbr.rel (!%p78_p3) target bundleno = 80 (0x50), region = 24  ;;  %s174_s21 = sand.u32 (%p78_p3), 1, %s1439_s13  }
   0xd   : > { %s1272_s22 = sshll.u32 (%p78_p3), %s1447_s15, 3  ;;  %s1194_s23 = sshll.u32 (%p78_p3), %s174_s21, 9 }
   0xe   : > { %s1516_s26 = scalar_lea.vmem (%p78_p3), %s1758_s1, %s1272_s22  ;;  %s1521_s27 = scalar_lea.vmem (%p78_p3), [#allocation3], %s1194_s23 }
   0xf   : > { %v337_v0 = vld [vmem:[%s1516_s26] sm:$0xff] (%p78_p3) }
  0x10   : > { %v339_v1 = vld [vmem:[%s1516_s26 + $0x20] sm:$0xff] (%p78_p3)  ;;  %338 = vst [vmem:[%s1521_s27] sm:$0xff] (%p78_p3), %v337_v0 }
  0x11   : > { %v341_v2 = vld [vmem:[%s1516_s26 + $0x40] sm:$0xff]  ;;  %340 = vst [vmem:[%s1521_s27 + $0x8] sm:$0xff] %v339_v1 }
  0x12   : > { %342 = vst [vmem:[%s1521_s27 + $0x10] sm:$0xff] %v341_v2  ;;  %v343_v3 = vld [vmem:[%s1516_s26 + $0x60] sm:$0xff] }
  0x13   : > { %v345_v4 = vld [vmem:[%s1516_s26 + $0x80] sm:$0xff]  ;;  %344 = vst [vmem:[%s1521_s27 + $0x18] sm:$0xff] %v343_v3 }
  0x14   : > { %v347_v5 = vld [vmem:[%s1516_s26 + $0xa0] sm:$0xff]  ;;  %346 = vst [vmem:[%s1521_s27 + $0x20] sm:$0xff] %v345_v4 }
  0x15   : > { %348 = vst [vmem:[%s1521_s27 + $0x28] sm:$0xff] %v347_v5  ;;  %v349_v6 = vld [vmem:[%s1516_s26 + $0xc0] sm:$0xff] }
  0x16   : > { %v351_v7 = vld [vmem:[%s1516_s26 + $0xe0] sm:$0xff]  ;;  %350 = vst [vmem:[%s1521_s27 + $0x30] sm:$0xff] %v349_v6 }
  0x17   : > { %v353_v8 = vld [vmem:[%s1516_s26 + $0x100] sm:$0xff]  ;;  %352 = vst [vmem:[%s1521_s27 + $0x38] sm:$0xff] %v351_v7 }
  0x18   : > { %354 = vst [vmem:[%s1521_s27 + $0x40] sm:$0xff] %v353_v8  ;;  %v355_v9 = vld [vmem:[%s1516_s26 + $0x120] sm:$0xff] }
  0x19   : > { %v357_v10 = vld [vmem:[%s1516_s26 + $0x140] sm:$0xff]  ;;  %356 = vst [vmem:[%s1521_s27 + $0x48] sm:$0xff] %v355_v9 }
  0x1a   : > { %v359_v11 = vld [vmem:[%s1516_s26 + $0x160] sm:$0xff]  ;;  %358 = vst [vmem:[%s1521_s27 + $0x50] sm:$0xff] %v357_v10 }
  0x1b   : > { %360 = vst [vmem:[%s1521_s27 + $0x58] sm:$0xff] %v359_v11  ;;  %v361_v12 = vld [vmem:[%s1516_s26 + $0x180] sm:$0xff] }
  0x1c   : > { %v363_v13 = vld [vmem:[%s1516_s26 + $0x1a0] sm:$0xff]  ;;  %362 = vst [vmem:[%s1521_s27 + $0x60] sm:$0xff] %v361_v12 }
  0x1d   : > { %v365_v14 = vld [vmem:[%s1516_s26 + $0x1c0] sm:$0xff]  ;;  %364 = vst [vmem:[%s1521_s27 + $0x68] sm:$0xff] %v363_v13 }
  0x1e   : > { %366 = vst [vmem:[%s1521_s27 + $0x70] sm:$0xff] %v365_v14  ;;  %v367_v15 = vld [vmem:[%s1516_s26 + $0x1e0] sm:$0xff] }
  0x1f   : > { %v369_v16 = vld [vmem:[%s1516_s26 + $0x200] sm:$0xff]  ;;  %368 = vst [vmem:[%s1521_s27 + $0x78] sm:$0xff] %v367_v15 }
  0x20   : > { %v371_v17 = vld [vmem:[%s1516_s26 + $0x220] sm:$0xff]  ;;  %370 = vst [vmem:[%s1521_s27 + $0x80] sm:$0xff] %v369_v16 }
  0x21   : > { %372 = vst [vmem:[%s1521_s27 + $0x88] sm:$0xff] %v371_v17  ;;  %v373_v18 = vld [vmem:[%s1516_s26 + $0x240] sm:$0xff] }
  0x22   : > { %v375_v19 = vld [vmem:[%s1516_s26 + $0x260] sm:$0xff]  ;;  %374 = vst [vmem:[%s1521_s27 + $0x90] sm:$0xff] %v373_v18 }
  0x23   : > { %v377_v20 = vld [vmem:[%s1516_s26 + $0x280] sm:$0xff]  ;;  %376 = vst [vmem:[%s1521_s27 + $0x98] sm:$0xff] %v375_v19 }
  0x24   : > { %378 = vst [vmem:[%s1521_s27 + $0xa0] sm:$0xff] %v377_v20  ;;  %v379_v21 = vld [vmem:[%s1516_s26 + $0x2a0] sm:$0xff] }
  0x25   : > { %v381_v22 = vld [vmem:[%s1516_s26 + $0x2c0] sm:$0xff]  ;;  %380 = vst [vmem:[%s1521_s27 + $0xa8] sm:$0xff] %v379_v21 }
  0x26   : > { %v383_v23 = vld [vmem:[%s1516_s26 + $0x2e0] sm:$0xff]  ;;  %382 = vst [vmem:[%s1521_s27 + $0xb0] sm:$0xff] %v381_v22 }
  0x27   : > { %384 = vst [vmem:[%s1521_s27 + $0xb8] sm:$0xff] %v383_v23  ;;  %v385_v24 = vld [vmem:[%s1516_s26 + $0x300] sm:$0xff] }
  0x28   : > { %v387_v25 = vld [vmem:[%s1516_s26 + $0x320] sm:$0xff]  ;;  %386 = vst [vmem:[%s1521_s27 + $0xc0] sm:$0xff] %v385_v24 }
  0x29   : > { %v389_v26 = vld [vmem:[%s1516_s26 + $0x340] sm:$0xff]  ;;  %388 = vst [vmem:[%s1521_s27 + $0xc8] sm:$0xff] %v387_v25 }
  0x2a   : > { %390 = vst [vmem:[%s1521_s27 + $0xd0] sm:$0xff] %v389_v26  ;;  %v391_v27 = vld [vmem:[%s1516_s26 + $0x360] sm:$0xff] }
  0x2b   : > { %v393_v28 = vld [vmem:[%s1516_s26 + $0x380] sm:$0xff]  ;;  %392 = vst [vmem:[%s1521_s27 + $0xd8] sm:$0xff] %v391_v27 }
  0x2c   : > { %v395_v29 = vld [vmem:[%s1516_s26 + $0x3a0] sm:$0xff]  ;;  %394 = vst [vmem:[%s1521_s27 + $0xe0] sm:$0xff] %v393_v28 }
  0x2d   : > { %396 = vst [vmem:[%s1521_s27 + $0xe8] sm:$0xff] %v395_v29  ;;  %v397_v30 = vld [vmem:[%s1516_s26 + $0x3c0] sm:$0xff] }
  0x2e   : > { %v399_v31 = vld [vmem:[%s1516_s26 + $0x3e0] sm:$0xff]  ;;  %398 = vst [vmem:[%s1521_s27 + $0xf0] sm:$0xff] %v397_v30 }
  0x2f   : > { %v401_v32 = vld [vmem:[%s1516_s26 + $0x400] sm:$0xff]  ;;  %400 = vst [vmem:[%s1521_s27 + $0xf8] sm:$0xff] %v399_v31 }
  0x30   : > { %402 = vst [vmem:[%s1521_s27 + $0x100] sm:$0xff] %v401_v32  ;;  %v403_v33 = vld [vmem:[%s1516_s26 + $0x420] sm:$0xff] }
  0x31   : > { %v405_v34 = vld [vmem:[%s1516_s26 + $0x440] sm:$0xff]  ;;  %404 = vst [vmem:[%s1521_s27 + $0x108] sm:$0xff] %v403_v33 }
  0x32   : > { %v407_v35 = vld [vmem:[%s1516_s26 + $0x460] sm:$0xff]  ;;  %406 = vst [vmem:[%s1521_s27 + $0x110] sm:$0xff] %v405_v34 }
  0x33   : > { %408 = vst [vmem:[%s1521_s27 + $0x118] sm:$0xff] %v407_v35  ;;  %v409_v36 = vld [vmem:[%s1516_s26 + $0x480] sm:$0xff] }
  0x34   : > { %v411_v37 = vld [vmem:[%s1516_s26 + $0x4a0] sm:$0xff]  ;;  %410 = vst [vmem:[%s1521_s27 + $0x120] sm:$0xff] %v409_v36 }
  0x35   : > { %v413_v38 = vld [vmem:[%s1516_s26 + $0x4c0] sm:$0xff]  ;;  %412 = vst [vmem:[%s1521_s27 + $0x128] sm:$0xff] %v411_v37 }
  0x36   : > { %414 = vst [vmem:[%s1521_s27 + $0x130] sm:$0xff] %v413_v38  ;;  %v415_v39 = vld [vmem:[%s1516_s26 + $0x4e0] sm:$0xff] }
  0x37   : > { %v417_v40 = vld [vmem:[%s1516_s26 + $0x500] sm:$0xff]  ;;  %416 = vst [vmem:[%s1521_s27 + $0x138] sm:$0xff] %v415_v39 }
  0x38   : > { %v419_v41 = vld [vmem:[%s1516_s26 + $0x520] sm:$0xff]  ;;  %418 = vst [vmem:[%s1521_s27 + $0x140] sm:$0xff] %v417_v40 }
  0x39   : > { %420 = vst [vmem:[%s1521_s27 + $0x148] sm:$0xff] %v419_v41  ;;  %v421_v42 = vld [vmem:[%s1516_s26 + $0x540] sm:$0xff] }
  0x3a   : > { %v423_v43 = vld [vmem:[%s1516_s26 + $0x560] sm:$0xff]  ;;  %422 = vst [vmem:[%s1521_s27 + $0x150] sm:$0xff] %v421_v42 }
  0x3b   : > { %v425_v44 = vld [vmem:[%s1516_s26 + $0x580] sm:$0xff]  ;;  %424 = vst [vmem:[%s1521_s27 + $0x158] sm:$0xff] %v423_v43 }
  0x3c   : > { %426 = vst [vmem:[%s1521_s27 + $0x160] sm:$0xff] %v425_v44  ;;  %v427_v45 = vld [vmem:[%s1516_s26 + $0x5a0] sm:$0xff] }
  0x3d   : > { %v429_v46 = vld [vmem:[%s1516_s26 + $0x5c0] sm:$0xff]  ;;  %428 = vst [vmem:[%s1521_s27 + $0x168] sm:$0xff] %v427_v45 }
  0x3e   : > { %v431_v47 = vld [vmem:[%s1516_s26 + $0x5e0] sm:$0xff]  ;;  %430 = vst [vmem:[%s1521_s27 + $0x170] sm:$0xff] %v429_v46 }
  0x3f   : > { %432 = vst [vmem:[%s1521_s27 + $0x178] sm:$0xff] %v431_v47  ;;  %v433_v48 = vld [vmem:[%s1516_s26 + $0x600] sm:$0xff] }
  0x40   : > { %v435_v49 = vld [vmem:[%s1516_s26 + $0x620] sm:$0xff]  ;;  %434 = vst [vmem:[%s1521_s27 + $0x180] sm:$0xff] %v433_v48 }
  0x41   : > { %v437_v50 = vld [vmem:[%s1516_s26 + $0x640] sm:$0xff]  ;;  %436 = vst [vmem:[%s1521_s27 + $0x188] sm:$0xff] %v435_v49 }
  0x42   : > { %438 = vst [vmem:[%s1521_s27 + $0x190] sm:$0xff] %v437_v50  ;;  %v439_v51 = vld [vmem:[%s1516_s26 + $0x660] sm:$0xff] }
  0x43   : > { %v441_v52 = vld [vmem:[%s1516_s26 + $0x680] sm:$0xff]  ;;  %440 = vst [vmem:[%s1521_s27 + $0x198] sm:$0xff] %v439_v51 }
  0x44   : > { %v443_v53 = vld [vmem:[%s1516_s26 + $0x6a0] sm:$0xff]  ;;  %442 = vst [vmem:[%s1521_s27 + $0x1a0] sm:$0xff] %v441_v52 }
  0x45   : > { %444 = vst [vmem:[%s1521_s27 + $0x1a8] sm:$0xff] %v443_v53  ;;  %v445_v54 = vld [vmem:[%s1516_s26 + $0x6c0] sm:$0xff] }
  0x46   : > { %v447_v55 = vld [vmem:[%s1516_s26 + $0x6e0] sm:$0xff]  ;;  %446 = vst [vmem:[%s1521_s27 + $0x1b0] sm:$0xff] %v445_v54 }
  0x47   : > { %v449_v56 = vld [vmem:[%s1516_s26 + $0x700] sm:$0xff]  ;;  %448 = vst [vmem:[%s1521_s27 + $0x1b8] sm:$0xff] %v447_v55 }
  0x48   : > { %450 = vst [vmem:[%s1521_s27 + $0x1c0] sm:$0xff] %v449_v56  ;;  %v451_v57 = vld [vmem:[%s1516_s26 + $0x720] sm:$0xff] }
  0x49   : > { %v453_v58 = vld [vmem:[%s1516_s26 + $0x740] sm:$0xff]  ;;  %452 = vst [vmem:[%s1521_s27 + $0x1c8] sm:$0xff] %v451_v57 }
  0x4a   : > { %v455_v59 = vld [vmem:[%s1516_s26 + $0x760] sm:$0xff]  ;;  %454 = vst [vmem:[%s1521_s27 + $0x1d0] sm:$0xff] %v453_v58 }
  0x4b   : > { %456 = vst [vmem:[%s1521_s27 + $0x1d8] sm:$0xff] %v455_v59  ;;  %v457_v60 = vld [vmem:[%s1516_s26 + $0x780] sm:$0xff] }
  0x4c   : > { %v459_v61 = vld [vmem:[%s1516_s26 + $0x7a0] sm:$0xff]  ;;  %458 = vst [vmem:[%s1521_s27 + $0x1e0] sm:$0xff] %v457_v60 }
  0x4d   : > { %v461_v62 = vld [vmem:[%s1516_s26 + $0x7c0] sm:$0xff]  ;;  %460 = vst [vmem:[%s1521_s27 + $0x1e8] sm:$0xff] %v459_v61 }
  0x4e   : > { %462 = vst [vmem:[%s1521_s27 + $0x1f0] sm:$0xff] %v461_v62  ;;  %v463_v63 = vld [vmem:[%s1516_s26 + $0x7e0] sm:$0xff] }
  0x4f   : > { %464 = vst [vmem:[%s1521_s27 + $0x1f8] sm:$0xff] %v463_v63 }
  0x50 PF: > { %p1197_p6 = scmp.ge.s32.totalorder %s1451_s16, 1  ;;  %p477_p7 = scmp.lt.s32.totalorder %s1451_s16, 5 }
  0x52   : > { %p478_p8 = pnand %p1197_p6, %p477_p7 }
  0x53   : > { %s484_s28 = sand.u32 (!%p478_p8), 1, %s1435_s12   ;;  %s1199_s8 = sshll.u32 (!%p478_p8), %s1443_s14, 1 }
  0x54   : > { %481 = sbr.rel (%p478_p8) target bundleno = 356 (0x164), region = 66  ;;  %s1198_s6 = sshll.u32 (!%p478_p8), %s484_s28, 9 }
  0x55   : > { %s1665_s7 = scalar_lea.vmem (!%p478_p8), [#allocation3], %s1198_s6  ;;  %p537_p9 = scmp.lt.s32.totalorder (!%p478_p8), %s1199_s8, 7 }
  0x59   : > { %v1654_v0 = vld [vmem:[%s1757_s0] sm:$0xff]  ;;  %v1659_v1 = vld [vmem:[%s1757_s0 + $0x8] sm:$0xff]  ;;  %v1313_v4 = vld [vmem:[%s1665_s7 + $0x74] ss:$8 sps:$4 sm:$0xff]   ;;  %s1768_s8 = smov (!%p537_p9, %s1199_s8), 7 }
  0x5a   : > { %v1203_v2 = vcombine.high %v1654_v0, %v1654_v0  ;;  %v1205_v3 = vcombine.high %v1659_v1, %v1659_v1  ;;  %v1315_v5 = vld [vmem:[%s1665_s7 + $0x174] ss:$8 sps:$4 sm:$0xff]   ;;  %959 = vmatprep.subr.bf16.mxu0 %v1313_v4  ;;  %v1317_v6 = vld [vmem:[%s1665_s7 + $0x70] ss:$8 sps:$4 sm:$0xff]   ;;  %v1319_v8 = vld [vmem:[%s1665_s7 + $0x64] ss:$8 sps:$4 sm:$0xff]   ;;  %s539_s11 = scalar_lea.vmem %s1759_s2, %s1768_s8 }
  0x5b   : > { %v1318_v7 = vld [vmem:[%s1665_s7 + $0x170] ss:$8 sps:$4 sm:$0xff]   ;;  %1000 = vmatprep.subr.bf16.mxu1 %v1315_v5  ;;  %960 = vmatpush1.bf16.msra.mxu0 %v1317_v6  ;;  %v1321_v9 = vld [vmem:[%s1665_s7 + $0x164] ss:$8 sps:$4 sm:$0xff]   ;;  %v1323_v10 = vld [vmem:[%s1665_s7 + $0x60] ss:$8 sps:$4 sm:$0xff]   ;;  %v1202_v6 = vcombine.low %v1654_v0, %v1654_v0 }
  0x5c   : > { %991 = vmatprep.mubr.bf16.mxu0 %v1203_v2  ;;  %1032 = vmatprep.mubr.bf16.mxu1 %v1205_v3  ;;  %v1324_v11 = vld [vmem:[%s1665_s7 + $0x160] ss:$8 sps:$4 sm:$0xff]   ;;  %v1325_v12 = vld [vmem:[%s1665_s7 + $0x54] ss:$8 sps:$4 sm:$0xff]   ;;  %v1329_v14 = vld [vmem:[%s1665_s7 + $0x50] ss:$8 sps:$4 sm:$0xff]  }
  0x5d   : > { %1001 = vmatpush1.bf16.msra.mxu1 %v1318_v7  ;;  %961 = vmatprep.subr.bf16.mxu0 %v1319_v8  ;;  %v1327_v13 = vld [vmem:[%s1665_s7 + $0x154] ss:$8 sps:$4 sm:$0xff]   ;;  %v1330_v15 = vld [vmem:[%s1665_s7 + $0x150] ss:$8 sps:$4 sm:$0xff]   ;;  %v1331_v16 = vld [vmem:[%s1665_s7 + $0x44] ss:$8 sps:$4 sm:$0xff]   ;;  %v1204_v7 = vcombine.low %v1659_v1, %v1659_v1  ;;  %v1052_v8 = vlaneseq }
  0x5e   : > { %1002 = vmatprep.subr.bf16.mxu1 %v1321_v9  ;;  %v1333_v17 = vld [vmem:[%s1665_s7 + $0x144] ss:$8 sps:$4 sm:$0xff]   ;;  %v1335_v18 = vld [vmem:[%s1665_s7 + $0x40] ss:$8 sps:$4 sm:$0xff]   ;;  %v1337_v20 = vld [vmem:[%s1665_s7 + $0x34] ss:$8 sps:$4 sm:$0xff]  }
  0x5f   : > { %962 = vmatpush1.bf16.msra.mxu0 %v1323_v10  ;;  %v1336_v19 = vld [vmem:[%s1665_s7 + $0x140] ss:$8 sps:$4 sm:$0xff]   ;;  %v1339_v21 = vld [vmem:[%s1665_s7 + $0x134] ss:$8 sps:$4 sm:$0xff]   ;;  %v1341_v22 = vld [vmem:[%s1665_s7 + $0x30] ss:$8 sps:$4 sm:$0xff]  }
  0x60   : > { %963 = vmatprep.subr.bf16.mxu0 %v1325_v12  ;;  %v1342_v23 = vld [vmem:[%s1665_s7 + $0x130] ss:$8 sps:$4 sm:$0xff]   ;;  %v1343_v24 = vld [vmem:[%s1665_s7 + $0x24] ss:$8 sps:$4 sm:$0xff]   ;;  %v1347_v26 = vld [vmem:[%s1665_s7 + $0x20] ss:$8 sps:$4 sm:$0xff]  }
  0x61   : > { %1003 = vmatpush1.bf16.msra.mxu1 %v1324_v11  ;;  %v1345_v25 = vld [vmem:[%s1665_s7 + $0x124] ss:$8 sps:$4 sm:$0xff]   ;;  %v1348_v27 = vld [vmem:[%s1665_s7 + $0x120] ss:$8 sps:$4 sm:$0xff]   ;;  %v1349_v28 = vld [vmem:[%s1665_s7 + $0x14] ss:$8 sps:$4 sm:$0xff]  }
  0x62   : > { %1004 = vmatprep.subr.bf16.mxu1 %v1327_v13  ;;  %v1351_v29 = vld [vmem:[%s1665_s7 + $0x114] ss:$8 sps:$4 sm:$0xff]   ;;  %v1353_v30 = vld [vmem:[%s1665_s7 + $0x10] ss:$8 sps:$4 sm:$0xff]   ;;  %v1355_v32 = vld [vmem:[%s1665_s7 + $0x4] ss:$8 sps:$4 sm:$0xff]  }
  0x63   : > { %964 = vmatpush1.bf16.msra.mxu0 %v1329_v14  ;;  %v1354_v31 = vld [vmem:[%s1665_s7 + $0x110] ss:$8 sps:$4 sm:$0xff]   ;;  %v1357_v33 = vld [vmem:[%s1665_s7 + $0x104] ss:$8 sps:$4 sm:$0xff]   ;;  %v1359_v34 = vld [vmem:[%s1665_s7] ss:$8 sps:$4 sm:$0xff]  }
  0x64   : > { %965 = vmatprep.subr.bf16.mxu0 %v1331_v16  ;;  %v1360_v35 = vld [vmem:[%s1665_s7 + $0x100] ss:$8 sps:$4 sm:$0xff]   ;;  %v1361_v36 = vld [vmem:[%s1665_s7 + $0xf4] ss:$8 sps:$4 sm:$0xff]   ;;  %v1365_v38 = vld [vmem:[%s1665_s7 + $0xf0] ss:$8 sps:$4 sm:$0xff]  }
  0x65   : > { %1005 = vmatpush1.bf16.msra.mxu1 %v1330_v15  ;;  %v1363_v37 = vld [vmem:[%s1665_s7 + $0x1f4] ss:$8 sps:$4 sm:$0xff]   ;;  %v1366_v39 = vld [vmem:[%s1665_s7 + $0x1f0] ss:$8 sps:$4 sm:$0xff]   ;;  %v1367_v40 = vld [vmem:[%s1665_s7 + $0xe4] ss:$8 sps:$4 sm:$0xff]  }
  0x66   : > { %1006 = vmatprep.subr.bf16.mxu1 %v1333_v17  ;;  %v1369_v41 = vld [vmem:[%s1665_s7 + $0x1e4] ss:$8 sps:$4 sm:$0xff]   ;;  %v1371_v42 = vld [vmem:[%s1665_s7 + $0xe0] ss:$8 sps:$4 sm:$0xff]   ;;  %v1373_v44 = vld [vmem:[%s1665_s7 + $0xd4] ss:$8 sps:$4 sm:$0xff]  }
  0x67   : > { %966 = vmatpush1.bf16.msra.mxu0 %v1335_v18  ;;  %v1372_v43 = vld [vmem:[%s1665_s7 + $0x1e0] ss:$8 sps:$4 sm:$0xff]   ;;  %v1375_v45 = vld [vmem:[%s1665_s7 + $0x1d4] ss:$8 sps:$4 sm:$0xff]   ;;  %v1377_v46 = vld [vmem:[%s1665_s7 + $0xd0] ss:$8 sps:$4 sm:$0xff]  }
  0x68   : > { %967 = vmatprep.subr.bf16.mxu0 %v1337_v20  ;;  %v1378_v47 = vld [vmem:[%s1665_s7 + $0x1d0] ss:$8 sps:$4 sm:$0xff]   ;;  %v1379_v48 = vld [vmem:[%s1665_s7 + $0xc4] ss:$8 sps:$4 sm:$0xff]   ;;  %v1383_v50 = vld [vmem:[%s1665_s7 + $0xc0] ss:$8 sps:$4 sm:$0xff]  }
  0x69   : > { %1007 = vmatpush1.bf16.msra.mxu1 %v1336_v19  ;;  %v1381_v49 = vld [vmem:[%s1665_s7 + $0x1c4] ss:$8 sps:$4 sm:$0xff]   ;;  %v1384_v51 = vld [vmem:[%s1665_s7 + $0x1c0] ss:$8 sps:$4 sm:$0xff]   ;;  %v1385_v52 = vld [vmem:[%s1665_s7 + $0xb4] ss:$8 sps:$4 sm:$0xff]  }
  0x6a   : > { %1008 = vmatprep.subr.bf16.mxu1 %v1339_v21  ;;  %v1387_v53 = vld [vmem:[%s1665_s7 + $0x1b4] ss:$8 sps:$4 sm:$0xff]   ;;  %v1389_v54 = vld [vmem:[%s1665_s7 + $0xb0] ss:$8 sps:$4 sm:$0xff]   ;;  %v1391_v56 = vld [vmem:[%s1665_s7 + $0xa4] ss:$8 sps:$4 sm:$0xff]  }
  0x6b   : > { %968 = vmatpush1.bf16.msra.mxu0 %v1341_v22  ;;  %v1390_v55 = vld [vmem:[%s1665_s7 + $0x1b0] ss:$8 sps:$4 sm:$0xff]   ;;  %v1393_v57 = vld [vmem:[%s1665_s7 + $0x1a4] ss:$8 sps:$4 sm:$0xff]   ;;  %v1395_v58 = vld [vmem:[%s1665_s7 + $0xa0] ss:$8 sps:$4 sm:$0xff]  }
  0x6c   : > { %969 = vmatprep.subr.bf16.mxu0 %v1343_v24  ;;  %v1396_v59 = vld [vmem:[%s1665_s7 + $0x1a0] ss:$8 sps:$4 sm:$0xff]   ;;  %v1397_v60 = vld [vmem:[%s1665_s7 + $0x94] ss:$8 sps:$4 sm:$0xff]   ;;  %v1401_v62 = vld [vmem:[%s1665_s7 + $0x90] ss:$8 sps:$4 sm:$0xff]  }
  0x6d   : > { %1009 = vmatpush1.bf16.msra.mxu1 %v1342_v23  ;;  %v1399_v61 = vld [vmem:[%s1665_s7 + $0x194] ss:$8 sps:$4 sm:$0xff]   ;;  %v1402_v63 = vld [vmem:[%s1665_s7 + $0x190] ss:$8 sps:$4 sm:$0xff]   ;;  %v1403_v2 = vld [vmem:[%s1665_s7 + $0x84] ss:$8 sps:$4 sm:$0xff]  }
  0x6e   : > { %1010 = vmatprep.subr.bf16.mxu1 %v1345_v25  ;;  %v1405_v3 = vld [vmem:[%s1665_s7 + $0x184] ss:$8 sps:$4 sm:$0xff]   ;;  %v1407_v4 = vld [vmem:[%s1665_s7 + $0x80] ss:$8 sps:$4 sm:$0xff]   ;;  %v1053_v9 = vshrl.u32 %v1052_v8, 7  ;;  %s1201_s12 = sshll.u32 %s1768_s8, 3 }
  0x6f   : > { %970 = vmatpush1.bf16.msra.mxu0 %v1347_v26  ;;  %v1408_v5 = vld [vmem:[%s1665_s7 + $0x180] ss:$8 sps:$4 sm:$0xff]   ;;  %s549_s14 = scalar_lea.vmem %s1760_s3, %s1201_s12 }
  0x70   : > { %971 = vmatprep.subr.bf16.mxu0 %v1349_v28  ;;  %v1054_v10 = vsub.s32 0, %v1053_v9  ;;  %v1050_v11 = vld [vmem:[%s539_s11] sm:$0x3]  ;;  %v1058_v12 = vsub.s32 1, %v1053_v9 }
  0x71   : > { %1011 = vmatpush1.bf16.msra.mxu1 %v1348_v27 }
  0x72   : > { %1012 = vmatprep.subr.bf16.mxu1 %v1351_v29  ;;  %v1055_v0 = vrot.slane %v1050_v11, %v1054_v10  ;;  %v1059_v15 = vrot.slane %v1050_v11, %v1058_v12 }
  0x73   : > { %972 = vmatpush1.bf16.msra.mxu0 %v1353_v30 }
  0x74   : > { %973 = vmatprep.subr.bf16.mxu0 %v1355_v32 }
  0x75   : > { %1013 = vmatpush1.bf16.msra.mxu1 %v1354_v31 }
  0x76   : > { %1014 = vmatprep.subr.bf16.mxu1 %v1357_v33 }
  0x77   : > { %974 = vmatpush1.bf16.msra.mxu0 %v1359_v34 }
  0x78   : > { %975 = vmatprep.subr.bf16.mxu0 %v1361_v36 }
  0x79   : > { %1015 = vmatpush1.bf16.msra.mxu1 %v1360_v35 }
  0x7a   : > { %1016 = vmatprep.subr.bf16.mxu1 %v1363_v37 }
  0x7b   : > { %976 = vmatpush2.bf16.msra.mxu0 %v1365_v38 }
  0x7c   : > { %977 = vmatprep.subr.bf16.mxu0 %v1367_v40 }
  0x7d   : > { %1017 = vmatpush2.bf16.msra.mxu1 %v1366_v39 }
  0x7e   : > { %1018 = vmatprep.subr.bf16.mxu1 %v1369_v41 }
  0x7f   : > { %978 = vmatpush2.bf16.msra.mxu0 %v1371_v42 }
  0x80   : > { %979 = vmatprep.subr.bf16.mxu0 %v1373_v44 }
  0x81   : > { %1019 = vmatpush2.bf16.msra.mxu1 %v1372_v43 }
  0x82   : > { %1020 = vmatprep.subr.bf16.mxu1 %v1375_v45 }
  0x83   : > { %980 = vmatpush2.bf16.msra.mxu0 %v1377_v46 }
  0x84   : > { %981 = vmatprep.subr.bf16.mxu0 %v1379_v48 }
  0x85   : > { %1021 = vmatpush2.bf16.msra.mxu1 %v1378_v47 }
  0x86   : > { %1022 = vmatprep.subr.bf16.mxu1 %v1381_v49 }
  0x87   : > { %982 = vmatpush2.bf16.msra.mxu0 %v1383_v50 }
  0x88   : > { %983 = vmatprep.subr.bf16.mxu0 %v1385_v52 }
  0x89   : > { %1023 = vmatpush2.bf16.msra.mxu1 %v1384_v51 }
  0x8a   : > { %1024 = vmatprep.subr.bf16.mxu1 %v1387_v53 }
  0x8b   : > { %984 = vmatpush2.bf16.msra.mxu0 %v1389_v54 }
  0x8c   : > { %985 = vmatprep.subr.bf16.mxu0 %v1391_v56 }
  0x8d   : > { %1025 = vmatpush2.bf16.msra.mxu1 %v1390_v55 }
  0x8e   : > { %1026 = vmatprep.subr.bf16.mxu1 %v1393_v57 }
  0x8f   : > { %986 = vmatpush2.bf16.msra.mxu0 %v1395_v58 }
  0x90   : > { %987 = vmatprep.subr.bf16.mxu0 %v1397_v60 }
  0x91   : > { %1027 = vmatpush2.bf16.msra.mxu1 %v1396_v59 }
  0x92   : > { %1028 = vmatprep.subr.bf16.mxu1 %v1399_v61 }
  0x93   : > { %988 = vmatpush2.bf16.msra.mxu0 %v1401_v62 }
  0x94   : > { %989 = vmatprep.subr.bf16.mxu0 %v1403_v2 }
  0x95   : > { %1029 = vmatpush2.bf16.msra.mxu1 %v1402_v63 }
  0x96   : > { %1030 = vmatprep.subr.bf16.mxu1 %v1405_v3 }
  0x97   : > { %990 = vmatpush2.bf16.msra.mxu0 %v1407_v4 }
  0x99   : > { %1031 = vmatpush2.bf16.msra.mxu1 %v1408_v5 }
  0x9a   : > { %992 = vmatmul.mubr.bf16.vlgmr.msra.gmra.mxu0 %v1202_v6 }
  0x9c   : > { %1033 = vmatmul.mubr.bf16.vlgmr.msra.gmra.mxu1 %v1204_v7 }
 0x15a   : > { %v993_v13 = vpop.f32.mrf.mxu0 }
 0x15c   : > { %v1034_v1 = vpop.f32.mrf.mxu1  ;;  %v995_v16 = vpop.f32.mrf.mxu0 }
 0x15d   : > { %v1035_v14 = vadd.f32 %v1034_v1, %v993_v13 }
 0x15e   : > { %v1036_v17 = vpop.f32.mrf.mxu1  ;;  %v997_v20 = vpop.f32.mrf.mxu0 }
 0x15f   : > { %v1062_v18 = vadd.f32 %v1055_v0, %v1035_v14  ;;  %v1037_v19 = vadd.f32 %v1036_v17, %v995_v16 }
 0x160   : > { %v1038_v21 = vpop.f32.mrf.mxu1  ;;  %v998_v23 = vpop.f32.mrf.mxu0 }
 0x161   : > { %1064 = vst [vmem:[%s549_s14] sm:$0xff] %v1062_v18  ;;  %v1063_v22 = vadd.f32 %v1059_v15, %v1037_v19 }
 0x162   : > { %v1039_v24 = vpop.f32.mrf.mxu1 }
 0x163   : > { %1065 = vst [vmem:[%s549_s14 + $0x8] sm:$0xff] %v1063_v22 }
 0x164 PF: > { %s13_s16 = sadd.s32 1, %s1451_s16   ;;  %s1761_s12 = smov %s1439_s13 }
 0x165   : > { %p10_p10 = scmp.ge.s32.totalorder %s13_s16, 6   ;;  %s1762_s13 = smov %s1508_s20 }
 0x166   : > { %s1763_s14 = smov %s1447_s15  ;;  %s1764_s15 = smov %s1766_s17 }
 0x167   :  { %12 = sbr.rel (!%p10_p10) target bundleno = 3 (0x3), region = 119 }

// kernel: mammography_forward.81
= control target key start
LH: loop header
LB: loop body
LE: loop exit
PB: predicated region body
PF: predicated region fallthrough
CT: control target
= control target key end

     0   :  { %s842_s12 = smov 0   ;;  %s844_s13 = smov 0   ;;  %s927_s0 = inlined_call_operand.vmem [shape: bf16[8,2304], index: 0, kind: input, shape index: {}]   ;;  %s928_s1 = inlined_call_operand.vmem [shape: bf16[2304,256], index: 1, kind: input, shape index: {}]   ;;  %s929_s2 = inlined_call_operand.vmem [shape: f32[1,256], index: 2, kind: input, shape index: {}]   ;;  %s930_s3 = inlined_call_operand.vmem [shape: f32[8,256], index: 3, kind: output, shape index: {}]  }
   0x1   :  { %s846_s14 = smov 0  }
   0x2 LB: > { %s25_s15 = sadd.s32 1, %s815_s13  ;;  %p675_p0 = scmp.ge.s32.totalorder %s819_s14, 1  ;;  %s819_s14 = sphi %s846_s14, %s13_s14   ;;  %s815_s13 = sphi %s844_s13, %s932_s13   ;;  %s811_s12 = sphi %s842_s12, %s931_s12  }
   0x3   : > { %p26_p1 = scmp.ge.s32.totalorder %s25_s15, 9  ;;  %p194_p2 = scmp.lt.s32.totalorder %s819_s14, 10 }
   0x5   : > { %s934_s15 = smov (%p26_p1, %s25_s15), 0  ;;  %p195_p3 = pnand %p675_p0, %p194_p2 }
   0x6   : > { %s676_s16 = sshll.u32 (!%p195_p3), %s811_s12, 1  ;;  %s678_s17 = sshll.u32 (!%p195_p3), %s811_s12, 5 }
   0x7   : > { %198 = sbr.rel (%p195_p3) target bundleno = 299 (0x12b), region = 32  ;;  %p243_p4 = scmp.lt.s32.totalorder (!%p195_p3), %s676_s16, 17 }
   0x8   : > { %p252_p5 = scmp.lt.s32.totalorder (!%p195_p3), %s678_s17, 287  ;;  %p681_p6 = scmp.ne.s32.totalorder (!%p195_p3), %s811_s12, 0 }
   0xc   : > { %s936_s16 = smov (!%p243_p4, %s676_s16), 17  ;;  %s938_s17 = smov (!%p252_p5, %s678_s17), 287 }
   0xd   : > { %s677_s18 = sshll.u32 %s936_s16, 2  ;;  %s721_s22 = sshll.u32 %s938_s17, 3 }
   0xe   : > { %s867_s21 = scalar_lea.vmem %s927_s0, %s677_s18  ;;  %s872_s25 = scalar_lea.vmem %s928_s1, %s721_s22 }
   0xf   : > { %280 = sbr.rel (%p681_p6) target bundleno = 22 (0x16), region = 36 }
  0x14   : > { %v821_v0 = vmov 0.0  }
  0x15   : > { %281 = vst [vmem:[#allocation2] sm:$0xff] %v821_v0  ;;  %282 = vst [vmem:[#allocation2 + $0x8] sm:$0xff] %v821_v0 }
  0x16 PF: > { %v747_v1 = vld [vmem:[%s872_s25 + $0x74] ss:$8 sps:$4 sm:$0xff]   ;;  %v749_v2 = vld [vmem:[%s872_s25 + $0x70] ss:$8 sps:$4 sm:$0xff]   ;;  %v750_v3 = vld [vmem:[%s872_s25 + $0x64] ss:$8 sps:$4 sm:$0xff]  }
  0x17   : > { %485 = vmatprep.subr.bf16.mxu0 %v747_v1  ;;  %v752_v4 = vld [vmem:[%s872_s25 + $0x60] ss:$8 sps:$4 sm:$0xff]   ;;  %v753_v5 = vld [vmem:[%s872_s25 + $0x54] ss:$8 sps:$4 sm:$0xff]   ;;  %v755_v6 = vld [vmem:[%s872_s25 + $0x50] ss:$8 sps:$4 sm:$0xff]  }
  0x18   : > { %486 = vmatpush1.bf16.msra.mxu0 %v749_v2  ;;  %v756_v7 = vld [vmem:[%s872_s25 + $0x44] ss:$8 sps:$4 sm:$0xff]   ;;  %v758_v8 = vld [vmem:[%s872_s25 + $0x40] ss:$8 sps:$4 sm:$0xff]   ;;  %v759_v9 = vld [vmem:[%s872_s25 + $0x34] ss:$8 sps:$4 sm:$0xff]  }
  0x19   : > { %487 = vmatprep.subr.bf16.mxu0 %v750_v3  ;;  %v761_v10 = vld [vmem:[%s872_s25 + $0x30] ss:$8 sps:$4 sm:$0xff]   ;;  %v762_v11 = vld [vmem:[%s872_s25 + $0x24] ss:$8 sps:$4 sm:$0xff]   ;;  %v764_v12 = vld [vmem:[%s872_s25 + $0x20] ss:$8 sps:$4 sm:$0xff]  }
  0x1a   : > { %v765_v13 = vld [vmem:[%s872_s25 + $0x14] ss:$8 sps:$4 sm:$0xff]   ;;  %v285_v14 = vld [vmem:[%s867_s21] sm:$0xff]  ;;  %v767_v16 = vld [vmem:[%s872_s25 + $0x10] ss:$8 sps:$4 sm:$0xff]   ;;  %p716_p7 = scmp.ne.s32.totalorder %s811_s12, 8 }
  0x1b   : > { %v683_v15 = vcombine.high %v285_v14, %v285_v14  ;;  %v768_v17 = vld [vmem:[%s872_s25 + $0x4] ss:$8 sps:$4 sm:$0xff]   ;;  %v770_v18 = vld [vmem:[%s872_s25] ss:$8 sps:$4 sm:$0xff]   ;;  %v771_v19 = vld [vmem:[%s872_s25 + $0xf4] ss:$8 sps:$4 sm:$0xff]   ;;  %v682_v35 = vcombine.low %v285_v14, %v285_v14 }
  0x1c   : > { %488 = vmatpush1.bf16.msra.mxu0 %v752_v4  ;;  %v773_v20 = vld [vmem:[%s872_s25 + $0xf0] ss:$8 sps:$4 sm:$0xff]   ;;  %v774_v21 = vld [vmem:[%s872_s25 + $0xe4] ss:$8 sps:$4 sm:$0xff]   ;;  %v776_v22 = vld [vmem:[%s872_s25 + $0xe0] ss:$8 sps:$4 sm:$0xff]  }
  0x1d   : > { %489 = vmatprep.subr.bf16.mxu0 %v753_v5  ;;  %517 = vmatprep.mubr.bf16.mxu0 %v683_v15  ;;  %v777_v23 = vld [vmem:[%s872_s25 + $0xd4] ss:$8 sps:$4 sm:$0xff]   ;;  %v779_v24 = vld [vmem:[%s872_s25 + $0xd0] ss:$8 sps:$4 sm:$0xff]   ;;  %v780_v25 = vld [vmem:[%s872_s25 + $0xc4] ss:$8 sps:$4 sm:$0xff]  }
  0x1e   : > { %v782_v26 = vld [vmem:[%s872_s25 + $0xc0] ss:$8 sps:$4 sm:$0xff]   ;;  %v783_v27 = vld [vmem:[%s872_s25 + $0xb4] ss:$8 sps:$4 sm:$0xff]   ;;  %v785_v28 = vld [vmem:[%s872_s25 + $0xb0] ss:$8 sps:$4 sm:$0xff]  }
  0x1f   : > { %v786_v29 = vld [vmem:[%s872_s25 + $0xa4] ss:$8 sps:$4 sm:$0xff]   ;;  %v788_v30 = vld [vmem:[%s872_s25 + $0xa0] ss:$8 sps:$4 sm:$0xff]   ;;  %v789_v31 = vld [vmem:[%s872_s25 + $0x94] ss:$8 sps:$4 sm:$0xff]  }
  0x20   : > { %490 = vmatpush1.bf16.msra.mxu0 %v755_v6  ;;  %v791_v32 = vld [vmem:[%s872_s25 + $0x90] ss:$8 sps:$4 sm:$0xff]   ;;  %v792_v33 = vld [vmem:[%s872_s25 + $0x84] ss:$8 sps:$4 sm:$0xff]   ;;  %v794_v34 = vld [vmem:[%s872_s25 + $0x80] ss:$8 sps:$4 sm:$0xff]  }
  0x21   : > { %491 = vmatprep.subr.bf16.mxu0 %v756_v7  ;;  %v283_v36 = vld [vmem:[#allocation2] sm:$0xff]  ;;  %v284_v38 = vld [vmem:[#allocation2 + $0x8] sm:$0xff] }
  0x24   : > { %492 = vmatpush1.bf16.msra.mxu0 %v758_v8 }
  0x25   : > { %493 = vmatprep.subr.bf16.mxu0 %v759_v9 }
  0x28   : > { %494 = vmatpush1.bf16.msra.mxu0 %v761_v10 }
  0x29   : > { %495 = vmatprep.subr.bf16.mxu0 %v762_v11 }
  0x2c   : > { %496 = vmatpush1.bf16.msra.mxu0 %v764_v12 }
  0x2d   : > { %497 = vmatprep.subr.bf16.mxu0 %v765_v13 }
  0x30   : > { %498 = vmatpush1.bf16.msra.mxu0 %v767_v16 }
  0x31   : > { %499 = vmatprep.subr.bf16.mxu0 %v768_v17 }
  0x34   : > { %500 = vmatpush1.bf16.msra.mxu0 %v770_v18 }
  0x35   : > { %501 = vmatprep.subr.bf16.mxu0 %v771_v19 }
  0x38   : > { %502 = vmatpush2.bf16.msra.mxu0 %v773_v20 }
  0x39   : > { %503 = vmatprep.subr.bf16.mxu0 %v774_v21 }
  0x3c   : > { %504 = vmatpush2.bf16.msra.mxu0 %v776_v22 }
  0x3d   : > { %505 = vmatprep.subr.bf16.mxu0 %v777_v23 }
  0x40   : > { %506 = vmatpush2.bf16.msra.mxu0 %v779_v24 }
  0x41   : > { %507 = vmatprep.subr.bf16.mxu0 %v780_v25 }
  0x44   : > { %508 = vmatpush2.bf16.msra.mxu0 %v782_v26 }
  0x45   : > { %509 = vmatprep.subr.bf16.mxu0 %v783_v27 }
  0x48   : > { %510 = vmatpush2.bf16.msra.mxu0 %v785_v28 }
  0x49   : > { %511 = vmatprep.subr.bf16.mxu0 %v786_v29 }
  0x4c   : > { %512 = vmatpush2.bf16.msra.mxu0 %v788_v30 }
  0x4d   : > { %513 = vmatprep.subr.bf16.mxu0 %v789_v31 }
  0x50   : > { %514 = vmatpush2.bf16.msra.mxu0 %v791_v32 }
  0x51   : > { %515 = vmatprep.subr.bf16.mxu0 %v792_v33 }
  0x54   : > { %516 = vmatpush2.bf16.msra.mxu0 %v794_v34 }
  0x57   : > { %518 = vmatmul.mubr.bf16.vlgmr.msra.gmra.mxu0 %v682_v35 }
 0x117   : > { %v519_v37 = vpop.f32.mrf.mxu0 }
 0x118   : > { %v526_v39 = vadd.f32 %v519_v37, %v283_v36 }
 0x119   : > { %v521_v40 = vpop.f32.mrf.mxu0  ;;  %533 = sbr.rel (%p716_p7) target bundleno = 299 (0x12b), region = 40 }
 0x11a   : > { %528 = vst [vmem:[#allocation2] sm:$0xff] %v526_v39  ;;  %v527_v41 = vadd.f32 %v521_v40, %v284_v38 }
 0x11b   : > { %v523_v42 = vpop.f32.mrf.mxu0 }
 0x11c   : > { %529 = vst [vmem:[#allocation2 + $0x8] sm:$0xff] %v527_v41 }
 0x11d   : > { %v524_v43 = vpop.f32.mrf.mxu0 }
 0x11e   : > { %v538_v44 = vlaneseq  ;;  %v536_v46 = vld [vmem:[%s929_s2] sm:$0x3] }
 0x120   : > { %v539_v45 = vshrl.u32 %v538_v44, 7 }
 0x121   : > { %v534_v49 = vld [vmem:[#allocation2] sm:$0xff] }
 0x122   : > { %v540_v47 = vsub.s32 0, %v539_v45  ;;  %v544_v48 = vsub.s32 1, %v539_v45 }
 0x123   : > { %v535_v50 = vld [vmem:[#allocation2 + $0x8] sm:$0xff] }
 0x124   : > { %v541_v51 = vrot.slane %v536_v46, %v540_v47  ;;  %v545_v52 = vrot.slane %v536_v46, %v544_v48 }
 0x126   : > { %v548_v53 = vadd.f32 %v541_v51, %v534_v49  ;;  %v549_v54 = vadd.f32 %v545_v52, %v535_v50 }
 0x128   : > { %v550_v55 = vmax.f32 %v548_v53, 0.0  ;;  %v551_v56 = vmax.f32 %v549_v54, 0.0 }
 0x12a   : > { %552 = vst [vmem:[%s930_s3] sm:$0xff] %v550_v55  ;;  %553 = vst [vmem:[%s930_s3 + $0x8] sm:$0xff] %v551_v56 }
 0x12b PF: > { %s13_s14 = sadd.s32 1, %s819_s14   ;;  %s931_s12 = smov %s815_s13 }
 0x12c   : > { %p10_p8 = scmp.ge.s32.totalorder %s13_s14, 11   ;;  %s932_s13 = smov %s934_s15 }
 0x12e   :  { %12 = sbr.rel (!%p10_p8) target bundleno = 2 (0x2), region = 76 }

// kernel: mammography_forward.83
= control target key start
LH: loop header
LB: loop body
LE: loop exit
PB: predicated region body
PF: predicated region fallthrough
CT: control target
= control target key end

     0   :  { %s1167_s12 = smov 0   ;;  %s1169_s13 = smov 0   ;;  %s1285_s0 = inlined_call_operand.vmem [shape: bf16[8,1024], index: 0, kind: input, shape index: {}]   ;;  %s1286_s1 = inlined_call_operand.vmem [shape: bf16[1024,256], index: 1, kind: input, shape index: {}]   ;;  %s1287_s2 = inlined_call_operand.vmem [shape: f32[1,256], index: 2, kind: input, shape index: {}]   ;;  %s1288_s3 = inlined_call_operand.vmem [shape: f32[8,256], index: 3, kind: output, shape index: {}]  }
   0x1   :  { %s1171_s14 = smov 0  }
   0x2 LB: > { %s25_s15 = sadd.s32 1, %s1140_s13  ;;  %p916_p0 = scmp.ge.s32.totalorder %s1144_s14, 1  ;;  %s1144_s14 = sphi %s1171_s14, %s13_s14   ;;  %s1140_s13 = sphi %s1169_s13, %s1290_s13   ;;  %s1136_s12 = sphi %s1167_s12, %s1289_s12  }
   0x3   : > { %p26_p1 = scmp.ge.s32.totalorder %s25_s15, 2  ;;  %p194_p2 = scmp.lt.s32.totalorder %s1144_s14, 3 }
   0x5   : > { %s1292_s15 = smov (%p26_p1, %s25_s15), 0  ;;  %p195_p3 = pnand %p916_p0, %p194_p2 }
   0x6   : > { %s917_s16 = sshll.u32 (!%p195_p3), %s1136_s12, 2  ;;  %s919_s17 = sshll.u32 (!%p195_p3), %s1136_s12, 6 }
   0x7   : > { %198 = sbr.rel (%p195_p3) target bundleno = 301 (0x12d), region = 32  ;;  %p243_p4 = scmp.lt.s32.totalorder (!%p195_p3), %s917_s16, 7 }
   0x8   : > { %p252_p5 = scmp.lt.s32.totalorder (!%p195_p3), %s919_s17, 127  ;;  %p922_p6 = scmp.ne.s32.totalorder (!%p195_p3), %s1136_s12, 0 }
   0xc   : > { %s1294_s16 = smov (!%p243_p4, %s917_s16), 7  ;;  %s1296_s17 = smov (!%p252_p5, %s919_s17), 127 }
   0xd   : > { %s918_s18 = sshll.u32 %s1294_s16, 2  ;;  %s996_s22 = sshll.u32 %s1296_s17, 3 }
   0xe   : > { %s1192_s21 = scalar_lea.vmem %s1285_s0, %s918_s18  ;;  %s1197_s25 = scalar_lea.vmem %s1286_s1, %s996_s22 }
   0xf   : > { %280 = sbr.rel (%p922_p6) target bundleno = 22 (0x16), region = 36 }
  0x14   : > { %v1146_v0 = vmov 0.0  }
  0x15   : > { %281 = vst [vmem:[#allocation2] sm:$0xff] %v1146_v0  ;;  %282 = vst [vmem:[#allocation2 + $0x8] sm:$0xff] %v1146_v0 }
  0x16 PF: > { %v1022_v1 = vld [vmem:[%s1197_s25 + $0x74] ss:$8 sps:$4 sm:$0xff]   ;;  %v1026_v3 = vld [vmem:[%s1197_s25 + $0x70] ss:$8 sps:$4 sm:$0xff]   ;;  %v1028_v5 = vld [vmem:[%s1197_s25 + $0x64] ss:$8 sps:$4 sm:$0xff]  }
  0x17   : > { %v1024_v2 = vld [vmem:[%s1197_s25 + $0x174] ss:$8 sps:$4 sm:$0xff]   ;;  %685 = vmatprep.subr.bf16.mxu0 %v1022_v1  ;;  %v1027_v4 = vld [vmem:[%s1197_s25 + $0x170] ss:$8 sps:$4 sm:$0xff]   ;;  %v1030_v6 = vld [vmem:[%s1197_s25 + $0x164] ss:$8 sps:$4 sm:$0xff]  }
  0x18   : > { %726 = vmatprep.subr.bf16.mxu1 %v1024_v2  ;;  %686 = vmatpush1.bf16.msra.mxu0 %v1026_v3  ;;  %v1032_v7 = vld [vmem:[%s1197_s25 + $0x60] ss:$8 sps:$4 sm:$0xff]   ;;  %v1034_v9 = vld [vmem:[%s1197_s25 + $0x54] ss:$8 sps:$4 sm:$0xff]   ;;  %v1038_v11 = vld [vmem:[%s1197_s25 + $0x50] ss:$8 sps:$4 sm:$0xff]  }
  0x19   : > { %727 = vmatpush1.bf16.msra.mxu1 %v1027_v4  ;;  %687 = vmatprep.subr.bf16.mxu0 %v1028_v5  ;;  %v1033_v8 = vld [vmem:[%s1197_s25 + $0x160] ss:$8 sps:$4 sm:$0xff]   ;;  %v1036_v10 = vld [vmem:[%s1197_s25 + $0x154] ss:$8 sps:$4 sm:$0xff]   ;;  %v1039_v12 = vld [vmem:[%s1197_s25 + $0x150] ss:$8 sps:$4 sm:$0xff]  }
  0x1a   : > { %728 = vmatprep.subr.bf16.mxu1 %v1030_v6  ;;  %v1040_v13 = vld [vmem:[%s1197_s25 + $0x44] ss:$8 sps:$4 sm:$0xff]   ;;  %v1044_v15 = vld [vmem:[%s1197_s25 + $0x40] ss:$8 sps:$4 sm:$0xff]   ;;  %v1046_v17 = vld [vmem:[%s1197_s25 + $0x34] ss:$8 sps:$4 sm:$0xff]  }
  0x1b   : > { %v1042_v14 = vld [vmem:[%s1197_s25 + $0x144] ss:$8 sps:$4 sm:$0xff]   ;;  %v1045_v16 = vld [vmem:[%s1197_s25 + $0x140] ss:$8 sps:$4 sm:$0xff]   ;;  %v1048_v18 = vld [vmem:[%s1197_s25 + $0x134] ss:$8 sps:$4 sm:$0xff]  }
  0x1c   : > { %688 = vmatpush1.bf16.msra.mxu0 %v1032_v7  ;;  %v1050_v19 = vld [vmem:[%s1197_s25 + $0x30] ss:$8 sps:$4 sm:$0xff]   ;;  %v1052_v21 = vld [vmem:[%s1197_s25 + $0x24] ss:$8 sps:$4 sm:$0xff]   ;;  %v1056_v23 = vld [vmem:[%s1197_s25 + $0x20] ss:$8 sps:$4 sm:$0xff]  }
  0x1d   : > { %729 = vmatpush1.bf16.msra.mxu1 %v1033_v8  ;;  %689 = vmatprep.subr.bf16.mxu0 %v1034_v9  ;;  %v1051_v20 = vld [vmem:[%s1197_s25 + $0x130] ss:$8 sps:$4 sm:$0xff]   ;;  %v1054_v22 = vld [vmem:[%s1197_s25 + $0x124] ss:$8 sps:$4 sm:$0xff]   ;;  %v1057_v24 = vld [vmem:[%s1197_s25 + $0x120] ss:$8 sps:$4 sm:$0xff]  }
  0x1e   : > { %730 = vmatprep.subr.bf16.mxu1 %v1036_v10  ;;  %v1058_v25 = vld [vmem:[%s1197_s25 + $0x14] ss:$8 sps:$4 sm:$0xff]   ;;  %v1062_v27 = vld [vmem:[%s1197_s25 + $0x10] ss:$8 sps:$4 sm:$0xff]   ;;  %v1064_v29 = vld [vmem:[%s1197_s25 + $0x4] ss:$8 sps:$4 sm:$0xff]  }
  0x1f   : > { %v1060_v26 = vld [vmem:[%s1197_s25 + $0x114] ss:$8 sps:$4 sm:$0xff]   ;;  %v1063_v28 = vld [vmem:[%s1197_s25 + $0x110] ss:$8 sps:$4 sm:$0xff]   ;;  %v1066_v30 = vld [vmem:[%s1197_s25 + $0x104] ss:$8 sps:$4 sm:$0xff]  }
  0x20   : > { %690 = vmatpush1.bf16.msra.mxu0 %v1038_v11  ;;  %v1068_v31 = vld [vmem:[%s1197_s25] ss:$8 sps:$4 sm:$0xff]   ;;  %v1070_v33 = vld [vmem:[%s1197_s25 + $0xf4] ss:$8 sps:$4 sm:$0xff]   ;;  %v1074_v35 = vld [vmem:[%s1197_s25 + $0xf0] ss:$8 sps:$4 sm:$0xff]  }
  0x21   : > { %731 = vmatpush1.bf16.msra.mxu1 %v1039_v12  ;;  %691 = vmatprep.subr.bf16.mxu0 %v1040_v13  ;;  %v1069_v32 = vld [vmem:[%s1197_s25 + $0x100] ss:$8 sps:$4 sm:$0xff]   ;;  %v1072_v34 = vld [vmem:[%s1197_s25 + $0x1f4] ss:$8 sps:$4 sm:$0xff]   ;;  %v1075_v36 = vld [vmem:[%s1197_s25 + $0x1f0] ss:$8 sps:$4 sm:$0xff]  }
  0x22   : > { %732 = vmatprep.subr.bf16.mxu1 %v1042_v14  ;;  %v1076_v37 = vld [vmem:[%s1197_s25 + $0xe4] ss:$8 sps:$4 sm:$0xff]   ;;  %v1080_v39 = vld [vmem:[%s1197_s25 + $0xe0] ss:$8 sps:$4 sm:$0xff]   ;;  %v1082_v41 = vld [vmem:[%s1197_s25 + $0xd4] ss:$8 sps:$4 sm:$0xff]  }
  0x23   : > { %v1078_v38 = vld [vmem:[%s1197_s25 + $0x1e4] ss:$8 sps:$4 sm:$0xff]   ;;  %v1081_v40 = vld [vmem:[%s1197_s25 + $0x1e0] ss:$8 sps:$4 sm:$0xff]   ;;  %v1084_v42 = vld [vmem:[%s1197_s25 + $0x1d4] ss:$8 sps:$4 sm:$0xff]  }
  0x24   : > { %692 = vmatpush1.bf16.msra.mxu0 %v1044_v15  ;;  %v1086_v43 = vld [vmem:[%s1197_s25 + $0xd0] ss:$8 sps:$4 sm:$0xff]   ;;  %v1088_v45 = vld [vmem:[%s1197_s25 + $0xc4] ss:$8 sps:$4 sm:$0xff]   ;;  %v1092_v50 = vld [vmem:[%s1197_s25 + $0xc0] ss:$8 sps:$4 sm:$0xff]  }
  0x25   : > { %733 = vmatpush1.bf16.msra.mxu1 %v1045_v16  ;;  %693 = vmatprep.subr.bf16.mxu0 %v1046_v17  ;;  %v1087_v44 = vld [vmem:[%s1197_s25 + $0x1d0] ss:$8 sps:$4 sm:$0xff]   ;;  %v1090_v46 = vld [vmem:[%s1197_s25 + $0x1c4] ss:$8 sps:$4 sm:$0xff]   ;;  %v1093_v51 = vld [vmem:[%s1197_s25 + $0x1c0] ss:$8 sps:$4 sm:$0xff]  }
  0x26   : > { %734 = vmatprep.subr.bf16.mxu1 %v1048_v18  ;;  %v285_v47 = vld [vmem:[%s1192_s21] sm:$0xff]  ;;  %v286_v49 = vld [vmem:[%s1192_s21 + $0x8] sm:$0xff]  ;;  %v1094_v53 = vld [vmem:[%s1197_s25 + $0xb4] ss:$8 sps:$4 sm:$0xff]   ;;  %p991_p7 = scmp.ne.s32.totalorder %s1136_s12, 1 }
  0x27   : > { %v924_v48 = vcombine.high %v285_v47, %v285_v47  ;;  %v926_v52 = vcombine.high %v286_v49, %v286_v49  ;;  %v1096_v54 = vld [vmem:[%s1197_s25 + $0x1b4] ss:$8 sps:$4 sm:$0xff]   ;;  %v1098_v55 = vld [vmem:[%s1197_s25 + $0xb0] ss:$8 sps:$4 sm:$0xff]   ;;  %v1100_v57 = vld [vmem:[%s1197_s25 + $0xa4] ss:$8 sps:$4 sm:$0xff]   ;;  %v923_v5 = vcombine.low %v285_v47, %v285_v47  ;;  %v925_v6 = vcombine.low %v286_v49, %v286_v49 }
  0x28   : > { %694 = vmatpush1.bf16.msra.mxu0 %v1050_v19  ;;  %v1099_v56 = vld [vmem:[%s1197_s25 + $0x1b0] ss:$8 sps:$4 sm:$0xff]   ;;  %v1102_v58 = vld [vmem:[%s1197_s25 + $0x1a4] ss:$8 sps:$4 sm:$0xff]   ;;  %v1104_v59 = vld [vmem:[%s1197_s25 + $0xa0] ss:$8 sps:$4 sm:$0xff]  }
  0x29   : > { %735 = vmatpush1.bf16.msra.mxu1 %v1051_v20  ;;  %695 = vmatprep.subr.bf16.mxu0 %v1052_v21  ;;  %v1105_v60 = vld [vmem:[%s1197_s25 + $0x1a0] ss:$8 sps:$4 sm:$0xff]   ;;  %v1106_v61 = vld [vmem:[%s1197_s25 + $0x94] ss:$8 sps:$4 sm:$0xff]   ;;  %v1110_v63 = vld [vmem:[%s1197_s25 + $0x90] ss:$8 sps:$4 sm:$0xff]  }
  0x2a   : > { %736 = vmatprep.subr.bf16.mxu1 %v1054_v22  ;;  %717 = vmatprep.mubr.bf16.mxu0 %v924_v48  ;;  %v1108_v62 = vld [vmem:[%s1197_s25 + $0x194] ss:$8 sps:$4 sm:$0xff]   ;;  %v1111_v0 = vld [vmem:[%s1197_s25 + $0x190] ss:$8 sps:$4 sm:$0xff]   ;;  %v1112_v1 = vld [vmem:[%s1197_s25 + $0x84] ss:$8 sps:$4 sm:$0xff]  }
  0x2b   : > { %758 = vmatprep.mubr.bf16.mxu1 %v926_v52  ;;  %v1114_v2 = vld [vmem:[%s1197_s25 + $0x184] ss:$8 sps:$4 sm:$0xff]   ;;  %v1116_v3 = vld [vmem:[%s1197_s25 + $0x80] ss:$8 sps:$4 sm:$0xff]  }
  0x2c   : > { %696 = vmatpush1.bf16.msra.mxu0 %v1056_v23  ;;  %v1117_v4 = vld [vmem:[%s1197_s25 + $0x180] ss:$8 sps:$4 sm:$0xff]  }
  0x2d   : > { %737 = vmatpush1.bf16.msra.mxu1 %v1057_v24  ;;  %697 = vmatprep.subr.bf16.mxu0 %v1058_v25  ;;  %v283_v8 = vld [vmem:[#allocation2] sm:$0xff]  ;;  %v284_v12 = vld [vmem:[#allocation2 + $0x8] sm:$0xff] }
  0x2e   : > { %738 = vmatprep.subr.bf16.mxu1 %v1060_v26 }
  0x30   : > { %698 = vmatpush1.bf16.msra.mxu0 %v1062_v27 }
  0x31   : > { %739 = vmatpush1.bf16.msra.mxu1 %v1063_v28  ;;  %699 = vmatprep.subr.bf16.mxu0 %v1064_v29 }
  0x32   : > { %740 = vmatprep.subr.bf16.mxu1 %v1066_v30 }
  0x34   : > { %700 = vmatpush1.bf16.msra.mxu0 %v1068_v31 }
  0x35   : > { %741 = vmatpush1.bf16.msra.mxu1 %v1069_v32  ;;  %701 = vmatprep.subr.bf16.mxu0 %v1070_v33 }
  0x36   : > { %742 = vmatprep.subr.bf16.mxu1 %v1072_v34 }
  0x38   : > { %702 = vmatpush2.bf16.msra.mxu0 %v1074_v35 }
  0x39   : > { %743 = vmatpush2.bf16.msra.mxu1 %v1075_v36  ;;  %703 = vmatprep.subr.bf16.mxu0 %v1076_v37 }
  0x3a   : > { %744 = vmatprep.subr.bf16.mxu1 %v1078_v38 }
  0x3c   : > { %704 = vmatpush2.bf16.msra.mxu0 %v1080_v39 }
  0x3d   : > { %745 = vmatpush2.bf16.msra.mxu1 %v1081_v40  ;;  %705 = vmatprep.subr.bf16.mxu0 %v1082_v41 }
  0x3e   : > { %746 = vmatprep.subr.bf16.mxu1 %v1084_v42 }
  0x40   : > { %706 = vmatpush2.bf16.msra.mxu0 %v1086_v43 }
  0x41   : > { %747 = vmatpush2.bf16.msra.mxu1 %v1087_v44  ;;  %707 = vmatprep.subr.bf16.mxu0 %v1088_v45 }
  0x42   : > { %748 = vmatprep.subr.bf16.mxu1 %v1090_v46 }
  0x44   : > { %708 = vmatpush2.bf16.msra.mxu0 %v1092_v50 }
  0x45   : > { %749 = vmatpush2.bf16.msra.mxu1 %v1093_v51  ;;  %709 = vmatprep.subr.bf16.mxu0 %v1094_v53 }
  0x46   : > { %750 = vmatprep.subr.bf16.mxu1 %v1096_v54 }
  0x48   : > { %710 = vmatpush2.bf16.msra.mxu0 %v1098_v55 }
  0x49   : > { %751 = vmatpush2.bf16.msra.mxu1 %v1099_v56  ;;  %711 = vmatprep.subr.bf16.mxu0 %v1100_v57 }
  0x4a   : > { %752 = vmatprep.subr.bf16.mxu1 %v1102_v58 }
  0x4c   : > { %712 = vmatpush2.bf16.msra.mxu0 %v1104_v59 }
  0x4d   : > { %753 = vmatpush2.bf16.msra.mxu1 %v1105_v60  ;;  %713 = vmatprep.subr.bf16.mxu0 %v1106_v61 }
  0x4e   : > { %754 = vmatprep.subr.bf16.mxu1 %v1108_v62 }
  0x50   : > { %714 = vmatpush2.bf16.msra.mxu0 %v1110_v63 }
  0x51   : > { %755 = vmatpush2.bf16.msra.mxu1 %v1111_v0  ;;  %715 = vmatprep.subr.bf16.mxu0 %v1112_v1 }
  0x52   : > { %756 = vmatprep.subr.bf16.mxu1 %v1114_v2 }
  0x54   : > { %716 = vmatpush2.bf16.msra.mxu0 %v1116_v3 }
  0x55   : > { %757 = vmatpush2.bf16.msra.mxu1 %v1117_v4 }
  0x57   : > { %718 = vmatmul.mubr.bf16.vlgmr.msra.gmra.mxu0 %v923_v5 }
  0x58   : > { %759 = vmatmul.mubr.bf16.vlgmr.msra.gmra.mxu1 %v925_v6 }
 0x117   : > { %v719_v7 = vpop.f32.mrf.mxu0 }
 0x118   : > { %v760_v9 = vpop.f32.mrf.mxu1 }
 0x119   : > { %v761_v10 = vadd.f32 %v760_v9, %v719_v7  ;;  %v721_v11 = vpop.f32.mrf.mxu0 }
 0x11a   : > { %v762_v13 = vpop.f32.mrf.mxu1 }
 0x11b   : > { %v767_v14 = vadd.f32 %v761_v10, %v283_v8  ;;  %v763_v15 = vadd.f32 %v762_v13, %v721_v11  ;;  %v723_v16 = vpop.f32.mrf.mxu0  ;;  %774 = sbr.rel (%p991_p7) target bundleno = 301 (0x12d), region = 40 }
 0x11c   : > { %v764_v17 = vpop.f32.mrf.mxu1 }
 0x11d   : > { %769 = vst [vmem:[#allocation2] sm:$0xff] %v767_v14  ;;  %v768_v18 = vadd.f32 %v763_v15, %v284_v12  ;;  %v724_v19 = vpop.f32.mrf.mxu0 }
 0x11e   : > { %v765_v20 = vpop.f32.mrf.mxu1 }
 0x11f   : > { %770 = vst [vmem:[#allocation2 + $0x8] sm:$0xff] %v768_v18 }
 0x120   : > { %v779_v21 = vlaneseq  ;;  %v777_v23 = vld [vmem:[%s1287_s2] sm:$0x3] }
 0x122   : > { %v780_v22 = vshrl.u32 %v779_v21, 7 }
 0x124   : > { %v781_v24 = vsub.s32 0, %v780_v22  ;;  %v785_v25 = vsub.s32 1, %v780_v22  ;;  %v775_v26 = vld [vmem:[#allocation2] sm:$0xff] }
 0x126   : > { %v776_v27 = vld [vmem:[#allocation2 + $0x8] sm:$0xff]  ;;  %v782_v28 = vrot.slane %v777_v23, %v781_v24  ;;  %v786_v29 = vrot.slane %v777_v23, %v785_v25 }
 0x128   : > { %v789_v30 = vadd.f32 %v782_v28, %v775_v26  ;;  %v790_v31 = vadd.f32 %v786_v29, %v776_v27 }
 0x12a   : > { %v791_v32 = vmax.f32 %v789_v30, 0.0  ;;  %v792_v33 = vmax.f32 %v790_v31, 0.0 }
 0x12c   : > { %793 = vst [vmem:[%s1288_s3] sm:$0xff] %v791_v32  ;;  %794 = vst [vmem:[%s1288_s3 + $0x8] sm:$0xff] %v792_v33 }
 0x12d PF: > { %s13_s14 = sadd.s32 1, %s1144_s14   ;;  %s1289_s12 = smov %s1140_s13 }
 0x12e   : > { %p10_p8 = scmp.ge.s32.totalorder %s13_s14, 4   ;;  %s1290_s13 = smov %s1292_s15 }
 0x130   :  { %12 = sbr.rel (!%p10_p8) target bundleno = 2 (0x2), region = 76 }

// kernel: mammography_forward.99
= control target key start
LH: loop header
LB: loop body
LE: loop exit
PB: predicated region body
PF: predicated region fallthrough
CT: control target
= control target key end

     0   :  { %s1515_s12 = smov 0   ;;  %s1517_s13 = smov 0   ;;  %s1827_s0 = inlined_call_operand.vmem [shape: bf16[8,1024], index: 0, kind: input, shape index: {}]   ;;  %s1828_s1 = inlined_call_operand.vmem [shape: bf16[1024,512], index: 1, kind: input, shape index: {}]   ;;  %s1829_s2 = inlined_call_operand.vmem [shape: f32[1,512], index: 2, kind: input, shape index: {}]   ;;  %s1830_s3 = inlined_call_operand.vmem [shape: f32[8,512], index: 3, kind: output, shape index: {}]  }
   0x1   :  { %s1519_s14 = smov 0   ;;  %s1521_s15 = smov 0  }
   0x2   :  { %s1523_s16 = smov 0   ;;  %s1525_s17 = smov 0  }
   0x3   :  { %s1527_s18 = smov 0  }
   0x4 LB: > { %s25_s19 = sadd.s32 1, %s1484_s16  ;;  %s28_s20 = sadd.s32 1, %s1488_s17  ;;  %s1492_s18 = sphi %s1527_s18, %s13_s18   ;;  %s1488_s17 = sphi %s1525_s17, %s1836_s17   ;;  %s1484_s16 = sphi %s1523_s16, %s1835_s16   ;;  %s1480_s15 = sphi %s1521_s15, %s1834_s15   ;;  %s1476_s14 = sphi %s1519_s14, %s1833_s14   ;;  %s1472_s13 = sphi %s1517_s13, %s1832_s13   ;;  %s1468_s12 = sphi %s1515_s12, %s1831_s12  }
   0x5   : > { %p26_p0 = scmp.ge.s32.totalorder %s25_s19, 2  ;;  %p76_p1 = scmp.ne.s32.totalorder %s1472_s13, %s1468_s12 }
   0x6   : > { %p77_p2 = scmp.eq.s32.totalorder %s1492_s18, 0  ;;  %s69_s24 = sadd.s32 1, %s1472_s13 }
   0x7   : > { %s1838_s19 = smov (%p26_p0, %s25_s19), 0  ;;  %s1840_s20 = smov (!%p26_p0, %s28_s20), %s1488_s17 }
   0x8   : > { %p78_p3 = por %p77_p2, %p76_p1  ;;  %p30_p4 = scmp.ge.s32.totalorder %s1840_s20, 2 }
   0x9   : > { %s64_s21 = ssub.s32 %s1484_s16, %s1838_s19  ;;  %p1195_p6 = scmp.ge.s32.totalorder %s1492_s18, 4 }
   0xa   : > { %s1842_s20 = smov (%p30_p4, %s1840_s20), 0 }
   0xb   : > { %s65_s22 = ssub.s32 %s1488_s17, %s1842_s20  ;;  %156 = sbr.rel (%p1195_p6) target bundleno = 55 (0x37), region = 16 }
   0xc   : > { %s66_s23 = sor.u32 %s65_s22, %s64_s21 }
   0xd   : > { %p67_p5 = scmp.eq.s32.totalorder %s66_s23, 0 }
   0xf   : > { %s1566_s25 = scalar_select %p67_p5, %s1472_s13, %s69_s24  }
  0x10   : > { %172 = sbr.rel (!%p78_p3) target bundleno = 55 (0x37), region = 24  ;;  %s174_s26 = sand.u32 (%p78_p3), 1, %s1472_s13  }
  0x11   : > { %s1198_s27 = sshll.u32 (%p78_p3), %s1488_s17, 1  ;;  %s1196_s28 = sshll.u32 (%p78_p3), %s174_s26, 9 }
  0x12   : > { %s1280_s29 = sshll.u32 (%p78_p3), %s1484_s16, 8  ;;  %s1580_s8 = scalar_lea.vmem (%p78_p3), [#allocation3], %s1196_s28 }
  0x13   : > { %s180_s30 = sadd.s32 (%p78_p3), %s1280_s29, %s1198_s27 }
  0x14   : > { %s1200_s4 = sshll.u32 (%p78_p3), %s180_s30, 2 }
  0x15   : > { %s1575_s7 = scalar_lea.vmem %s1828_s1, %s1200_s4 }
  0x16   : > { %v337_v0 = vld [vmem:[%s1575_s7] sm:$0xff]  ;;  %v339_v1 = vld [vmem:[%s1575_s7 + $0x10] sm:$0xff] }
  0x17   : > { %v341_v2 = vld [vmem:[%s1575_s7 + $0x20] sm:$0xff]  ;;  %338 = vst [vmem:[%s1580_s8] sm:$0xff] %v337_v0  ;;  %340 = vst [vmem:[%s1580_s8 + $0x8] sm:$0xff] %v339_v1  ;;  %v343_v3 = vld [vmem:[%s1575_s7 + $0x30] sm:$0xff] }
  0x18   : > { %342 = vst [vmem:[%s1580_s8 + $0x10] sm:$0xff] %v341_v2  ;;  %v345_v4 = vld [vmem:[%s1575_s7 + $0x40] sm:$0xff]  ;;  %v347_v5 = vld [vmem:[%s1575_s7 + $0x50] sm:$0xff]  ;;  %344 = vst [vmem:[%s1580_s8 + $0x18] sm:$0xff] %v343_v3 }
  0x19   : > { %346 = vst [vmem:[%s1580_s8 + $0x20] sm:$0xff] %v345_v4  ;;  %348 = vst [vmem:[%s1580_s8 + $0x28] sm:$0xff] %v347_v5  ;;  %v349_v6 = vld [vmem:[%s1575_s7 + $0x60] sm:$0xff]  ;;  %v351_v7 = vld [vmem:[%s1575_s7 + $0x70] sm:$0xff] }
  0x1a   : > { %v353_v8 = vld [vmem:[%s1575_s7 + $0x80] sm:$0xff]  ;;  %350 = vst [vmem:[%s1580_s8 + $0x30] sm:$0xff] %v349_v6  ;;  %352 = vst [vmem:[%s1580_s8 + $0x38] sm:$0xff] %v351_v7  ;;  %v355_v9 = vld [vmem:[%s1575_s7 + $0x90] sm:$0xff] }
  0x1b   : > { %354 = vst [vmem:[%s1580_s8 + $0x40] sm:$0xff] %v353_v8  ;;  %v357_v10 = vld [vmem:[%s1575_s7 + $0xa0] sm:$0xff]  ;;  %v359_v11 = vld [vmem:[%s1575_s7 + $0xb0] sm:$0xff]  ;;  %356 = vst [vmem:[%s1580_s8 + $0x48] sm:$0xff] %v355_v9 }
  0x1c   : > { %358 = vst [vmem:[%s1580_s8 + $0x50] sm:$0xff] %v357_v10  ;;  %360 = vst [vmem:[%s1580_s8 + $0x58] sm:$0xff] %v359_v11  ;;  %v361_v12 = vld [vmem:[%s1575_s7 + $0xc0] sm:$0xff]  ;;  %v363_v13 = vld [vmem:[%s1575_s7 + $0xd0] sm:$0xff] }
  0x1d   : > { %v365_v14 = vld [vmem:[%s1575_s7 + $0xe0] sm:$0xff]  ;;  %362 = vst [vmem:[%s1580_s8 + $0x60] sm:$0xff] %v361_v12  ;;  %364 = vst [vmem:[%s1580_s8 + $0x68] sm:$0xff] %v363_v13  ;;  %v367_v15 = vld [vmem:[%s1575_s7 + $0xf0] sm:$0xff] }
  0x1e   : > { %366 = vst [vmem:[%s1580_s8 + $0x70] sm:$0xff] %v365_v14  ;;  %v369_v16 = vld [vmem:[%s1575_s7 + $0x100] sm:$0xff]  ;;  %v371_v17 = vld [vmem:[%s1575_s7 + $0x110] sm:$0xff]  ;;  %368 = vst [vmem:[%s1580_s8 + $0x78] sm:$0xff] %v367_v15 }
  0x1f   : > { %370 = vst [vmem:[%s1580_s8 + $0x80] sm:$0xff] %v369_v16  ;;  %372 = vst [vmem:[%s1580_s8 + $0x88] sm:$0xff] %v371_v17  ;;  %v373_v18 = vld [vmem:[%s1575_s7 + $0x120] sm:$0xff]  ;;  %v375_v19 = vld [vmem:[%s1575_s7 + $0x130] sm:$0xff] }
  0x20   : > { %v377_v20 = vld [vmem:[%s1575_s7 + $0x140] sm:$0xff]  ;;  %374 = vst [vmem:[%s1580_s8 + $0x90] sm:$0xff] %v373_v18  ;;  %376 = vst [vmem:[%s1580_s8 + $0x98] sm:$0xff] %v375_v19  ;;  %v379_v21 = vld [vmem:[%s1575_s7 + $0x150] sm:$0xff] }
  0x21   : > { %378 = vst [vmem:[%s1580_s8 + $0xa0] sm:$0xff] %v377_v20  ;;  %v381_v22 = vld [vmem:[%s1575_s7 + $0x160] sm:$0xff]  ;;  %v383_v23 = vld [vmem:[%s1575_s7 + $0x170] sm:$0xff]  ;;  %380 = vst [vmem:[%s1580_s8 + $0xa8] sm:$0xff] %v379_v21 }
  0x22   : > { %382 = vst [vmem:[%s1580_s8 + $0xb0] sm:$0xff] %v381_v22  ;;  %384 = vst [vmem:[%s1580_s8 + $0xb8] sm:$0xff] %v383_v23  ;;  %v385_v24 = vld [vmem:[%s1575_s7 + $0x180] sm:$0xff]  ;;  %v387_v25 = vld [vmem:[%s1575_s7 + $0x190] sm:$0xff] }
  0x23   : > { %v389_v26 = vld [vmem:[%s1575_s7 + $0x1a0] sm:$0xff]  ;;  %386 = vst [vmem:[%s1580_s8 + $0xc0] sm:$0xff] %v385_v24  ;;  %388 = vst [vmem:[%s1580_s8 + $0xc8] sm:$0xff] %v387_v25  ;;  %v391_v27 = vld [vmem:[%s1575_s7 + $0x1b0] sm:$0xff] }
  0x24   : > { %390 = vst [vmem:[%s1580_s8 + $0xd0] sm:$0xff] %v389_v26  ;;  %v393_v28 = vld [vmem:[%s1575_s7 + $0x1c0] sm:$0xff]  ;;  %v395_v29 = vld [vmem:[%s1575_s7 + $0x1d0] sm:$0xff]  ;;  %392 = vst [vmem:[%s1580_s8 + $0xd8] sm:$0xff] %v391_v27 }
  0x25   : > { %394 = vst [vmem:[%s1580_s8 + $0xe0] sm:$0xff] %v393_v28  ;;  %396 = vst [vmem:[%s1580_s8 + $0xe8] sm:$0xff] %v395_v29  ;;  %v397_v30 = vld [vmem:[%s1575_s7 + $0x1e0] sm:$0xff]  ;;  %v399_v31 = vld [vmem:[%s1575_s7 + $0x1f0] sm:$0xff] }
  0x26   : > { %v401_v32 = vld [vmem:[%s1575_s7 + $0x200] sm:$0xff]  ;;  %398 = vst [vmem:[%s1580_s8 + $0xf0] sm:$0xff] %v397_v30  ;;  %400 = vst [vmem:[%s1580_s8 + $0xf8] sm:$0xff] %v399_v31  ;;  %v403_v33 = vld [vmem:[%s1575_s7 + $0x210] sm:$0xff] }
  0x27   : > { %402 = vst [vmem:[%s1580_s8 + $0x100] sm:$0xff] %v401_v32  ;;  %v405_v34 = vld [vmem:[%s1575_s7 + $0x220] sm:$0xff]  ;;  %v407_v35 = vld [vmem:[%s1575_s7 + $0x230] sm:$0xff]  ;;  %404 = vst [vmem:[%s1580_s8 + $0x108] sm:$0xff] %v403_v33 }
  0x28   : > { %406 = vst [vmem:[%s1580_s8 + $0x110] sm:$0xff] %v405_v34  ;;  %408 = vst [vmem:[%s1580_s8 + $0x118] sm:$0xff] %v407_v35  ;;  %v409_v36 = vld [vmem:[%s1575_s7 + $0x240] sm:$0xff]  ;;  %v411_v37 = vld [vmem:[%s1575_s7 + $0x250] sm:$0xff] }
  0x29   : > { %v413_v38 = vld [vmem:[%s1575_s7 + $0x260] sm:$0xff]  ;;  %410 = vst [vmem:[%s1580_s8 + $0x120] sm:$0xff] %v409_v36  ;;  %412 = vst [vmem:[%s1580_s8 + $0x128] sm:$0xff] %v411_v37  ;;  %v415_v39 = vld [vmem:[%s1575_s7 + $0x270] sm:$0xff] }
  0x2a   : > { %414 = vst [vmem:[%s1580_s8 + $0x130] sm:$0xff] %v413_v38  ;;  %v417_v40 = vld [vmem:[%s1575_s7 + $0x280] sm:$0xff]  ;;  %v419_v41 = vld [vmem:[%s1575_s7 + $0x290] sm:$0xff]  ;;  %416 = vst [vmem:[%s1580_s8 + $0x138] sm:$0xff] %v415_v39 }
  0x2b   : > { %418 = vst [vmem:[%s1580_s8 + $0x140] sm:$0xff] %v417_v40  ;;  %420 = vst [vmem:[%s1580_s8 + $0x148] sm:$0xff] %v419_v41  ;;  %v421_v42 = vld [vmem:[%s1575_s7 + $0x2a0] sm:$0xff]  ;;  %v423_v43 = vld [vmem:[%s1575_s7 + $0x2b0] sm:$0xff] }
  0x2c   : > { %v425_v44 = vld [vmem:[%s1575_s7 + $0x2c0] sm:$0xff]  ;;  %422 = vst [vmem:[%s1580_s8 + $0x150] sm:$0xff] %v421_v42  ;;  %424 = vst [vmem:[%s1580_s8 + $0x158] sm:$0xff] %v423_v43  ;;  %v427_v45 = vld [vmem:[%s1575_s7 + $0x2d0] sm:$0xff] }
  0x2d   : > { %426 = vst [vmem:[%s1580_s8 + $0x160] sm:$0xff] %v425_v44  ;;  %v429_v46 = vld [vmem:[%s1575_s7 + $0x2e0] sm:$0xff]  ;;  %v431_v47 = vld [vmem:[%s1575_s7 + $0x2f0] sm:$0xff]  ;;  %428 = vst [vmem:[%s1580_s8 + $0x168] sm:$0xff] %v427_v45 }
  0x2e   : > { %430 = vst [vmem:[%s1580_s8 + $0x170] sm:$0xff] %v429_v46  ;;  %432 = vst [vmem:[%s1580_s8 + $0x178] sm:$0xff] %v431_v47  ;;  %v433_v48 = vld [vmem:[%s1575_s7 + $0x300] sm:$0xff]  ;;  %v435_v49 = vld [vmem:[%s1575_s7 + $0x310] sm:$0xff] }
  0x2f   : > { %v437_v50 = vld [vmem:[%s1575_s7 + $0x320] sm:$0xff]  ;;  %434 = vst [vmem:[%s1580_s8 + $0x180] sm:$0xff] %v433_v48  ;;  %436 = vst [vmem:[%s1580_s8 + $0x188] sm:$0xff] %v435_v49  ;;  %v439_v51 = vld [vmem:[%s1575_s7 + $0x330] sm:$0xff] }
  0x30   : > { %438 = vst [vmem:[%s1580_s8 + $0x190] sm:$0xff] %v437_v50  ;;  %v441_v52 = vld [vmem:[%s1575_s7 + $0x340] sm:$0xff]  ;;  %v443_v53 = vld [vmem:[%s1575_s7 + $0x350] sm:$0xff]  ;;  %440 = vst [vmem:[%s1580_s8 + $0x198] sm:$0xff] %v439_v51 }
  0x31   : > { %442 = vst [vmem:[%s1580_s8 + $0x1a0] sm:$0xff] %v441_v52  ;;  %444 = vst [vmem:[%s1580_s8 + $0x1a8] sm:$0xff] %v443_v53  ;;  %v445_v54 = vld [vmem:[%s1575_s7 + $0x360] sm:$0xff]  ;;  %v447_v55 = vld [vmem:[%s1575_s7 + $0x370] sm:$0xff] }
  0x32   : > { %v449_v56 = vld [vmem:[%s1575_s7 + $0x380] sm:$0xff]  ;;  %446 = vst [vmem:[%s1580_s8 + $0x1b0] sm:$0xff] %v445_v54  ;;  %448 = vst [vmem:[%s1580_s8 + $0x1b8] sm:$0xff] %v447_v55  ;;  %v451_v57 = vld [vmem:[%s1575_s7 + $0x390] sm:$0xff] }
  0x33   : > { %450 = vst [vmem:[%s1580_s8 + $0x1c0] sm:$0xff] %v449_v56  ;;  %v453_v58 = vld [vmem:[%s1575_s7 + $0x3a0] sm:$0xff]  ;;  %v455_v59 = vld [vmem:[%s1575_s7 + $0x3b0] sm:$0xff]  ;;  %452 = vst [vmem:[%s1580_s8 + $0x1c8] sm:$0xff] %v451_v57 }
  0x34   : > { %454 = vst [vmem:[%s1580_s8 + $0x1d0] sm:$0xff] %v453_v58  ;;  %456 = vst [vmem:[%s1580_s8 + $0x1d8] sm:$0xff] %v455_v59  ;;  %v457_v60 = vld [vmem:[%s1575_s7 + $0x3c0] sm:$0xff]  ;;  %v459_v61 = vld [vmem:[%s1575_s7 + $0x3d0] sm:$0xff] }
  0x35   : > { %v461_v62 = vld [vmem:[%s1575_s7 + $0x3e0] sm:$0xff]  ;;  %458 = vst [vmem:[%s1580_s8 + $0x1e0] sm:$0xff] %v457_v60  ;;  %460 = vst [vmem:[%s1580_s8 + $0x1e8] sm:$0xff] %v459_v61  ;;  %v463_v63 = vld [vmem:[%s1575_s7 + $0x3f0] sm:$0xff] }
  0x36   : > { %462 = vst [vmem:[%s1580_s8 + $0x1f0] sm:$0xff] %v461_v62  ;;  %464 = vst [vmem:[%s1580_s8 + $0x1f8] sm:$0xff] %v463_v63 }
  0x37 PF: > { %p1201_p7 = scmp.ge.s32.totalorder %s1492_s18, 1  ;;  %p477_p8 = scmp.lt.s32.totalorder %s1492_s18, 5 }
  0x39   : > { %p478_p9 = pnand %p1201_p7, %p477_p8 }
  0x3a   : > { %s484_s9 = sand.u32 (!%p478_p9), 1, %s1468_s12   ;;  %s1203_s10 = sshll.u32 (!%p478_p9), %s1476_s14, 2 }
  0x3b   : > { %481 = sbr.rel (%p478_p9) target bundleno = 353 (0x161), region = 66  ;;  %s1202_s11 = sshll.u32 (!%p478_p9), %s484_s9, 9 }
  0x3c   : > { %p527_p10 = scmp.lt.s32.totalorder (!%p478_p9), %s1203_s10, 7  ;;  %s1205_s21 = sshll.u32 (!%p478_p9), %s1480_s15, 1 }
  0x3d   : > { %p537_p11 = scmp.lt.s32.totalorder (!%p478_p9), %s1205_s21, 3  ;;  %s1729_s5 = scalar_lea.vmem (!%p478_p9), [#allocation3], %s1202_s11 }
  0x3e   : > { %p1208_p12 = scmp.ne.s32.totalorder (!%p478_p9), %s1476_s14, 0 }
  0x40   : > { %s1844_s10 = smov (!%p527_p10, %s1203_s10), 7  ;;  %s1846_s21 = smov (!%p537_p11, %s1205_s21), 3 }
  0x41   : > { %s1204_s22 = sshll.u32 %s1844_s10, 2  ;;  %s539_s12 = scalar_lea.vmem %s1829_s2, %s1846_s21 }
  0x42   : > { %s1715_s26 = scalar_lea.vmem %s1827_s0, %s1204_s22  ;;  %s1207_s29 = sshll.u32 %s1846_s21, 3 }
  0x43   : > { %s1727_s15 = scalar_lea.vmem %s1830_s3, %s1207_s29  ;;  %554 = sbr.rel (%p1208_p12) target bundleno = 74 (0x4a), region = 74 }
  0x48   : > { %v1494_v0 = vmov 0.0  }
  0x49   : > { %555 = vst [vmem:[#allocation2] sm:$0xff] %v1494_v0  ;;  %556 = vst [vmem:[#allocation2 + $0x8] sm:$0xff] %v1494_v0 }
  0x4a PF: > { %v1338_v1 = vld [vmem:[%s1729_s5 + $0x74] ss:$8 sps:$4 sm:$0xff]   ;;  %v1342_v3 = vld [vmem:[%s1729_s5 + $0x70] ss:$8 sps:$4 sm:$0xff]   ;;  %v1344_v5 = vld [vmem:[%s1729_s5 + $0x64] ss:$8 sps:$4 sm:$0xff]  }
  0x4b   : > { %v1340_v2 = vld [vmem:[%s1729_s5 + $0x174] ss:$8 sps:$4 sm:$0xff]   ;;  %959 = vmatprep.subr.bf16.mxu0 %v1338_v1  ;;  %v1343_v4 = vld [vmem:[%s1729_s5 + $0x170] ss:$8 sps:$4 sm:$0xff]   ;;  %v1346_v6 = vld [vmem:[%s1729_s5 + $0x164] ss:$8 sps:$4 sm:$0xff]  }
  0x4c   : > { %1000 = vmatprep.subr.bf16.mxu1 %v1340_v2  ;;  %960 = vmatpush1.bf16.msra.mxu0 %v1342_v3  ;;  %v1348_v7 = vld [vmem:[%s1729_s5 + $0x60] ss:$8 sps:$4 sm:$0xff]   ;;  %v1350_v9 = vld [vmem:[%s1729_s5 + $0x54] ss:$8 sps:$4 sm:$0xff]   ;;  %v1354_v11 = vld [vmem:[%s1729_s5 + $0x50] ss:$8 sps:$4 sm:$0xff]  }
  0x4d   : > { %1001 = vmatpush1.bf16.msra.mxu1 %v1343_v4  ;;  %961 = vmatprep.subr.bf16.mxu0 %v1344_v5  ;;  %v1349_v8 = vld [vmem:[%s1729_s5 + $0x160] ss:$8 sps:$4 sm:$0xff]   ;;  %v1352_v10 = vld [vmem:[%s1729_s5 + $0x154] ss:$8 sps:$4 sm:$0xff]   ;;  %v1355_v12 = vld [vmem:[%s1729_s5 + $0x150] ss:$8 sps:$4 sm:$0xff]  }
  0x4e   : > { %1002 = vmatprep.subr.bf16.mxu1 %v1346_v6  ;;  %v1356_v13 = vld [vmem:[%s1729_s5 + $0x44] ss:$8 sps:$4 sm:$0xff]   ;;  %v1360_v15 = vld [vmem:[%s1729_s5 + $0x40] ss:$8 sps:$4 sm:$0xff]   ;;  %v1362_v17 = vld [vmem:[%s1729_s5 + $0x34] ss:$8 sps:$4 sm:$0xff]  }
  0x4f   : > { %v1358_v14 = vld [vmem:[%s1729_s5 + $0x144] ss:$8 sps:$4 sm:$0xff]   ;;  %v1361_v16 = vld [vmem:[%s1729_s5 + $0x140] ss:$8 sps:$4 sm:$0xff]   ;;  %v1364_v18 = vld [vmem:[%s1729_s5 + $0x134] ss:$8 sps:$4 sm:$0xff]  }
  0x50   : > { %962 = vmatpush1.bf16.msra.mxu0 %v1348_v7  ;;  %v1366_v19 = vld [vmem:[%s1729_s5 + $0x30] ss:$8 sps:$4 sm:$0xff]   ;;  %v1368_v21 = vld [vmem:[%s1729_s5 + $0x24] ss:$8 sps:$4 sm:$0xff]   ;;  %v1372_v23 = vld [vmem:[%s1729_s5 + $0x20] ss:$8 sps:$4 sm:$0xff]  }
  0x51   : > { %1003 = vmatpush1.bf16.msra.mxu1 %v1349_v8  ;;  %963 = vmatprep.subr.bf16.mxu0 %v1350_v9  ;;  %v1367_v20 = vld [vmem:[%s1729_s5 + $0x130] ss:$8 sps:$4 sm:$0xff]   ;;  %v1370_v22 = vld [vmem:[%s1729_s5 + $0x124] ss:$8 sps:$4 sm:$0xff]   ;;  %v1373_v24 = vld [vmem:[%s1729_s5 + $0x120] ss:$8 sps:$4 sm:$0xff]  }
  0x52   : > { %1004 = vmatprep.subr.bf16.mxu1 %v1352_v10  ;;  %v1374_v25 = vld [vmem:[%s1729_s5 + $0x14] ss:$8 sps:$4 sm:$0xff]   ;;  %v1378_v27 = vld [vmem:[%s1729_s5 + $0x10] ss:$8 sps:$4 sm:$0xff]   ;;  %v1380_v29 = vld [vmem:[%s1729_s5 + $0x4] ss:$8 sps:$4 sm:$0xff]  }
  0x53   : > { %v1376_v26 = vld [vmem:[%s1729_s5 + $0x114] ss:$8 sps:$4 sm:$0xff]   ;;  %v1379_v28 = vld [vmem:[%s1729_s5 + $0x110] ss:$8 sps:$4 sm:$0xff]   ;;  %v1382_v30 = vld [vmem:[%s1729_s5 + $0x104] ss:$8 sps:$4 sm:$0xff]  }
  0x54   : > { %964 = vmatpush1.bf16.msra.mxu0 %v1354_v11  ;;  %v1384_v31 = vld [vmem:[%s1729_s5] ss:$8 sps:$4 sm:$0xff]   ;;  %v1386_v33 = vld [vmem:[%s1729_s5 + $0xf4] ss:$8 sps:$4 sm:$0xff]   ;;  %v1390_v35 = vld [vmem:[%s1729_s5 + $0xf0] ss:$8 sps:$4 sm:$0xff]  }
  0x55   : > { %1005 = vmatpush1.bf16.msra.mxu1 %v1355_v12  ;;  %965 = vmatprep.subr.bf16.mxu0 %v1356_v13  ;;  %v1385_v32 = vld [vmem:[%s1729_s5 + $0x100] ss:$8 sps:$4 sm:$0xff]   ;;  %v1388_v34 = vld [vmem:[%s1729_s5 + $0x1f4] ss:$8 sps:$4 sm:$0xff]   ;;  %v1391_v36 = vld [vmem:[%s1729_s5 + $0x1f0] ss:$8 sps:$4 sm:$0xff]  }
  0x56   : > { %1006 = vmatprep.subr.bf16.mxu1 %v1358_v14  ;;  %v1392_v37 = vld [vmem:[%s1729_s5 + $0xe4] ss:$8 sps:$4 sm:$0xff]   ;;  %v1396_v39 = vld [vmem:[%s1729_s5 + $0xe0] ss:$8 sps:$4 sm:$0xff]   ;;  %v1398_v41 = vld [vmem:[%s1729_s5 + $0xd4] ss:$8 sps:$4 sm:$0xff]  }
  0x57   : > { %v1394_v38 = vld [vmem:[%s1729_s5 + $0x1e4] ss:$8 sps:$4 sm:$0xff]   ;;  %v1397_v40 = vld [vmem:[%s1729_s5 + $0x1e0] ss:$8 sps:$4 sm:$0xff]   ;;  %v1400_v42 = vld [vmem:[%s1729_s5 + $0x1d4] ss:$8 sps:$4 sm:$0xff]  }
  0x58   : > { %966 = vmatpush1.bf16.msra.mxu0 %v1360_v15  ;;  %v1402_v43 = vld [vmem:[%s1729_s5 + $0xd0] ss:$8 sps:$4 sm:$0xff]   ;;  %v1404_v45 = vld [vmem:[%s1729_s5 + $0xc4] ss:$8 sps:$4 sm:$0xff]   ;;  %v1408_v50 = vld [vmem:[%s1729_s5 + $0xc0] ss:$8 sps:$4 sm:$0xff]  }
  0x59   : > { %1007 = vmatpush1.bf16.msra.mxu1 %v1361_v16  ;;  %967 = vmatprep.subr.bf16.mxu0 %v1362_v17  ;;  %v1403_v44 = vld [vmem:[%s1729_s5 + $0x1d0] ss:$8 sps:$4 sm:$0xff]   ;;  %v1406_v46 = vld [vmem:[%s1729_s5 + $0x1c4] ss:$8 sps:$4 sm:$0xff]   ;;  %v1409_v51 = vld [vmem:[%s1729_s5 + $0x1c0] ss:$8 sps:$4 sm:$0xff]  }
  0x5a   : > { %1008 = vmatprep.subr.bf16.mxu1 %v1364_v18  ;;  %v559_v47 = vld [vmem:[%s1715_s26] sm:$0xff]  ;;  %v560_v49 = vld [vmem:[%s1715_s26 + $0x8] sm:$0xff]  ;;  %v1416_v57 = vld [vmem:[%s1729_s5 + $0xa4] ss:$8 sps:$4 sm:$0xff]   ;;  %p1277_p13 = scmp.ne.s32.totalorder %s1476_s14, 1 }
  0x5b   : > { %v1210_v48 = vcombine.high %v559_v47, %v559_v47  ;;  %v1212_v52 = vcombine.high %v560_v49, %v560_v49  ;;  %v1410_v53 = vld [vmem:[%s1729_s5 + $0xb4] ss:$8 sps:$4 sm:$0xff]   ;;  %v1414_v55 = vld [vmem:[%s1729_s5 + $0xb0] ss:$8 sps:$4 sm:$0xff]   ;;  %v1418_v58 = vld [vmem:[%s1729_s5 + $0x1a4] ss:$8 sps:$4 sm:$0xff]   ;;  %v1209_v5 = vcombine.low %v559_v47, %v559_v47  ;;  %v1211_v6 = vcombine.low %v560_v49, %v560_v49 }
  0x5c   : > { %968 = vmatpush1.bf16.msra.mxu0 %v1366_v19  ;;  %v1412_v54 = vld [vmem:[%s1729_s5 + $0x1b4] ss:$8 sps:$4 sm:$0xff]   ;;  %v1415_v56 = vld [vmem:[%s1729_s5 + $0x1b0] ss:$8 sps:$4 sm:$0xff]   ;;  %v1420_v59 = vld [vmem:[%s1729_s5 + $0xa0] ss:$8 sps:$4 sm:$0xff]  }
  0x5d   : > { %1009 = vmatpush1.bf16.msra.mxu1 %v1367_v20  ;;  %969 = vmatprep.subr.bf16.mxu0 %v1368_v21  ;;  %v1421_v60 = vld [vmem:[%s1729_s5 + $0x1a0] ss:$8 sps:$4 sm:$0xff]   ;;  %v1422_v61 = vld [vmem:[%s1729_s5 + $0x94] ss:$8 sps:$4 sm:$0xff]   ;;  %v1426_v63 = vld [vmem:[%s1729_s5 + $0x90] ss:$8 sps:$4 sm:$0xff]  }
  0x5e   : > { %1010 = vmatprep.subr.bf16.mxu1 %v1370_v22  ;;  %991 = vmatprep.mubr.bf16.mxu0 %v1210_v48  ;;  %v1424_v62 = vld [vmem:[%s1729_s5 + $0x194] ss:$8 sps:$4 sm:$0xff]   ;;  %v1427_v0 = vld [vmem:[%s1729_s5 + $0x190] ss:$8 sps:$4 sm:$0xff]   ;;  %v1428_v1 = vld [vmem:[%s1729_s5 + $0x84] ss:$8 sps:$4 sm:$0xff]  }
  0x5f   : > { %1032 = vmatprep.mubr.bf16.mxu1 %v1212_v52  ;;  %v1430_v2 = vld [vmem:[%s1729_s5 + $0x184] ss:$8 sps:$4 sm:$0xff]   ;;  %v1432_v3 = vld [vmem:[%s1729_s5 + $0x80] ss:$8 sps:$4 sm:$0xff]   ;;  %v557_v8 = vld [vmem:[#allocation2] sm:$0xff] }
  0x60   : > { %970 = vmatpush1.bf16.msra.mxu0 %v1372_v23  ;;  %v1433_v4 = vld [vmem:[%s1729_s5 + $0x180] ss:$8 sps:$4 sm:$0xff]   ;;  %v558_v12 = vld [vmem:[#allocation2 + $0x8] sm:$0xff] }
  0x61   : > { %1011 = vmatpush1.bf16.msra.mxu1 %v1373_v24  ;;  %971 = vmatprep.subr.bf16.mxu0 %v1374_v25 }
  0x62   : > { %1012 = vmatprep.subr.bf16.mxu1 %v1376_v26 }
  0x64   : > { %972 = vmatpush1.bf16.msra.mxu0 %v1378_v27 }
  0x65   : > { %1013 = vmatpush1.bf16.msra.mxu1 %v1379_v28  ;;  %973 = vmatprep.subr.bf16.mxu0 %v1380_v29 }
  0x66   : > { %1014 = vmatprep.subr.bf16.mxu1 %v1382_v30 }
  0x68   : > { %974 = vmatpush1.bf16.msra.mxu0 %v1384_v31 }
  0x69   : > { %1015 = vmatpush1.bf16.msra.mxu1 %v1385_v32  ;;  %975 = vmatprep.subr.bf16.mxu0 %v1386_v33 }
  0x6a   : > { %1016 = vmatprep.subr.bf16.mxu1 %v1388_v34 }
  0x6c   : > { %976 = vmatpush2.bf16.msra.mxu0 %v1390_v35 }
  0x6d   : > { %1017 = vmatpush2.bf16.msra.mxu1 %v1391_v36  ;;  %977 = vmatprep.subr.bf16.mxu0 %v1392_v37 }
  0x6e   : > { %1018 = vmatprep.subr.bf16.mxu1 %v1394_v38 }
  0x70   : > { %978 = vmatpush2.bf16.msra.mxu0 %v1396_v39 }
  0x71   : > { %1019 = vmatpush2.bf16.msra.mxu1 %v1397_v40  ;;  %979 = vmatprep.subr.bf16.mxu0 %v1398_v41 }
  0x72   : > { %1020 = vmatprep.subr.bf16.mxu1 %v1400_v42 }
  0x74   : > { %980 = vmatpush2.bf16.msra.mxu0 %v1402_v43 }
  0x75   : > { %1021 = vmatpush2.bf16.msra.mxu1 %v1403_v44  ;;  %981 = vmatprep.subr.bf16.mxu0 %v1404_v45 }
  0x76   : > { %1022 = vmatprep.subr.bf16.mxu1 %v1406_v46 }
  0x78   : > { %982 = vmatpush2.bf16.msra.mxu0 %v1408_v50 }
  0x79   : > { %1023 = vmatpush2.bf16.msra.mxu1 %v1409_v51  ;;  %983 = vmatprep.subr.bf16.mxu0 %v1410_v53 }
  0x7a   : > { %1024 = vmatprep.subr.bf16.mxu1 %v1412_v54 }
  0x7c   : > { %984 = vmatpush2.bf16.msra.mxu0 %v1414_v55 }
  0x7d   : > { %1025 = vmatpush2.bf16.msra.mxu1 %v1415_v56  ;;  %985 = vmatprep.subr.bf16.mxu0 %v1416_v57 }
  0x7e   : > { %1026 = vmatprep.subr.bf16.mxu1 %v1418_v58 }
  0x80   : > { %986 = vmatpush2.bf16.msra.mxu0 %v1420_v59 }
  0x81   : > { %1027 = vmatpush2.bf16.msra.mxu1 %v1421_v60  ;;  %987 = vmatprep.subr.bf16.mxu0 %v1422_v61 }
  0x82   : > { %1028 = vmatprep.subr.bf16.mxu1 %v1424_v62 }
  0x84   : > { %988 = vmatpush2.bf16.msra.mxu0 %v1426_v63 }
  0x85   : > { %1029 = vmatpush2.bf16.msra.mxu1 %v1427_v0  ;;  %989 = vmatprep.subr.bf16.mxu0 %v1428_v1 }
  0x86   : > { %1030 = vmatprep.subr.bf16.mxu1 %v1430_v2 }
  0x88   : > { %990 = vmatpush2.bf16.msra.mxu0 %v1432_v3 }
  0x89   : > { %1031 = vmatpush2.bf16.msra.mxu1 %v1433_v4 }
  0x8b   : > { %992 = vmatmul.mubr.bf16.vlgmr.msra.gmra.mxu0 %v1209_v5 }
  0x8c   : > { %1033 = vmatmul.mubr.bf16.vlgmr.msra.gmra.mxu1 %v1211_v6 }
 0x14b   : > { %v993_v7 = vpop.f32.mrf.mxu0 }
 0x14c   : > { %v1034_v9 = vpop.f32.mrf.mxu1 }
 0x14d   : > { %v1035_v10 = vadd.f32 %v1034_v9, %v993_v7  ;;  %v995_v11 = vpop.f32.mrf.mxu0 }
 0x14e   : > { %v1036_v13 = vpop.f32.mrf.mxu1 }
 0x14f   : > { %v1041_v14 = vadd.f32 %v1035_v10, %v557_v8  ;;  %v1037_v15 = vadd.f32 %v1036_v13, %v995_v11  ;;  %v997_v16 = vpop.f32.mrf.mxu0  ;;  %1048 = sbr.rel (%p1277_p13) target bundleno = 353 (0x161), region = 78 }
 0x150   : > { %v1038_v17 = vpop.f32.mrf.mxu1 }
 0x151   : > { %1043 = vst [vmem:[#allocation2] sm:$0xff] %v1041_v14  ;;  %v1042_v18 = vadd.f32 %v1037_v15, %v558_v12  ;;  %v998_v19 = vpop.f32.mrf.mxu0 }
 0x152   : > { %v1039_v20 = vpop.f32.mrf.mxu1 }
 0x153   : > { %1044 = vst [vmem:[#allocation2 + $0x8] sm:$0xff] %v1042_v18 }
 0x154   : > { %v1053_v21 = vlaneseq  ;;  %v1051_v23 = vld [vmem:[%s539_s12] sm:$0x3] }
 0x156   : > { %v1054_v22 = vshrl.u32 %v1053_v21, 7 }
 0x158   : > { %v1055_v24 = vsub.s32 0, %v1054_v22  ;;  %v1059_v25 = vsub.s32 1, %v1054_v22  ;;  %v1049_v26 = vld [vmem:[#allocation2] sm:$0xff] }
 0x15a   : > { %v1050_v27 = vld [vmem:[#allocation2 + $0x8] sm:$0xff]  ;;  %v1056_v28 = vrot.slane %v1051_v23, %v1055_v24  ;;  %v1060_v29 = vrot.slane %v1051_v23, %v1059_v25 }
 0x15c   : > { %v1063_v30 = vadd.f32 %v1056_v28, %v1049_v26  ;;  %v1064_v31 = vadd.f32 %v1060_v29, %v1050_v27 }
 0x15e   : > { %v1065_v32 = vmax.f32 %v1063_v30, 0.0  ;;  %v1066_v33 = vmax.f32 %v1064_v31, 0.0 }
 0x160   : > { %1067 = vst [vmem:[%s1727_s15] sm:$0xff] %v1065_v32  ;;  %1068 = vst [vmem:[%s1727_s15 + $0x8] sm:$0xff] %v1066_v33 }
 0x161 PF: > { %s13_s18 = sadd.s32 1, %s1492_s18   ;;  %s1831_s12 = smov %s1472_s13 }
 0x162   : > { %p10_p0 = scmp.ge.s32.totalorder %s13_s18, 6   ;;  %s1832_s13 = smov %s1566_s25 }
 0x163   : > { %s1833_s14 = smov %s1484_s16  ;;  %s1834_s15 = smov %s1488_s17 }
 0x164   : > { %s1835_s16 = smov %s1838_s19  ;;  %s1836_s17 = smov %s1842_s20 }
 0x165   :  { %12 = sbr.rel (!%p10_p0) target bundleno = 4 (0x4), region = 119 }

// kernel: mammography_forward.100
= control target key start
LH: loop header
LB: loop body
LE: loop exit
PB: predicated region body
PF: predicated region fallthrough
CT: control target
= control target key end

     0   :  { %s1515_s12 = smov 0   ;;  %s1517_s13 = smov 0   ;;  %s1827_s0 = inlined_call_operand.vmem [shape: bf16[8,4608], index: 0, kind: input, shape index: {}]   ;;  %s1828_s1 = inlined_call_operand.vmem [shape: bf16[4608,512], index: 1, kind: input, shape index: {}]   ;;  %s1829_s2 = inlined_call_operand.vmem [shape: f32[1,512], index: 2, kind: input, shape index: {}]   ;;  %s1830_s3 = inlined_call_operand.vmem [shape: f32[8,512], index: 3, kind: output, shape index: {}]  }
   0x1   :  { %s1519_s14 = smov 0   ;;  %s1521_s15 = smov 0  }
   0x2   :  { %s1523_s16 = smov 0   ;;  %s1525_s17 = smov 0  }
   0x3   :  { %s1527_s18 = smov 0  }
   0x4 LB: > { %s25_s19 = sadd.s32 1, %s1484_s16  ;;  %s28_s20 = sadd.s32 1, %s1488_s17  ;;  %s1492_s18 = sphi %s1527_s18, %s13_s18   ;;  %s1488_s17 = sphi %s1525_s17, %s1836_s17   ;;  %s1484_s16 = sphi %s1523_s16, %s1835_s16   ;;  %s1480_s15 = sphi %s1521_s15, %s1834_s15   ;;  %s1476_s14 = sphi %s1519_s14, %s1833_s14   ;;  %s1472_s13 = sphi %s1517_s13, %s1832_s13   ;;  %s1468_s12 = sphi %s1515_s12, %s1831_s12  }
   0x5   : > { %p26_p0 = scmp.ge.s32.totalorder %s25_s19, 9  ;;  %p76_p1 = scmp.ne.s32.totalorder %s1472_s13, %s1468_s12 }
   0x6   : > { %p77_p2 = scmp.eq.s32.totalorder %s1492_s18, 0  ;;  %s69_s24 = sadd.s32 1, %s1472_s13 }
   0x7   : > { %s1838_s19 = smov (%p26_p0, %s25_s19), 0  ;;  %s1840_s20 = smov (!%p26_p0, %s28_s20), %s1488_s17 }
   0x8   : > { %p78_p3 = por %p77_p2, %p76_p1  ;;  %p30_p4 = scmp.ge.s32.totalorder %s1840_s20, 2 }
   0x9   : > { %s64_s21 = ssub.s32 %s1484_s16, %s1838_s19  ;;  %p1195_p6 = scmp.ge.s32.totalorder %s1492_s18, 18 }
   0xa   : > { %s1842_s20 = smov (%p30_p4, %s1840_s20), 0 }
   0xb   : > { %s65_s22 = ssub.s32 %s1488_s17, %s1842_s20  ;;  %156 = sbr.rel (%p1195_p6) target bundleno = 55 (0x37), region = 16 }
   0xc   : > { %s66_s23 = sor.u32 %s65_s22, %s64_s21 }
   0xd   : > { %p67_p5 = scmp.eq.s32.totalorder %s66_s23, 0 }
   0xf   : > { %s1566_s25 = scalar_select %p67_p5, %s1472_s13, %s69_s24  }
  0x10   : > { %172 = sbr.rel (!%p78_p3) target bundleno = 55 (0x37), region = 24  ;;  %s174_s26 = sand.u32 (%p78_p3), 1, %s1472_s13  }
  0x11   : > { %s1198_s27 = sshll.u32 (%p78_p3), %s1488_s17, 1  ;;  %s1196_s28 = sshll.u32 (%p78_p3), %s174_s26, 9 }
  0x12   : > { %s1280_s29 = sshll.u32 (%p78_p3), %s1484_s16, 8  ;;  %s1580_s8 = scalar_lea.vmem (%p78_p3), [#allocation3], %s1196_s28 }
  0x13   : > { %s180_s30 = sadd.s32 (%p78_p3), %s1280_s29, %s1198_s27 }
  0x14   : > { %s1200_s4 = sshll.u32 (%p78_p3), %s180_s30, 2 }
  0x15   : > { %s1575_s7 = scalar_lea.vmem %s1828_s1, %s1200_s4 }
  0x16   : > { %v337_v0 = vld [vmem:[%s1575_s7] sm:$0xff]  ;;  %v339_v1 = vld [vmem:[%s1575_s7 + $0x10] sm:$0xff] }
  0x17   : > { %v341_v2 = vld [vmem:[%s1575_s7 + $0x20] sm:$0xff]  ;;  %338 = vst [vmem:[%s1580_s8] sm:$0xff] %v337_v0  ;;  %340 = vst [vmem:[%s1580_s8 + $0x8] sm:$0xff] %v339_v1  ;;  %v343_v3 = vld [vmem:[%s1575_s7 + $0x30] sm:$0xff] }
  0x18   : > { %342 = vst [vmem:[%s1580_s8 + $0x10] sm:$0xff] %v341_v2  ;;  %v345_v4 = vld [vmem:[%s1575_s7 + $0x40] sm:$0xff]  ;;  %v347_v5 = vld [vmem:[%s1575_s7 + $0x50] sm:$0xff]  ;;  %344 = vst [vmem:[%s1580_s8 + $0x18] sm:$0xff] %v343_v3 }
  0x19   : > { %346 = vst [vmem:[%s1580_s8 + $0x20] sm:$0xff] %v345_v4  ;;  %348 = vst [vmem:[%s1580_s8 + $0x28] sm:$0xff] %v347_v5  ;;  %v349_v6 = vld [vmem:[%s1575_s7 + $0x60] sm:$0xff]  ;;  %v351_v7 = vld [vmem:[%s1575_s7 + $0x70] sm:$0xff] }
  0x1a   : > { %v353_v8 = vld [vmem:[%s1575_s7 + $0x80] sm:$0xff]  ;;  %350 = vst [vmem:[%s1580_s8 + $0x30] sm:$0xff] %v349_v6  ;;  %352 = vst [vmem:[%s1580_s8 + $0x38] sm:$0xff] %v351_v7  ;;  %v355_v9 = vld [vmem:[%s1575_s7 + $0x90] sm:$0xff] }
  0x1b   : > { %354 = vst [vmem:[%s1580_s8 + $0x40] sm:$0xff] %v353_v8  ;;  %v357_v10 = vld [vmem:[%s1575_s7 + $0xa0] sm:$0xff]  ;;  %v359_v11 = vld [vmem:[%s1575_s7 + $0xb0] sm:$0xff]  ;;  %356 = vst [vmem:[%s1580_s8 + $0x48] sm:$0xff] %v355_v9 }
  0x1c   : > { %358 = vst [vmem:[%s1580_s8 + $0x50] sm:$0xff] %v357_v10  ;;  %360 = vst [vmem:[%s1580_s8 + $0x58] sm:$0xff] %v359_v11  ;;  %v361_v12 = vld [vmem:[%s1575_s7 + $0xc0] sm:$0xff]  ;;  %v363_v13 = vld [vmem:[%s1575_s7 + $0xd0] sm:$0xff] }
  0x1d   : > { %v365_v14 = vld [vmem:[%s1575_s7 + $0xe0] sm:$0xff]  ;;  %362 = vst [vmem:[%s1580_s8 + $0x60] sm:$0xff] %v361_v12  ;;  %364 = vst [vmem:[%s1580_s8 + $0x68] sm:$0xff] %v363_v13  ;;  %v367_v15 = vld [vmem:[%s1575_s7 + $0xf0] sm:$0xff] }
  0x1e   : > { %366 = vst [vmem:[%s1580_s8 + $0x70] sm:$0xff] %v365_v14  ;;  %v369_v16 = vld [vmem:[%s1575_s7 + $0x100] sm:$0xff]  ;;  %v371_v17 = vld [vmem:[%s1575_s7 + $0x110] sm:$0xff]  ;;  %368 = vst [vmem:[%s1580_s8 + $0x78] sm:$0xff] %v367_v15 }
  0x1f   : > { %370 = vst [vmem:[%s1580_s8 + $0x80] sm:$0xff] %v369_v16  ;;  %372 = vst [vmem:[%s1580_s8 + $0x88] sm:$0xff] %v371_v17  ;;  %v373_v18 = vld [vmem:[%s1575_s7 + $0x120] sm:$0xff]  ;;  %v375_v19 = vld [vmem:[%s1575_s7 + $0x130] sm:$0xff] }
  0x20   : > { %v377_v20 = vld [vmem:[%s1575_s7 + $0x140] sm:$0xff]  ;;  %374 = vst [vmem:[%s1580_s8 + $0x90] sm:$0xff] %v373_v18  ;;  %376 = vst [vmem:[%s1580_s8 + $0x98] sm:$0xff] %v375_v19  ;;  %v379_v21 = vld [vmem:[%s1575_s7 + $0x150] sm:$0xff] }
  0x21   : > { %378 = vst [vmem:[%s1580_s8 + $0xa0] sm:$0xff] %v377_v20  ;;  %v381_v22 = vld [vmem:[%s1575_s7 + $0x160] sm:$0xff]  ;;  %v383_v23 = vld [vmem:[%s1575_s7 + $0x170] sm:$0xff]  ;;  %380 = vst [vmem:[%s1580_s8 + $0xa8] sm:$0xff] %v379_v21 }
  0x22   : > { %382 = vst [vmem:[%s1580_s8 + $0xb0] sm:$0xff] %v381_v22  ;;  %384 = vst [vmem:[%s1580_s8 + $0xb8] sm:$0xff] %v383_v23  ;;  %v385_v24 = vld [vmem:[%s1575_s7 + $0x180] sm:$0xff]  ;;  %v387_v25 = vld [vmem:[%s1575_s7 + $0x190] sm:$0xff] }
  0x23   : > { %v389_v26 = vld [vmem:[%s1575_s7 + $0x1a0] sm:$0xff]  ;;  %386 = vst [vmem:[%s1580_s8 + $0xc0] sm:$0xff] %v385_v24  ;;  %388 = vst [vmem:[%s1580_s8 + $0xc8] sm:$0xff] %v387_v25  ;;  %v391_v27 = vld [vmem:[%s1575_s7 + $0x1b0] sm:$0xff] }
  0x24   : > { %390 = vst [vmem:[%s1580_s8 + $0xd0] sm:$0xff] %v389_v26  ;;  %v393_v28 = vld [vmem:[%s1575_s7 + $0x1c0] sm:$0xff]  ;;  %v395_v29 = vld [vmem:[%s1575_s7 + $0x1d0] sm:$0xff]  ;;  %392 = vst [vmem:[%s1580_s8 + $0xd8] sm:$0xff] %v391_v27 }
  0x25   : > { %394 = vst [vmem:[%s1580_s8 + $0xe0] sm:$0xff] %v393_v28  ;;  %396 = vst [vmem:[%s1580_s8 + $0xe8] sm:$0xff] %v395_v29  ;;  %v397_v30 = vld [vmem:[%s1575_s7 + $0x1e0] sm:$0xff]  ;;  %v399_v31 = vld [vmem:[%s1575_s7 + $0x1f0] sm:$0xff] }
  0x26   : > { %v401_v32 = vld [vmem:[%s1575_s7 + $0x200] sm:$0xff]  ;;  %398 = vst [vmem:[%s1580_s8 + $0xf0] sm:$0xff] %v397_v30  ;;  %400 = vst [vmem:[%s1580_s8 + $0xf8] sm:$0xff] %v399_v31  ;;  %v403_v33 = vld [vmem:[%s1575_s7 + $0x210] sm:$0xff] }
  0x27   : > { %402 = vst [vmem:[%s1580_s8 + $0x100] sm:$0xff] %v401_v32  ;;  %v405_v34 = vld [vmem:[%s1575_s7 + $0x220] sm:$0xff]  ;;  %v407_v35 = vld [vmem:[%s1575_s7 + $0x230] sm:$0xff]  ;;  %404 = vst [vmem:[%s1580_s8 + $0x108] sm:$0xff] %v403_v33 }
  0x28   : > { %406 = vst [vmem:[%s1580_s8 + $0x110] sm:$0xff] %v405_v34  ;;  %408 = vst [vmem:[%s1580_s8 + $0x118] sm:$0xff] %v407_v35  ;;  %v409_v36 = vld [vmem:[%s1575_s7 + $0x240] sm:$0xff]  ;;  %v411_v37 = vld [vmem:[%s1575_s7 + $0x250] sm:$0xff] }
  0x29   : > { %v413_v38 = vld [vmem:[%s1575_s7 + $0x260] sm:$0xff]  ;;  %410 = vst [vmem:[%s1580_s8 + $0x120] sm:$0xff] %v409_v36  ;;  %412 = vst [vmem:[%s1580_s8 + $0x128] sm:$0xff] %v411_v37  ;;  %v415_v39 = vld [vmem:[%s1575_s7 + $0x270] sm:$0xff] }
  0x2a   : > { %414 = vst [vmem:[%s1580_s8 + $0x130] sm:$0xff] %v413_v38  ;;  %v417_v40 = vld [vmem:[%s1575_s7 + $0x280] sm:$0xff]  ;;  %v419_v41 = vld [vmem:[%s1575_s7 + $0x290] sm:$0xff]  ;;  %416 = vst [vmem:[%s1580_s8 + $0x138] sm:$0xff] %v415_v39 }
  0x2b   : > { %418 = vst [vmem:[%s1580_s8 + $0x140] sm:$0xff] %v417_v40  ;;  %420 = vst [vmem:[%s1580_s8 + $0x148] sm:$0xff] %v419_v41  ;;  %v421_v42 = vld [vmem:[%s1575_s7 + $0x2a0] sm:$0xff]  ;;  %v423_v43 = vld [vmem:[%s1575_s7 + $0x2b0] sm:$0xff] }
  0x2c   : > { %v425_v44 = vld [vmem:[%s1575_s7 + $0x2c0] sm:$0xff]  ;;  %422 = vst [vmem:[%s1580_s8 + $0x150] sm:$0xff] %v421_v42  ;;  %424 = vst [vmem:[%s1580_s8 + $0x158] sm:$0xff] %v423_v43  ;;  %v427_v45 = vld [vmem:[%s1575_s7 + $0x2d0] sm:$0xff] }
  0x2d   : > { %426 = vst [vmem:[%s1580_s8 + $0x160] sm:$0xff] %v425_v44  ;;  %v429_v46 = vld [vmem:[%s1575_s7 + $0x2e0] sm:$0xff]  ;;  %v431_v47 = vld [vmem:[%s1575_s7 + $0x2f0] sm:$0xff]  ;;  %428 = vst [vmem:[%s1580_s8 + $0x168] sm:$0xff] %v427_v45 }
  0x2e   : > { %430 = vst [vmem:[%s1580_s8 + $0x170] sm:$0xff] %v429_v46  ;;  %432 = vst [vmem:[%s1580_s8 + $0x178] sm:$0xff] %v431_v47  ;;  %v433_v48 = vld [vmem:[%s1575_s7 + $0x300] sm:$0xff]  ;;  %v435_v49 = vld [vmem:[%s1575_s7 + $0x310] sm:$0xff] }
  0x2f   : > { %v437_v50 = vld [vmem:[%s1575_s7 + $0x320] sm:$0xff]  ;;  %434 = vst [vmem:[%s1580_s8 + $0x180] sm:$0xff] %v433_v48  ;;  %436 = vst [vmem:[%s1580_s8 + $0x188] sm:$0xff] %v435_v49  ;;  %v439_v51 = vld [vmem:[%s1575_s7 + $0x330] sm:$0xff] }
  0x30   : > { %438 = vst [vmem:[%s1580_s8 + $0x190] sm:$0xff] %v437_v50  ;;  %v441_v52 = vld [vmem:[%s1575_s7 + $0x340] sm:$0xff]  ;;  %v443_v53 = vld [vmem:[%s1575_s7 + $0x350] sm:$0xff]  ;;  %440 = vst [vmem:[%s1580_s8 + $0x198] sm:$0xff] %v439_v51 }
  0x31   : > { %442 = vst [vmem:[%s1580_s8 + $0x1a0] sm:$0xff] %v441_v52  ;;  %444 = vst [vmem:[%s1580_s8 + $0x1a8] sm:$0xff] %v443_v53  ;;  %v445_v54 = vld [vmem:[%s1575_s7 + $0x360] sm:$0xff]  ;;  %v447_v55 = vld [vmem:[%s1575_s7 + $0x370] sm:$0xff] }
  0x32   : > { %v449_v56 = vld [vmem:[%s1575_s7 + $0x380] sm:$0xff]  ;;  %446 = vst [vmem:[%s1580_s8 + $0x1b0] sm:$0xff] %v445_v54  ;;  %448 = vst [vmem:[%s1580_s8 + $0x1b8] sm:$0xff] %v447_v55  ;;  %v451_v57 = vld [vmem:[%s1575_s7 + $0x390] sm:$0xff] }
  0x33   : > { %450 = vst [vmem:[%s1580_s8 + $0x1c0] sm:$0xff] %v449_v56  ;;  %v453_v58 = vld [vmem:[%s1575_s7 + $0x3a0] sm:$0xff]  ;;  %v455_v59 = vld [vmem:[%s1575_s7 + $0x3b0] sm:$0xff]  ;;  %452 = vst [vmem:[%s1580_s8 + $0x1c8] sm:$0xff] %v451_v57 }
  0x34   : > { %454 = vst [vmem:[%s1580_s8 + $0x1d0] sm:$0xff] %v453_v58  ;;  %456 = vst [vmem:[%s1580_s8 + $0x1d8] sm:$0xff] %v455_v59  ;;  %v457_v60 = vld [vmem:[%s1575_s7 + $0x3c0] sm:$0xff]  ;;  %v459_v61 = vld [vmem:[%s1575_s7 + $0x3d0] sm:$0xff] }
  0x35   : > { %v461_v62 = vld [vmem:[%s1575_s7 + $0x3e0] sm:$0xff]  ;;  %458 = vst [vmem:[%s1580_s8 + $0x1e0] sm:$0xff] %v457_v60  ;;  %460 = vst [vmem:[%s1580_s8 + $0x1e8] sm:$0xff] %v459_v61  ;;  %v463_v63 = vld [vmem:[%s1575_s7 + $0x3f0] sm:$0xff] }
  0x36   : > { %462 = vst [vmem:[%s1580_s8 + $0x1f0] sm:$0xff] %v461_v62  ;;  %464 = vst [vmem:[%s1580_s8 + $0x1f8] sm:$0xff] %v463_v63 }
  0x37 PF: > { %p1201_p7 = scmp.ge.s32.totalorder %s1492_s18, 1  ;;  %p477_p8 = scmp.lt.s32.totalorder %s1492_s18, 19 }
  0x39   : > { %p478_p9 = pnand %p1201_p7, %p477_p8 }
  0x3a   : > { %s484_s9 = sand.u32 (!%p478_p9), 1, %s1468_s12   ;;  %s1203_s10 = sshll.u32 (!%p478_p9), %s1476_s14, 2 }
  0x3b   : > { %481 = sbr.rel (%p478_p9) target bundleno = 353 (0x161), region = 66  ;;  %s1202_s11 = sshll.u32 (!%p478_p9), %s484_s9, 9 }
  0x3c   : > { %p527_p10 = scmp.lt.s32.totalorder (!%p478_p9), %s1203_s10, 35  ;;  %s1205_s21 = sshll.u32 (!%p478_p9), %s1480_s15, 1 }
  0x3d   : > { %p537_p11 = scmp.lt.s32.totalorder (!%p478_p9), %s1205_s21, 3  ;;  %s1729_s5 = scalar_lea.vmem (!%p478_p9), [#allocation3], %s1202_s11 }
  0x3e   : > { %p1208_p12 = scmp.ne.s32.totalorder (!%p478_p9), %s1476_s14, 0 }
  0x40   : > { %s1844_s10 = smov (!%p527_p10, %s1203_s10), 35  ;;  %s1846_s21 = smov (!%p537_p11, %s1205_s21), 3 }
  0x41   : > { %s1204_s22 = sshll.u32 %s1844_s10, 2  ;;  %s539_s12 = scalar_lea.vmem %s1829_s2, %s1846_s21 }
  0x42   : > { %s1715_s26 = scalar_lea.vmem %s1827_s0, %s1204_s22  ;;  %s1207_s29 = sshll.u32 %s1846_s21, 3 }
  0x43   : > { %s1727_s15 = scalar_lea.vmem %s1830_s3, %s1207_s29  ;;  %554 = sbr.rel (%p1208_p12) target bundleno = 74 (0x4a), region = 74 }
  0x48   : > { %v1494_v0 = vmov 0.0  }
  0x49   : > { %555 = vst [vmem:[#allocation2] sm:$0xff] %v1494_v0  ;;  %556 = vst [vmem:[#allocation2 + $0x8] sm:$0xff] %v1494_v0 }
  0x4a PF: > { %v1338_v1 = vld [vmem:[%s1729_s5 + $0x74] ss:$8 sps:$4 sm:$0xff]   ;;  %v1342_v3 = vld [vmem:[%s1729_s5 + $0x70] ss:$8 sps:$4 sm:$0xff]   ;;  %v1344_v5 = vld [vmem:[%s1729_s5 + $0x64] ss:$8 sps:$4 sm:$0xff]  }
  0x4b   : > { %v1340_v2 = vld [vmem:[%s1729_s5 + $0x174] ss:$8 sps:$4 sm:$0xff]   ;;  %959 = vmatprep.subr.bf16.mxu0 %v1338_v1  ;;  %v1343_v4 = vld [vmem:[%s1729_s5 + $0x170] ss:$8 sps:$4 sm:$0xff]   ;;  %v1346_v6 = vld [vmem:[%s1729_s5 + $0x164] ss:$8 sps:$4 sm:$0xff]  }
  0x4c   : > { %1000 = vmatprep.subr.bf16.mxu1 %v1340_v2  ;;  %960 = vmatpush1.bf16.msra.mxu0 %v1342_v3  ;;  %v1348_v7 = vld [vmem:[%s1729_s5 + $0x60] ss:$8 sps:$4 sm:$0xff]   ;;  %v1350_v9 = vld [vmem:[%s1729_s5 + $0x54] ss:$8 sps:$4 sm:$0xff]   ;;  %v1354_v11 = vld [vmem:[%s1729_s5 + $0x50] ss:$8 sps:$4 sm:$0xff]  }
  0x4d   : > { %1001 = vmatpush1.bf16.msra.mxu1 %v1343_v4  ;;  %961 = vmatprep.subr.bf16.mxu0 %v1344_v5  ;;  %v1349_v8 = vld [vmem:[%s1729_s5 + $0x160] ss:$8 sps:$4 sm:$0xff]   ;;  %v1352_v10 = vld [vmem:[%s1729_s5 + $0x154] ss:$8 sps:$4 sm:$0xff]   ;;  %v1355_v12 = vld [vmem:[%s1729_s5 + $0x150] ss:$8 sps:$4 sm:$0xff]  }
  0x4e   : > { %1002 = vmatprep.subr.bf16.mxu1 %v1346_v6  ;;  %v1356_v13 = vld [vmem:[%s1729_s5 + $0x44] ss:$8 sps:$4 sm:$0xff]   ;;  %v1360_v15 = vld [vmem:[%s1729_s5 + $0x40] ss:$8 sps:$4 sm:$0xff]   ;;  %v1362_v17 = vld [vmem:[%s1729_s5 + $0x34] ss:$8 sps:$4 sm:$0xff]  }
  0x4f   : > { %v1358_v14 = vld [vmem:[%s1729_s5 + $0x144] ss:$8 sps:$4 sm:$0xff]   ;;  %v1361_v16 = vld [vmem:[%s1729_s5 + $0x140] ss:$8 sps:$4 sm:$0xff]   ;;  %v1364_v18 = vld [vmem:[%s1729_s5 + $0x134] ss:$8 sps:$4 sm:$0xff]  }
  0x50   : > { %962 = vmatpush1.bf16.msra.mxu0 %v1348_v7  ;;  %v1366_v19 = vld [vmem:[%s1729_s5 + $0x30] ss:$8 sps:$4 sm:$0xff]   ;;  %v1368_v21 = vld [vmem:[%s1729_s5 + $0x24] ss:$8 sps:$4 sm:$0xff]   ;;  %v1372_v23 = vld [vmem:[%s1729_s5 + $0x20] ss:$8 sps:$4 sm:$0xff]  }
  0x51   : > { %1003 = vmatpush1.bf16.msra.mxu1 %v1349_v8  ;;  %963 = vmatprep.subr.bf16.mxu0 %v1350_v9  ;;  %v1367_v20 = vld [vmem:[%s1729_s5 + $0x130] ss:$8 sps:$4 sm:$0xff]   ;;  %v1370_v22 = vld [vmem:[%s1729_s5 + $0x124] ss:$8 sps:$4 sm:$0xff]   ;;  %v1373_v24 = vld [vmem:[%s1729_s5 + $0x120] ss:$8 sps:$4 sm:$0xff]  }
  0x52   : > { %1004 = vmatprep.subr.bf16.mxu1 %v1352_v10  ;;  %v1374_v25 = vld [vmem:[%s1729_s5 + $0x14] ss:$8 sps:$4 sm:$0xff]   ;;  %v1378_v27 = vld [vmem:[%s1729_s5 + $0x10] ss:$8 sps:$4 sm:$0xff]   ;;  %v1380_v29 = vld [vmem:[%s1729_s5 + $0x4] ss:$8 sps:$4 sm:$0xff]  }
  0x53   : > { %v1376_v26 = vld [vmem:[%s1729_s5 + $0x114] ss:$8 sps:$4 sm:$0xff]   ;;  %v1379_v28 = vld [vmem:[%s1729_s5 + $0x110] ss:$8 sps:$4 sm:$0xff]   ;;  %v1382_v30 = vld [vmem:[%s1729_s5 + $0x104] ss:$8 sps:$4 sm:$0xff]  }
  0x54   : > { %964 = vmatpush1.bf16.msra.mxu0 %v1354_v11  ;;  %v1384_v31 = vld [vmem:[%s1729_s5] ss:$8 sps:$4 sm:$0xff]   ;;  %v1386_v33 = vld [vmem:[%s1729_s5 + $0xf4] ss:$8 sps:$4 sm:$0xff]   ;;  %v1390_v35 = vld [vmem:[%s1729_s5 + $0xf0] ss:$8 sps:$4 sm:$0xff]  }
  0x55   : > { %1005 = vmatpush1.bf16.msra.mxu1 %v1355_v12  ;;  %965 = vmatprep.subr.bf16.mxu0 %v1356_v13  ;;  %v1385_v32 = vld [vmem:[%s1729_s5 + $0x100] ss:$8 sps:$4 sm:$0xff]   ;;  %v1388_v34 = vld [vmem:[%s1729_s5 + $0x1f4] ss:$8 sps:$4 sm:$0xff]   ;;  %v1391_v36 = vld [vmem:[%s1729_s5 + $0x1f0] ss:$8 sps:$4 sm:$0xff]  }
  0x56   : > { %1006 = vmatprep.subr.bf16.mxu1 %v1358_v14  ;;  %v1392_v37 = vld [vmem:[%s1729_s5 + $0xe4] ss:$8 sps:$4 sm:$0xff]   ;;  %v1396_v39 = vld [vmem:[%s1729_s5 + $0xe0] ss:$8 sps:$4 sm:$0xff]   ;;  %v1398_v41 = vld [vmem:[%s1729_s5 + $0xd4] ss:$8 sps:$4 sm:$0xff]  }
  0x57   : > { %v1394_v38 = vld [vmem:[%s1729_s5 + $0x1e4] ss:$8 sps:$4 sm:$0xff]   ;;  %v1397_v40 = vld [vmem:[%s1729_s5 + $0x1e0] ss:$8 sps:$4 sm:$0xff]   ;;  %v1400_v42 = vld [vmem:[%s1729_s5 + $0x1d4] ss:$8 sps:$4 sm:$0xff]  }
  0x58   : > { %966 = vmatpush1.bf16.msra.mxu0 %v1360_v15  ;;  %v1402_v43 = vld [vmem:[%s1729_s5 + $0xd0] ss:$8 sps:$4 sm:$0xff]   ;;  %v1404_v45 = vld [vmem:[%s1729_s5 + $0xc4] ss:$8 sps:$4 sm:$0xff]   ;;  %v1408_v50 = vld [vmem:[%s1729_s5 + $0xc0] ss:$8 sps:$4 sm:$0xff]  }
  0x59   : > { %1007 = vmatpush1.bf16.msra.mxu1 %v1361_v16  ;;  %967 = vmatprep.subr.bf16.mxu0 %v1362_v17  ;;  %v1403_v44 = vld [vmem:[%s1729_s5 + $0x1d0] ss:$8 sps:$4 sm:$0xff]   ;;  %v1406_v46 = vld [vmem:[%s1729_s5 + $0x1c4] ss:$8 sps:$4 sm:$0xff]   ;;  %v1409_v51 = vld [vmem:[%s1729_s5 + $0x1c0] ss:$8 sps:$4 sm:$0xff]  }
  0x5a   : > { %1008 = vmatprep.subr.bf16.mxu1 %v1364_v18  ;;  %v559_v47 = vld [vmem:[%s1715_s26] sm:$0xff]  ;;  %v560_v49 = vld [vmem:[%s1715_s26 + $0x8] sm:$0xff]  ;;  %v1416_v57 = vld [vmem:[%s1729_s5 + $0xa4] ss:$8 sps:$4 sm:$0xff]   ;;  %p1277_p13 = scmp.ne.s32.totalorder %s1476_s14, 8 }
  0x5b   : > { %v1210_v48 = vcombine.high %v559_v47, %v559_v47  ;;  %v1212_v52 = vcombine.high %v560_v49, %v560_v49  ;;  %v1410_v53 = vld [vmem:[%s1729_s5 + $0xb4] ss:$8 sps:$4 sm:$0xff]   ;;  %v1414_v55 = vld [vmem:[%s1729_s5 + $0xb0] ss:$8 sps:$4 sm:$0xff]   ;;  %v1418_v58 = vld [vmem:[%s1729_s5 + $0x1a4] ss:$8 sps:$4 sm:$0xff]   ;;  %v1209_v5 = vcombine.low %v559_v47, %v559_v47  ;;  %v1211_v6 = vcombine.low %v560_v49, %v560_v49 }
  0x5c   : > { %968 = vmatpush1.bf16.msra.mxu0 %v1366_v19  ;;  %v1412_v54 = vld [vmem:[%s1729_s5 + $0x1b4] ss:$8 sps:$4 sm:$0xff]   ;;  %v1415_v56 = vld [vmem:[%s1729_s5 + $0x1b0] ss:$8 sps:$4 sm:$0xff]   ;;  %v1420_v59 = vld [vmem:[%s1729_s5 + $0xa0] ss:$8 sps:$4 sm:$0xff]  }
  0x5d   : > { %1009 = vmatpush1.bf16.msra.mxu1 %v1367_v20  ;;  %969 = vmatprep.subr.bf16.mxu0 %v1368_v21  ;;  %v1421_v60 = vld [vmem:[%s1729_s5 + $0x1a0] ss:$8 sps:$4 sm:$0xff]   ;;  %v1422_v61 = vld [vmem:[%s1729_s5 + $0x94] ss:$8 sps:$4 sm:$0xff]   ;;  %v1426_v63 = vld [vmem:[%s1729_s5 + $0x90] ss:$8 sps:$4 sm:$0xff]  }
  0x5e   : > { %1010 = vmatprep.subr.bf16.mxu1 %v1370_v22  ;;  %991 = vmatprep.mubr.bf16.mxu0 %v1210_v48  ;;  %v1424_v62 = vld [vmem:[%s1729_s5 + $0x194] ss:$8 sps:$4 sm:$0xff]   ;;  %v1427_v0 = vld [vmem:[%s1729_s5 + $0x190] ss:$8 sps:$4 sm:$0xff]   ;;  %v1428_v1 = vld [vmem:[%s1729_s5 + $0x84] ss:$8 sps:$4 sm:$0xff]  }
  0x5f   : > { %1032 = vmatprep.mubr.bf16.mxu1 %v1212_v52  ;;  %v1430_v2 = vld [vmem:[%s1729_s5 + $0x184] ss:$8 sps:$4 sm:$0xff]   ;;  %v1432_v3 = vld [vmem:[%s1729_s5 + $0x80] ss:$8 sps:$4 sm:$0xff]   ;;  %v557_v8 = vld [vmem:[#allocation2] sm:$0xff] }
  0x60   : > { %970 = vmatpush1.bf16.msra.mxu0 %v1372_v23  ;;  %v1433_v4 = vld [vmem:[%s1729_s5 + $0x180] ss:$8 sps:$4 sm:$0xff]   ;;  %v558_v12 = vld [vmem:[#allocation2 + $0x8] sm:$0xff] }
  0x61   : > { %1011 = vmatpush1.bf16.msra.mxu1 %v1373_v24  ;;  %971 = vmatprep.subr.bf16.mxu0 %v1374_v25 }
  0x62   : > { %1012 = vmatprep.subr.bf16.mxu1 %v1376_v26 }
  0x64   : > { %972 = vmatpush1.bf16.msra.mxu0 %v1378_v27 }
  0x65   : > { %1013 = vmatpush1.bf16.msra.mxu1 %v1379_v28  ;;  %973 = vmatprep.subr.bf16.mxu0 %v1380_v29 }
  0x66   : > { %1014 = vmatprep.subr.bf16.mxu1 %v1382_v30 }
  0x68   : > { %974 = vmatpush1.bf16.msra.mxu0 %v1384_v31 }
  0x69   : > { %1015 = vmatpush1.bf16.msra.mxu1 %v1385_v32  ;;  %975 = vmatprep.subr.bf16.mxu0 %v1386_v33 }
  0x6a   : > { %1016 = vmatprep.subr.bf16.mxu1 %v1388_v34 }
  0x6c   : > { %976 = vmatpush2.bf16.msra.mxu0 %v1390_v35 }
  0x6d   : > { %1017 = vmatpush2.bf16.msra.mxu1 %v1391_v36  ;;  %977 = vmatprep.subr.bf16.mxu0 %v1392_v37 }
  0x6e   : > { %1018 = vmatprep.subr.bf16.mxu1 %v1394_v38 }
  0x70   : > { %978 = vmatpush2.bf16.msra.mxu0 %v1396_v39 }
  0x71   : > { %1019 = vmatpush2.bf16.msra.mxu1 %v1397_v40  ;;  %979 = vmatprep.subr.bf16.mxu0 %v1398_v41 }
  0x72   : > { %1020 = vmatprep.subr.bf16.mxu1 %v1400_v42 }
  0x74   : > { %980 = vmatpush2.bf16.msra.mxu0 %v1402_v43 }
  0x75   : > { %1021 = vmatpush2.bf16.msra.mxu1 %v1403_v44  ;;  %981 = vmatprep.subr.bf16.mxu0 %v1404_v45 }
  0x76   : > { %1022 = vmatprep.subr.bf16.mxu1 %v1406_v46 }
  0x78   : > { %982 = vmatpush2.bf16.msra.mxu0 %v1408_v50 }
  0x79   : > { %1023 = vmatpush2.bf16.msra.mxu1 %v1409_v51  ;;  %983 = vmatprep.subr.bf16.mxu0 %v1410_v53 }
  0x7a   : > { %1024 = vmatprep.subr.bf16.mxu1 %v1412_v54 }
  0x7c   : > { %984 = vmatpush2.bf16.msra.mxu0 %v1414_v55 }
  0x7d   : > { %1025 = vmatpush2.bf16.msra.mxu1 %v1415_v56  ;;  %985 = vmatprep.subr.bf16.mxu0 %v1416_v57 }
  0x7e   : > { %1026 = vmatprep.subr.bf16.mxu1 %v1418_v58 }
  0x80   : > { %986 = vmatpush2.bf16.msra.mxu0 %v1420_v59 }
  0x81   : > { %1027 = vmatpush2.bf16.msra.mxu1 %v1421_v60  ;;  %987 = vmatprep.subr.bf16.mxu0 %v1422_v61 }
  0x82   : > { %1028 = vmatprep.subr.bf16.mxu1 %v1424_v62 }
  0x84   : > { %988 = vmatpush2.bf16.msra.mxu0 %v1426_v63 }
  0x85   : > { %1029 = vmatpush2.bf16.msra.mxu1 %v1427_v0  ;;  %989 = vmatprep.subr.bf16.mxu0 %v1428_v1 }
  0x86   : > { %1030 = vmatprep.subr.bf16.mxu1 %v1430_v2 }
  0x88   : > { %990 = vmatpush2.bf16.msra.mxu0 %v1432_v3 }
  0x89   : > { %1031 = vmatpush2.bf16.msra.mxu1 %v1433_v4 }
  0x8b   : > { %992 = vmatmul.mubr.bf16.vlgmr.msra.gmra.mxu0 %v1209_v5 }
  0x8c   : > { %1033 = vmatmul.mubr.bf16.vlgmr.msra.gmra.mxu1 %v1211_v6 }
 0x14b   : > { %v993_v7 = vpop.f32.mrf.mxu0 }
 0x14c   : > { %v1034_v9 = vpop.f32.mrf.mxu1 }
 0x14d   : > { %v1035_v10 = vadd.f32 %v1034_v9, %v993_v7  ;;  %v995_v11 = vpop.f32.mrf.mxu0 }
 0x14e   : > { %v1036_v13 = vpop.f32.mrf.mxu1 }
 0x14f   : > { %v1041_v14 = vadd.f32 %v1035_v10, %v557_v8  ;;  %v1037_v15 = vadd.f32 %v1036_v13, %v995_v11  ;;  %v997_v16 = vpop.f32.mrf.mxu0  ;;  %1048 = sbr.rel (%p1277_p13) target bundleno = 353 (0x161), region = 78 }
 0x150   : > { %v1038_v17 = vpop.f32.mrf.mxu1 }
 0x151   : > { %1043 = vst [vmem:[#allocation2] sm:$0xff] %v1041_v14  ;;  %v1042_v18 = vadd.f32 %v1037_v15, %v558_v12  ;;  %v998_v19 = vpop.f32.mrf.mxu0 }
 0x152   : > { %v1039_v20 = vpop.f32.mrf.mxu1 }
 0x153   : > { %1044 = vst [vmem:[#allocation2 + $0x8] sm:$0xff] %v1042_v18 }
 0x154   : > { %v1053_v21 = vlaneseq  ;;  %v1051_v23 = vld [vmem:[%s539_s12] sm:$0x3] }
 0x156   : > { %v1054_v22 = vshrl.u32 %v1053_v21, 7 }
 0x158   : > { %v1055_v24 = vsub.s32 0, %v1054_v22  ;;  %v1059_v25 = vsub.s32 1, %v1054_v22  ;;  %v1049_v26 = vld [vmem:[#allocation2] sm:$0xff] }
 0x15a   : > { %v1050_v27 = vld [vmem:[#allocation2 + $0x8] sm:$0xff]  ;;  %v1056_v28 = vrot.slane %v1051_v23, %v1055_v24  ;;  %v1060_v29 = vrot.slane %v1051_v23, %v1059_v25 }
 0x15c   : > { %v1063_v30 = vadd.f32 %v1056_v28, %v1049_v26  ;;  %v1064_v31 = vadd.f32 %v1060_v29, %v1050_v27 }
 0x15e   : > { %v1065_v32 = vmax.f32 %v1063_v30, 0.0  ;;  %v1066_v33 = vmax.f32 %v1064_v31, 0.0 }
 0x160   : > { %1067 = vst [vmem:[%s1727_s15] sm:$0xff] %v1065_v32  ;;  %1068 = vst [vmem:[%s1727_s15 + $0x8] sm:$0xff] %v1066_v33 }
 0x161 PF: > { %s13_s18 = sadd.s32 1, %s1492_s18   ;;  %s1831_s12 = smov %s1472_s13 }
 0x162   : > { %p10_p0 = scmp.ge.s32.totalorder %s13_s18, 20   ;;  %s1832_s13 = smov %s1566_s25 }
 0x163   : > { %s1833_s14 = smov %s1484_s16  ;;  %s1834_s15 = smov %s1488_s17 }
 0x164   : > { %s1835_s16 = smov %s1838_s19  ;;  %s1836_s17 = smov %s1842_s20 }
 0x165   :  { %12 = sbr.rel (!%p10_p0) target bundleno = 4 (0x4), region = 119 }

// kernel: mammography_forward.98
= control target key start
LH: loop header
LB: loop body
LE: loop exit
PB: predicated region body
PF: predicated region fallthrough
CT: control target
= control target key end

     0   :  { %s1513_s12 = smov 0   ;;  %s1515_s13 = smov 0   ;;  %s1825_s0 = inlined_call_operand.vmem [shape: bf16[8,1024], index: 0, kind: input, shape index: {}]   ;;  %s1826_s1 = inlined_call_operand.vmem [shape: bf16[1024,2048], index: 1, kind: input, shape index: {}]   ;;  %s1827_s2 = inlined_call_operand.vmem [shape: f32[1,2048], index: 2, kind: input, shape index: {}]   ;;  %s1828_s3 = inlined_call_operand.vmem [shape: f32[8,2048], index: 3, kind: output, shape index: {}]  }
   0x1   :  { %s1517_s14 = smov 0   ;;  %s1519_s15 = smov 0  }
   0x2   :  { %s1521_s16 = smov 0   ;;  %s1523_s17 = smov 0  }
   0x3   :  { %s1525_s18 = smov 0  }
   0x4 LB: > { %s25_s19 = sadd.s32 1, %s1482_s16  ;;  %s28_s20 = sadd.s32 1, %s1486_s17  ;;  %s1490_s18 = sphi %s1525_s18, %s13_s18   ;;  %s1486_s17 = sphi %s1523_s17, %s1834_s17   ;;  %s1482_s16 = sphi %s1521_s16, %s1833_s16   ;;  %s1478_s15 = sphi %s1519_s15, %s1832_s15   ;;  %s1474_s14 = sphi %s1517_s14, %s1831_s14   ;;  %s1470_s13 = sphi %s1515_s13, %s1830_s13   ;;  %s1466_s12 = sphi %s1513_s12, %s1829_s12  }
   0x5   : > { %p26_p0 = scmp.ge.s32.totalorder %s25_s19, 2  ;;  %p76_p1 = scmp.ne.s32.totalorder %s1470_s13, %s1466_s12 }
   0x6   : > { %p77_p2 = scmp.eq.s32.totalorder %s1490_s18, 0  ;;  %s69_s24 = sadd.s32 1, %s1470_s13 }
   0x7   : > { %s1836_s19 = smov (%p26_p0, %s25_s19), 0  ;;  %s1838_s20 = smov (!%p26_p0, %s28_s20), %s1486_s17 }
   0x8   : > { %p78_p3 = por %p77_p2, %p76_p1  ;;  %p30_p4 = scmp.ge.s32.totalorder %s1838_s20, 8 }
   0x9   : > { %s64_s21 = ssub.s32 %s1482_s16, %s1836_s19  ;;  %p1193_p6 = scmp.ge.s32.totalorder %s1490_s18, 16 }
   0xa   : > { %s1840_s20 = smov (%p30_p4, %s1838_s20), 0 }
   0xb   : > { %s65_s22 = ssub.s32 %s1486_s17, %s1840_s20  ;;  %156 = sbr.rel (%p1193_p6) target bundleno = 87 (0x57), region = 16 }
   0xc   : > { %s66_s23 = sor.u32 %s65_s22, %s64_s21 }
   0xd   : > { %p67_p5 = scmp.eq.s32.totalorder %s66_s23, 0 }
   0xf   : > { %s1564_s25 = scalar_select %p67_p5, %s1470_s13, %s69_s24  }
  0x10   : > { %172 = sbr.rel (!%p78_p3) target bundleno = 87 (0x57), region = 24  ;;  %s174_s26 = sand.u32 (%p78_p3), 1, %s1470_s13  }
  0x11   : > { %s1196_s27 = sshll.u32 (%p78_p3), %s1486_s17, 1  ;;  %s1194_s28 = sshll.u32 (%p78_p3), %s174_s26, 9 }
  0x12   : > { %s1278_s29 = sshll.u32 (%p78_p3), %s1482_s16, 10  ;;  %s1578_s8 = scalar_lea.vmem (%p78_p3), [#allocation3], %s1194_s28 }
  0x13   : > { %s180_s30 = sadd.s32 (%p78_p3), %s1278_s29, %s1196_s27 }
  0x14   : > { %s1198_s4 = sshll.u32 (%p78_p3), %s180_s30, 2 }
  0x15   : > { %s1573_s7 = scalar_lea.vmem %s1826_s1, %s1198_s4 }
  0x16   : > { %v337_v0 = vld [vmem:[%s1573_s7] sm:$0xff] }
  0x17   : > { %v339_v1 = vld [vmem:[%s1573_s7 + $0x40] sm:$0xff]  ;;  %338 = vst [vmem:[%s1578_s8] sm:$0xff] %v337_v0 }
  0x18   : > { %v341_v2 = vld [vmem:[%s1573_s7 + $0x80] sm:$0xff]  ;;  %340 = vst [vmem:[%s1578_s8 + $0x8] sm:$0xff] %v339_v1 }
  0x19   : > { %342 = vst [vmem:[%s1578_s8 + $0x10] sm:$0xff] %v341_v2  ;;  %v343_v3 = vld [vmem:[%s1573_s7 + $0xc0] sm:$0xff] }
  0x1a   : > { %v345_v4 = vld [vmem:[%s1573_s7 + $0x100] sm:$0xff]  ;;  %344 = vst [vmem:[%s1578_s8 + $0x18] sm:$0xff] %v343_v3 }
  0x1b   : > { %v347_v5 = vld [vmem:[%s1573_s7 + $0x140] sm:$0xff]  ;;  %346 = vst [vmem:[%s1578_s8 + $0x20] sm:$0xff] %v345_v4 }
  0x1c   : > { %348 = vst [vmem:[%s1578_s8 + $0x28] sm:$0xff] %v347_v5  ;;  %v349_v6 = vld [vmem:[%s1573_s7 + $0x180] sm:$0xff] }
  0x1d   : > { %v351_v7 = vld [vmem:[%s1573_s7 + $0x1c0] sm:$0xff]  ;;  %350 = vst [vmem:[%s1578_s8 + $0x30] sm:$0xff] %v349_v6 }
  0x1e   : > { %v353_v8 = vld [vmem:[%s1573_s7 + $0x200] sm:$0xff]  ;;  %352 = vst [vmem:[%s1578_s8 + $0x38] sm:$0xff] %v351_v7 }
  0x1f   : > { %354 = vst [vmem:[%s1578_s8 + $0x40] sm:$0xff] %v353_v8  ;;  %v355_v9 = vld [vmem:[%s1573_s7 + $0x240] sm:$0xff] }
  0x20   : > { %v357_v10 = vld [vmem:[%s1573_s7 + $0x280] sm:$0xff]  ;;  %356 = vst [vmem:[%s1578_s8 + $0x48] sm:$0xff] %v355_v9 }
  0x21   : > { %v359_v11 = vld [vmem:[%s1573_s7 + $0x2c0] sm:$0xff]  ;;  %358 = vst [vmem:[%s1578_s8 + $0x50] sm:$0xff] %v357_v10 }
  0x22   : > { %360 = vst [vmem:[%s1578_s8 + $0x58] sm:$0xff] %v359_v11  ;;  %v361_v12 = vld [vmem:[%s1573_s7 + $0x300] sm:$0xff] }
  0x23   : > { %v363_v13 = vld [vmem:[%s1573_s7 + $0x340] sm:$0xff]  ;;  %362 = vst [vmem:[%s1578_s8 + $0x60] sm:$0xff] %v361_v12 }
  0x24   : > { %v365_v14 = vld [vmem:[%s1573_s7 + $0x380] sm:$0xff]  ;;  %364 = vst [vmem:[%s1578_s8 + $0x68] sm:$0xff] %v363_v13 }
  0x25   : > { %366 = vst [vmem:[%s1578_s8 + $0x70] sm:$0xff] %v365_v14  ;;  %v367_v15 = vld [vmem:[%s1573_s7 + $0x3c0] sm:$0xff] }
  0x26   : > { %v369_v16 = vld [vmem:[%s1573_s7 + $0x400] sm:$0xff]  ;;  %368 = vst [vmem:[%s1578_s8 + $0x78] sm:$0xff] %v367_v15 }
  0x27   : > { %v371_v17 = vld [vmem:[%s1573_s7 + $0x440] sm:$0xff]  ;;  %370 = vst [vmem:[%s1578_s8 + $0x80] sm:$0xff] %v369_v16 }
  0x28   : > { %372 = vst [vmem:[%s1578_s8 + $0x88] sm:$0xff] %v371_v17  ;;  %v373_v18 = vld [vmem:[%s1573_s7 + $0x480] sm:$0xff] }
  0x29   : > { %v375_v19 = vld [vmem:[%s1573_s7 + $0x4c0] sm:$0xff]  ;;  %374 = vst [vmem:[%s1578_s8 + $0x90] sm:$0xff] %v373_v18 }
  0x2a   : > { %v377_v20 = vld [vmem:[%s1573_s7 + $0x500] sm:$0xff]  ;;  %376 = vst [vmem:[%s1578_s8 + $0x98] sm:$0xff] %v375_v19 }
  0x2b   : > { %378 = vst [vmem:[%s1578_s8 + $0xa0] sm:$0xff] %v377_v20  ;;  %v379_v21 = vld [vmem:[%s1573_s7 + $0x540] sm:$0xff] }
  0x2c   : > { %v381_v22 = vld [vmem:[%s1573_s7 + $0x580] sm:$0xff]  ;;  %380 = vst [vmem:[%s1578_s8 + $0xa8] sm:$0xff] %v379_v21 }
  0x2d   : > { %v383_v23 = vld [vmem:[%s1573_s7 + $0x5c0] sm:$0xff]  ;;  %382 = vst [vmem:[%s1578_s8 + $0xb0] sm:$0xff] %v381_v22 }
  0x2e   : > { %384 = vst [vmem:[%s1578_s8 + $0xb8] sm:$0xff] %v383_v23  ;;  %v385_v24 = vld [vmem:[%s1573_s7 + $0x600] sm:$0xff] }
  0x2f   : > { %v387_v25 = vld [vmem:[%s1573_s7 + $0x640] sm:$0xff]  ;;  %386 = vst [vmem:[%s1578_s8 + $0xc0] sm:$0xff] %v385_v24 }
  0x30   : > { %v389_v26 = vld [vmem:[%s1573_s7 + $0x680] sm:$0xff]  ;;  %388 = vst [vmem:[%s1578_s8 + $0xc8] sm:$0xff] %v387_v25 }
  0x31   : > { %390 = vst [vmem:[%s1578_s8 + $0xd0] sm:$0xff] %v389_v26  ;;  %v391_v27 = vld [vmem:[%s1573_s7 + $0x6c0] sm:$0xff] }
  0x32   : > { %v393_v28 = vld [vmem:[%s1573_s7 + $0x700] sm:$0xff]  ;;  %392 = vst [vmem:[%s1578_s8 + $0xd8] sm:$0xff] %v391_v27 }
  0x33   : > { %v395_v29 = vld [vmem:[%s1573_s7 + $0x740] sm:$0xff]  ;;  %394 = vst [vmem:[%s1578_s8 + $0xe0] sm:$0xff] %v393_v28 }
  0x34   : > { %396 = vst [vmem:[%s1578_s8 + $0xe8] sm:$0xff] %v395_v29  ;;  %v397_v30 = vld [vmem:[%s1573_s7 + $0x780] sm:$0xff] }
  0x35   : > { %v399_v31 = vld [vmem:[%s1573_s7 + $0x7c0] sm:$0xff]  ;;  %398 = vst [vmem:[%s1578_s8 + $0xf0] sm:$0xff] %v397_v30 }
  0x36   : > { %v401_v32 = vld [vmem:[%s1573_s7 + $0x800] sm:$0xff]  ;;  %400 = vst [vmem:[%s1578_s8 + $0xf8] sm:$0xff] %v399_v31 }
  0x37   : > { %402 = vst [vmem:[%s1578_s8 + $0x100] sm:$0xff] %v401_v32  ;;  %v403_v33 = vld [vmem:[%s1573_s7 + $0x840] sm:$0xff] }
  0x38   : > { %v405_v34 = vld [vmem:[%s1573_s7 + $0x880] sm:$0xff]  ;;  %404 = vst [vmem:[%s1578_s8 + $0x108] sm:$0xff] %v403_v33 }
  0x39   : > { %v407_v35 = vld [vmem:[%s1573_s7 + $0x8c0] sm:$0xff]  ;;  %406 = vst [vmem:[%s1578_s8 + $0x110] sm:$0xff] %v405_v34 }
  0x3a   : > { %408 = vst [vmem:[%s1578_s8 + $0x118] sm:$0xff] %v407_v35  ;;  %v409_v36 = vld [vmem:[%s1573_s7 + $0x900] sm:$0xff] }
  0x3b   : > { %v411_v37 = vld [vmem:[%s1573_s7 + $0x940] sm:$0xff]  ;;  %410 = vst [vmem:[%s1578_s8 + $0x120] sm:$0xff] %v409_v36 }
  0x3c   : > { %v413_v38 = vld [vmem:[%s1573_s7 + $0x980] sm:$0xff]  ;;  %412 = vst [vmem:[%s1578_s8 + $0x128] sm:$0xff] %v411_v37 }
  0x3d   : > { %414 = vst [vmem:[%s1578_s8 + $0x130] sm:$0xff] %v413_v38  ;;  %v415_v39 = vld [vmem:[%s1573_s7 + $0x9c0] sm:$0xff] }
  0x3e   : > { %v417_v40 = vld [vmem:[%s1573_s7 + $0xa00] sm:$0xff]  ;;  %416 = vst [vmem:[%s1578_s8 + $0x138] sm:$0xff] %v415_v39 }
  0x3f   : > { %v419_v41 = vld [vmem:[%s1573_s7 + $0xa40] sm:$0xff]  ;;  %418 = vst [vmem:[%s1578_s8 + $0x140] sm:$0xff] %v417_v40 }
  0x40   : > { %420 = vst [vmem:[%s1578_s8 + $0x148] sm:$0xff] %v419_v41  ;;  %v421_v42 = vld [vmem:[%s1573_s7 + $0xa80] sm:$0xff] }
  0x41   : > { %v423_v43 = vld [vmem:[%s1573_s7 + $0xac0] sm:$0xff]  ;;  %422 = vst [vmem:[%s1578_s8 + $0x150] sm:$0xff] %v421_v42 }
  0x42   : > { %v425_v44 = vld [vmem:[%s1573_s7 + $0xb00] sm:$0xff]  ;;  %424 = vst [vmem:[%s1578_s8 + $0x158] sm:$0xff] %v423_v43 }
  0x43   : > { %426 = vst [vmem:[%s1578_s8 + $0x160] sm:$0xff] %v425_v44  ;;  %v427_v45 = vld [vmem:[%s1573_s7 + $0xb40] sm:$0xff] }
  0x44   : > { %v429_v46 = vld [vmem:[%s1573_s7 + $0xb80] sm:$0xff]  ;;  %428 = vst [vmem:[%s1578_s8 + $0x168] sm:$0xff] %v427_v45 }
  0x45   : > { %v431_v47 = vld [vmem:[%s1573_s7 + $0xbc0] sm:$0xff]  ;;  %430 = vst [vmem:[%s1578_s8 + $0x170] sm:$0xff] %v429_v46 }
  0x46   : > { %432 = vst [vmem:[%s1578_s8 + $0x178] sm:$0xff] %v431_v47  ;;  %v433_v48 = vld [vmem:[%s1573_s7 + $0xc00] sm:$0xff] }
  0x47   : > { %v435_v49 = vld [vmem:[%s1573_s7 + $0xc40] sm:$0xff]  ;;  %434 = vst [vmem:[%s1578_s8 + $0x180] sm:$0xff] %v433_v48 }
  0x48   : > { %v437_v50 = vld [vmem:[%s1573_s7 + $0xc80] sm:$0xff]  ;;  %436 = vst [vmem:[%s1578_s8 + $0x188] sm:$0xff] %v435_v49 }
  0x49   : > { %438 = vst [vmem:[%s1578_s8 + $0x190] sm:$0xff] %v437_v50  ;;  %v439_v51 = vld [vmem:[%s1573_s7 + $0xcc0] sm:$0xff] }
  0x4a   : > { %v441_v52 = vld [vmem:[%s1573_s7 + $0xd00] sm:$0xff]  ;;  %440 = vst [vmem:[%s1578_s8 + $0x198] sm:$0xff] %v439_v51 }
  0x4b   : > { %v443_v53 = vld [vmem:[%s1573_s7 + $0xd40] sm:$0xff]  ;;  %442 = vst [vmem:[%s1578_s8 + $0x1a0] sm:$0xff] %v441_v52 }
  0x4c   : > { %444 = vst [vmem:[%s1578_s8 + $0x1a8] sm:$0xff] %v443_v53  ;;  %v445_v54 = vld [vmem:[%s1573_s7 + $0xd80] sm:$0xff] }
  0x4d   : > { %v447_v55 = vld [vmem:[%s1573_s7 + $0xdc0] sm:$0xff]  ;;  %446 = vst [vmem:[%s1578_s8 + $0x1b0] sm:$0xff] %v445_v54 }
  0x4e   : > { %v449_v56 = vld [vmem:[%s1573_s7 + $0xe00] sm:$0xff]  ;;  %448 = vst [vmem:[%s1578_s8 + $0x1b8] sm:$0xff] %v447_v55 }
  0x4f   : > { %450 = vst [vmem:[%s1578_s8 + $0x1c0] sm:$0xff] %v449_v56  ;;  %v451_v57 = vld [vmem:[%s1573_s7 + $0xe40] sm:$0xff] }
  0x50   : > { %v453_v58 = vld [vmem:[%s1573_s7 + $0xe80] sm:$0xff]  ;;  %452 = vst [vmem:[%s1578_s8 + $0x1c8] sm:$0xff] %v451_v57 }
  0x51   : > { %v455_v59 = vld [vmem:[%s1573_s7 + $0xec0] sm:$0xff]  ;;  %454 = vst [vmem:[%s1578_s8 + $0x1d0] sm:$0xff] %v453_v58 }
  0x52   : > { %456 = vst [vmem:[%s1578_s8 + $0x1d8] sm:$0xff] %v455_v59  ;;  %v457_v60 = vld [vmem:[%s1573_s7 + $0xf00] sm:$0xff] }
  0x53   : > { %v459_v61 = vld [vmem:[%s1573_s7 + $0xf40] sm:$0xff]  ;;  %458 = vst [vmem:[%s1578_s8 + $0x1e0] sm:$0xff] %v457_v60 }
  0x54   : > { %v461_v62 = vld [vmem:[%s1573_s7 + $0xf80] sm:$0xff]  ;;  %460 = vst [vmem:[%s1578_s8 + $0x1e8] sm:$0xff] %v459_v61 }
  0x55   : > { %462 = vst [vmem:[%s1578_s8 + $0x1f0] sm:$0xff] %v461_v62  ;;  %v463_v63 = vld [vmem:[%s1573_s7 + $0xfc0] sm:$0xff] }
  0x56   : > { %464 = vst [vmem:[%s1578_s8 + $0x1f8] sm:$0xff] %v463_v63 }
  0x57 PF: > { %p1199_p7 = scmp.ge.s32.totalorder %s1490_s18, 1  ;;  %p477_p8 = scmp.lt.s32.totalorder %s1490_s18, 17 }
  0x59   : > { %p478_p9 = pnand %p1199_p7, %p477_p8 }
  0x5a   : > { %s484_s9 = sand.u32 (!%p478_p9), 1, %s1466_s12   ;;  %s1201_s10 = sshll.u32 (!%p478_p9), %s1474_s14, 2 }
  0x5b   : > { %481 = sbr.rel (%p478_p9) target bundleno = 383 (0x17f), region = 66  ;;  %s1200_s11 = sshll.u32 (!%p478_p9), %s484_s9, 9 }
  0x5c   : > { %p527_p10 = scmp.lt.s32.totalorder (!%p478_p9), %s1201_s10, 7  ;;  %s1203_s21 = sshll.u32 (!%p478_p9), %s1478_s15, 1 }
  0x5d   : > { %p537_p11 = scmp.lt.s32.totalorder (!%p478_p9), %s1203_s21, 15  ;;  %s1727_s5 = scalar_lea.vmem (!%p478_p9), [#allocation3], %s1200_s11 }
  0x5e   : > { %p1206_p12 = scmp.ne.s32.totalorder (!%p478_p9), %s1474_s14, 0 }
  0x60   : > { %s1842_s10 = smov (!%p527_p10, %s1201_s10), 7  ;;  %s1844_s21 = smov (!%p537_p11, %s1203_s21), 15 }
  0x61   : > { %s1202_s22 = sshll.u32 %s1842_s10, 2  ;;  %s539_s12 = scalar_lea.vmem %s1827_s2, %s1844_s21 }
  0x62   : > { %s1713_s26 = scalar_lea.vmem %s1825_s0, %s1202_s22  ;;  %s1205_s29 = sshll.u32 %s1844_s21, 3 }
  0x63   : > { %s1725_s15 = scalar_lea.vmem %s1828_s3, %s1205_s29  ;;  %554 = sbr.rel (%p1206_p12) target bundleno = 106 (0x6a), region = 74 }
  0x68   : > { %v1492_v0 = vmov 0.0  }
  0x69   : > { %555 = vst [vmem:[#allocation2] sm:$0xff] %v1492_v0  ;;  %556 = vst [vmem:[#allocation2 + $0x8] sm:$0xff] %v1492_v0 }
  0x6a PF: > { %v1336_v1 = vld [vmem:[%s1727_s5 + $0x74] ss:$8 sps:$4 sm:$0xff]   ;;  %v1340_v3 = vld [vmem:[%s1727_s5 + $0x70] ss:$8 sps:$4 sm:$0xff]   ;;  %v1342_v5 = vld [vmem:[%s1727_s5 + $0x64] ss:$8 sps:$4 sm:$0xff]  }
  0x6b   : > { %v1338_v2 = vld [vmem:[%s1727_s5 + $0x174] ss:$8 sps:$4 sm:$0xff]   ;;  %959 = vmatprep.subr.bf16.mxu0 %v1336_v1  ;;  %v1341_v4 = vld [vmem:[%s1727_s5 + $0x170] ss:$8 sps:$4 sm:$0xff]   ;;  %v1344_v6 = vld [vmem:[%s1727_s5 + $0x164] ss:$8 sps:$4 sm:$0xff]  }
  0x6c   : > { %1000 = vmatprep.subr.bf16.mxu1 %v1338_v2  ;;  %960 = vmatpush1.bf16.msra.mxu0 %v1340_v3  ;;  %v1346_v7 = vld [vmem:[%s1727_s5 + $0x60] ss:$8 sps:$4 sm:$0xff]   ;;  %v1348_v9 = vld [vmem:[%s1727_s5 + $0x54] ss:$8 sps:$4 sm:$0xff]   ;;  %v1352_v11 = vld [vmem:[%s1727_s5 + $0x50] ss:$8 sps:$4 sm:$0xff]  }
  0x6d   : > { %1001 = vmatpush1.bf16.msra.mxu1 %v1341_v4  ;;  %961 = vmatprep.subr.bf16.mxu0 %v1342_v5  ;;  %v1347_v8 = vld [vmem:[%s1727_s5 + $0x160] ss:$8 sps:$4 sm:$0xff]   ;;  %v1350_v10 = vld [vmem:[%s1727_s5 + $0x154] ss:$8 sps:$4 sm:$0xff]   ;;  %v1353_v12 = vld [vmem:[%s1727_s5 + $0x150] ss:$8 sps:$4 sm:$0xff]  }
  0x6e   : > { %1002 = vmatprep.subr.bf16.mxu1 %v1344_v6  ;;  %v1354_v13 = vld [vmem:[%s1727_s5 + $0x44] ss:$8 sps:$4 sm:$0xff]   ;;  %v1358_v15 = vld [vmem:[%s1727_s5 + $0x40] ss:$8 sps:$4 sm:$0xff]   ;;  %v1360_v17 = vld [vmem:[%s1727_s5 + $0x34] ss:$8 sps:$4 sm:$0xff]  }
  0x6f   : > { %v1356_v14 = vld [vmem:[%s1727_s5 + $0x144] ss:$8 sps:$4 sm:$0xff]   ;;  %v1359_v16 = vld [vmem:[%s1727_s5 + $0x140] ss:$8 sps:$4 sm:$0xff]   ;;  %v1362_v18 = vld [vmem:[%s1727_s5 + $0x134] ss:$8 sps:$4 sm:$0xff]  }
  0x70   : > { %962 = vmatpush1.bf16.msra.mxu0 %v1346_v7  ;;  %v1364_v19 = vld [vmem:[%s1727_s5 + $0x30] ss:$8 sps:$4 sm:$0xff]   ;;  %v1366_v21 = vld [vmem:[%s1727_s5 + $0x24] ss:$8 sps:$4 sm:$0xff]   ;;  %v1370_v23 = vld [vmem:[%s1727_s5 + $0x20] ss:$8 sps:$4 sm:$0xff]  }
  0x71   : > { %1003 = vmatpush1.bf16.msra.mxu1 %v1347_v8  ;;  %963 = vmatprep.subr.bf16.mxu0 %v1348_v9  ;;  %v1365_v20 = vld [vmem:[%s1727_s5 + $0x130] ss:$8 sps:$4 sm:$0xff]   ;;  %v1368_v22 = vld [vmem:[%s1727_s5 + $0x124] ss:$8 sps:$4 sm:$0xff]   ;;  %v1371_v24 = vld [vmem:[%s1727_s5 + $0x120] ss:$8 sps:$4 sm:$0xff]  }
  0x72   : > { %1004 = vmatprep.subr.bf16.mxu1 %v1350_v10  ;;  %v1372_v25 = vld [vmem:[%s1727_s5 + $0x14] ss:$8 sps:$4 sm:$0xff]   ;;  %v1376_v27 = vld [vmem:[%s1727_s5 + $0x10] ss:$8 sps:$4 sm:$0xff]   ;;  %v1378_v29 = vld [vmem:[%s1727_s5 + $0x4] ss:$8 sps:$4 sm:$0xff]  }
  0x73   : > { %v1374_v26 = vld [vmem:[%s1727_s5 + $0x114] ss:$8 sps:$4 sm:$0xff]   ;;  %v1377_v28 = vld [vmem:[%s1727_s5 + $0x110] ss:$8 sps:$4 sm:$0xff]   ;;  %v1380_v30 = vld [vmem:[%s1727_s5 + $0x104] ss:$8 sps:$4 sm:$0xff]  }
  0x74   : > { %964 = vmatpush1.bf16.msra.mxu0 %v1352_v11  ;;  %v1382_v31 = vld [vmem:[%s1727_s5] ss:$8 sps:$4 sm:$0xff]   ;;  %v1384_v33 = vld [vmem:[%s1727_s5 + $0xf4] ss:$8 sps:$4 sm:$0xff]   ;;  %v1388_v35 = vld [vmem:[%s1727_s5 + $0xf0] ss:$8 sps:$4 sm:$0xff]  }
  0x75   : > { %1005 = vmatpush1.bf16.msra.mxu1 %v1353_v12  ;;  %965 = vmatprep.subr.bf16.mxu0 %v1354_v13  ;;  %v1383_v32 = vld [vmem:[%s1727_s5 + $0x100] ss:$8 sps:$4 sm:$0xff]   ;;  %v1386_v34 = vld [vmem:[%s1727_s5 + $0x1f4] ss:$8 sps:$4 sm:$0xff]   ;;  %v1389_v36 = vld [vmem:[%s1727_s5 + $0x1f0] ss:$8 sps:$4 sm:$0xff]  }
  0x76   : > { %1006 = vmatprep.subr.bf16.mxu1 %v1356_v14  ;;  %v1390_v37 = vld [vmem:[%s1727_s5 + $0xe4] ss:$8 sps:$4 sm:$0xff]   ;;  %v1394_v39 = vld [vmem:[%s1727_s5 + $0xe0] ss:$8 sps:$4 sm:$0xff]   ;;  %v1396_v41 = vld [vmem:[%s1727_s5 + $0xd4] ss:$8 sps:$4 sm:$0xff]  }
  0x77   : > { %v1392_v38 = vld [vmem:[%s1727_s5 + $0x1e4] ss:$8 sps:$4 sm:$0xff]   ;;  %v1395_v40 = vld [vmem:[%s1727_s5 + $0x1e0] ss:$8 sps:$4 sm:$0xff]   ;;  %v1398_v42 = vld [vmem:[%s1727_s5 + $0x1d4] ss:$8 sps:$4 sm:$0xff]  }
  0x78   : > { %966 = vmatpush1.bf16.msra.mxu0 %v1358_v15  ;;  %v1400_v43 = vld [vmem:[%s1727_s5 + $0xd0] ss:$8 sps:$4 sm:$0xff]   ;;  %v1402_v45 = vld [vmem:[%s1727_s5 + $0xc4] ss:$8 sps:$4 sm:$0xff]   ;;  %v1406_v50 = vld [vmem:[%s1727_s5 + $0xc0] ss:$8 sps:$4 sm:$0xff]  }
  0x79   : > { %1007 = vmatpush1.bf16.msra.mxu1 %v1359_v16  ;;  %967 = vmatprep.subr.bf16.mxu0 %v1360_v17  ;;  %v1401_v44 = vld [vmem:[%s1727_s5 + $0x1d0] ss:$8 sps:$4 sm:$0xff]   ;;  %v1404_v46 = vld [vmem:[%s1727_s5 + $0x1c4] ss:$8 sps:$4 sm:$0xff]   ;;  %v1407_v51 = vld [vmem:[%s1727_s5 + $0x1c0] ss:$8 sps:$4 sm:$0xff]  }
  0x7a   : > { %1008 = vmatprep.subr.bf16.mxu1 %v1362_v18  ;;  %v559_v47 = vld [vmem:[%s1713_s26] sm:$0xff]  ;;  %v560_v49 = vld [vmem:[%s1713_s26 + $0x8] sm:$0xff]  ;;  %v1414_v57 = vld [vmem:[%s1727_s5 + $0xa4] ss:$8 sps:$4 sm:$0xff]   ;;  %p1275_p13 = scmp.ne.s32.totalorder %s1474_s14, 1 }
  0x7b   : > { %v1208_v48 = vcombine.high %v559_v47, %v559_v47  ;;  %v1210_v52 = vcombine.high %v560_v49, %v560_v49  ;;  %v1408_v53 = vld [vmem:[%s1727_s5 + $0xb4] ss:$8 sps:$4 sm:$0xff]   ;;  %v1412_v55 = vld [vmem:[%s1727_s5 + $0xb0] ss:$8 sps:$4 sm:$0xff]   ;;  %v1416_v58 = vld [vmem:[%s1727_s5 + $0x1a4] ss:$8 sps:$4 sm:$0xff]   ;;  %v1207_v5 = vcombine.low %v559_v47, %v559_v47  ;;  %v1209_v6 = vcombine.low %v560_v49, %v560_v49 }
  0x7c   : > { %968 = vmatpush1.bf16.msra.mxu0 %v1364_v19  ;;  %v1410_v54 = vld [vmem:[%s1727_s5 + $0x1b4] ss:$8 sps:$4 sm:$0xff]   ;;  %v1413_v56 = vld [vmem:[%s1727_s5 + $0x1b0] ss:$8 sps:$4 sm:$0xff]   ;;  %v1418_v59 = vld [vmem:[%s1727_s5 + $0xa0] ss:$8 sps:$4 sm:$0xff]  }
  0x7d   : > { %1009 = vmatpush1.bf16.msra.mxu1 %v1365_v20  ;;  %969 = vmatprep.subr.bf16.mxu0 %v1366_v21  ;;  %v1419_v60 = vld [vmem:[%s1727_s5 + $0x1a0] ss:$8 sps:$4 sm:$0xff]   ;;  %v1420_v61 = vld [vmem:[%s1727_s5 + $0x94] ss:$8 sps:$4 sm:$0xff]   ;;  %v1424_v63 = vld [vmem:[%s1727_s5 + $0x90] ss:$8 sps:$4 sm:$0xff]  }
  0x7e   : > { %1010 = vmatprep.subr.bf16.mxu1 %v1368_v22  ;;  %991 = vmatprep.mubr.bf16.mxu0 %v1208_v48  ;;  %v1422_v62 = vld [vmem:[%s1727_s5 + $0x194] ss:$8 sps:$4 sm:$0xff]   ;;  %v1425_v0 = vld [vmem:[%s1727_s5 + $0x190] ss:$8 sps:$4 sm:$0xff]   ;;  %v1426_v1 = vld [vmem:[%s1727_s5 + $0x84] ss:$8 sps:$4 sm:$0xff]  }
  0x7f   : > { %1032 = vmatprep.mubr.bf16.mxu1 %v1210_v52  ;;  %v1428_v2 = vld [vmem:[%s1727_s5 + $0x184] ss:$8 sps:$4 sm:$0xff]   ;;  %v1430_v3 = vld [vmem:[%s1727_s5 + $0x80] ss:$8 sps:$4 sm:$0xff]   ;;  %v557_v8 = vld [vmem:[#allocation2] sm:$0xff] }
  0x80   : > { %970 = vmatpush1.bf16.msra.mxu0 %v1370_v23  ;;  %v1431_v4 = vld [vmem:[%s1727_s5 + $0x180] ss:$8 sps:$4 sm:$0xff]   ;;  %v558_v12 = vld [vmem:[#allocation2 + $0x8] sm:$0xff] }
  0x81   : > { %1011 = vmatpush1.bf16.msra.mxu1 %v1371_v24  ;;  %971 = vmatprep.subr.bf16.mxu0 %v1372_v25 }
  0x82   : > { %1012 = vmatprep.subr.bf16.mxu1 %v1374_v26 }
  0x84   : > { %972 = vmatpush1.bf16.msra.mxu0 %v1376_v27 }
  0x85   : > { %1013 = vmatpush1.bf16.msra.mxu1 %v1377_v28  ;;  %973 = vmatprep.subr.bf16.mxu0 %v1378_v29 }
  0x86   : > { %1014 = vmatprep.subr.bf16.mxu1 %v1380_v30 }
  0x88   : > { %974 = vmatpush1.bf16.msra.mxu0 %v1382_v31 }
  0x89   : > { %1015 = vmatpush1.bf16.msra.mxu1 %v1383_v32  ;;  %975 = vmatprep.subr.bf16.mxu0 %v1384_v33 }
  0x8a   : > { %1016 = vmatprep.subr.bf16.mxu1 %v1386_v34 }
  0x8c   : > { %976 = vmatpush2.bf16.msra.mxu0 %v1388_v35 }
  0x8d   : > { %1017 = vmatpush2.bf16.msra.mxu1 %v1389_v36  ;;  %977 = vmatprep.subr.bf16.mxu0 %v1390_v37 }
  0x8e   : > { %1018 = vmatprep.subr.bf16.mxu1 %v1392_v38 }
  0x90   : > { %978 = vmatpush2.bf16.msra.mxu0 %v1394_v39 }
  0x91   : > { %1019 = vmatpush2.bf16.msra.mxu1 %v1395_v40  ;;  %979 = vmatprep.subr.bf16.mxu0 %v1396_v41 }
  0x92   : > { %1020 = vmatprep.subr.bf16.mxu1 %v1398_v42 }
  0x94   : > { %980 = vmatpush2.bf16.msra.mxu0 %v1400_v43 }
  0x95   : > { %1021 = vmatpush2.bf16.msra.mxu1 %v1401_v44  ;;  %981 = vmatprep.subr.bf16.mxu0 %v1402_v45 }
  0x96   : > { %1022 = vmatprep.subr.bf16.mxu1 %v1404_v46 }
  0x98   : > { %982 = vmatpush2.bf16.msra.mxu0 %v1406_v50 }
  0x99   : > { %1023 = vmatpush2.bf16.msra.mxu1 %v1407_v51  ;;  %983 = vmatprep.subr.bf16.mxu0 %v1408_v53 }
  0x9a   : > { %1024 = vmatprep.subr.bf16.mxu1 %v1410_v54 }
  0x9c   : > { %984 = vmatpush2.bf16.msra.mxu0 %v1412_v55 }
  0x9d   : > { %1025 = vmatpush2.bf16.msra.mxu1 %v1413_v56  ;;  %985 = vmatprep.subr.bf16.mxu0 %v1414_v57 }
  0x9e   : > { %1026 = vmatprep.subr.bf16.mxu1 %v1416_v58 }
  0xa0   : > { %986 = vmatpush2.bf16.msra.mxu0 %v1418_v59 }
  0xa1   : > { %1027 = vmatpush2.bf16.msra.mxu1 %v1419_v60  ;;  %987 = vmatprep.subr.bf16.mxu0 %v1420_v61 }
  0xa2   : > { %1028 = vmatprep.subr.bf16.mxu1 %v1422_v62 }
  0xa4   : > { %988 = vmatpush2.bf16.msra.mxu0 %v1424_v63 }
  0xa5   : > { %1029 = vmatpush2.bf16.msra.mxu1 %v1425_v0  ;;  %989 = vmatprep.subr.bf16.mxu0 %v1426_v1 }
  0xa6   : > { %1030 = vmatprep.subr.bf16.mxu1 %v1428_v2 }
  0xa8   : > { %990 = vmatpush2.bf16.msra.mxu0 %v1430_v3 }
  0xa9   : > { %1031 = vmatpush2.bf16.msra.mxu1 %v1431_v4 }
  0xab   : > { %992 = vmatmul.mubr.bf16.vlgmr.msra.gmra.mxu0 %v1207_v5 }
  0xac   : > { %1033 = vmatmul.mubr.bf16.vlgmr.msra.gmra.mxu1 %v1209_v6 }
 0x16b   : > { %v993_v7 = vpop.f32.mrf.mxu0 }
 0x16c   : > { %v1034_v9 = vpop.f32.mrf.mxu1 }
 0x16d   : > { %v1035_v10 = vadd.f32 %v1034_v9, %v993_v7  ;;  %v995_v11 = vpop.f32.mrf.mxu0 }
 0x16e   : > { %v1036_v13 = vpop.f32.mrf.mxu1 }
 0x16f   : > { %v1041_v14 = vadd.f32 %v1035_v10, %v557_v8  ;;  %v1037_v15 = vadd.f32 %v1036_v13, %v995_v11  ;;  %v997_v16 = vpop.f32.mrf.mxu0  ;;  %1048 = sbr.rel (%p1275_p13) target bundleno = 383 (0x17f), region = 78 }
 0x170   : > { %v1038_v17 = vpop.f32.mrf.mxu1 }
 0x171   : > { %1043 = vst [vmem:[#allocation2] sm:$0xff] %v1041_v14  ;;  %v1042_v18 = vadd.f32 %v1037_v15, %v558_v12  ;;  %v998_v19 = vpop.f32.mrf.mxu0 }
 0x172   : > { %v1039_v20 = vpop.f32.mrf.mxu1 }
 0x173   : > { %1044 = vst [vmem:[#allocation2 + $0x8] sm:$0xff] %v1042_v18 }
 0x174   : > { %v1053_v21 = vlaneseq  ;;  %v1051_v23 = vld [vmem:[%s539_s12] sm:$0x3] }
 0x176   : > { %v1054_v22 = vshrl.u32 %v1053_v21, 7 }
 0x178   : > { %v1055_v24 = vsub.s32 0, %v1054_v22  ;;  %v1059_v25 = vsub.s32 1, %v1054_v22  ;;  %v1049_v26 = vld [vmem:[#allocation2] sm:$0xff] }
 0x17a   : > { %v1050_v27 = vld [vmem:[#allocation2 + $0x8] sm:$0xff]  ;;  %v1056_v28 = vrot.slane %v1051_v23, %v1055_v24  ;;  %v1060_v29 = vrot.slane %v1051_v23, %v1059_v25 }
 0x17c   : > { %v1063_v30 = vadd.f32 %v1056_v28, %v1049_v26  ;;  %v1064_v31 = vadd.f32 %v1060_v29, %v1050_v27 }
 0x17e   : > { %1065 = vst [vmem:[%s1725_s15] sm:$0xff] %v1063_v30  ;;  %1066 = vst [vmem:[%s1725_s15 + $0x8] sm:$0xff] %v1064_v31 }
 0x17f PF: > { %s13_s18 = sadd.s32 1, %s1490_s18   ;;  %s1829_s12 = smov %s1470_s13 }
 0x180   : > { %p10_p0 = scmp.ge.s32.totalorder %s13_s18, 18   ;;  %s1830_s13 = smov %s1564_s25 }
 0x181   : > { %s1831_s14 = smov %s1482_s16  ;;  %s1832_s15 = smov %s1486_s17 }
 0x182   : > { %s1833_s16 = smov %s1836_s19  ;;  %s1834_s17 = smov %s1840_s20 }
 0x183   :  { %12 = sbr.rel (!%p10_p0) target bundleno = 4 (0x4), region = 119 }

// kernel: mammography_forward.101
= control target key start
LH: loop header
LB: loop body
LE: loop exit
PB: predicated region body
PF: predicated region fallthrough
CT: control target
= control target key end

     0   :  { %s1567_s15 = smov 0   ;;  %s1569_s16 = smov 0   ;;  %s1854_s0 = inlined_call_operand.vmem [shape: bf16[8,512], index: 0, kind: input, shape index: {}]   ;;  %s1855_s1 = inlined_call_operand.vmem [shape: bf16[512,2048], index: 1, kind: input, shape index: {}]   ;;  %s1856_s2 = inlined_call_operand.vmem [shape: f32[1,2048], index: 2, kind: input, shape index: {}]   ;;  %s1857_s3 = inlined_call_operand.vmem [shape: f32[8,2048], index: 3, kind: input, shape index: {}]   ;;  %s1858_s4 = inlined_call_operand.vmem [shape: f32[8,2048], index: 4, kind: output, shape index: {}]  }
   0x1   :  { %s1571_s17 = smov 0   ;;  %s1573_s18 = smov 0  }
   0x2   :  { %s1575_s19 = smov 0  }
   0x3 LB: > { %s29_s20 = sadd.s32 1, %s1536_s18  ;;  %p77_p1 = scmp.ne.s32.totalorder %s1528_s16, %s1524_s15  ;;  %s1540_s19 = sphi %s1575_s19, %s14_s19   ;;  %s1536_s18 = sphi %s1573_s18, %s1862_s18   ;;  %s1532_s17 = sphi %s1571_s17, %s1861_s17   ;;  %s1528_s16 = sphi %s1569_s16, %s1860_s16   ;;  %s1524_s15 = sphi %s1567_s15, %s1859_s15  }
   0x4   : > { %p31_p0 = scmp.ge.s32.totalorder %s29_s20, 8  ;;  %p78_p2 = scmp.eq.s32.totalorder %s1540_s19, 0 }
   0x5   : > { %s70_s22 = sadd.s32 1, %s1528_s16  ;;  %p1280_p5 = scmp.ge.s32.totalorder %s1540_s19, 8 }
   0x6   : > { %s1864_s20 = smov (%p31_p0, %s29_s20), 0  ;;  %p79_p3 = por %p78_p2, %p77_p1 }
   0x7   : > { %s66_s21 = ssub.s32 %s1536_s18, %s1864_s20  ;;  %198 = sbr.rel (%p1280_p5) target bundleno = 80 (0x50), region = 20 }
   0x8   : > { %p68_p4 = scmp.eq.s32.totalorder %s66_s21, 0 }
   0xa   : > { %s1602_s23 = scalar_select %p68_p4, %s1528_s16, %s70_s22  }
   0xc   : > { %201 = sbr.rel (!%p79_p3) target bundleno = 80 (0x50), region = 24  ;;  %s203_s24 = sand.u32 (%p79_p3), 1, %s1528_s16  }
   0xd   : > { %s1361_s25 = sshll.u32 (%p79_p3), %s1536_s18, 3  ;;  %s1281_s26 = sshll.u32 (%p79_p3), %s203_s24, 9 }
   0xe   : > { %s1610_s29 = scalar_lea.vmem (%p79_p3), %s1855_s1, %s1361_s25  ;;  %s1615_s30 = scalar_lea.vmem (%p79_p3), [#allocation3], %s1281_s26 }
   0xf   : > { %v366_v0 = vld [vmem:[%s1610_s29] sm:$0xff] (%p79_p3) }
  0x10   : > { %v368_v1 = vld [vmem:[%s1610_s29 + $0x40] sm:$0xff] (%p79_p3)  ;;  %367 = vst [vmem:[%s1615_s30] sm:$0xff] (%p79_p3), %v366_v0 }
  0x11   : > { %v370_v2 = vld [vmem:[%s1610_s29 + $0x80] sm:$0xff]  ;;  %369 = vst [vmem:[%s1615_s30 + $0x8] sm:$0xff] %v368_v1 }
  0x12   : > { %371 = vst [vmem:[%s1615_s30 + $0x10] sm:$0xff] %v370_v2  ;;  %v372_v3 = vld [vmem:[%s1610_s29 + $0xc0] sm:$0xff] }
  0x13   : > { %v374_v4 = vld [vmem:[%s1610_s29 + $0x100] sm:$0xff]  ;;  %373 = vst [vmem:[%s1615_s30 + $0x18] sm:$0xff] %v372_v3 }
  0x14   : > { %v376_v5 = vld [vmem:[%s1610_s29 + $0x140] sm:$0xff]  ;;  %375 = vst [vmem:[%s1615_s30 + $0x20] sm:$0xff] %v374_v4 }
  0x15   : > { %377 = vst [vmem:[%s1615_s30 + $0x28] sm:$0xff] %v376_v5  ;;  %v378_v6 = vld [vmem:[%s1610_s29 + $0x180] sm:$0xff] }
  0x16   : > { %v380_v7 = vld [vmem:[%s1610_s29 + $0x1c0] sm:$0xff]  ;;  %379 = vst [vmem:[%s1615_s30 + $0x30] sm:$0xff] %v378_v6 }
  0x17   : > { %v382_v8 = vld [vmem:[%s1610_s29 + $0x200] sm:$0xff]  ;;  %381 = vst [vmem:[%s1615_s30 + $0x38] sm:$0xff] %v380_v7 }
  0x18   : > { %383 = vst [vmem:[%s1615_s30 + $0x40] sm:$0xff] %v382_v8  ;;  %v384_v9 = vld [vmem:[%s1610_s29 + $0x240] sm:$0xff] }
  0x19   : > { %v386_v10 = vld [vmem:[%s1610_s29 + $0x280] sm:$0xff]  ;;  %385 = vst [vmem:[%s1615_s30 + $0x48] sm:$0xff] %v384_v9 }
  0x1a   : > { %v388_v11 = vld [vmem:[%s1610_s29 + $0x2c0] sm:$0xff]  ;;  %387 = vst [vmem:[%s1615_s30 + $0x50] sm:$0xff] %v386_v10 }
  0x1b   : > { %389 = vst [vmem:[%s1615_s30 + $0x58] sm:$0xff] %v388_v11  ;;  %v390_v12 = vld [vmem:[%s1610_s29 + $0x300] sm:$0xff] }
  0x1c   : > { %v392_v13 = vld [vmem:[%s1610_s29 + $0x340] sm:$0xff]  ;;  %391 = vst [vmem:[%s1615_s30 + $0x60] sm:$0xff] %v390_v12 }
  0x1d   : > { %v394_v14 = vld [vmem:[%s1610_s29 + $0x380] sm:$0xff]  ;;  %393 = vst [vmem:[%s1615_s30 + $0x68] sm:$0xff] %v392_v13 }
  0x1e   : > { %395 = vst [vmem:[%s1615_s30 + $0x70] sm:$0xff] %v394_v14  ;;  %v396_v15 = vld [vmem:[%s1610_s29 + $0x3c0] sm:$0xff] }
  0x1f   : > { %v398_v16 = vld [vmem:[%s1610_s29 + $0x400] sm:$0xff]  ;;  %397 = vst [vmem:[%s1615_s30 + $0x78] sm:$0xff] %v396_v15 }
  0x20   : > { %v400_v17 = vld [vmem:[%s1610_s29 + $0x440] sm:$0xff]  ;;  %399 = vst [vmem:[%s1615_s30 + $0x80] sm:$0xff] %v398_v16 }
  0x21   : > { %401 = vst [vmem:[%s1615_s30 + $0x88] sm:$0xff] %v400_v17  ;;  %v402_v18 = vld [vmem:[%s1610_s29 + $0x480] sm:$0xff] }
  0x22   : > { %v404_v19 = vld [vmem:[%s1610_s29 + $0x4c0] sm:$0xff]  ;;  %403 = vst [vmem:[%s1615_s30 + $0x90] sm:$0xff] %v402_v18 }
  0x23   : > { %v406_v20 = vld [vmem:[%s1610_s29 + $0x500] sm:$0xff]  ;;  %405 = vst [vmem:[%s1615_s30 + $0x98] sm:$0xff] %v404_v19 }
  0x24   : > { %407 = vst [vmem:[%s1615_s30 + $0xa0] sm:$0xff] %v406_v20  ;;  %v408_v21 = vld [vmem:[%s1610_s29 + $0x540] sm:$0xff] }
  0x25   : > { %v410_v22 = vld [vmem:[%s1610_s29 + $0x580] sm:$0xff]  ;;  %409 = vst [vmem:[%s1615_s30 + $0xa8] sm:$0xff] %v408_v21 }
  0x26   : > { %v412_v23 = vld [vmem:[%s1610_s29 + $0x5c0] sm:$0xff]  ;;  %411 = vst [vmem:[%s1615_s30 + $0xb0] sm:$0xff] %v410_v22 }
  0x27   : > { %413 = vst [vmem:[%s1615_s30 + $0xb8] sm:$0xff] %v412_v23  ;;  %v414_v24 = vld [vmem:[%s1610_s29 + $0x600] sm:$0xff] }
  0x28   : > { %v416_v25 = vld [vmem:[%s1610_s29 + $0x640] sm:$0xff]  ;;  %415 = vst [vmem:[%s1615_s30 + $0xc0] sm:$0xff] %v414_v24 }
  0x29   : > { %v418_v26 = vld [vmem:[%s1610_s29 + $0x680] sm:$0xff]  ;;  %417 = vst [vmem:[%s1615_s30 + $0xc8] sm:$0xff] %v416_v25 }
  0x2a   : > { %419 = vst [vmem:[%s1615_s30 + $0xd0] sm:$0xff] %v418_v26  ;;  %v420_v27 = vld [vmem:[%s1610_s29 + $0x6c0] sm:$0xff] }
  0x2b   : > { %v422_v28 = vld [vmem:[%s1610_s29 + $0x700] sm:$0xff]  ;;  %421 = vst [vmem:[%s1615_s30 + $0xd8] sm:$0xff] %v420_v27 }
  0x2c   : > { %v424_v29 = vld [vmem:[%s1610_s29 + $0x740] sm:$0xff]  ;;  %423 = vst [vmem:[%s1615_s30 + $0xe0] sm:$0xff] %v422_v28 }
  0x2d   : > { %425 = vst [vmem:[%s1615_s30 + $0xe8] sm:$0xff] %v424_v29  ;;  %v426_v30 = vld [vmem:[%s1610_s29 + $0x780] sm:$0xff] }
  0x2e   : > { %v428_v31 = vld [vmem:[%s1610_s29 + $0x7c0] sm:$0xff]  ;;  %427 = vst [vmem:[%s1615_s30 + $0xf0] sm:$0xff] %v426_v30 }
  0x2f   : > { %v430_v32 = vld [vmem:[%s1610_s29 + $0x800] sm:$0xff]  ;;  %429 = vst [vmem:[%s1615_s30 + $0xf8] sm:$0xff] %v428_v31 }
  0x30   : > { %431 = vst [vmem:[%s1615_s30 + $0x100] sm:$0xff] %v430_v32  ;;  %v432_v33 = vld [vmem:[%s1610_s29 + $0x840] sm:$0xff] }
  0x31   : > { %v434_v34 = vld [vmem:[%s1610_s29 + $0x880] sm:$0xff]  ;;  %433 = vst [vmem:[%s1615_s30 + $0x108] sm:$0xff] %v432_v33 }
  0x32   : > { %v436_v35 = vld [vmem:[%s1610_s29 + $0x8c0] sm:$0xff]  ;;  %435 = vst [vmem:[%s1615_s30 + $0x110] sm:$0xff] %v434_v34 }
  0x33   : > { %437 = vst [vmem:[%s1615_s30 + $0x118] sm:$0xff] %v436_v35  ;;  %v438_v36 = vld [vmem:[%s1610_s29 + $0x900] sm:$0xff] }
  0x34   : > { %v440_v37 = vld [vmem:[%s1610_s29 + $0x940] sm:$0xff]  ;;  %439 = vst [vmem:[%s1615_s30 + $0x120] sm:$0xff] %v438_v36 }
  0x35   : > { %v442_v38 = vld [vmem:[%s1610_s29 + $0x980] sm:$0xff]  ;;  %441 = vst [vmem:[%s1615_s30 + $0x128] sm:$0xff] %v440_v37 }
  0x36   : > { %443 = vst [vmem:[%s1615_s30 + $0x130] sm:$0xff] %v442_v38  ;;  %v444_v39 = vld [vmem:[%s1610_s29 + $0x9c0] sm:$0xff] }
  0x37   : > { %v446_v40 = vld [vmem:[%s1610_s29 + $0xa00] sm:$0xff]  ;;  %445 = vst [vmem:[%s1615_s30 + $0x138] sm:$0xff] %v444_v39 }
  0x38   : > { %v448_v41 = vld [vmem:[%s1610_s29 + $0xa40] sm:$0xff]  ;;  %447 = vst [vmem:[%s1615_s30 + $0x140] sm:$0xff] %v446_v40 }
  0x39   : > { %449 = vst [vmem:[%s1615_s30 + $0x148] sm:$0xff] %v448_v41  ;;  %v450_v42 = vld [vmem:[%s1610_s29 + $0xa80] sm:$0xff] }
  0x3a   : > { %v452_v43 = vld [vmem:[%s1610_s29 + $0xac0] sm:$0xff]  ;;  %451 = vst [vmem:[%s1615_s30 + $0x150] sm:$0xff] %v450_v42 }
  0x3b   : > { %v454_v44 = vld [vmem:[%s1610_s29 + $0xb00] sm:$0xff]  ;;  %453 = vst [vmem:[%s1615_s30 + $0x158] sm:$0xff] %v452_v43 }
  0x3c   : > { %455 = vst [vmem:[%s1615_s30 + $0x160] sm:$0xff] %v454_v44  ;;  %v456_v45 = vld [vmem:[%s1610_s29 + $0xb40] sm:$0xff] }
  0x3d   : > { %v458_v46 = vld [vmem:[%s1610_s29 + $0xb80] sm:$0xff]  ;;  %457 = vst [vmem:[%s1615_s30 + $0x168] sm:$0xff] %v456_v45 }
  0x3e   : > { %v460_v47 = vld [vmem:[%s1610_s29 + $0xbc0] sm:$0xff]  ;;  %459 = vst [vmem:[%s1615_s30 + $0x170] sm:$0xff] %v458_v46 }
  0x3f   : > { %461 = vst [vmem:[%s1615_s30 + $0x178] sm:$0xff] %v460_v47  ;;  %v462_v48 = vld [vmem:[%s1610_s29 + $0xc00] sm:$0xff] }
  0x40   : > { %v464_v49 = vld [vmem:[%s1610_s29 + $0xc40] sm:$0xff]  ;;  %463 = vst [vmem:[%s1615_s30 + $0x180] sm:$0xff] %v462_v48 }
  0x41   : > { %v466_v50 = vld [vmem:[%s1610_s29 + $0xc80] sm:$0xff]  ;;  %465 = vst [vmem:[%s1615_s30 + $0x188] sm:$0xff] %v464_v49 }
  0x42   : > { %467 = vst [vmem:[%s1615_s30 + $0x190] sm:$0xff] %v466_v50  ;;  %v468_v51 = vld [vmem:[%s1610_s29 + $0xcc0] sm:$0xff] }
  0x43   : > { %v470_v52 = vld [vmem:[%s1610_s29 + $0xd00] sm:$0xff]  ;;  %469 = vst [vmem:[%s1615_s30 + $0x198] sm:$0xff] %v468_v51 }
  0x44   : > { %v472_v53 = vld [vmem:[%s1610_s29 + $0xd40] sm:$0xff]  ;;  %471 = vst [vmem:[%s1615_s30 + $0x1a0] sm:$0xff] %v470_v52 }
  0x45   : > { %473 = vst [vmem:[%s1615_s30 + $0x1a8] sm:$0xff] %v472_v53  ;;  %v474_v54 = vld [vmem:[%s1610_s29 + $0xd80] sm:$0xff] }
  0x46   : > { %v476_v55 = vld [vmem:[%s1610_s29 + $0xdc0] sm:$0xff]  ;;  %475 = vst [vmem:[%s1615_s30 + $0x1b0] sm:$0xff] %v474_v54 }
  0x47   : > { %v478_v56 = vld [vmem:[%s1610_s29 + $0xe00] sm:$0xff]  ;;  %477 = vst [vmem:[%s1615_s30 + $0x1b8] sm:$0xff] %v476_v55 }
  0x48   : > { %479 = vst [vmem:[%s1615_s30 + $0x1c0] sm:$0xff] %v478_v56  ;;  %v480_v57 = vld [vmem:[%s1610_s29 + $0xe40] sm:$0xff] }
  0x49   : > { %v482_v58 = vld [vmem:[%s1610_s29 + $0xe80] sm:$0xff]  ;;  %481 = vst [vmem:[%s1615_s30 + $0x1c8] sm:$0xff] %v480_v57 }
  0x4a   : > { %v484_v59 = vld [vmem:[%s1610_s29 + $0xec0] sm:$0xff]  ;;  %483 = vst [vmem:[%s1615_s30 + $0x1d0] sm:$0xff] %v482_v58 }
  0x4b   : > { %485 = vst [vmem:[%s1615_s30 + $0x1d8] sm:$0xff] %v484_v59  ;;  %v486_v60 = vld [vmem:[%s1610_s29 + $0xf00] sm:$0xff] }
  0x4c   : > { %v488_v61 = vld [vmem:[%s1610_s29 + $0xf40] sm:$0xff]  ;;  %487 = vst [vmem:[%s1615_s30 + $0x1e0] sm:$0xff] %v486_v60 }
  0x4d   : > { %v490_v62 = vld [vmem:[%s1610_s29 + $0xf80] sm:$0xff]  ;;  %489 = vst [vmem:[%s1615_s30 + $0x1e8] sm:$0xff] %v488_v61 }
  0x4e   : > { %491 = vst [vmem:[%s1615_s30 + $0x1f0] sm:$0xff] %v490_v62  ;;  %v492_v63 = vld [vmem:[%s1610_s29 + $0xfc0] sm:$0xff] }
  0x4f   : > { %493 = vst [vmem:[%s1615_s30 + $0x1f8] sm:$0xff] %v492_v63 }
  0x50 PF: > { %p1284_p6 = scmp.ge.s32.totalorder %s1540_s19, 1  ;;  %p519_p7 = scmp.lt.s32.totalorder %s1540_s19, 9 }
  0x52   : > { %p520_p8 = pnand %p1284_p6, %p519_p7 }
  0x53   : > { %s526_s5 = sand.u32 (!%p520_p8), 1, %s1524_s15   ;;  %s1286_s12 = sshll.u32 (!%p520_p8), %s1532_s17, 1 }
  0x54   : > { %523 = sbr.rel (%p520_p8) target bundleno = 360 (0x168), region = 70  ;;  %s1285_s10 = sshll.u32 (!%p520_p8), %s526_s5, 9 }
  0x55   : > { %s1759_s11 = scalar_lea.vmem (!%p520_p8), [#allocation3], %s1285_s10  ;;  %p590_p9 = scmp.lt.s32.totalorder (!%p520_p8), %s1286_s12, 15 }
  0x59   : > { %v1748_v0 = vld [vmem:[%s1854_s0] sm:$0xff]  ;;  %v1753_v1 = vld [vmem:[%s1854_s0 + $0x8] sm:$0xff]  ;;  %v1402_v4 = vld [vmem:[%s1759_s11 + $0x74] ss:$8 sps:$4 sm:$0xff]   ;;  %s1866_s12 = smov (!%p590_p9, %s1286_s12), 15 }
  0x5a   : > { %v1292_v2 = vcombine.high %v1748_v0, %v1748_v0  ;;  %v1294_v3 = vcombine.high %v1753_v1, %v1753_v1  ;;  %v1404_v5 = vld [vmem:[%s1759_s11 + $0x174] ss:$8 sps:$4 sm:$0xff]   ;;  %1022 = vmatprep.subr.bf16.mxu0 %v1402_v4  ;;  %v1406_v6 = vld [vmem:[%s1759_s11 + $0x70] ss:$8 sps:$4 sm:$0xff]   ;;  %v1408_v8 = vld [vmem:[%s1759_s11 + $0x64] ss:$8 sps:$4 sm:$0xff]   ;;  %s592_s15 = scalar_lea.vmem %s1856_s2, %s1866_s12 }
  0x5b   : > { %v1407_v7 = vld [vmem:[%s1759_s11 + $0x170] ss:$8 sps:$4 sm:$0xff]   ;;  %1063 = vmatprep.subr.bf16.mxu1 %v1404_v5  ;;  %1023 = vmatpush1.bf16.msra.mxu0 %v1406_v6  ;;  %v1410_v9 = vld [vmem:[%s1759_s11 + $0x164] ss:$8 sps:$4 sm:$0xff]   ;;  %v1412_v10 = vld [vmem:[%s1759_s11 + $0x60] ss:$8 sps:$4 sm:$0xff]   ;;  %v1291_v6 = vcombine.low %v1748_v0, %v1748_v0 }
  0x5c   : > { %1054 = vmatprep.mubr.bf16.mxu0 %v1292_v2  ;;  %1095 = vmatprep.mubr.bf16.mxu1 %v1294_v3  ;;  %v1413_v11 = vld [vmem:[%s1759_s11 + $0x160] ss:$8 sps:$4 sm:$0xff]   ;;  %v1414_v12 = vld [vmem:[%s1759_s11 + $0x54] ss:$8 sps:$4 sm:$0xff]   ;;  %v1418_v14 = vld [vmem:[%s1759_s11 + $0x50] ss:$8 sps:$4 sm:$0xff]  }
  0x5d   : > { %1064 = vmatpush1.bf16.msra.mxu1 %v1407_v7  ;;  %1024 = vmatprep.subr.bf16.mxu0 %v1408_v8  ;;  %v1416_v13 = vld [vmem:[%s1759_s11 + $0x154] ss:$8 sps:$4 sm:$0xff]   ;;  %v1419_v15 = vld [vmem:[%s1759_s11 + $0x150] ss:$8 sps:$4 sm:$0xff]   ;;  %v1420_v16 = vld [vmem:[%s1759_s11 + $0x44] ss:$8 sps:$4 sm:$0xff]   ;;  %v1293_v7 = vcombine.low %v1753_v1, %v1753_v1  ;;  %v1115_v8 = vlaneseq }
  0x5e   : > { %1065 = vmatprep.subr.bf16.mxu1 %v1410_v9  ;;  %v1422_v17 = vld [vmem:[%s1759_s11 + $0x144] ss:$8 sps:$4 sm:$0xff]   ;;  %v1424_v18 = vld [vmem:[%s1759_s11 + $0x40] ss:$8 sps:$4 sm:$0xff]   ;;  %v1426_v20 = vld [vmem:[%s1759_s11 + $0x34] ss:$8 sps:$4 sm:$0xff]  }
  0x5f   : > { %1025 = vmatpush1.bf16.msra.mxu0 %v1412_v10  ;;  %v1425_v19 = vld [vmem:[%s1759_s11 + $0x140] ss:$8 sps:$4 sm:$0xff]   ;;  %v1428_v21 = vld [vmem:[%s1759_s11 + $0x134] ss:$8 sps:$4 sm:$0xff]   ;;  %v1430_v22 = vld [vmem:[%s1759_s11 + $0x30] ss:$8 sps:$4 sm:$0xff]  }
  0x60   : > { %1026 = vmatprep.subr.bf16.mxu0 %v1414_v12  ;;  %v1431_v23 = vld [vmem:[%s1759_s11 + $0x130] ss:$8 sps:$4 sm:$0xff]   ;;  %v1432_v24 = vld [vmem:[%s1759_s11 + $0x24] ss:$8 sps:$4 sm:$0xff]   ;;  %v1436_v26 = vld [vmem:[%s1759_s11 + $0x20] ss:$8 sps:$4 sm:$0xff]  }
  0x61   : > { %1066 = vmatpush1.bf16.msra.mxu1 %v1413_v11  ;;  %v1434_v25 = vld [vmem:[%s1759_s11 + $0x124] ss:$8 sps:$4 sm:$0xff]   ;;  %v1437_v27 = vld [vmem:[%s1759_s11 + $0x120] ss:$8 sps:$4 sm:$0xff]   ;;  %v1438_v28 = vld [vmem:[%s1759_s11 + $0x14] ss:$8 sps:$4 sm:$0xff]  }
  0x62   : > { %1067 = vmatprep.subr.bf16.mxu1 %v1416_v13  ;;  %v1440_v29 = vld [vmem:[%s1759_s11 + $0x114] ss:$8 sps:$4 sm:$0xff]   ;;  %v1442_v30 = vld [vmem:[%s1759_s11 + $0x10] ss:$8 sps:$4 sm:$0xff]   ;;  %v1444_v32 = vld [vmem:[%s1759_s11 + $0x4] ss:$8 sps:$4 sm:$0xff]  }
  0x63   : > { %1027 = vmatpush1.bf16.msra.mxu0 %v1418_v14  ;;  %v1443_v31 = vld [vmem:[%s1759_s11 + $0x110] ss:$8 sps:$4 sm:$0xff]   ;;  %v1446_v33 = vld [vmem:[%s1759_s11 + $0x104] ss:$8 sps:$4 sm:$0xff]   ;;  %v1448_v34 = vld [vmem:[%s1759_s11] ss:$8 sps:$4 sm:$0xff]  }
  0x64   : > { %1028 = vmatprep.subr.bf16.mxu0 %v1420_v16  ;;  %v1449_v35 = vld [vmem:[%s1759_s11 + $0x100] ss:$8 sps:$4 sm:$0xff]   ;;  %v1450_v36 = vld [vmem:[%s1759_s11 + $0xf4] ss:$8 sps:$4 sm:$0xff]   ;;  %v1454_v38 = vld [vmem:[%s1759_s11 + $0xf0] ss:$8 sps:$4 sm:$0xff]  }
  0x65   : > { %1068 = vmatpush1.bf16.msra.mxu1 %v1419_v15  ;;  %v1452_v37 = vld [vmem:[%s1759_s11 + $0x1f4] ss:$8 sps:$4 sm:$0xff]   ;;  %v1455_v39 = vld [vmem:[%s1759_s11 + $0x1f0] ss:$8 sps:$4 sm:$0xff]   ;;  %v1456_v40 = vld [vmem:[%s1759_s11 + $0xe4] ss:$8 sps:$4 sm:$0xff]  }
  0x66   : > { %1069 = vmatprep.subr.bf16.mxu1 %v1422_v17  ;;  %v1458_v41 = vld [vmem:[%s1759_s11 + $0x1e4] ss:$8 sps:$4 sm:$0xff]   ;;  %v1460_v42 = vld [vmem:[%s1759_s11 + $0xe0] ss:$8 sps:$4 sm:$0xff]   ;;  %v1462_v44 = vld [vmem:[%s1759_s11 + $0xd4] ss:$8 sps:$4 sm:$0xff]  }
  0x67   : > { %1029 = vmatpush1.bf16.msra.mxu0 %v1424_v18  ;;  %v1461_v43 = vld [vmem:[%s1759_s11 + $0x1e0] ss:$8 sps:$4 sm:$0xff]   ;;  %v1464_v45 = vld [vmem:[%s1759_s11 + $0x1d4] ss:$8 sps:$4 sm:$0xff]   ;;  %v1466_v46 = vld [vmem:[%s1759_s11 + $0xd0] ss:$8 sps:$4 sm:$0xff]  }
  0x68   : > { %1030 = vmatprep.subr.bf16.mxu0 %v1426_v20  ;;  %v1467_v47 = vld [vmem:[%s1759_s11 + $0x1d0] ss:$8 sps:$4 sm:$0xff]   ;;  %v1468_v48 = vld [vmem:[%s1759_s11 + $0xc4] ss:$8 sps:$4 sm:$0xff]   ;;  %v1472_v50 = vld [vmem:[%s1759_s11 + $0xc0] ss:$8 sps:$4 sm:$0xff]  }
  0x69   : > { %1070 = vmatpush1.bf16.msra.mxu1 %v1425_v19  ;;  %v1470_v49 = vld [vmem:[%s1759_s11 + $0x1c4] ss:$8 sps:$4 sm:$0xff]   ;;  %v1473_v51 = vld [vmem:[%s1759_s11 + $0x1c0] ss:$8 sps:$4 sm:$0xff]   ;;  %v1474_v52 = vld [vmem:[%s1759_s11 + $0xb4] ss:$8 sps:$4 sm:$0xff]  }
  0x6a   : > { %1071 = vmatprep.subr.bf16.mxu1 %v1428_v21  ;;  %v1476_v53 = vld [vmem:[%s1759_s11 + $0x1b4] ss:$8 sps:$4 sm:$0xff]   ;;  %v1478_v54 = vld [vmem:[%s1759_s11 + $0xb0] ss:$8 sps:$4 sm:$0xff]   ;;  %v1480_v56 = vld [vmem:[%s1759_s11 + $0xa4] ss:$8 sps:$4 sm:$0xff]  }
  0x6b   : > { %1031 = vmatpush1.bf16.msra.mxu0 %v1430_v22  ;;  %v1479_v55 = vld [vmem:[%s1759_s11 + $0x1b0] ss:$8 sps:$4 sm:$0xff]   ;;  %v1482_v57 = vld [vmem:[%s1759_s11 + $0x1a4] ss:$8 sps:$4 sm:$0xff]   ;;  %v1484_v58 = vld [vmem:[%s1759_s11 + $0xa0] ss:$8 sps:$4 sm:$0xff]  }
  0x6c   : > { %1032 = vmatprep.subr.bf16.mxu0 %v1432_v24  ;;  %v1485_v59 = vld [vmem:[%s1759_s11 + $0x1a0] ss:$8 sps:$4 sm:$0xff]   ;;  %v1486_v60 = vld [vmem:[%s1759_s11 + $0x94] ss:$8 sps:$4 sm:$0xff]   ;;  %v1490_v62 = vld [vmem:[%s1759_s11 + $0x90] ss:$8 sps:$4 sm:$0xff]  }
  0x6d   : > { %1072 = vmatpush1.bf16.msra.mxu1 %v1431_v23  ;;  %v1488_v61 = vld [vmem:[%s1759_s11 + $0x194] ss:$8 sps:$4 sm:$0xff]   ;;  %v1491_v63 = vld [vmem:[%s1759_s11 + $0x190] ss:$8 sps:$4 sm:$0xff]   ;;  %v1492_v2 = vld [vmem:[%s1759_s11 + $0x84] ss:$8 sps:$4 sm:$0xff]  }
  0x6e   : > { %1073 = vmatprep.subr.bf16.mxu1 %v1434_v25  ;;  %v1494_v3 = vld [vmem:[%s1759_s11 + $0x184] ss:$8 sps:$4 sm:$0xff]   ;;  %v1496_v4 = vld [vmem:[%s1759_s11 + $0x80] ss:$8 sps:$4 sm:$0xff]   ;;  %v1116_v9 = vshrl.u32 %v1115_v8, 7  ;;  %s1288_s21 = sshll.u32 %s1866_s12, 3 }
  0x6f   : > { %1033 = vmatpush1.bf16.msra.mxu0 %v1436_v26  ;;  %v1497_v5 = vld [vmem:[%s1759_s11 + $0x180] ss:$8 sps:$4 sm:$0xff]   ;;  %s602_s25 = scalar_lea.vmem %s1857_s3, %s1288_s21  ;;  %s612_s27 = scalar_lea.vmem %s1858_s4, %s1288_s21 }
  0x70   : > { %1034 = vmatprep.subr.bf16.mxu0 %v1438_v28  ;;  %v1117_v10 = vsub.s32 0, %v1116_v9  ;;  %v1113_v11 = vld [vmem:[%s592_s15] sm:$0x3]  ;;  %v1121_v0 = vsub.s32 1, %v1116_v9  ;;  %v1128_v21 = vld [vmem:[%s602_s25 + $0x8] sm:$0xff] }
  0x71   : > { %1074 = vmatpush1.bf16.msra.mxu1 %v1437_v27  ;;  %v1127_v16 = vld [vmem:[%s602_s25] sm:$0xff] }
  0x72   : > { %1075 = vmatprep.subr.bf16.mxu1 %v1440_v29  ;;  %v1118_v1 = vrot.slane %v1113_v11, %v1117_v10  ;;  %v1122_v15 = vrot.slane %v1113_v11, %v1121_v0 }
  0x73   : > { %1035 = vmatpush1.bf16.msra.mxu0 %v1442_v30 }
  0x74   : > { %1036 = vmatprep.subr.bf16.mxu0 %v1444_v32 }
  0x75   : > { %1076 = vmatpush1.bf16.msra.mxu1 %v1443_v31 }
  0x76   : > { %1077 = vmatprep.subr.bf16.mxu1 %v1446_v33 }
  0x77   : > { %1037 = vmatpush1.bf16.msra.mxu0 %v1448_v34 }
  0x78   : > { %1038 = vmatprep.subr.bf16.mxu0 %v1450_v36 }
  0x79   : > { %1078 = vmatpush1.bf16.msra.mxu1 %v1449_v35 }
  0x7a   : > { %1079 = vmatprep.subr.bf16.mxu1 %v1452_v37 }
  0x7b   : > { %1039 = vmatpush2.bf16.msra.mxu0 %v1454_v38 }
  0x7c   : > { %1040 = vmatprep.subr.bf16.mxu0 %v1456_v40 }
  0x7d   : > { %1080 = vmatpush2.bf16.msra.mxu1 %v1455_v39 }
  0x7e   : > { %1081 = vmatprep.subr.bf16.mxu1 %v1458_v41 }
  0x7f   : > { %1041 = vmatpush2.bf16.msra.mxu0 %v1460_v42 }
  0x80   : > { %1042 = vmatprep.subr.bf16.mxu0 %v1462_v44 }
  0x81   : > { %1082 = vmatpush2.bf16.msra.mxu1 %v1461_v43 }
  0x82   : > { %1083 = vmatprep.subr.bf16.mxu1 %v1464_v45 }
  0x83   : > { %1043 = vmatpush2.bf16.msra.mxu0 %v1466_v46 }
  0x84   : > { %1044 = vmatprep.subr.bf16.mxu0 %v1468_v48 }
  0x85   : > { %1084 = vmatpush2.bf16.msra.mxu1 %v1467_v47 }
  0x86   : > { %1085 = vmatprep.subr.bf16.mxu1 %v1470_v49 }
  0x87   : > { %1045 = vmatpush2.bf16.msra.mxu0 %v1472_v50 }
  0x88   : > { %1046 = vmatprep.subr.bf16.mxu0 %v1474_v52 }
  0x89   : > { %1086 = vmatpush2.bf16.msra.mxu1 %v1473_v51 }
  0x8a   : > { %1087 = vmatprep.subr.bf16.mxu1 %v1476_v53 }
  0x8b   : > { %1047 = vmatpush2.bf16.msra.mxu0 %v1478_v54 }
  0x8c   : > { %1048 = vmatprep.subr.bf16.mxu0 %v1480_v56 }
  0x8d   : > { %1088 = vmatpush2.bf16.msra.mxu1 %v1479_v55 }
  0x8e   : > { %1089 = vmatprep.subr.bf16.mxu1 %v1482_v57 }
  0x8f   : > { %1049 = vmatpush2.bf16.msra.mxu0 %v1484_v58 }
  0x90   : > { %1050 = vmatprep.subr.bf16.mxu0 %v1486_v60 }
  0x91   : > { %1090 = vmatpush2.bf16.msra.mxu1 %v1485_v59 }
  0x92   : > { %1091 = vmatprep.subr.bf16.mxu1 %v1488_v61 }
  0x93   : > { %1051 = vmatpush2.bf16.msra.mxu0 %v1490_v62 }
  0x94   : > { %1052 = vmatprep.subr.bf16.mxu0 %v1492_v2 }
  0x95   : > { %1092 = vmatpush2.bf16.msra.mxu1 %v1491_v63 }
  0x96   : > { %1093 = vmatprep.subr.bf16.mxu1 %v1494_v3 }
  0x97   : > { %1053 = vmatpush2.bf16.msra.mxu0 %v1496_v4 }
  0x99   : > { %1094 = vmatpush2.bf16.msra.mxu1 %v1497_v5 }
  0x9a   : > { %1055 = vmatmul.mubr.bf16.vlgmr.msra.gmra.mxu0 %v1291_v6 }
  0x9c   : > { %1096 = vmatmul.mubr.bf16.vlgmr.msra.gmra.mxu1 %v1293_v7 }
 0x15a   : > { %v1056_v12 = vpop.f32.mrf.mxu0 }
 0x15c   : > { %v1097_v13 = vpop.f32.mrf.mxu1  ;;  %v1058_v17 = vpop.f32.mrf.mxu0 }
 0x15d   : > { %v1098_v14 = vadd.f32 %v1097_v13, %v1056_v12 }
 0x15e   : > { %v1099_v18 = vpop.f32.mrf.mxu1  ;;  %v1060_v22 = vpop.f32.mrf.mxu0 }
 0x15f   : > { %v1125_v19 = vadd.f32 %v1118_v1, %v1098_v14  ;;  %v1100_v20 = vadd.f32 %v1099_v18, %v1058_v17 }
 0x160   : > { %v1101_v23 = vpop.f32.mrf.mxu1  ;;  %v1061_v26 = vpop.f32.mrf.mxu0 }
 0x161   : > { %v1129_v24 = vadd.f32 %v1127_v16, %v1125_v19  ;;  %v1126_v25 = vadd.f32 %v1122_v15, %v1100_v20 }
 0x162   : > { %v1102_v27 = vpop.f32.mrf.mxu1 }
 0x163   : > { %v1131_v28 = vmax.f32 %v1129_v24, 0.0  ;;  %v1130_v29 = vadd.f32 %v1128_v21, %v1126_v25 }
 0x165   : > { %1133 = vst [vmem:[%s612_s27] sm:$0xff] %v1131_v28  ;;  %v1132_v30 = vmax.f32 %v1130_v29, 0.0 }
 0x167   : > { %1134 = vst [vmem:[%s612_s27 + $0x8] sm:$0xff] %v1132_v30 }
 0x168 PF: > { %s14_s19 = sadd.s32 1, %s1540_s19   ;;  %s1859_s15 = smov %s1528_s16 }
 0x169   : > { %p11_p10 = scmp.ge.s32.totalorder %s14_s19, 10   ;;  %s1860_s16 = smov %s1602_s23 }
 0x16a   : > { %s1861_s17 = smov %s1536_s18  ;;  %s1862_s18 = smov %s1864_s20 }
 0x16b   :  { %13 = sbr.rel (!%p11_p10) target bundleno = 3 (0x3), region = 126 }

// kernel: mammography_forward.102
= control target key start
LH: loop header
LB: loop body
LE: loop exit
PB: predicated region body
PF: predicated region fallthrough
CT: control target
= control target key end

     0   :  { %s1515_s12 = smov 0   ;;  %s1517_s13 = smov 0   ;;  %s1827_s0 = inlined_call_operand.vmem [shape: bf16[8,2048], index: 0, kind: input, shape index: {}]   ;;  %s1828_s1 = inlined_call_operand.vmem [shape: bf16[2048,512], index: 1, kind: input, shape index: {}]   ;;  %s1829_s2 = inlined_call_operand.vmem [shape: f32[1,512], index: 2, kind: input, shape index: {}]   ;;  %s1830_s3 = inlined_call_operand.vmem [shape: f32[8,512], index: 3, kind: output, shape index: {}]  }
   0x1   :  { %s1519_s14 = smov 0   ;;  %s1521_s15 = smov 0  }
   0x2   :  { %s1523_s16 = smov 0   ;;  %s1525_s17 = smov 0  }
   0x3   :  { %s1527_s18 = smov 0  }
   0x4 LB: > { %s25_s19 = sadd.s32 1, %s1484_s16  ;;  %s28_s20 = sadd.s32 1, %s1488_s17  ;;  %s1492_s18 = sphi %s1527_s18, %s13_s18   ;;  %s1488_s17 = sphi %s1525_s17, %s1836_s17   ;;  %s1484_s16 = sphi %s1523_s16, %s1835_s16   ;;  %s1480_s15 = sphi %s1521_s15, %s1834_s15   ;;  %s1476_s14 = sphi %s1519_s14, %s1833_s14   ;;  %s1472_s13 = sphi %s1517_s13, %s1832_s13   ;;  %s1468_s12 = sphi %s1515_s12, %s1831_s12  }
   0x5   : > { %p26_p0 = scmp.ge.s32.totalorder %s25_s19, 4  ;;  %p76_p1 = scmp.ne.s32.totalorder %s1472_s13, %s1468_s12 }
   0x6   : > { %p77_p2 = scmp.eq.s32.totalorder %s1492_s18, 0  ;;  %s69_s24 = sadd.s32 1, %s1472_s13 }
   0x7   : > { %s1838_s19 = smov (%p26_p0, %s25_s19), 0  ;;  %s1840_s20 = smov (!%p26_p0, %s28_s20), %s1488_s17 }
   0x8   : > { %p78_p3 = por %p77_p2, %p76_p1  ;;  %p30_p4 = scmp.ge.s32.totalorder %s1840_s20, 2 }
   0x9   : > { %s64_s21 = ssub.s32 %s1484_s16, %s1838_s19  ;;  %p1195_p6 = scmp.ge.s32.totalorder %s1492_s18, 8 }
   0xa   : > { %s1842_s20 = smov (%p30_p4, %s1840_s20), 0 }
   0xb   : > { %s65_s22 = ssub.s32 %s1488_s17, %s1842_s20  ;;  %156 = sbr.rel (%p1195_p6) target bundleno = 55 (0x37), region = 16 }
   0xc   : > { %s66_s23 = sor.u32 %s65_s22, %s64_s21 }
   0xd   : > { %p67_p5 = scmp.eq.s32.totalorder %s66_s23, 0 }
   0xf   : > { %s1566_s25 = scalar_select %p67_p5, %s1472_s13, %s69_s24  }
  0x10   : > { %172 = sbr.rel (!%p78_p3) target bundleno = 55 (0x37), region = 24  ;;  %s174_s26 = sand.u32 (%p78_p3), 1, %s1472_s13  }
  0x11   : > { %s1198_s27 = sshll.u32 (%p78_p3), %s1488_s17, 1  ;;  %s1196_s28 = sshll.u32 (%p78_p3), %s174_s26, 9 }
  0x12   : > { %s1280_s29 = sshll.u32 (%p78_p3), %s1484_s16, 8  ;;  %s1580_s8 = scalar_lea.vmem (%p78_p3), [#allocation3], %s1196_s28 }
  0x13   : > { %s180_s30 = sadd.s32 (%p78_p3), %s1280_s29, %s1198_s27 }
  0x14   : > { %s1200_s4 = sshll.u32 (%p78_p3), %s180_s30, 2 }
  0x15   : > { %s1575_s7 = scalar_lea.vmem %s1828_s1, %s1200_s4 }
  0x16   : > { %v337_v0 = vld [vmem:[%s1575_s7] sm:$0xff]  ;;  %v339_v1 = vld [vmem:[%s1575_s7 + $0x10] sm:$0xff] }
  0x17   : > { %v341_v2 = vld [vmem:[%s1575_s7 + $0x20] sm:$0xff]  ;;  %338 = vst [vmem:[%s1580_s8] sm:$0xff] %v337_v0  ;;  %340 = vst [vmem:[%s1580_s8 + $0x8] sm:$0xff] %v339_v1  ;;  %v343_v3 = vld [vmem:[%s1575_s7 + $0x30] sm:$0xff] }
  0x18   : > { %342 = vst [vmem:[%s1580_s8 + $0x10] sm:$0xff] %v341_v2  ;;  %v345_v4 = vld [vmem:[%s1575_s7 + $0x40] sm:$0xff]  ;;  %v347_v5 = vld [vmem:[%s1575_s7 + $0x50] sm:$0xff]  ;;  %344 = vst [vmem:[%s1580_s8 + $0x18] sm:$0xff] %v343_v3 }
  0x19   : > { %346 = vst [vmem:[%s1580_s8 + $0x20] sm:$0xff] %v345_v4  ;;  %348 = vst [vmem:[%s1580_s8 + $0x28] sm:$0xff] %v347_v5  ;;  %v349_v6 = vld [vmem:[%s1575_s7 + $0x60] sm:$0xff]  ;;  %v351_v7 = vld [vmem:[%s1575_s7 + $0x70] sm:$0xff] }
  0x1a   : > { %v353_v8 = vld [vmem:[%s1575_s7 + $0x80] sm:$0xff]  ;;  %350 = vst [vmem:[%s1580_s8 + $0x30] sm:$0xff] %v349_v6  ;;  %352 = vst [vmem:[%s1580_s8 + $0x38] sm:$0xff] %v351_v7  ;;  %v355_v9 = vld [vmem:[%s1575_s7 + $0x90] sm:$0xff] }
  0x1b   : > { %354 = vst [vmem:[%s1580_s8 + $0x40] sm:$0xff] %v353_v8  ;;  %v357_v10 = vld [vmem:[%s1575_s7 + $0xa0] sm:$0xff]  ;;  %v359_v11 = vld [vmem:[%s1575_s7 + $0xb0] sm:$0xff]  ;;  %356 = vst [vmem:[%s1580_s8 + $0x48] sm:$0xff] %v355_v9 }
  0x1c   : > { %358 = vst [vmem:[%s1580_s8 + $0x50] sm:$0xff] %v357_v10  ;;  %360 = vst [vmem:[%s1580_s8 + $0x58] sm:$0xff] %v359_v11  ;;  %v361_v12 = vld [vmem:[%s1575_s7 + $0xc0] sm:$0xff]  ;;  %v363_v13 = vld [vmem:[%s1575_s7 + $0xd0] sm:$0xff] }
  0x1d   : > { %v365_v14 = vld [vmem:[%s1575_s7 + $0xe0] sm:$0xff]  ;;  %362 = vst [vmem:[%s1580_s8 + $0x60] sm:$0xff] %v361_v12  ;;  %364 = vst [vmem:[%s1580_s8 + $0x68] sm:$0xff] %v363_v13  ;;  %v367_v15 = vld [vmem:[%s1575_s7 + $0xf0] sm:$0xff] }
  0x1e   : > { %366 = vst [vmem:[%s1580_s8 + $0x70] sm:$0xff] %v365_v14  ;;  %v369_v16 = vld [vmem:[%s1575_s7 + $0x100] sm:$0xff]  ;;  %v371_v17 = vld [vmem:[%s1575_s7 + $0x110] sm:$0xff]  ;;  %368 = vst [vmem:[%s1580_s8 + $0x78] sm:$0xff] %v367_v15 }
  0x1f   : > { %370 = vst [vmem:[%s1580_s8 + $0x80] sm:$0xff] %v369_v16  ;;  %372 = vst [vmem:[%s1580_s8 + $0x88] sm:$0xff] %v371_v17  ;;  %v373_v18 = vld [vmem:[%s1575_s7 + $0x120] sm:$0xff]  ;;  %v375_v19 = vld [vmem:[%s1575_s7 + $0x130] sm:$0xff] }
  0x20   : > { %v377_v20 = vld [vmem:[%s1575_s7 + $0x140] sm:$0xff]  ;;  %374 = vst [vmem:[%s1580_s8 + $0x90] sm:$0xff] %v373_v18  ;;  %376 = vst [vmem:[%s1580_s8 + $0x98] sm:$0xff] %v375_v19  ;;  %v379_v21 = vld [vmem:[%s1575_s7 + $0x150] sm:$0xff] }
  0x21   : > { %378 = vst [vmem:[%s1580_s8 + $0xa0] sm:$0xff] %v377_v20  ;;  %v381_v22 = vld [vmem:[%s1575_s7 + $0x160] sm:$0xff]  ;;  %v383_v23 = vld [vmem:[%s1575_s7 + $0x170] sm:$0xff]  ;;  %380 = vst [vmem:[%s1580_s8 + $0xa8] sm:$0xff] %v379_v21 }
  0x22   : > { %382 = vst [vmem:[%s1580_s8 + $0xb0] sm:$0xff] %v381_v22  ;;  %384 = vst [vmem:[%s1580_s8 + $0xb8] sm:$0xff] %v383_v23  ;;  %v385_v24 = vld [vmem:[%s1575_s7 + $0x180] sm:$0xff]  ;;  %v387_v25 = vld [vmem:[%s1575_s7 + $0x190] sm:$0xff] }
  0x23   : > { %v389_v26 = vld [vmem:[%s1575_s7 + $0x1a0] sm:$0xff]  ;;  %386 = vst [vmem:[%s1580_s8 + $0xc0] sm:$0xff] %v385_v24  ;;  %388 = vst [vmem:[%s1580_s8 + $0xc8] sm:$0xff] %v387_v25  ;;  %v391_v27 = vld [vmem:[%s1575_s7 + $0x1b0] sm:$0xff] }
  0x24   : > { %390 = vst [vmem:[%s1580_s8 + $0xd0] sm:$0xff] %v389_v26  ;;  %v393_v28 = vld [vmem:[%s1575_s7 + $0x1c0] sm:$0xff]  ;;  %v395_v29 = vld [vmem:[%s1575_s7 + $0x1d0] sm:$0xff]  ;;  %392 = vst [vmem:[%s1580_s8 + $0xd8] sm:$0xff] %v391_v27 }
  0x25   : > { %394 = vst [vmem:[%s1580_s8 + $0xe0] sm:$0xff] %v393_v28  ;;  %396 = vst [vmem:[%s1580_s8 + $0xe8] sm:$0xff] %v395_v29  ;;  %v397_v30 = vld [vmem:[%s1575_s7 + $0x1e0] sm:$0xff]  ;;  %v399_v31 = vld [vmem:[%s1575_s7 + $0x1f0] sm:$0xff] }
  0x26   : > { %v401_v32 = vld [vmem:[%s1575_s7 + $0x200] sm:$0xff]  ;;  %398 = vst [vmem:[%s1580_s8 + $0xf0] sm:$0xff] %v397_v30  ;;  %400 = vst [vmem:[%s1580_s8 + $0xf8] sm:$0xff] %v399_v31  ;;  %v403_v33 = vld [vmem:[%s1575_s7 + $0x210] sm:$0xff] }
  0x27   : > { %402 = vst [vmem:[%s1580_s8 + $0x100] sm:$0xff] %v401_v32  ;;  %v405_v34 = vld [vmem:[%s1575_s7 + $0x220] sm:$0xff]  ;;  %v407_v35 = vld [vmem:[%s1575_s7 + $0x230] sm:$0xff]  ;;  %404 = vst [vmem:[%s1580_s8 + $0x108] sm:$0xff] %v403_v33 }
  0x28   : > { %406 = vst [vmem:[%s1580_s8 + $0x110] sm:$0xff] %v405_v34  ;;  %408 = vst [vmem:[%s1580_s8 + $0x118] sm:$0xff] %v407_v35  ;;  %v409_v36 = vld [vmem:[%s1575_s7 + $0x240] sm:$0xff]  ;;  %v411_v37 = vld [vmem:[%s1575_s7 + $0x250] sm:$0xff] }
  0x29   : > { %v413_v38 = vld [vmem:[%s1575_s7 + $0x260] sm:$0xff]  ;;  %410 = vst [vmem:[%s1580_s8 + $0x120] sm:$0xff] %v409_v36  ;;  %412 = vst [vmem:[%s1580_s8 + $0x128] sm:$0xff] %v411_v37  ;;  %v415_v39 = vld [vmem:[%s1575_s7 + $0x270] sm:$0xff] }
  0x2a   : > { %414 = vst [vmem:[%s1580_s8 + $0x130] sm:$0xff] %v413_v38  ;;  %v417_v40 = vld [vmem:[%s1575_s7 + $0x280] sm:$0xff]  ;;  %v419_v41 = vld [vmem:[%s1575_s7 + $0x290] sm:$0xff]  ;;  %416 = vst [vmem:[%s1580_s8 + $0x138] sm:$0xff] %v415_v39 }
  0x2b   : > { %418 = vst [vmem:[%s1580_s8 + $0x140] sm:$0xff] %v417_v40  ;;  %420 = vst [vmem:[%s1580_s8 + $0x148] sm:$0xff] %v419_v41  ;;  %v421_v42 = vld [vmem:[%s1575_s7 + $0x2a0] sm:$0xff]  ;;  %v423_v43 = vld [vmem:[%s1575_s7 + $0x2b0] sm:$0xff] }
  0x2c   : > { %v425_v44 = vld [vmem:[%s1575_s7 + $0x2c0] sm:$0xff]  ;;  %422 = vst [vmem:[%s1580_s8 + $0x150] sm:$0xff] %v421_v42  ;;  %424 = vst [vmem:[%s1580_s8 + $0x158] sm:$0xff] %v423_v43  ;;  %v427_v45 = vld [vmem:[%s1575_s7 + $0x2d0] sm:$0xff] }
  0x2d   : > { %426 = vst [vmem:[%s1580_s8 + $0x160] sm:$0xff] %v425_v44  ;;  %v429_v46 = vld [vmem:[%s1575_s7 + $0x2e0] sm:$0xff]  ;;  %v431_v47 = vld [vmem:[%s1575_s7 + $0x2f0] sm:$0xff]  ;;  %428 = vst [vmem:[%s1580_s8 + $0x168] sm:$0xff] %v427_v45 }
  0x2e   : > { %430 = vst [vmem:[%s1580_s8 + $0x170] sm:$0xff] %v429_v46  ;;  %432 = vst [vmem:[%s1580_s8 + $0x178] sm:$0xff] %v431_v47  ;;  %v433_v48 = vld [vmem:[%s1575_s7 + $0x300] sm:$0xff]  ;;  %v435_v49 = vld [vmem:[%s1575_s7 + $0x310] sm:$0xff] }
  0x2f   : > { %v437_v50 = vld [vmem:[%s1575_s7 + $0x320] sm:$0xff]  ;;  %434 = vst [vmem:[%s1580_s8 + $0x180] sm:$0xff] %v433_v48  ;;  %436 = vst [vmem:[%s1580_s8 + $0x188] sm:$0xff] %v435_v49  ;;  %v439_v51 = vld [vmem:[%s1575_s7 + $0x330] sm:$0xff] }
  0x30   : > { %438 = vst [vmem:[%s1580_s8 + $0x190] sm:$0xff] %v437_v50  ;;  %v441_v52 = vld [vmem:[%s1575_s7 + $0x340] sm:$0xff]  ;;  %v443_v53 = vld [vmem:[%s1575_s7 + $0x350] sm:$0xff]  ;;  %440 = vst [vmem:[%s1580_s8 + $0x198] sm:$0xff] %v439_v51 }
  0x31   : > { %442 = vst [vmem:[%s1580_s8 + $0x1a0] sm:$0xff] %v441_v52  ;;  %444 = vst [vmem:[%s1580_s8 + $0x1a8] sm:$0xff] %v443_v53  ;;  %v445_v54 = vld [vmem:[%s1575_s7 + $0x360] sm:$0xff]  ;;  %v447_v55 = vld [vmem:[%s1575_s7 + $0x370] sm:$0xff] }
  0x32   : > { %v449_v56 = vld [vmem:[%s1575_s7 + $0x380] sm:$0xff]  ;;  %446 = vst [vmem:[%s1580_s8 + $0x1b0] sm:$0xff] %v445_v54  ;;  %448 = vst [vmem:[%s1580_s8 + $0x1b8] sm:$0xff] %v447_v55  ;;  %v451_v57 = vld [vmem:[%s1575_s7 + $0x390] sm:$0xff] }
  0x33   : > { %450 = vst [vmem:[%s1580_s8 + $0x1c0] sm:$0xff] %v449_v56  ;;  %v453_v58 = vld [vmem:[%s1575_s7 + $0x3a0] sm:$0xff]  ;;  %v455_v59 = vld [vmem:[%s1575_s7 + $0x3b0] sm:$0xff]  ;;  %452 = vst [vmem:[%s1580_s8 + $0x1c8] sm:$0xff] %v451_v57 }
  0x34   : > { %454 = vst [vmem:[%s1580_s8 + $0x1d0] sm:$0xff] %v453_v58  ;;  %456 = vst [vmem:[%s1580_s8 + $0x1d8] sm:$0xff] %v455_v59  ;;  %v457_v60 = vld [vmem:[%s1575_s7 + $0x3c0] sm:$0xff]  ;;  %v459_v61 = vld [vmem:[%s1575_s7 + $0x3d0] sm:$0xff] }
  0x35   : > { %v461_v62 = vld [vmem:[%s1575_s7 + $0x3e0] sm:$0xff]  ;;  %458 = vst [vmem:[%s1580_s8 + $0x1e0] sm:$0xff] %v457_v60  ;;  %460 = vst [vmem:[%s1580_s8 + $0x1e8] sm:$0xff] %v459_v61  ;;  %v463_v63 = vld [vmem:[%s1575_s7 + $0x3f0] sm:$0xff] }
  0x36   : > { %462 = vst [vmem:[%s1580_s8 + $0x1f0] sm:$0xff] %v461_v62  ;;  %464 = vst [vmem:[%s1580_s8 + $0x1f8] sm:$0xff] %v463_v63 }
  0x37 PF: > { %p1201_p7 = scmp.ge.s32.totalorder %s1492_s18, 1  ;;  %p477_p8 = scmp.lt.s32.totalorder %s1492_s18, 9 }
  0x39   : > { %p478_p9 = pnand %p1201_p7, %p477_p8 }
  0x3a   : > { %s484_s9 = sand.u32 (!%p478_p9), 1, %s1468_s12   ;;  %s1203_s10 = sshll.u32 (!%p478_p9), %s1476_s14, 2 }
  0x3b   : > { %481 = sbr.rel (%p478_p9) target bundleno = 353 (0x161), region = 66  ;;  %s1202_s11 = sshll.u32 (!%p478_p9), %s484_s9, 9 }
  0x3c   : > { %p527_p10 = scmp.lt.s32.totalorder (!%p478_p9), %s1203_s10, 15  ;;  %s1205_s21 = sshll.u32 (!%p478_p9), %s1480_s15, 1 }
  0x3d   : > { %p537_p11 = scmp.lt.s32.totalorder (!%p478_p9), %s1205_s21, 3  ;;  %s1729_s5 = scalar_lea.vmem (!%p478_p9), [#allocation3], %s1202_s11 }
  0x3e   : > { %p1208_p12 = scmp.ne.s32.totalorder (!%p478_p9), %s1476_s14, 0 }
  0x40   : > { %s1844_s10 = smov (!%p527_p10, %s1203_s10), 15  ;;  %s1846_s21 = smov (!%p537_p11, %s1205_s21), 3 }
  0x41   : > { %s1204_s22 = sshll.u32 %s1844_s10, 2  ;;  %s539_s12 = scalar_lea.vmem %s1829_s2, %s1846_s21 }
  0x42   : > { %s1715_s26 = scalar_lea.vmem %s1827_s0, %s1204_s22  ;;  %s1207_s29 = sshll.u32 %s1846_s21, 3 }
  0x43   : > { %s1727_s15 = scalar_lea.vmem %s1830_s3, %s1207_s29  ;;  %554 = sbr.rel (%p1208_p12) target bundleno = 74 (0x4a), region = 74 }
  0x48   : > { %v1494_v0 = vmov 0.0  }
  0x49   : > { %555 = vst [vmem:[#allocation2] sm:$0xff] %v1494_v0  ;;  %556 = vst [vmem:[#allocation2 + $0x8] sm:$0xff] %v1494_v0 }
  0x4a PF: > { %v1338_v1 = vld [vmem:[%s1729_s5 + $0x74] ss:$8 sps:$4 sm:$0xff]   ;;  %v1342_v3 = vld [vmem:[%s1729_s5 + $0x70] ss:$8 sps:$4 sm:$0xff]   ;;  %v1344_v5 = vld [vmem:[%s1729_s5 + $0x64] ss:$8 sps:$4 sm:$0xff]  }
  0x4b   : > { %v1340_v2 = vld [vmem:[%s1729_s5 + $0x174] ss:$8 sps:$4 sm:$0xff]   ;;  %959 = vmatprep.subr.bf16.mxu0 %v1338_v1  ;;  %v1343_v4 = vld [vmem:[%s1729_s5 + $0x170] ss:$8 sps:$4 sm:$0xff]   ;;  %v1346_v6 = vld [vmem:[%s1729_s5 + $0x164] ss:$8 sps:$4 sm:$0xff]  }
  0x4c   : > { %1000 = vmatprep.subr.bf16.mxu1 %v1340_v2  ;;  %960 = vmatpush1.bf16.msra.mxu0 %v1342_v3  ;;  %v1348_v7 = vld [vmem:[%s1729_s5 + $0x60] ss:$8 sps:$4 sm:$0xff]   ;;  %v1350_v9 = vld [vmem:[%s1729_s5 + $0x54] ss:$8 sps:$4 sm:$0xff]   ;;  %v1354_v11 = vld [vmem:[%s1729_s5 + $0x50] ss:$8 sps:$4 sm:$0xff]  }
  0x4d   : > { %1001 = vmatpush1.bf16.msra.mxu1 %v1343_v4  ;;  %961 = vmatprep.subr.bf16.mxu0 %v1344_v5  ;;  %v1349_v8 = vld [vmem:[%s1729_s5 + $0x160] ss:$8 sps:$4 sm:$0xff]   ;;  %v1352_v10 = vld [vmem:[%s1729_s5 + $0x154] ss:$8 sps:$4 sm:$0xff]   ;;  %v1355_v12 = vld [vmem:[%s1729_s5 + $0x150] ss:$8 sps:$4 sm:$0xff]  }
  0x4e   : > { %1002 = vmatprep.subr.bf16.mxu1 %v1346_v6  ;;  %v1356_v13 = vld [vmem:[%s1729_s5 + $0x44] ss:$8 sps:$4 sm:$0xff]   ;;  %v1360_v15 = vld [vmem:[%s1729_s5 + $0x40] ss:$8 sps:$4 sm:$0xff]   ;;  %v1362_v17 = vld [vmem:[%s1729_s5 + $0x34] ss:$8 sps:$4 sm:$0xff]  }
  0x4f   : > { %v1358_v14 = vld [vmem:[%s1729_s5 + $0x144] ss:$8 sps:$4 sm:$0xff]   ;;  %v1361_v16 = vld [vmem:[%s1729_s5 + $0x140] ss:$8 sps:$4 sm:$0xff]   ;;  %v1364_v18 = vld [vmem:[%s1729_s5 + $0x134] ss:$8 sps:$4 sm:$0xff]  }
  0x50   : > { %962 = vmatpush1.bf16.msra.mxu0 %v1348_v7  ;;  %v1366_v19 = vld [vmem:[%s1729_s5 + $0x30] ss:$8 sps:$4 sm:$0xff]   ;;  %v1368_v21 = vld [vmem:[%s1729_s5 + $0x24] ss:$8 sps:$4 sm:$0xff]   ;;  %v1372_v23 = vld [vmem:[%s1729_s5 + $0x20] ss:$8 sps:$4 sm:$0xff]  }
  0x51   : > { %1003 = vmatpush1.bf16.msra.mxu1 %v1349_v8  ;;  %963 = vmatprep.subr.bf16.mxu0 %v1350_v9  ;;  %v1367_v20 = vld [vmem:[%s1729_s5 + $0x130] ss:$8 sps:$4 sm:$0xff]   ;;  %v1370_v22 = vld [vmem:[%s1729_s5 + $0x124] ss:$8 sps:$4 sm:$0xff]   ;;  %v1373_v24 = vld [vmem:[%s1729_s5 + $0x120] ss:$8 sps:$4 sm:$0xff]  }
  0x52   : > { %1004 = vmatprep.subr.bf16.mxu1 %v1352_v10  ;;  %v1374_v25 = vld [vmem:[%s1729_s5 + $0x14] ss:$8 sps:$4 sm:$0xff]   ;;  %v1378_v27 = vld [vmem:[%s1729_s5 + $0x10] ss:$8 sps:$4 sm:$0xff]   ;;  %v1380_v29 = vld [vmem:[%s1729_s5 + $0x4] ss:$8 sps:$4 sm:$0xff]  }
  0x53   : > { %v1376_v26 = vld [vmem:[%s1729_s5 + $0x114] ss:$8 sps:$4 sm:$0xff]   ;;  %v1379_v28 = vld [vmem:[%s1729_s5 + $0x110] ss:$8 sps:$4 sm:$0xff]   ;;  %v1382_v30 = vld [vmem:[%s1729_s5 + $0x104] ss:$8 sps:$4 sm:$0xff]  }
  0x54   : > { %964 = vmatpush1.bf16.msra.mxu0 %v1354_v11  ;;  %v1384_v31 = vld [vmem:[%s1729_s5] ss:$8 sps:$4 sm:$0xff]   ;;  %v1386_v33 = vld [vmem:[%s1729_s5 + $0xf4] ss:$8 sps:$4 sm:$0xff]   ;;  %v1390_v35 = vld [vmem:[%s1729_s5 + $0xf0] ss:$8 sps:$4 sm:$0xff]  }
  0x55   : > { %1005 = vmatpush1.bf16.msra.mxu1 %v1355_v12  ;;  %965 = vmatprep.subr.bf16.mxu0 %v1356_v13  ;;  %v1385_v32 = vld [vmem:[%s1729_s5 + $0x100] ss:$8 sps:$4 sm:$0xff]   ;;  %v1388_v34 = vld [vmem:[%s1729_s5 + $0x1f4] ss:$8 sps:$4 sm:$0xff]   ;;  %v1391_v36 = vld [vmem:[%s1729_s5 + $0x1f0] ss:$8 sps:$4 sm:$0xff]  }
  0x56   : > { %1006 = vmatprep.subr.bf16.mxu1 %v1358_v14  ;;  %v1392_v37 = vld [vmem:[%s1729_s5 + $0xe4] ss:$8 sps:$4 sm:$0xff]   ;;  %v1396_v39 = vld [vmem:[%s1729_s5 + $0xe0] ss:$8 sps:$4 sm:$0xff]   ;;  %v1398_v41 = vld [vmem:[%s1729_s5 + $0xd4] ss:$8 sps:$4 sm:$0xff]  }
  0x57   : > { %v1394_v38 = vld [vmem:[%s1729_s5 + $0x1e4] ss:$8 sps:$4 sm:$0xff]   ;;  %v1397_v40 = vld [vmem:[%s1729_s5 + $0x1e0] ss:$8 sps:$4 sm:$0xff]   ;;  %v1400_v42 = vld [vmem:[%s1729_s5 + $0x1d4] ss:$8 sps:$4 sm:$0xff]  }
  0x58   : > { %966 = vmatpush1.bf16.msra.mxu0 %v1360_v15  ;;  %v1402_v43 = vld [vmem:[%s1729_s5 + $0xd0] ss:$8 sps:$4 sm:$0xff]   ;;  %v1404_v45 = vld [vmem:[%s1729_s5 + $0xc4] ss:$8 sps:$4 sm:$0xff]   ;;  %v1408_v50 = vld [vmem:[%s1729_s5 + $0xc0] ss:$8 sps:$4 sm:$0xff]  }
  0x59   : > { %1007 = vmatpush1.bf16.msra.mxu1 %v1361_v16  ;;  %967 = vmatprep.subr.bf16.mxu0 %v1362_v17  ;;  %v1403_v44 = vld [vmem:[%s1729_s5 + $0x1d0] ss:$8 sps:$4 sm:$0xff]   ;;  %v1406_v46 = vld [vmem:[%s1729_s5 + $0x1c4] ss:$8 sps:$4 sm:$0xff]   ;;  %v1409_v51 = vld [vmem:[%s1729_s5 + $0x1c0] ss:$8 sps:$4 sm:$0xff]  }
  0x5a   : > { %1008 = vmatprep.subr.bf16.mxu1 %v1364_v18  ;;  %v559_v47 = vld [vmem:[%s1715_s26] sm:$0xff]  ;;  %v560_v49 = vld [vmem:[%s1715_s26 + $0x8] sm:$0xff]  ;;  %v1416_v57 = vld [vmem:[%s1729_s5 + $0xa4] ss:$8 sps:$4 sm:$0xff]   ;;  %p1277_p13 = scmp.ne.s32.totalorder %s1476_s14, 3 }
  0x5b   : > { %v1210_v48 = vcombine.high %v559_v47, %v559_v47  ;;  %v1212_v52 = vcombine.high %v560_v49, %v560_v49  ;;  %v1410_v53 = vld [vmem:[%s1729_s5 + $0xb4] ss:$8 sps:$4 sm:$0xff]   ;;  %v1414_v55 = vld [vmem:[%s1729_s5 + $0xb0] ss:$8 sps:$4 sm:$0xff]   ;;  %v1418_v58 = vld [vmem:[%s1729_s5 + $0x1a4] ss:$8 sps:$4 sm:$0xff]   ;;  %v1209_v5 = vcombine.low %v559_v47, %v559_v47  ;;  %v1211_v6 = vcombine.low %v560_v49, %v560_v49 }
  0x5c   : > { %968 = vmatpush1.bf16.msra.mxu0 %v1366_v19  ;;  %v1412_v54 = vld [vmem:[%s1729_s5 + $0x1b4] ss:$8 sps:$4 sm:$0xff]   ;;  %v1415_v56 = vld [vmem:[%s1729_s5 + $0x1b0] ss:$8 sps:$4 sm:$0xff]   ;;  %v1420_v59 = vld [vmem:[%s1729_s5 + $0xa0] ss:$8 sps:$4 sm:$0xff]  }
  0x5d   : > { %1009 = vmatpush1.bf16.msra.mxu1 %v1367_v20  ;;  %969 = vmatprep.subr.bf16.mxu0 %v1368_v21  ;;  %v1421_v60 = vld [vmem:[%s1729_s5 + $0x1a0] ss:$8 sps:$4 sm:$0xff]   ;;  %v1422_v61 = vld [vmem:[%s1729_s5 + $0x94] ss:$8 sps:$4 sm:$0xff]   ;;  %v1426_v63 = vld [vmem:[%s1729_s5 + $0x90] ss:$8 sps:$4 sm:$0xff]  }
  0x5e   : > { %1010 = vmatprep.subr.bf16.mxu1 %v1370_v22  ;;  %991 = vmatprep.mubr.bf16.mxu0 %v1210_v48  ;;  %v1424_v62 = vld [vmem:[%s1729_s5 + $0x194] ss:$8 sps:$4 sm:$0xff]   ;;  %v1427_v0 = vld [vmem:[%s1729_s5 + $0x190] ss:$8 sps:$4 sm:$0xff]   ;;  %v1428_v1 = vld [vmem:[%s1729_s5 + $0x84] ss:$8 sps:$4 sm:$0xff]  }
  0x5f   : > { %1032 = vmatprep.mubr.bf16.mxu1 %v1212_v52  ;;  %v1430_v2 = vld [vmem:[%s1729_s5 + $0x184] ss:$8 sps:$4 sm:$0xff]   ;;  %v1432_v3 = vld [vmem:[%s1729_s5 + $0x80] ss:$8 sps:$4 sm:$0xff]   ;;  %v557_v8 = vld [vmem:[#allocation2] sm:$0xff] }
  0x60   : > { %970 = vmatpush1.bf16.msra.mxu0 %v1372_v23  ;;  %v1433_v4 = vld [vmem:[%s1729_s5 + $0x180] ss:$8 sps:$4 sm:$0xff]   ;;  %v558_v12 = vld [vmem:[#allocation2 + $0x8] sm:$0xff] }
  0x61   : > { %1011 = vmatpush1.bf16.msra.mxu1 %v1373_v24  ;;  %971 = vmatprep.subr.bf16.mxu0 %v1374_v25 }
  0x62   : > { %1012 = vmatprep.subr.bf16.mxu1 %v1376_v26 }
  0x64   : > { %972 = vmatpush1.bf16.msra.mxu0 %v1378_v27 }
  0x65   : > { %1013 = vmatpush1.bf16.msra.mxu1 %v1379_v28  ;;  %973 = vmatprep.subr.bf16.mxu0 %v1380_v29 }
  0x66   : > { %1014 = vmatprep.subr.bf16.mxu1 %v1382_v30 }
  0x68   : > { %974 = vmatpush1.bf16.msra.mxu0 %v1384_v31 }
  0x69   : > { %1015 = vmatpush1.bf16.msra.mxu1 %v1385_v32  ;;  %975 = vmatprep.subr.bf16.mxu0 %v1386_v33 }
  0x6a   : > { %1016 = vmatprep.subr.bf16.mxu1 %v1388_v34 }
  0x6c   : > { %976 = vmatpush2.bf16.msra.mxu0 %v1390_v35 }
  0x6d   : > { %1017 = vmatpush2.bf16.msra.mxu1 %v1391_v36  ;;  %977 = vmatprep.subr.bf16.mxu0 %v1392_v37 }
  0x6e   : > { %1018 = vmatprep.subr.bf16.mxu1 %v1394_v38 }
  0x70   : > { %978 = vmatpush2.bf16.msra.mxu0 %v1396_v39 }
  0x71   : > { %1019 = vmatpush2.bf16.msra.mxu1 %v1397_v40  ;;  %979 = vmatprep.subr.bf16.mxu0 %v1398_v41 }
  0x72   : > { %1020 = vmatprep.subr.bf16.mxu1 %v1400_v42 }
  0x74   : > { %980 = vmatpush2.bf16.msra.mxu0 %v1402_v43 }
  0x75   : > { %1021 = vmatpush2.bf16.msra.mxu1 %v1403_v44  ;;  %981 = vmatprep.subr.bf16.mxu0 %v1404_v45 }
  0x76   : > { %1022 = vmatprep.subr.bf16.mxu1 %v1406_v46 }
  0x78   : > { %982 = vmatpush2.bf16.msra.mxu0 %v1408_v50 }
  0x79   : > { %1023 = vmatpush2.bf16.msra.mxu1 %v1409_v51  ;;  %983 = vmatprep.subr.bf16.mxu0 %v1410_v53 }
  0x7a   : > { %1024 = vmatprep.subr.bf16.mxu1 %v1412_v54 }
  0x7c   : > { %984 = vmatpush2.bf16.msra.mxu0 %v1414_v55 }
  0x7d   : > { %1025 = vmatpush2.bf16.msra.mxu1 %v1415_v56  ;;  %985 = vmatprep.subr.bf16.mxu0 %v1416_v57 }
  0x7e   : > { %1026 = vmatprep.subr.bf16.mxu1 %v1418_v58 }
  0x80   : > { %986 = vmatpush2.bf16.msra.mxu0 %v1420_v59 }
  0x81   : > { %1027 = vmatpush2.bf16.msra.mxu1 %v1421_v60  ;;  %987 = vmatprep.subr.bf16.mxu0 %v1422_v61 }
  0x82   : > { %1028 = vmatprep.subr.bf16.mxu1 %v1424_v62 }
  0x84   : > { %988 = vmatpush2.bf16.msra.mxu0 %v1426_v63 }
  0x85   : > { %1029 = vmatpush2.bf16.msra.mxu1 %v1427_v0  ;;  %989 = vmatprep.subr.bf16.mxu0 %v1428_v1 }
  0x86   : > { %1030 = vmatprep.subr.bf16.mxu1 %v1430_v2 }
  0x88   : > { %990 = vmatpush2.bf16.msra.mxu0 %v1432_v3 }
  0x89   : > { %1031 = vmatpush2.bf16.msra.mxu1 %v1433_v4 }
  0x8b   : > { %992 = vmatmul.mubr.bf16.vlgmr.msra.gmra.mxu0 %v1209_v5 }
  0x8c   : > { %1033 = vmatmul.mubr.bf16.vlgmr.msra.gmra.mxu1 %v1211_v6 }
 0x14b   : > { %v993_v7 = vpop.f32.mrf.mxu0 }
 0x14c   : > { %v1034_v9 = vpop.f32.mrf.mxu1 }
 0x14d   : > { %v1035_v10 = vadd.f32 %v1034_v9, %v993_v7  ;;  %v995_v11 = vpop.f32.mrf.mxu0 }
 0x14e   : > { %v1036_v13 = vpop.f32.mrf.mxu1 }
 0x14f   : > { %v1041_v14 = vadd.f32 %v1035_v10, %v557_v8  ;;  %v1037_v15 = vadd.f32 %v1036_v13, %v995_v11  ;;  %v997_v16 = vpop.f32.mrf.mxu0  ;;  %1048 = sbr.rel (%p1277_p13) target bundleno = 353 (0x161), region = 78 }
 0x150   : > { %v1038_v17 = vpop.f32.mrf.mxu1 }
 0x151   : > { %1043 = vst [vmem:[#allocation2] sm:$0xff] %v1041_v14  ;;  %v1042_v18 = vadd.f32 %v1037_v15, %v558_v12  ;;  %v998_v19 = vpop.f32.mrf.mxu0 }
 0x152   : > { %v1039_v20 = vpop.f32.mrf.mxu1 }
 0x153   : > { %1044 = vst [vmem:[#allocation2 + $0x8] sm:$0xff] %v1042_v18 }
 0x154   : > { %v1053_v21 = vlaneseq  ;;  %v1051_v23 = vld [vmem:[%s539_s12] sm:$0x3] }
 0x156   : > { %v1054_v22 = vshrl.u32 %v1053_v21, 7 }
 0x158   : > { %v1055_v24 = vsub.s32 0, %v1054_v22  ;;  %v1059_v25 = vsub.s32 1, %v1054_v22  ;;  %v1049_v26 = vld [vmem:[#allocation2] sm:$0xff] }
 0x15a   : > { %v1050_v27 = vld [vmem:[#allocation2 + $0x8] sm:$0xff]  ;;  %v1056_v28 = vrot.slane %v1051_v23, %v1055_v24  ;;  %v1060_v29 = vrot.slane %v1051_v23, %v1059_v25 }
 0x15c   : > { %v1063_v30 = vadd.f32 %v1056_v28, %v1049_v26  ;;  %v1064_v31 = vadd.f32 %v1060_v29, %v1050_v27 }
 0x15e   : > { %v1065_v32 = vmax.f32 %v1063_v30, 0.0  ;;  %v1066_v33 = vmax.f32 %v1064_v31, 0.0 }
 0x160   : > { %1067 = vst [vmem:[%s1727_s15] sm:$0xff] %v1065_v32  ;;  %1068 = vst [vmem:[%s1727_s15 + $0x8] sm:$0xff] %v1066_v33 }
 0x161 PF: > { %s13_s18 = sadd.s32 1, %s1492_s18   ;;  %s1831_s12 = smov %s1472_s13 }
 0x162   : > { %p10_p0 = scmp.ge.s32.totalorder %s13_s18, 10   ;;  %s1832_s13 = smov %s1566_s25 }
 0x163   : > { %s1833_s14 = smov %s1484_s16  ;;  %s1834_s15 = smov %s1488_s17 }
 0x164   : > { %s1835_s16 = smov %s1838_s19  ;;  %s1836_s17 = smov %s1842_s20 }
 0x165   :  { %12 = sbr.rel (!%p10_p0) target bundleno = 4 (0x4), region = 119 }

// kernel: mammography_forward.109
= control target key start
LH: loop header
LB: loop body
LE: loop exit
PB: predicated region body
PF: predicated region fallthrough
CT: control target
= control target key end

     0   :  { %s940_s12 = smov 0   ;;  %s942_s13 = smov 0   ;;  %s1023_s0 = inlined_call_operand.vmem [shape: bf16[8,2048], index: 0, kind: input, shape index: {}]   ;;  %s1024_s1 = inlined_call_operand.vmem [shape: bf16[2048,128], index: 1, kind: input, shape index: {}]   ;;  %s1025_s2 = inlined_call_operand.vmem [shape: f32[1,128], index: 2, kind: input, shape index: {}]   ;;  %s1026_s3 = inlined_call_operand.vmem [shape: f32[8,128], index: 3, kind: output, shape index: {}]  }
   0x1   :  { %s944_s14 = smov 0  }
   0x2 LB: > { %s25_s15 = sadd.s32 1, %s913_s13  ;;  %p743_p0 = scmp.ge.s32.totalorder %s917_s14, 1  ;;  %s917_s14 = sphi %s944_s14, %s13_s14   ;;  %s913_s13 = sphi %s942_s13, %s1028_s13   ;;  %s909_s12 = sphi %s940_s12, %s1027_s12  }
   0x3   : > { %p26_p1 = scmp.ge.s32.totalorder %s25_s15, 4  ;;  %p189_p2 = scmp.lt.s32.totalorder %s917_s14, 5 }
   0x5   : > { %s1030_s15 = smov (%p26_p1, %s25_s15), 0  ;;  %p190_p3 = pnand %p743_p0, %p189_p2 }
   0x6   : > { %s744_s16 = sshll.u32 (!%p190_p3), %s909_s12, 2  ;;  %s746_s17 = sshll.u32 (!%p190_p3), %s909_s12, 6 }
   0x7   : > { %193 = sbr.rel (%p190_p3) target bundleno = 269 (0x10d), region = 32  ;;  %p233_p4 = scmp.lt.s32.totalorder (!%p190_p3), %s744_s16, 15 }
   0x8   : > { %p241_p5 = scmp.lt.s32.totalorder (!%p190_p3), %s746_s17, 255  ;;  %p748_p6 = scmp.ne.s32.totalorder (!%p190_p3), %s909_s12, 0 }
   0xc   : > { %s1032_s16 = smov (!%p233_p4, %s744_s16), 15  ;;  %s1034_s17 = smov (!%p241_p5, %s746_s17), 255 }
   0xd   : > { %s745_s18 = sshll.u32 %s1032_s16, 2  ;;  %s747_s22 = sshll.u32 %s1034_s17, 2 }
   0xe   : > { %s965_s21 = scalar_lea.vmem %s1023_s0, %s745_s18  ;;  %s970_s25 = scalar_lea.vmem %s1024_s1, %s747_s22 }
   0xf   : > { %263 = sbr.rel (%p748_p6) target bundleno = 22 (0x16), region = 36 }
  0x14   : > { %v919_v0 = vmov 0.0  }
  0x15   : > { %264 = vst [vmem:[#allocation2] sm:$0xff] %v919_v0 }
  0x16 PF: > { %v859_v1 = vld [vmem:[%s970_s25 + $0x78] sm:$0xff]   ;;  %v863_v5 = vld [vmem:[%s970_s25 + $0x70] sm:$0xff]   ;;  %v867_v9 = vld [vmem:[%s970_s25 + $0x68] sm:$0xff]   ;;  %p785_p7 = scmp.ne.s32.totalorder %s909_s12, 3 }
  0x17   : > { %v860_v2 = vld [vmem:[%s970_s25 + $0xf8] sm:$0xff]   ;;  %790 = vmatprep.subr.bf16.mxu0 %v859_v1  ;;  %v864_v6 = vld [vmem:[%s970_s25 + $0xf0] sm:$0xff]   ;;  %v868_v10 = vld [vmem:[%s970_s25 + $0xe8] sm:$0xff]  }
  0x18   : > { %v861_v3 = vld [vmem:[%s970_s25 + $0x38] sm:$0xff]   ;;  %812 = vmatprep.subr.bf16.mxu1 %v860_v2  ;;  %v865_v7 = vld [vmem:[%s970_s25 + $0x30] sm:$0xff]   ;;  %v869_v11 = vld [vmem:[%s970_s25 + $0x28] sm:$0xff]  }
  0x19   : > { %v862_v4 = vld [vmem:[%s970_s25 + $0xb8] sm:$0xff]   ;;  %791 = vmatpush3.bf16.msra.mxu0 %v861_v3  ;;  %v866_v8 = vld [vmem:[%s970_s25 + $0xb0] sm:$0xff]   ;;  %v870_v12 = vld [vmem:[%s970_s25 + $0xa8] sm:$0xff]  }
  0x1a   : > { %813 = vmatpush3.bf16.msra.mxu1 %v862_v4  ;;  %792 = vmatprep.subr.bf16.mxu0 %v863_v5  ;;  %v871_v13 = vld [vmem:[%s970_s25 + $0x60] sm:$0xff]   ;;  %v875_v17 = vld [vmem:[%s970_s25 + $0x58] sm:$0xff]   ;;  %v879_v21 = vld [vmem:[%s970_s25 + $0x50] sm:$0xff]  }
  0x1b   : > { %814 = vmatprep.subr.bf16.mxu1 %v864_v6  ;;  %v872_v14 = vld [vmem:[%s970_s25 + $0xe0] sm:$0xff]   ;;  %v876_v18 = vld [vmem:[%s970_s25 + $0xd8] sm:$0xff]   ;;  %v880_v22 = vld [vmem:[%s970_s25 + $0xd0] sm:$0xff]  }
  0x1c   : > { %v873_v15 = vld [vmem:[%s970_s25 + $0x20] sm:$0xff]   ;;  %v877_v19 = vld [vmem:[%s970_s25 + $0x18] sm:$0xff]   ;;  %v881_v23 = vld [vmem:[%s970_s25 + $0x10] sm:$0xff]  }
  0x1d   : > { %793 = vmatpush3.bf16.msra.mxu0 %v865_v7  ;;  %v874_v16 = vld [vmem:[%s970_s25 + $0xa0] sm:$0xff]   ;;  %v878_v20 = vld [vmem:[%s970_s25 + $0x98] sm:$0xff]   ;;  %v882_v24 = vld [vmem:[%s970_s25 + $0x90] sm:$0xff]  }
  0x1e   : > { %815 = vmatpush3.bf16.msra.mxu1 %v866_v8  ;;  %794 = vmatprep.subr.bf16.mxu0 %v867_v9  ;;  %v883_v25 = vld [vmem:[%s970_s25 + $0x48] sm:$0xff]   ;;  %v887_v29 = vld [vmem:[%s970_s25 + $0x40] sm:$0xff]  }
  0x1f   : > { %816 = vmatprep.subr.bf16.mxu1 %v868_v10  ;;  %v884_v26 = vld [vmem:[%s970_s25 + $0xc8] sm:$0xff]   ;;  %v888_v30 = vld [vmem:[%s970_s25 + $0xc0] sm:$0xff]  }
  0x20   : > { %v885_v27 = vld [vmem:[%s970_s25 + $0x8] sm:$0xff]   ;;  %v889_v31 = vld [vmem:[%s970_s25] sm:$0xff]  }
  0x21   : > { %795 = vmatpush3.bf16.msra.mxu0 %v869_v11  ;;  %v886_v28 = vld [vmem:[%s970_s25 + $0x88] sm:$0xff]   ;;  %v890_v32 = vld [vmem:[%s970_s25 + $0x80] sm:$0xff]  }
  0x22   : > { %817 = vmatpush3.bf16.msra.mxu1 %v870_v12  ;;  %796 = vmatprep.subr.bf16.mxu0 %v871_v13  ;;  %v266_v33 = vld [vmem:[%s965_s21] sm:$0xff]  ;;  %v267_v34 = vld [vmem:[%s965_s21 + $0x8] sm:$0xff] }
  0x23   : > { %818 = vmatprep.subr.bf16.mxu1 %v872_v14  ;;  %v749_v35 = vcombine.low %v266_v33, %v266_v33  ;;  %v750_v36 = vcombine.high %v266_v33, %v266_v33  ;;  %v751_v37 = vcombine.low %v267_v34, %v267_v34  ;;  %v752_v38 = vcombine.high %v267_v34, %v267_v34  ;;  %v265_v45 = vld [vmem:[#allocation2] sm:$0xff] }
  0x25   : > { %797 = vmatpush3.bf16.msra.mxu0 %v873_v15  ;;  %570 = vmatprep.mubr.bf16.mxu0 %v750_v36 }
  0x26   : > { %819 = vmatpush3.bf16.msra.mxu1 %v874_v16  ;;  %798 = vmatprep.subr.bf16.mxu0 %v875_v17 }
  0x27   : > { %820 = vmatprep.subr.bf16.mxu1 %v876_v18  ;;  %610 = vmatprep.mubr.bf16.mxu1 %v752_v38 }
  0x29   : > { %799 = vmatpush3.bf16.msra.mxu0 %v877_v19 }
  0x2a   : > { %821 = vmatpush3.bf16.msra.mxu1 %v878_v20  ;;  %800 = vmatprep.subr.bf16.mxu0 %v879_v21 }
  0x2b   : > { %822 = vmatprep.subr.bf16.mxu1 %v880_v22 }
  0x2d   : > { %801 = vmatpush3.bf16.msra.mxu0 %v881_v23 }
  0x2e   : > { %823 = vmatpush3.bf16.msra.mxu1 %v882_v24  ;;  %802 = vmatprep.subr.bf16.mxu0 %v883_v25 }
  0x2f   : > { %824 = vmatprep.subr.bf16.mxu1 %v884_v26 }
  0x31   : > { %803 = vmatpush3.bf16.msra.mxu0 %v885_v27 }
  0x32   : > { %825 = vmatpush3.bf16.msra.mxu1 %v886_v28  ;;  %804 = vmatprep.subr.bf16.mxu0 %v887_v29 }
  0x33   : > { %826 = vmatprep.subr.bf16.mxu1 %v888_v30 }
  0x35   : > { %805 = vmatpush3.bf16.msra.mxu0 %v889_v31 }
  0x36   : > { %827 = vmatpush3.bf16.msra.mxu1 %v890_v32 }
  0x38   : > { %571 = vmatmul.mubr.bf16.vlgmr.msra.gmra.mxu0 %v749_v35 }
  0x39   : > { %611 = vmatmul.mubr.bf16.vlgmr.msra.gmra.mxu1 %v751_v37 }
  0xf8   : > { %v806_v39 = vpop.f32.mrf.mxu0 }
  0xf9   : > { %v828_v40 = vpop.f32.mrf.mxu1 }
  0xfa   : > { %v807_v41 = vpop.f32.mrf.mxu0 }
  0xfb   : > { %v829_v42 = vpop.f32.mrf.mxu1  ;;  %v808_v43 = vadd.f32 %v807_v41, %v806_v39 }
  0xfc   : > { %v830_v44 = vadd.f32 %v829_v42, %v828_v40  ;;  %v809_v46 = vpop.f32.mrf.mxu0 }
  0xfd   : > { %v831_v47 = vpop.f32.mrf.mxu1 }
  0xfe   : > { %v613_v48 = vadd.f32 %v830_v44, %v808_v43  ;;  %v810_v49 = vpop.f32.mrf.mxu0  ;;  %623 = sbr.rel (%p785_p7) target bundleno = 269 (0x10d), region = 40 }
  0xff   : > { %v832_v50 = vpop.f32.mrf.mxu1 }
 0x100   : > { %v618_v51 = vadd.f32 %v613_v48, %v265_v45 }
 0x102   : > { %619 = vst [vmem:[#allocation2] sm:$0xff] %v618_v51 }
 0x103   : > { %v786_v53 = vld [vmem:[%s1025_s2] ss:$0 sm:$0xff] }
 0x109   : > { %v624_v52 = vld [vmem:[#allocation2] sm:$0xff] }
 0x10a   : > { %v632_v54 = vadd.f32 %v786_v53, %v624_v52 }
 0x10c   : > { %633 = vst [vmem:[%s1026_s3] sm:$0xff] %v632_v54 }
 0x10d PF: > { %s13_s14 = sadd.s32 1, %s917_s14   ;;  %s1027_s12 = smov %s913_s13 }
 0x10e   : > { %p10_p8 = scmp.ge.s32.totalorder %s13_s14, 6   ;;  %s1028_s13 = smov %s1030_s15 }
 0x110   :  { %12 = sbr.rel (!%p10_p8) target bundleno = 2 (0x2), region = 76 }

// kernel: mammography_forward.108
= control target key start
LH: loop header
LB: loop body
LE: loop exit
PB: predicated region body
PF: predicated region fallthrough
CT: control target
= control target key end

     0   :  { %s112_s0 = inlined_call_operand.vmem [shape: f32[2,1,2048], index: 0, kind: input, shape index: {}]   ;;  %s113_s1 = inlined_call_operand.vmem [shape: f32[2,2048], index: 1, kind: output, shape index: {}]  }
   0x1   :  { %v8_v0 = vld [vmem:[%s112_s0] sm:$0xff]  ;;  %v10_v1 = vld [vmem:[%s112_s0 + $0x10] sm:$0xff]  ;;  %v9_v4 = vld [vmem:[%s112_s0 + $0x8] sm:$0xff] }
   0x2   :  { %v68_v2 = vld [vmem:[%s112_s0] ss:$16 sps:$4 sm:$0xff]   ;;  %v21_v3 = vcombine.high %v8_v0, %v10_v1  ;;  %v11_v5 = vld [vmem:[%s112_s0 + $0x18] sm:$0xff] }
   0x3   :  { %v70_v6 = vld [vmem:[%s112_s0 + $0x8] ss:$16 sps:$4 sm:$0xff]   ;;  %64 = vst.sshfl [vmem:[%s113_s1] sm:$0xff pattern:$0x75316420] %v68_v2  ;;  %v37_v7 = vcombine.high %v9_v4, %v11_v5 }
   0x4   :  { %65 = vst.sshfl [vmem:[%s113_s1 + $0x8] sm:$0xff pattern:$0x75316420] %v21_v3  ;;  %66 = vst.sshfl [vmem:[%s113_s1 + $0x10] sm:$0xff pattern:$0x75316420] %v70_v6 }
   0x5   :  { %67 = vst.sshfl [vmem:[%s113_s1 + $0x18] sm:$0xff pattern:$0x75316420] %v37_v7 }

</bundles_post_ra>
